<compile_context>
chip_gen: v6e
topology: v6e:2x2x1
jax: 0.10.0
libtpu: 0.0.40
codegen_flags: <defaults>
</compile_context>

<pallas_src>
import functools
import math

import jax
import jax.numpy as jnp
from jax import lax
from jax.experimental import pallas as pl
from jax.experimental.pallas import tpu as pltpu

RANDOM_SIZE = 10  # TODO(synk): Config.random_size is not defined in the source module; using 10.
BN_EPS = 1e-5


# ---------------------------------------------------------------------------
# Tile selection helpers (all derived from *padded* shapes so the packed
# weight array alone determines the tiling — no extra static metadata needed).
# ---------------------------------------------------------------------------
def _round_up(x, m):
    return (x + m - 1) // m * m


def _choose_tk(Kp):
    # Kp is always a multiple of 128; pick the largest tile that divides it.
    for cand in (1024, 768, 512, 384, 256, 128):
        if Kp % cand == 0:
            return cand
    return 128


def _choose_tn(Np):
    # Keep >= 2 N-blocks for the big FC layers (v7x megacore sharding).
    if Np >= 1024 and Np % 512 == 0:
        return 512
    if Np >= 512 and Np % 256 == 0:
        return 256
    return 128


def _choose_tm(M):
    # Single M block for modest M; 256-row tiles for the big conv im2col
    # matmuls (feeds the 256x256 MXU on v6e/v7x better than 128).
    return _round_up(M, 8) if M <= 384 else 256


# ---------------------------------------------------------------------------
# Fused Pallas matmul kernel:  O = act(A @ B * scale + shift)
# A, B are bf16 (MXU-native); accumulation + epilogue are f32.
# scale/shift are per output column (folded bias + BatchNorm affine).
# ---------------------------------------------------------------------------
def _fused_matmul_kernel(a_ref, b_ref, s_ref, t_ref, o_ref, acc_ref, *, relu):
    @pl.when(pl.program_id(2) == 0)
    def _():
        acc_ref[...] = jnp.zeros_like(acc_ref)

    acc_ref[...] += jnp.dot(a_ref[...], b_ref[...],
                            preferred_element_type=jnp.float32)

    @pl.when(pl.program_id(2) == pl.num_programs(2) - 1)
    def _():
        y = acc_ref[...] * s_ref[...] + t_ref[...]
        if relu:
            y = jnp.maximum(y, 0.0)
        o_ref[...] = y.astype(o_ref.dtype)


def fused_matmul(a, w_packed, scale, shift, relu):
    """a: (M, K) activations (any float dtype).
    w_packed: (Kp, Np) bf16 pre-packed weight matrix (K/N padded to 128).
    scale/shift: (N,) f32 folded bias + BN.
    Returns act(a @ w * scale + shift) with shape (M, N), f32."""
    M, K = a.shape
    Kp, Np = w_packed.shape
    N = scale.shape[-1]

    tk = _choose_tk(Kp)
    tn = _choose_tn(Np)
    tm = _choose_tm(M)
    Mp = _round_up(M, tm)

    a_p = jnp.pad(a.astype(jnp.bfloat16), ((0, Mp - M), (0, Kp - K)))
    s_p = jnp.pad(scale.astype(jnp.float32).reshape(1, N), ((0, 0), (0, Np - N)))
    t_p = jnp.pad(shift.astype(jnp.float32).reshape(1, N), ((0, 0), (0, Np - N)))

    grid = (Mp // tm, Np // tn, Kp // tk)
    kernel = functools.partial(_fused_matmul_kernel, relu=relu)

    out = pl.pallas_call(
        kernel,
        out_shape=jax.ShapeDtypeStruct((Mp, Np), jnp.float32),
        grid_spec=pltpu.PrefetchScalarGridSpec(
            num_scalar_prefetch=0,
            grid=grid,
            in_specs=[
                pl.BlockSpec((tm, tk), lambda i, j, k: (i, k)),
                pl.BlockSpec((tk, tn), lambda i, j, k: (k, j)),
                pl.BlockSpec((1, tn), lambda i, j, k: (0, j)),
                pl.BlockSpec((1, tn), lambda i, j, k: (0, j)),
            ],
            out_specs=pl.BlockSpec((tm, tn), lambda i, j, k: (i, j)),
            scratch_shapes=[pltpu.VMEM((tm, tn), jnp.float32)],
        ),
        compiler_params=pltpu.CompilerParams(
            dimension_semantics=("parallel", "parallel", "arbitrary")),
    )(a_p, w_packed, s_p, t_p)
    return out[:M, :N]


# ---------------------------------------------------------------------------
# JAX glue: im2col, pooling, affine grid, bilinear grid sample
# ---------------------------------------------------------------------------
def im2col(x, kh, kw, stride, pad):
    """x: NHWC -> patches (N*OH*OW, KH*KW*C), plus (N, OH, OW)."""
    if pad:
        x = jnp.pad(x, ((0, 0), (pad, pad), (pad, pad), (0, 0)))
    n, h, w, c = x.shape
    oh = (h - kh) // stride + 1
    ow = (w - kw) // stride + 1
    cols = []
    for i in range(kh):
        for j in range(kw):
            cols.append(x[:, i:i + stride * oh:stride, j:j + stride * ow:stride, :])
    patches = jnp.stack(cols, axis=3)  # (n, oh, ow, kh*kw, c)
    return patches.reshape(n * oh * ow, kh * kw * c), (n, oh, ow)


def maxpool(x, k, s):
    return lax.reduce_window(x, -jnp.inf, lax.max,
                             (1, k, k, 1), (1, s, s, 1), "VALID")


def avgpool(x, k):
    summed = lax.reduce_window(x, 0.0, lax.add,
                               (1, k, k, 1), (1, k, k, 1), "VALID")
    return summed / float(k * k)


def affine_grid(theta, size):
    """F.affine_grid with align_corners=False (current PyTorch default)."""
    n, c, h, w = size
    xs = (2.0 * jnp.arange(w, dtype=jnp.float32) + 1.0) / w - 1.0
    ys = (2.0 * jnp.arange(h, dtype=jnp.float32) + 1.0) / h - 1.0
    gx, gy = jnp.meshgrid(xs, ys)  # (h, w)
    base = jnp.stack([gx, gy, jnp.ones_like(gx)], axis=-1)  # (h, w, 3)
    return jnp.einsum("hwk,nck->nhwc", base, theta)  # (n, h, w, 2) = (x, y)


def grid_sample_bilinear(x, grid):
    """F.grid_sample(mode='bilinear', padding_mode='zeros', align_corners=False).
    x: (N, C, H, W), grid: (N, Ho, Wo, 2) normalized coords."""
    n, c, h, w = x.shape
    gx, gy = grid[..., 0], grid[..., 1]
    ix = ((gx + 1.0) * w - 1.0) * 0.5
    iy = ((gy + 1.0) * h - 1.0) * 0.5
    ix0 = jnp.floor(ix)
    iy0 = jnp.floor(iy)
    ix1 = ix0 + 1.0
    iy1 = iy0 + 1.0
    wx1 = ix - ix0
    wx0 = 1.0 - wx1
    wy1 = iy - iy0
    wy0 = 1.0 - wy1

    def gather(img, yy, xx):
        valid = ((xx >= 0) & (xx <= w - 1) & (yy >= 0) & (yy <= h - 1))
        xc = jnp.clip(xx, 0, w - 1).astype(jnp.int32)
        yc = jnp.clip(yy, 0, h - 1).astype(jnp.int32)
        v = img[:, yc, xc]  # (C, Ho, Wo)
        return v * valid[None].astype(img.dtype)

    def per_sample(img, iy0_, ix0_, iy1_, ix1_, wy0_, wx0_, wy1_, wx1_):
        v00 = gather(img, iy0_, ix0_)
        v01 = gather(img, iy0_, ix1_)
        v10 = gather(img, iy1_, ix0_)
        v11 = gather(img, iy1_, ix1_)
        return (v00 * (wy0_ * wx0_)[None] + v01 * (wy0_ * wx1_)[None]
                + v10 * (wy1_ * wx0_)[None] + v11 * (wy1_ * wx1_)[None])

    return jax.vmap(per_sample)(x, iy0, ix0, iy1, ix1, wy0, wx0, wy1, wx1)


# ---------------------------------------------------------------------------
# Layer wrappers
# ---------------------------------------------------------------------------
def conv_block(x, layer, kh, kw, stride, pad, relu):
    """Heavy conv via im2col + fused Pallas matmul.  x: NHWC."""
    patches, (n, oh, ow) = im2col(x, kh, kw, stride, pad)
    y = fused_matmul(patches, layer["w"], layer["scale"], layer["shift"], relu)
    return y.reshape(n, oh, ow, -1)


def linear_block(x, layer, relu):
    """Heavy linear via fused Pallas matmul.  x: (N, in)."""
    return fused_matmul(x, layer["w"], layer["scale"], layer["shift"], relu)


def small_conv_block(x, layer, kh, kw, stride, pad, relu):
    """Tiny conv (localization net): plain XLA dot, no lane padding waste."""
    patches, (n, oh, ow) = im2col(x, kh, kw, stride, pad)
    y = patches @ layer["w"] * layer["scale"] + layer["shift"]
    if relu:
        y = jnp.maximum(y, 0.0)
    return y.reshape(n, oh, ow, -1)


def small_linear_block(x, layer, relu):
    y = x @ layer["w"] * layer["scale"] + layer["shift"]
    return jnp.maximum(y, 0.0) if relu else y


# ---------------------------------------------------------------------------
# BN folding + one-time weight packing (hoisted out of the forward pass)
# ---------------------------------------------------------------------------
def _fold_bn(bias, bn):
    if bn is None:
        return jnp.ones_like(bias), bias
    s = bn["gamma"] / jnp.sqrt(bn["var"] + BN_EPS)
    t = (bias - bn["mean"]) * s + bn["beta"]
    return s, t


def pack_params(p):
    """One-time: transpose weights to matmul layout, pad K/N to 128-multiples,
    cast to bf16 (heavy layers only), and fold bias+BN into scale/shift."""

    def big_conv(wk, bk, bnk):
        w = p[wk]
        oc, ic, kh, kw = w.shape
        K, N = kh * kw * ic, oc
        Kp, Np = _round_up(K, 128), _round_up(N, 128)
        wmat = jnp.transpose(w, (2, 3, 1, 0)).reshape(K, N)
        s, t = _fold_bn(p[bk], p[bnk] if bnk else None)
        return dict(w=jnp.pad(wmat, ((0, Kp - K), (0, Np - N))).astype(jnp.bfloat16),
                    scale=s.astype(jnp.float32), shift=t.astype(jnp.float32))

    def big_linear(wk, bk, bnk):
        w = p[wk]
        out_f, in_f = w.shape
        Kp, Np = _round_up(in_f, 128), _round_up(out_f, 128)
        s, t = _fold_bn(p[bk], p[bnk] if bnk else None)
        return dict(w=jnp.pad(w.T, ((0, Kp - in_f), (0, Np - out_f))).astype(jnp.bfloat16),
                    scale=s.astype(jnp.float32), shift=t.astype(jnp.float32))

    def small_conv(wk, bk, bnk):
        w = p[wk]
        oc, ic, kh, kw = w.shape
        wmat = jnp.transpose(w, (2, 3, 1, 0)).reshape(kh * kw * ic, oc)
        s, t = _fold_bn(p[bk], p[bnk] if bnk else None)
        return dict(w=wmat.astype(jnp.float32), scale=s, shift=t)

    def small_linear(wk, bk, bnk):
        s, t = _fold_bn(p[bk], p[bnk] if bnk else None)
        return dict(w=p[wk].T.astype(jnp.float32), scale=s, shift=t)

    return {
        "conv1": big_conv("conv1_w", "conv1_b", "conv1_bn"),
        "conv2": big_conv("conv2_w", "conv2_b", "conv2_bn"),
        "conv3": big_conv("conv3_w", "conv3_b", "conv3_bn"),
        "conv4": big_conv("conv4_w", "conv4_b", "conv4_bn"),
        "conv5": big_conv("conv5_w", "conv5_b", "conv5_bn"),
        "fc1": big_linear("fc1_w", "fc1_b", "fc1_bn"),
        "fc2": big_linear("fc2_w", "fc2_b", "fc2_bn"),
        "fc3": small_linear("fc3_w", "fc3_b", None),
        "loc1": small_conv("loc1_w", "loc1_b", "loc1_bn"),
        "loc2": small_conv("loc2_w", "loc2_b", "loc2_bn"),
        "loc3": small_conv("loc3_w", "loc3_b", None),
        "floc1": small_linear("floc1_w", "floc1_b", None),
        "floc2": small_linear("floc2_w", "floc2_b", None),
    }


# ---------------------------------------------------------------------------
# Parameter initialization (deterministic, matches module's init scheme)
# ---------------------------------------------------------------------------
def init_params(key):
    keys = list(jax.random.split(key, 64))
    kit = iter(keys)

    def conv_params(oc, ic, kh, kw):
        kw_, kb_ = jax.random.split(next(kit))
        fan_in = ic * kh * kw
        fan_out = oc * kh * kw
        std = math.sqrt(2.0 / (fan_in + fan_out))  # xavier_normal_
        w = std * jax.random.normal(kw_, (oc, ic, kh, kw), jnp.float32)
        bound = 1.0 / math.sqrt(fan_in)
        b = jax.random.uniform(kb_, (oc,), jnp.float32, -bound, bound)
        return w, b

    def linear_params(out_f, in_f):
        kw_, kb_ = jax.random.split(next(kit))
        bound = 1.0 / math.sqrt(in_f)
        w = jax.random.uniform(kw_, (out_f, in_f), jnp.float32, -bound, bound)
        b = jax.random.uniform(kb_, (out_f,), jnp.float32, -bound, bound)
        return w, b

    def bn_params(c):
        return dict(gamma=jnp.ones((c,), jnp.float32),
                    beta=jnp.zeros((c,), jnp.float32),
                    mean=jnp.zeros((c,), jnp.float32),
                    var=jnp.ones((c,), jnp.float32))

    p = {}
    # main trunk
    p["conv1_w"], p["conv1_b"] = conv_params(96, 1, 11, 11);   p["conv1_bn"] = bn_params(96)
    p["conv2_w"], p["conv2_b"] = conv_params(256, 96, 5, 5);   p["conv2_bn"] = bn_params(256)
    p["conv3_w"], p["conv3_b"] = conv_params(384, 256, 3, 3);  p["conv3_bn"] = bn_params(384)
    p["conv4_w"], p["conv4_b"] = conv_params(384, 384, 3, 3);  p["conv4_bn"] = bn_params(384)
    p["conv5_w"], p["conv5_b"] = conv_params(256, 384, 3, 3);  p["conv5_bn"] = bn_params(256)
    p["fc1_w"], p["fc1_b"] = linear_params(4096, 256 * 3 * 3); p["fc1_bn"] = bn_params(4096)
    p["fc2_w"], p["fc2_b"] = linear_params(4096, 4096);        p["fc2_bn"] = bn_params(4096)
    p["fc3_w"], p["fc3_b"] = linear_params(RANDOM_SIZE, 4096)
    # localization (STN)
    p["loc1_w"], p["loc1_b"] = conv_params(16, 1, 11, 11);     p["loc1_bn"] = bn_params(16)
    p["loc2_w"], p["loc2_b"] = conv_params(32, 16, 5, 5);      p["loc2_bn"] = bn_params(32)
    p["loc3_w"], p["loc3_b"] = conv_params(64, 32, 3, 3)
    p["floc1_w"], p["floc1_b"] = linear_params(32, 64)
    # fc_loc[2]: zero weight, identity-transform bias
    p["floc2_w"] = jnp.zeros((6, 32), jnp.float32)
    p["floc2_b"] = jnp.array([1.0, 0.0, 0.0, 0.0, 1.0, 0.0], jnp.float32)
    return p


# ---------------------------------------------------------------------------
# Forward pass (takes the pre-packed params)
# ---------------------------------------------------------------------------
def forward(packed, x):
    p = packed
    # ---------------- Spatial Transformer (tiny layers -> plain XLA) --------
    xh = jnp.transpose(x, (0, 2, 3, 1))  # NCHW -> NHWC
    l = small_conv_block(xh, p["loc1"], 11, 11, 4, 0, relu=False)
    l = maxpool(l, 2, 2)
    l = jnp.maximum(l, 0.0)
    l = small_conv_block(l, p["loc2"], 5, 5, 1, 0, relu=False)
    l = maxpool(l, 2, 2)
    l = jnp.maximum(l, 0.0)
    l = small_conv_block(l, p["loc3"], 3, 3, 1, 1, relu=False)
    l = avgpool(l, 4)
    l = jnp.maximum(l, 0.0)
    xs = l.reshape(l.shape[0], -1)  # (N, 64) — spatial is 1x1 so layout-invariant
    h = small_linear_block(xs, p["floc1"], relu=True)
    theta = small_linear_block(h, p["floc2"], relu=False)
    theta = theta.reshape(-1, 2, 3)
    grid = affine_grid(theta, x.shape)
    xt = grid_sample_bilinear(x, grid)  # NCHW

    # ---------------- Main trunk (fused Pallas matmuls) ----------------
    y = jnp.transpose(xt, (0, 2, 3, 1))  # NHWC
    y = conv_block(y, p["conv1"], 11, 11, 4, 0, relu=True)
    y = maxpool(y, 3, 2)
    y = conv_block(y, p["conv2"], 5, 5, 1, 2, relu=True)
    y = maxpool(y, 2, 2)
    y = conv_block(y, p["conv3"], 3, 3, 1, 1, relu=True)
    y = conv_block(y, p["conv4"], 3, 3, 1, 1, relu=True)
    y = conv_block(y, p["conv5"], 3, 3, 1, 1, relu=True)
    y = maxpool(y, 2, 2)
    # PyTorch flattens NCHW order: transpose back before reshape.
    y = jnp.transpose(y, (0, 3, 1, 2)).reshape(y.shape[0], -1)  # (N, 2304)
    # fc head (Dropout = identity in eval mode)
    y = linear_block(y, p["fc1"], relu=True)
    y = linear_block(y, p["fc2"], relu=True)
    y = small_linear_block(y, p["fc3"], relu=False)  # N=10 -> plain dot
    return y


if __name__ == "__main__":
    key = jax.random.PRNGKey(0)
    pkey, xkey = jax.random.split(key)
    params = init_params(pkey)
    # One-time weight packing (transpose/pad/bf16-cast/BN-fold) — hoisted out
    # of the per-forward path per the performance review.
    packed = pack_params(params)
    # 107 is the smallest spatial size consistent with the module's hard-coded
    # 256*3*3 fc input and the localization net's view(-1, 64).
    x = jax.random.normal(xkey, (2, 1, 107, 107), jnp.float32)
    fwd = jax.jit(forward)
    out = jax.block_until_ready(fwd(packed, x))
    assert out.shape == (2, RANDOM_SIZE), out.shape
    assert bool(jnp.all(jnp.isfinite(out)))
    print("KERNEL_OK")
</pallas_src>

<mosaic_0001>
module attributes {stable_mosaic.version = 11 : i64} {
  func.func @_fused_matmul_kernel(%arg0: i32, %arg1: i32, %arg2: i32, %arg3: memref<256x128xbf16, #tpu.memory_space<vmem>>, %arg4: memref<128x128xbf16, #tpu.memory_space<vmem>>, %arg5: memref<1x128xf32, #tpu.memory_space<vmem>>, %arg6: memref<1x128xf32, #tpu.memory_space<vmem>>, %arg7: memref<256x128xf32, #tpu.memory_space<vmem>>, %arg8: memref<256x128xf32, #tpu.memory_space<vmem>>) attributes {dimension_semantics = [#tpu.dimension_semantics<parallel>, #tpu.dimension_semantics<parallel>, #tpu.dimension_semantics<arbitrary>], iteration_bounds = array<i64: 5, 1, 1>, scalar_prefetch = 0 : i64, scratch_operands = 1 : i64, tpu.core_type = #tpu.core_type<tc>, window_params = [{transform_indices = @transform_0, window_bounds = array<i64: 256, 128>}, {transform_indices = @transform_1, window_bounds = array<i64: 128, 128>}, {transform_indices = @transform_2, window_bounds = array<i64: 1, 128>}, {transform_indices = @transform_3, window_bounds = array<i64: 1, 128>}, {transform_indices = @transform_4, window_bounds = array<i64: 256, 128>}]} {
    %c0_i32 = arith.constant 0 : i32
    %0 = arith.cmpi eq, %arg2, %c0_i32 : i32
    %1 = arith.extui %0 : i1 to i32
    %c0_i32_0 = arith.constant 0 : i32
    %2 = arith.cmpi ne, %1, %c0_i32_0 : i32
    scf.if %2 {
      %cst_10 = arith.constant 0.000000e+00 : f32
      %12 = vector.broadcast %cst_10 : f32 to vector<256x128xf32>
      %c0_11 = arith.constant 0 : index
      %c0_12 = arith.constant 0 : index
      %13 = vector.load %arg8[%c0_11, %c0_12] : memref<256x128xf32, #tpu.memory_space<vmem>>, vector<256x128xf32>
      tpu.vector_store %arg8[%c0_11, %c0_12], %12 {strides = array<i32>} : memref<256x128xf32, #tpu.memory_space<vmem>>, vector<256x128xf32>,
    } else {
    }
    %c0 = arith.constant 0 : index
    %c0_1 = arith.constant 0 : index
    %3 = vector.load %arg8[%c0, %c0_1] : memref<256x128xf32, #tpu.memory_space<vmem>>, vector<256x128xf32>
    %c0_2 = arith.constant 0 : index
    %c0_3 = arith.constant 0 : index
    %4 = vector.load %arg3[%c0_2, %c0_3] : memref<256x128xbf16, #tpu.memory_space<vmem>>, vector<256x128xbf16>
    %c0_4 = arith.constant 0 : index
    %c0_5 = arith.constant 0 : index
    %5 = vector.load %arg4[%c0_4, %c0_5] : memref<128x128xbf16, #tpu.memory_space<vmem>>, vector<128x128xbf16>
    %cst = arith.constant dense<0.000000e+00> : vector<256x128xf32>
    %6 = tpu.matmul %4, %5, %cst {dimension_numbers = #tpu.dot_dimension_numbers<[1], [0], [0], [1], [0, 0, 1, 1], [], []>} : vector<256x128xbf16>, vector<128x128xbf16>, vector<256x128xf32> -> vector<256x128xf32>
    %7 = arith.addf %3, %6 : vector<256x128xf32>
    %c0_6 = arith.constant 0 : index
    %c0_7 = arith.constant 0 : index
    %8 = vector.load %arg8[%c0_6, %c0_7] : memref<256x128xf32, #tpu.memory_space<vmem>>, vector<256x128xf32>
    tpu.vector_store %arg8[%c0_6, %c0_7], %7 {strides = array<i32>} : memref<256x128xf32, #tpu.memory_space<vmem>>, vector<256x128xf32>,
    %c0_i32_8 = arith.constant 0 : i32
    %9 = arith.cmpi eq, %arg2, %c0_i32_8 : i32
    %10 = arith.extui %9 : i1 to i32
    %c0_i32_9 = arith.constant 0 : i32
    %11 = arith.cmpi ne, %10, %c0_i32_9 : i32
    scf.if %11 {
      %c0_10 = arith.constant 0 : index
      %c0_11 = arith.constant 0 : index
      %12 = vector.load %arg8[%c0_10, %c0_11] : memref<256x128xf32, #tpu.memory_space<vmem>>, vector<256x128xf32>
      %c0_12 = arith.constant 0 : index
      %c0_13 = arith.constant 0 : index
      %13 = vector.load %arg5[%c0_12, %c0_13] : memref<1x128xf32, #tpu.memory_space<vmem>>, vector<1x128xf32>
      %14 = vector.broadcast %13 : vector<1x128xf32> to vector<256x128xf32>
      %15 = arith.mulf %12, %14 : vector<256x128xf32>
      %c0_14 = arith.constant 0 : index
      %c0_15 = arith.constant 0 : index
      %16 = vector.load %arg6[%c0_14, %c0_15] : memref<1x128xf32, #tpu.memory_space<vmem>>, vector<1x128xf32>
      %17 = vector.broadcast %16 : vector<1x128xf32> to vector<256x128xf32>
      %18 = arith.addf %15, %17 : vector<256x128xf32>
      %cst_16 = arith.constant 0.000000e+00 : f32
      %19 = vector.broadcast %cst_16 : f32 to vector<256x128xf32>
      %20 = arith.maximumf %18, %19 : vector<256x128xf32>
      %c0_17 = arith.constant 0 : index
      %c0_18 = arith.constant 0 : index
      %21 = vector.load %arg7[%c0_17, %c0_18] : memref<256x128xf32, #tpu.memory_space<vmem>>, vector<256x128xf32>
      tpu.vector_store %arg7[%c0_17, %c0_18], %20 {strides = array<i32>} : memref<256x128xf32, #tpu.memory_space<vmem>>, vector<256x128xf32>,
    } else {
    }
    return
  }
  func.func @transform_0(%arg0: i32, %arg1: i32, %arg2: i32) -> (i32, i32) {
    %c0_i32 = arith.constant 0 : i32
    return %arg0, %arg2 : i32, i32
  }
  func.func @transform_1(%arg0: i32, %arg1: i32, %arg2: i32) -> (i32, i32) {
    %c0_i32 = arith.constant 0 : i32
    return %arg2, %arg1 : i32, i32
  }
  func.func @transform_2(%arg0: i32, %arg1: i32, %arg2: i32) -> (i32, i32) {
    %c0_i32 = arith.constant 0 : i32
    %c0_i32_0 = arith.constant 0 : i32
    return %c0_i32, %arg1 : i32, i32
  }
  func.func @transform_3(%arg0: i32, %arg1: i32, %arg2: i32) -> (i32, i32) {
    %c0_i32 = arith.constant 0 : i32
    %c0_i32_0 = arith.constant 0 : i32
    return %c0_i32, %arg1 : i32, i32
  }
  func.func @transform_4(%arg0: i32, %arg1: i32, %arg2: i32) -> (i32, i32) {
    %c0_i32 = arith.constant 0 : i32
    return %arg0, %arg1 : i32, i32
  }
}

module attributes {stable_mosaic.version = 11 : i64} {
  func.func @_fused_matmul_kernel(%arg0: i32, %arg1: i32, %arg2: i32, %arg3: memref<288x128xbf16, #tpu.memory_space<vmem>>, %arg4: memref<128x128xbf16, #tpu.memory_space<vmem>>, %arg5: memref<1x128xf32, #tpu.memory_space<vmem>>, %arg6: memref<1x128xf32, #tpu.memory_space<vmem>>, %arg7: memref<288x128xf32, #tpu.memory_space<vmem>>, %arg8: memref<288x128xf32, #tpu.memory_space<vmem>>) attributes {dimension_semantics = [#tpu.dimension_semantics<parallel>, #tpu.dimension_semantics<parallel>, #tpu.dimension_semantics<arbitrary>], iteration_bounds = array<i64: 1, 2, 19>, scalar_prefetch = 0 : i64, scratch_operands = 1 : i64, tpu.core_type = #tpu.core_type<tc>, window_params = [{transform_indices = @transform_0, window_bounds = array<i64: 288, 128>}, {transform_indices = @transform_1, window_bounds = array<i64: 128, 128>}, {transform_indices = @transform_2, window_bounds = array<i64: 1, 128>}, {transform_indices = @transform_3, window_bounds = array<i64: 1, 128>}, {transform_indices = @transform_4, window_bounds = array<i64: 288, 128>}]} {
    %c0_i32 = arith.constant 0 : i32
    %0 = arith.cmpi eq, %arg2, %c0_i32 : i32
    %1 = arith.extui %0 : i1 to i32
    %c0_i32_0 = arith.constant 0 : i32
    %2 = arith.cmpi ne, %1, %c0_i32_0 : i32
    scf.if %2 {
      %cst_9 = arith.constant 0.000000e+00 : f32
      %12 = vector.broadcast %cst_9 : f32 to vector<288x128xf32>
      %c0_10 = arith.constant 0 : index
      %c0_11 = arith.constant 0 : index
      %13 = vector.load %arg8[%c0_10, %c0_11] : memref<288x128xf32, #tpu.memory_space<vmem>>, vector<288x128xf32>
      tpu.vector_store %arg8[%c0_10, %c0_11], %12 {strides = array<i32>} : memref<288x128xf32, #tpu.memory_space<vmem>>, vector<288x128xf32>,
    } else {
    }
    %c0 = arith.constant 0 : index
    %c0_1 = arith.constant 0 : index
    %3 = vector.load %arg8[%c0, %c0_1] : memref<288x128xf32, #tpu.memory_space<vmem>>, vector<288x128xf32>
    %c0_2 = arith.constant 0 : index
    %c0_3 = arith.constant 0 : index
    %4 = vector.load %arg3[%c0_2, %c0_3] : memref<288x128xbf16, #tpu.memory_space<vmem>>, vector<288x128xbf16>
    %c0_4 = arith.constant 0 : index
    %c0_5 = arith.constant 0 : index
    %5 = vector.load %arg4[%c0_4, %c0_5] : memref<128x128xbf16, #tpu.memory_space<vmem>>, vector<128x128xbf16>
    %cst = arith.constant dense<0.000000e+00> : vector<288x128xf32>
    %6 = tpu.matmul %4, %5, %cst {dimension_numbers = #tpu.dot_dimension_numbers<[1], [0], [0], [1], [0, 0, 1, 1], [], []>} : vector<288x128xbf16>, vector<128x128xbf16>, vector<288x128xf32> -> vector<288x128xf32>
    %7 = arith.addf %3, %6 : vector<288x128xf32>
    %c0_6 = arith.constant 0 : index
    %c0_7 = arith.constant 0 : index
    %8 = vector.load %arg8[%c0_6, %c0_7] : memref<288x128xf32, #tpu.memory_space<vmem>>, vector<288x128xf32>
    tpu.vector_store %arg8[%c0_6, %c0_7], %7 {strides = array<i32>} : memref<288x128xf32, #tpu.memory_space<vmem>>, vector<288x128xf32>,
    %c18_i32 = arith.constant 18 : i32
    %9 = arith.cmpi eq, %arg2, %c18_i32 : i32
    %10 = arith.extui %9 : i1 to i32
    %c0_i32_8 = arith.constant 0 : i32
    %11 = arith.cmpi ne, %10, %c0_i32_8 : i32
    scf.if %11 {
      %c0_9 = arith.constant 0 : index
      %c0_10 = arith.constant 0 : index
      %12 = vector.load %arg8[%c0_9, %c0_10] : memref<288x128xf32, #tpu.memory_space<vmem>>, vector<288x128xf32>
      %c0_11 = arith.constant 0 : index
      %c0_12 = arith.constant 0 : index
      %13 = vector.load %arg5[%c0_11, %c0_12] : memref<1x128xf32, #tpu.memory_space<vmem>>, vector<1x128xf32>
      %14 = vector.broadcast %13 : vector<1x128xf32> to vector<288x128xf32>
      %15 = arith.mulf %12, %14 : vector<288x128xf32>
      %c0_13 = arith.constant 0 : index
      %c0_14 = arith.constant 0 : index
      %16 = vector.load %arg6[%c0_13, %c0_14] : memref<1x128xf32, #tpu.memory_space<vmem>>, vector<1x128xf32>
      %17 = vector.broadcast %16 : vector<1x128xf32> to vector<288x128xf32>
      %18 = arith.addf %15, %17 : vector<288x128xf32>
      %cst_15 = arith.constant 0.000000e+00 : f32
      %19 = vector.broadcast %cst_15 : f32 to vector<288x128xf32>
      %20 = arith.maximumf %18, %19 : vector<288x128xf32>
      %c0_16 = arith.constant 0 : index
      %c0_17 = arith.constant 0 : index
      %21 = vector.load %arg7[%c0_16, %c0_17] : memref<288x128xf32, #tpu.memory_space<vmem>>, vector<288x128xf32>
      tpu.vector_store %arg7[%c0_16, %c0_17], %20 {strides = array<i32>} : memref<288x128xf32, #tpu.memory_space<vmem>>, vector<288x128xf32>,
    } else {
    }
    return
  }
  func.func @transform_0(%arg0: i32, %arg1: i32, %arg2: i32) -> (i32, i32) {
    %c0_i32 = arith.constant 0 : i32
    return %arg0, %arg2 : i32, i32
  }
  func.func @transform_1(%arg0: i32, %arg1: i32, %arg2: i32) -> (i32, i32) {
    %c0_i32 = arith.constant 0 : i32
    return %arg2, %arg1 : i32, i32
  }
  func.func @transform_2(%arg0: i32, %arg1: i32, %arg2: i32) -> (i32, i32) {
    %c0_i32 = arith.constant 0 : i32
    %c0_i32_0 = arith.constant 0 : i32
    return %c0_i32, %arg1 : i32, i32
  }
  func.func @transform_3(%arg0: i32, %arg1: i32, %arg2: i32) -> (i32, i32) {
    %c0_i32 = arith.constant 0 : i32
    %c0_i32_0 = arith.constant 0 : i32
    return %c0_i32, %arg1 : i32, i32
  }
  func.func @transform_4(%arg0: i32, %arg1: i32, %arg2: i32) -> (i32, i32) {
    %c0_i32 = arith.constant 0 : i32
    return %arg0, %arg1 : i32, i32
  }
}

module attributes {stable_mosaic.version = 11 : i64} {
  func.func @_fused_matmul_kernel(%arg0: i32, %arg1: i32, %arg2: i32, %arg3: memref<72x768xbf16, #tpu.memory_space<vmem>>, %arg4: memref<768x128xbf16, #tpu.memory_space<vmem>>, %arg5: memref<1x128xf32, #tpu.memory_space<vmem>>, %arg6: memref<1x128xf32, #tpu.memory_space<vmem>>, %arg7: memref<72x128xf32, #tpu.memory_space<vmem>>, %arg8: memref<72x128xf32, #tpu.memory_space<vmem>>) attributes {dimension_semantics = [#tpu.dimension_semantics<parallel>, #tpu.dimension_semantics<parallel>, #tpu.dimension_semantics<arbitrary>], iteration_bounds = array<i64: 1, 3, 3>, scalar_prefetch = 0 : i64, scratch_operands = 1 : i64, tpu.core_type = #tpu.core_type<tc>, window_params = [{transform_indices = @transform_0, window_bounds = array<i64: 72, 768>}, {transform_indices = @transform_1, window_bounds = array<i64: 768, 128>}, {transform_indices = @transform_2, window_bounds = array<i64: 1, 128>}, {transform_indices = @transform_3, window_bounds = array<i64: 1, 128>}, {transform_indices = @transform_4, window_bounds = array<i64: 72, 128>}]} {
    %c0_i32 = arith.constant 0 : i32
    %0 = arith.cmpi eq, %arg2, %c0_i32 : i32
    %1 = arith.extui %0 : i1 to i32
    %c0_i32_0 = arith.constant 0 : i32
    %2 = arith.cmpi ne, %1, %c0_i32_0 : i32
    scf.if %2 {
      %cst_9 = arith.constant 0.000000e+00 : f32
      %12 = vector.broadcast %cst_9 : f32 to vector<72x128xf32>
      %c0_10 = arith.constant 0 : index
      %c0_11 = arith.constant 0 : index
      %13 = vector.load %arg8[%c0_10, %c0_11] : memref<72x128xf32, #tpu.memory_space<vmem>>, vector<72x128xf32>
      tpu.vector_store %arg8[%c0_10, %c0_11], %12 {strides = array<i32>} : memref<72x128xf32, #tpu.memory_space<vmem>>, vector<72x128xf32>,
    } else {
    }
    %c0 = arith.constant 0 : index
    %c0_1 = arith.constant 0 : index
    %3 = vector.load %arg8[%c0, %c0_1] : memref<72x128xf32, #tpu.memory_space<vmem>>, vector<72x128xf32>
    %c0_2 = arith.constant 0 : index
    %c0_3 = arith.constant 0 : index
    %4 = vector.load %arg3[%c0_2, %c0_3] : memref<72x768xbf16, #tpu.memory_space<vmem>>, vector<72x768xbf16>
    %c0_4 = arith.constant 0 : index
    %c0_5 = arith.constant 0 : index
    %5 = vector.load %arg4[%c0_4, %c0_5] : memref<768x128xbf16, #tpu.memory_space<vmem>>, vector<768x128xbf16>
    %cst = arith.constant dense<0.000000e+00> : vector<72x128xf32>
    %6 = tpu.matmul %4, %5, %cst {dimension_numbers = #tpu.dot_dimension_numbers<[1], [0], [0], [1], [0, 0, 1, 1], [], []>} : vector<72x768xbf16>, vector<768x128xbf16>, vector<72x128xf32> -> vector<72x128xf32>
    %7 = arith.addf %3, %6 : vector<72x128xf32>
    %c0_6 = arith.constant 0 : index
    %c0_7 = arith.constant 0 : index
    %8 = vector.load %arg8[%c0_6, %c0_7] : memref<72x128xf32, #tpu.memory_space<vmem>>, vector<72x128xf32>
    tpu.vector_store %arg8[%c0_6, %c0_7], %7 {strides = array<i32>} : memref<72x128xf32, #tpu.memory_space<vmem>>, vector<72x128xf32>,
    %c2_i32 = arith.constant 2 : i32
    %9 = arith.cmpi eq, %arg2, %c2_i32 : i32
    %10 = arith.extui %9 : i1 to i32
    %c0_i32_8 = arith.constant 0 : i32
    %11 = arith.cmpi ne, %10, %c0_i32_8 : i32
    scf.if %11 {
      %c0_9 = arith.constant 0 : index
      %c0_10 = arith.constant 0 : index
      %12 = vector.load %arg8[%c0_9, %c0_10] : memref<72x128xf32, #tpu.memory_space<vmem>>, vector<72x128xf32>
      %c0_11 = arith.constant 0 : index
      %c0_12 = arith.constant 0 : index
      %13 = vector.load %arg5[%c0_11, %c0_12] : memref<1x128xf32, #tpu.memory_space<vmem>>, vector<1x128xf32>
      %14 = vector.broadcast %13 : vector<1x128xf32> to vector<72x128xf32>
      %15 = arith.mulf %12, %14 : vector<72x128xf32>
      %c0_13 = arith.constant 0 : index
      %c0_14 = arith.constant 0 : index
      %16 = vector.load %arg6[%c0_13, %c0_14] : memref<1x128xf32, #tpu.memory_space<vmem>>, vector<1x128xf32>
      %17 = vector.broadcast %16 : vector<1x128xf32> to vector<72x128xf32>
      %18 = arith.addf %15, %17 : vector<72x128xf32>
      %cst_15 = arith.constant 0.000000e+00 : f32
      %19 = vector.broadcast %cst_15 : f32 to vector<72x128xf32>
      %20 = arith.maximumf %18, %19 : vector<72x128xf32>
      %c0_16 = arith.constant 0 : index
      %c0_17 = arith.constant 0 : index
      %21 = vector.load %arg7[%c0_16, %c0_17] : memref<72x128xf32, #tpu.memory_space<vmem>>, vector<72x128xf32>
      tpu.vector_store %arg7[%c0_16, %c0_17], %20 {strides = array<i32>} : memref<72x128xf32, #tpu.memory_space<vmem>>, vector<72x128xf32>,
    } else {
    }
    return
  }
  func.func @transform_0(%arg0: i32, %arg1: i32, %arg2: i32) -> (i32, i32) {
    %c0_i32 = arith.constant 0 : i32
    return %arg0, %arg2 : i32, i32
  }
  func.func @transform_1(%arg0: i32, %arg1: i32, %arg2: i32) -> (i32, i32) {
    %c0_i32 = arith.constant 0 : i32
    return %arg2, %arg1 : i32, i32
  }
  func.func @transform_2(%arg0: i32, %arg1: i32, %arg2: i32) -> (i32, i32) {
    %c0_i32 = arith.constant 0 : i32
    %c0_i32_0 = arith.constant 0 : i32
    return %c0_i32, %arg1 : i32, i32
  }
  func.func @transform_3(%arg0: i32, %arg1: i32, %arg2: i32) -> (i32, i32) {
    %c0_i32 = arith.constant 0 : i32
    %c0_i32_0 = arith.constant 0 : i32
    return %c0_i32, %arg1 : i32, i32
  }
  func.func @transform_4(%arg0: i32, %arg1: i32, %arg2: i32) -> (i32, i32) {
    %c0_i32 = arith.constant 0 : i32
    return %arg0, %arg1 : i32, i32
  }
}

module attributes {stable_mosaic.version = 11 : i64} {
  func.func @_fused_matmul_kernel(%arg0: i32, %arg1: i32, %arg2: i32, %arg3: memref<72x384xbf16, #tpu.memory_space<vmem>>, %arg4: memref<384x128xbf16, #tpu.memory_space<vmem>>, %arg5: memref<1x128xf32, #tpu.memory_space<vmem>>, %arg6: memref<1x128xf32, #tpu.memory_space<vmem>>, %arg7: memref<72x128xf32, #tpu.memory_space<vmem>>, %arg8: memref<72x128xf32, #tpu.memory_space<vmem>>) attributes {dimension_semantics = [#tpu.dimension_semantics<parallel>, #tpu.dimension_semantics<parallel>, #tpu.dimension_semantics<arbitrary>], iteration_bounds = array<i64: 1, 3, 9>, scalar_prefetch = 0 : i64, scratch_operands = 1 : i64, tpu.core_type = #tpu.core_type<tc>, window_params = [{transform_indices = @transform_0, window_bounds = array<i64: 72, 384>}, {transform_indices = @transform_1, window_bounds = array<i64: 384, 128>}, {transform_indices = @transform_2, window_bounds = array<i64: 1, 128>}, {transform_indices = @transform_3, window_bounds = array<i64: 1, 128>}, {transform_indices = @transform_4, window_bounds = array<i64: 72, 128>}]} {
    %c0_i32 = arith.constant 0 : i32
    %0 = arith.cmpi eq, %arg2, %c0_i32 : i32
    %1 = arith.extui %0 : i1 to i32
    %c0_i32_0 = arith.constant 0 : i32
    %2 = arith.cmpi ne, %1, %c0_i32_0 : i32
    scf.if %2 {
      %cst_9 = arith.constant 0.000000e+00 : f32
      %12 = vector.broadcast %cst_9 : f32 to vector<72x128xf32>
      %c0_10 = arith.constant 0 : index
      %c0_11 = arith.constant 0 : index
      %13 = vector.load %arg8[%c0_10, %c0_11] : memref<72x128xf32, #tpu.memory_space<vmem>>, vector<72x128xf32>
      tpu.vector_store %arg8[%c0_10, %c0_11], %12 {strides = array<i32>} : memref<72x128xf32, #tpu.memory_space<vmem>>, vector<72x128xf32>,
    } else {
    }
    %c0 = arith.constant 0 : index
    %c0_1 = arith.constant 0 : index
    %3 = vector.load %arg8[%c0, %c0_1] : memref<72x128xf32, #tpu.memory_space<vmem>>, vector<72x128xf32>
    %c0_2 = arith.constant 0 : index
    %c0_3 = arith.constant 0 : index
    %4 = vector.load %arg3[%c0_2, %c0_3] : memref<72x384xbf16, #tpu.memory_space<vmem>>, vector<72x384xbf16>
    %c0_4 = arith.constant 0 : index
    %c0_5 = arith.constant 0 : index
    %5 = vector.load %arg4[%c0_4, %c0_5] : memref<384x128xbf16, #tpu.memory_space<vmem>>, vector<384x128xbf16>
    %cst = arith.constant dense<0.000000e+00> : vector<72x128xf32>
    %6 = tpu.matmul %4, %5, %cst {dimension_numbers = #tpu.dot_dimension_numbers<[1], [0], [0], [1], [0, 0, 1, 1], [], []>} : vector<72x384xbf16>, vector<384x128xbf16>, vector<72x128xf32> -> vector<72x128xf32>
    %7 = arith.addf %3, %6 : vector<72x128xf32>
    %c0_6 = arith.constant 0 : index
    %c0_7 = arith.constant 0 : index
    %8 = vector.load %arg8[%c0_6, %c0_7] : memref<72x128xf32, #tpu.memory_space<vmem>>, vector<72x128xf32>
    tpu.vector_store %arg8[%c0_6, %c0_7], %7 {strides = array<i32>} : memref<72x128xf32, #tpu.memory_space<vmem>>, vector<72x128xf32>,
    %c8_i32 = arith.constant 8 : i32
    %9 = arith.cmpi eq, %arg2, %c8_i32 : i32
    %10 = arith.extui %9 : i1 to i32
    %c0_i32_8 = arith.constant 0 : i32
    %11 = arith.cmpi ne, %10, %c0_i32_8 : i32
    scf.if %11 {
      %c0_9 = arith.constant 0 : index
      %c0_10 = arith.constant 0 : index
      %12 = vector.load %arg8[%c0_9, %c0_10] : memref<72x128xf32, #tpu.memory_space<vmem>>, vector<72x128xf32>
      %c0_11 = arith.constant 0 : index
      %c0_12 = arith.constant 0 : index
      %13 = vector.load %arg5[%c0_11, %c0_12] : memref<1x128xf32, #tpu.memory_space<vmem>>, vector<1x128xf32>
      %14 = vector.broadcast %13 : vector<1x128xf32> to vector<72x128xf32>
      %15 = arith.mulf %12, %14 : vector<72x128xf32>
      %c0_13 = arith.constant 0 : index
      %c0_14 = arith.constant 0 : index
      %16 = vector.load %arg6[%c0_13, %c0_14] : memref<1x128xf32, #tpu.memory_space<vmem>>, vector<1x128xf32>
      %17 = vector.broadcast %16 : vector<1x128xf32> to vector<72x128xf32>
      %18 = arith.addf %15, %17 : vector<72x128xf32>
      %cst_15 = arith.constant 0.000000e+00 : f32
      %19 = vector.broadcast %cst_15 : f32 to vector<72x128xf32>
      %20 = arith.maximumf %18, %19 : vector<72x128xf32>
      %c0_16 = arith.constant 0 : index
      %c0_17 = arith.constant 0 : index
      %21 = vector.load %arg7[%c0_16, %c0_17] : memref<72x128xf32, #tpu.memory_space<vmem>>, vector<72x128xf32>
      tpu.vector_store %arg7[%c0_16, %c0_17], %20 {strides = array<i32>} : memref<72x128xf32, #tpu.memory_space<vmem>>, vector<72x128xf32>,
    } else {
    }
    return
  }
  func.func @transform_0(%arg0: i32, %arg1: i32, %arg2: i32) -> (i32, i32) {
    %c0_i32 = arith.constant 0 : i32
    return %arg0, %arg2 : i32, i32
  }
  func.func @transform_1(%arg0: i32, %arg1: i32, %arg2: i32) -> (i32, i32) {
    %c0_i32 = arith.constant 0 : i32
    return %arg2, %arg1 : i32, i32
  }
  func.func @transform_2(%arg0: i32, %arg1: i32, %arg2: i32) -> (i32, i32) {
    %c0_i32 = arith.constant 0 : i32
    %c0_i32_0 = arith.constant 0 : i32
    return %c0_i32, %arg1 : i32, i32
  }
  func.func @transform_3(%arg0: i32, %arg1: i32, %arg2: i32) -> (i32, i32) {
    %c0_i32 = arith.constant 0 : i32
    %c0_i32_0 = arith.constant 0 : i32
    return %c0_i32, %arg1 : i32, i32
  }
  func.func @transform_4(%arg0: i32, %arg1: i32, %arg2: i32) -> (i32, i32) {
    %c0_i32 = arith.constant 0 : i32
    return %arg0, %arg1 : i32, i32
  }
}

module attributes {stable_mosaic.version = 11 : i64} {
  func.func @_fused_matmul_kernel(%arg0: i32, %arg1: i32, %arg2: i32, %arg3: memref<72x384xbf16, #tpu.memory_space<vmem>>, %arg4: memref<384x128xbf16, #tpu.memory_space<vmem>>, %arg5: memref<1x128xf32, #tpu.memory_space<vmem>>, %arg6: memref<1x128xf32, #tpu.memory_space<vmem>>, %arg7: memref<72x128xf32, #tpu.memory_space<vmem>>, %arg8: memref<72x128xf32, #tpu.memory_space<vmem>>) attributes {dimension_semantics = [#tpu.dimension_semantics<parallel>, #tpu.dimension_semantics<parallel>, #tpu.dimension_semantics<arbitrary>], iteration_bounds = array<i64: 1, 2, 9>, scalar_prefetch = 0 : i64, scratch_operands = 1 : i64, tpu.core_type = #tpu.core_type<tc>, window_params = [{transform_indices = @transform_0, window_bounds = array<i64: 72, 384>}, {transform_indices = @transform_1, window_bounds = array<i64: 384, 128>}, {transform_indices = @transform_2, window_bounds = array<i64: 1, 128>}, {transform_indices = @transform_3, window_bounds = array<i64: 1, 128>}, {transform_indices = @transform_4, window_bounds = array<i64: 72, 128>}]} {
    %c0_i32 = arith.constant 0 : i32
    %0 = arith.cmpi eq, %arg2, %c0_i32 : i32
    %1 = arith.extui %0 : i1 to i32
    %c0_i32_0 = arith.constant 0 : i32
    %2 = arith.cmpi ne, %1, %c0_i32_0 : i32
    scf.if %2 {
      %cst_9 = arith.constant 0.000000e+00 : f32
      %12 = vector.broadcast %cst_9 : f32 to vector<72x128xf32>
      %c0_10 = arith.constant 0 : index
      %c0_11 = arith.constant 0 : index
      %13 = vector.load %arg8[%c0_10, %c0_11] : memref<72x128xf32, #tpu.memory_space<vmem>>, vector<72x128xf32>
      tpu.vector_store %arg8[%c0_10, %c0_11], %12 {strides = array<i32>} : memref<72x128xf32, #tpu.memory_space<vmem>>, vector<72x128xf32>,
    } else {
    }
    %c0 = arith.constant 0 : index
    %c0_1 = arith.constant 0 : index
    %3 = vector.load %arg8[%c0, %c0_1] : memref<72x128xf32, #tpu.memory_space<vmem>>, vector<72x128xf32>
    %c0_2 = arith.constant 0 : index
    %c0_3 = arith.constant 0 : index
    %4 = vector.load %arg3[%c0_2, %c0_3] : memref<72x384xbf16, #tpu.memory_space<vmem>>, vector<72x384xbf16>
    %c0_4 = arith.constant 0 : index
    %c0_5 = arith.constant 0 : index
    %5 = vector.load %arg4[%c0_4, %c0_5] : memref<384x128xbf16, #tpu.memory_space<vmem>>, vector<384x128xbf16>
    %cst = arith.constant dense<0.000000e+00> : vector<72x128xf32>
    %6 = tpu.matmul %4, %5, %cst {dimension_numbers = #tpu.dot_dimension_numbers<[1], [0], [0], [1], [0, 0, 1, 1], [], []>} : vector<72x384xbf16>, vector<384x128xbf16>, vector<72x128xf32> -> vector<72x128xf32>
    %7 = arith.addf %3, %6 : vector<72x128xf32>
    %c0_6 = arith.constant 0 : index
    %c0_7 = arith.constant 0 : index
    %8 = vector.load %arg8[%c0_6, %c0_7] : memref<72x128xf32, #tpu.memory_space<vmem>>, vector<72x128xf32>
    tpu.vector_store %arg8[%c0_6, %c0_7], %7 {strides = array<i32>} : memref<72x128xf32, #tpu.memory_space<vmem>>, vector<72x128xf32>,
    %c8_i32 = arith.constant 8 : i32
    %9 = arith.cmpi eq, %arg2, %c8_i32 : i32
    %10 = arith.extui %9 : i1 to i32
    %c0_i32_8 = arith.constant 0 : i32
    %11 = arith.cmpi ne, %10, %c0_i32_8 : i32
    scf.if %11 {
      %c0_9 = arith.constant 0 : index
      %c0_10 = arith.constant 0 : index
      %12 = vector.load %arg8[%c0_9, %c0_10] : memref<72x128xf32, #tpu.memory_space<vmem>>, vector<72x128xf32>
      %c0_11 = arith.constant 0 : index
      %c0_12 = arith.constant 0 : index
      %13 = vector.load %arg5[%c0_11, %c0_12] : memref<1x128xf32, #tpu.memory_space<vmem>>, vector<1x128xf32>
      %14 = vector.broadcast %13 : vector<1x128xf32> to vector<72x128xf32>
      %15 = arith.mulf %12, %14 : vector<72x128xf32>
      %c0_13 = arith.constant 0 : index
      %c0_14 = arith.constant 0 : index
      %16 = vector.load %arg6[%c0_13, %c0_14] : memref<1x128xf32, #tpu.memory_space<vmem>>, vector<1x128xf32>
      %17 = vector.broadcast %16 : vector<1x128xf32> to vector<72x128xf32>
      %18 = arith.addf %15, %17 : vector<72x128xf32>
      %cst_15 = arith.constant 0.000000e+00 : f32
      %19 = vector.broadcast %cst_15 : f32 to vector<72x128xf32>
      %20 = arith.maximumf %18, %19 : vector<72x128xf32>
      %c0_16 = arith.constant 0 : index
      %c0_17 = arith.constant 0 : index
      %21 = vector.load %arg7[%c0_16, %c0_17] : memref<72x128xf32, #tpu.memory_space<vmem>>, vector<72x128xf32>
      tpu.vector_store %arg7[%c0_16, %c0_17], %20 {strides = array<i32>} : memref<72x128xf32, #tpu.memory_space<vmem>>, vector<72x128xf32>,
    } else {
    }
    return
  }
  func.func @transform_0(%arg0: i32, %arg1: i32, %arg2: i32) -> (i32, i32) {
    %c0_i32 = arith.constant 0 : i32
    return %arg0, %arg2 : i32, i32
  }
  func.func @transform_1(%arg0: i32, %arg1: i32, %arg2: i32) -> (i32, i32) {
    %c0_i32 = arith.constant 0 : i32
    return %arg2, %arg1 : i32, i32
  }
  func.func @transform_2(%arg0: i32, %arg1: i32, %arg2: i32) -> (i32, i32) {
    %c0_i32 = arith.constant 0 : i32
    %c0_i32_0 = arith.constant 0 : i32
    return %c0_i32, %arg1 : i32, i32
  }
  func.func @transform_3(%arg0: i32, %arg1: i32, %arg2: i32) -> (i32, i32) {
    %c0_i32 = arith.constant 0 : i32
    %c0_i32_0 = arith.constant 0 : i32
    return %c0_i32, %arg1 : i32, i32
  }
  func.func @transform_4(%arg0: i32, %arg1: i32, %arg2: i32) -> (i32, i32) {
    %c0_i32 = arith.constant 0 : i32
    return %arg0, %arg1 : i32, i32
  }
}

module attributes {stable_mosaic.version = 11 : i64} {
  func.func @_fused_matmul_kernel(%arg0: i32, %arg1: i32, %arg2: i32, %arg3: memref<8x768xbf16, #tpu.memory_space<vmem>>, %arg4: memref<768x512xbf16, #tpu.memory_space<vmem>>, %arg5: memref<1x512xf32, #tpu.memory_space<vmem>>, %arg6: memref<1x512xf32, #tpu.memory_space<vmem>>, %arg7: memref<8x512xf32, #tpu.memory_space<vmem>>, %arg8: memref<8x512xf32, #tpu.memory_space<vmem>>) attributes {dimension_semantics = [#tpu.dimension_semantics<parallel>, #tpu.dimension_semantics<parallel>, #tpu.dimension_semantics<arbitrary>], iteration_bounds = array<i64: 1, 8, 3>, scalar_prefetch = 0 : i64, scratch_operands = 1 : i64, tpu.core_type = #tpu.core_type<tc>, window_params = [{transform_indices = @transform_0, window_bounds = array<i64: 8, 768>}, {transform_indices = @transform_1, window_bounds = array<i64: 768, 512>}, {transform_indices = @transform_2, window_bounds = array<i64: 1, 512>}, {transform_indices = @transform_3, window_bounds = array<i64: 1, 512>}, {transform_indices = @transform_4, window_bounds = array<i64: 8, 512>}]} {
    %c0_i32 = arith.constant 0 : i32
    %0 = arith.cmpi eq, %arg2, %c0_i32 : i32
    %1 = arith.extui %0 : i1 to i32
    %c0_i32_0 = arith.constant 0 : i32
    %2 = arith.cmpi ne, %1, %c0_i32_0 : i32
    scf.if %2 {
      %cst_9 = arith.constant 0.000000e+00 : f32
      %12 = vector.broadcast %cst_9 : f32 to vector<8x512xf32>
      %c0_10 = arith.constant 0 : index
      %c0_11 = arith.constant 0 : index
      %13 = vector.load %arg8[%c0_10, %c0_11] : memref<8x512xf32, #tpu.memory_space<vmem>>, vector<8x512xf32>
      tpu.vector_store %arg8[%c0_10, %c0_11], %12 {strides = array<i32>} : memref<8x512xf32, #tpu.memory_space<vmem>>, vector<8x512xf32>,
    } else {
    }
    %c0 = arith.constant 0 : index
    %c0_1 = arith.constant 0 : index
    %3 = vector.load %arg8[%c0, %c0_1] : memref<8x512xf32, #tpu.memory_space<vmem>>, vector<8x512xf32>
    %c0_2 = arith.constant 0 : index
    %c0_3 = arith.constant 0 : index
    %4 = vector.load %arg3[%c0_2, %c0_3] : memref<8x768xbf16, #tpu.memory_space<vmem>>, vector<8x768xbf16>
    %c0_4 = arith.constant 0 : index
    %c0_5 = arith.constant 0 : index
    %5 = vector.load %arg4[%c0_4, %c0_5] : memref<768x512xbf16, #tpu.memory_space<vmem>>, vector<768x512xbf16>
    %cst = arith.constant dense<0.000000e+00> : vector<8x512xf32>
    %6 = tpu.matmul %4, %5, %cst {dimension_numbers = #tpu.dot_dimension_numbers<[1], [0], [0], [1], [0, 0, 1, 1], [], []>} : vector<8x768xbf16>, vector<768x512xbf16>, vector<8x512xf32> -> vector<8x512xf32>
    %7 = arith.addf %3, %6 : vector<8x512xf32>
    %c0_6 = arith.constant 0 : index
    %c0_7 = arith.constant 0 : index
    %8 = vector.load %arg8[%c0_6, %c0_7] : memref<8x512xf32, #tpu.memory_space<vmem>>, vector<8x512xf32>
    tpu.vector_store %arg8[%c0_6, %c0_7], %7 {strides = array<i32>} : memref<8x512xf32, #tpu.memory_space<vmem>>, vector<8x512xf32>,
    %c2_i32 = arith.constant 2 : i32
    %9 = arith.cmpi eq, %arg2, %c2_i32 : i32
    %10 = arith.extui %9 : i1 to i32
    %c0_i32_8 = arith.constant 0 : i32
    %11 = arith.cmpi ne, %10, %c0_i32_8 : i32
    scf.if %11 {
      %c0_9 = arith.constant 0 : index
      %c0_10 = arith.constant 0 : index
      %12 = vector.load %arg8[%c0_9, %c0_10] : memref<8x512xf32, #tpu.memory_space<vmem>>, vector<8x512xf32>
      %c0_11 = arith.constant 0 : index
      %c0_12 = arith.constant 0 : index
      %13 = vector.load %arg5[%c0_11, %c0_12] : memref<1x512xf32, #tpu.memory_space<vmem>>, vector<1x512xf32>
      %14 = vector.broadcast %13 : vector<1x512xf32> to vector<8x512xf32>
      %15 = arith.mulf %12, %14 : vector<8x512xf32>
      %c0_13 = arith.constant 0 : index
      %c0_14 = arith.constant 0 : index
      %16 = vector.load %arg6[%c0_13, %c0_14] : memref<1x512xf32, #tpu.memory_space<vmem>>, vector<1x512xf32>
      %17 = vector.broadcast %16 : vector<1x512xf32> to vector<8x512xf32>
      %18 = arith.addf %15, %17 : vector<8x512xf32>
      %cst_15 = arith.constant 0.000000e+00 : f32
      %19 = vector.broadcast %cst_15 : f32 to vector<8x512xf32>
      %20 = arith.maximumf %18, %19 : vector<8x512xf32>
      %c0_16 = arith.constant 0 : index
      %c0_17 = arith.constant 0 : index
      %21 = vector.load %arg7[%c0_16, %c0_17] : memref<8x512xf32, #tpu.memory_space<vmem>>, vector<8x512xf32>
      tpu.vector_store %arg7[%c0_16, %c0_17], %20 {strides = array<i32>} : memref<8x512xf32, #tpu.memory_space<vmem>>, vector<8x512xf32>,
    } else {
    }
    return
  }
  func.func @transform_0(%arg0: i32, %arg1: i32, %arg2: i32) -> (i32, i32) {
    %c0_i32 = arith.constant 0 : i32
    return %arg0, %arg2 : i32, i32
  }
  func.func @transform_1(%arg0: i32, %arg1: i32, %arg2: i32) -> (i32, i32) {
    %c0_i32 = arith.constant 0 : i32
    return %arg2, %arg1 : i32, i32
  }
  func.func @transform_2(%arg0: i32, %arg1: i32, %arg2: i32) -> (i32, i32) {
    %c0_i32 = arith.constant 0 : i32
    %c0_i32_0 = arith.constant 0 : i32
    return %c0_i32, %arg1 : i32, i32
  }
  func.func @transform_3(%arg0: i32, %arg1: i32, %arg2: i32) -> (i32, i32) {
    %c0_i32 = arith.constant 0 : i32
    %c0_i32_0 = arith.constant 0 : i32
    return %c0_i32, %arg1 : i32, i32
  }
  func.func @transform_4(%arg0: i32, %arg1: i32, %arg2: i32) -> (i32, i32) {
    %c0_i32 = arith.constant 0 : i32
    return %arg0, %arg1 : i32, i32
  }
}

module attributes {stable_mosaic.version = 11 : i64} {
  func.func @_fused_matmul_kernel(%arg0: i32, %arg1: i32, %arg2: i32, %arg3: memref<8x1024xbf16, #tpu.memory_space<vmem>>, %arg4: memref<1024x512xbf16, #tpu.memory_space<vmem>>, %arg5: memref<1x512xf32, #tpu.memory_space<vmem>>, %arg6: memref<1x512xf32, #tpu.memory_space<vmem>>, %arg7: memref<8x512xf32, #tpu.memory_space<vmem>>, %arg8: memref<8x512xf32, #tpu.memory_space<vmem>>) attributes {dimension_semantics = [#tpu.dimension_semantics<parallel>, #tpu.dimension_semantics<parallel>, #tpu.dimension_semantics<arbitrary>], iteration_bounds = array<i64: 1, 8, 4>, scalar_prefetch = 0 : i64, scratch_operands = 1 : i64, tpu.core_type = #tpu.core_type<tc>, window_params = [{transform_indices = @transform_0, window_bounds = array<i64: 8, 1024>}, {transform_indices = @transform_1, window_bounds = array<i64: 1024, 512>}, {transform_indices = @transform_2, window_bounds = array<i64: 1, 512>}, {transform_indices = @transform_3, window_bounds = array<i64: 1, 512>}, {transform_indices = @transform_4, window_bounds = array<i64: 8, 512>}]} {
    %c0_i32 = arith.constant 0 : i32
    %0 = arith.cmpi eq, %arg2, %c0_i32 : i32
    %1 = arith.extui %0 : i1 to i32
    %c0_i32_0 = arith.constant 0 : i32
    %2 = arith.cmpi ne, %1, %c0_i32_0 : i32
    scf.if %2 {
      %cst_9 = arith.constant 0.000000e+00 : f32
      %12 = vector.broadcast %cst_9 : f32 to vector<8x512xf32>
      %c0_10 = arith.constant 0 : index
      %c0_11 = arith.constant 0 : index
      %13 = vector.load %arg8[%c0_10, %c0_11] : memref<8x512xf32, #tpu.memory_space<vmem>>, vector<8x512xf32>
      tpu.vector_store %arg8[%c0_10, %c0_11], %12 {strides = array<i32>} : memref<8x512xf32, #tpu.memory_space<vmem>>, vector<8x512xf32>,
    } else {
    }
    %c0 = arith.constant 0 : index
    %c0_1 = arith.constant 0 : index
    %3 = vector.load %arg8[%c0, %c0_1] : memref<8x512xf32, #tpu.memory_space<vmem>>, vector<8x512xf32>
    %c0_2 = arith.constant 0 : index
    %c0_3 = arith.constant 0 : index
    %4 = vector.load %arg3[%c0_2, %c0_3] : memref<8x1024xbf16, #tpu.memory_space<vmem>>, vector<8x1024xbf16>
    %c0_4 = arith.constant 0 : index
    %c0_5 = arith.constant 0 : index
    %5 = vector.load %arg4[%c0_4, %c0_5] : memref<1024x512xbf16, #tpu.memory_space<vmem>>, vector<1024x512xbf16>
    %cst = arith.constant dense<0.000000e+00> : vector<8x512xf32>
    %6 = tpu.matmul %4, %5, %cst {dimension_numbers = #tpu.dot_dimension_numbers<[1], [0], [0], [1], [0, 0, 1, 1], [], []>} : vector<8x1024xbf16>, vector<1024x512xbf16>, vector<8x512xf32> -> vector<8x512xf32>
    %7 = arith.addf %3, %6 : vector<8x512xf32>
    %c0_6 = arith.constant 0 : index
    %c0_7 = arith.constant 0 : index
    %8 = vector.load %arg8[%c0_6, %c0_7] : memref<8x512xf32, #tpu.memory_space<vmem>>, vector<8x512xf32>
    tpu.vector_store %arg8[%c0_6, %c0_7], %7 {strides = array<i32>} : memref<8x512xf32, #tpu.memory_space<vmem>>, vector<8x512xf32>,
    %c3_i32 = arith.constant 3 : i32
    %9 = arith.cmpi eq, %arg2, %c3_i32 : i32
    %10 = arith.extui %9 : i1 to i32
    %c0_i32_8 = arith.constant 0 : i32
    %11 = arith.cmpi ne, %10, %c0_i32_8 : i32
    scf.if %11 {
      %c0_9 = arith.constant 0 : index
      %c0_10 = arith.constant 0 : index
      %12 = vector.load %arg8[%c0_9, %c0_10] : memref<8x512xf32, #tpu.memory_space<vmem>>, vector<8x512xf32>
      %c0_11 = arith.constant 0 : index
      %c0_12 = arith.constant 0 : index
      %13 = vector.load %arg5[%c0_11, %c0_12] : memref<1x512xf32, #tpu.memory_space<vmem>>, vector<1x512xf32>
      %14 = vector.broadcast %13 : vector<1x512xf32> to vector<8x512xf32>
      %15 = arith.mulf %12, %14 : vector<8x512xf32>
      %c0_13 = arith.constant 0 : index
      %c0_14 = arith.constant 0 : index
      %16 = vector.load %arg6[%c0_13, %c0_14] : memref<1x512xf32, #tpu.memory_space<vmem>>, vector<1x512xf32>
      %17 = vector.broadcast %16 : vector<1x512xf32> to vector<8x512xf32>
      %18 = arith.addf %15, %17 : vector<8x512xf32>
      %cst_15 = arith.constant 0.000000e+00 : f32
      %19 = vector.broadcast %cst_15 : f32 to vector<8x512xf32>
      %20 = arith.maximumf %18, %19 : vector<8x512xf32>
      %c0_16 = arith.constant 0 : index
      %c0_17 = arith.constant 0 : index
      %21 = vector.load %arg7[%c0_16, %c0_17] : memref<8x512xf32, #tpu.memory_space<vmem>>, vector<8x512xf32>
      tpu.vector_store %arg7[%c0_16, %c0_17], %20 {strides = array<i32>} : memref<8x512xf32, #tpu.memory_space<vmem>>, vector<8x512xf32>,
    } else {
    }
    return
  }
  func.func @transform_0(%arg0: i32, %arg1: i32, %arg2: i32) -> (i32, i32) {
    %c0_i32 = arith.constant 0 : i32
    return %arg0, %arg2 : i32, i32
  }
  func.func @transform_1(%arg0: i32, %arg1: i32, %arg2: i32) -> (i32, i32) {
    %c0_i32 = arith.constant 0 : i32
    return %arg2, %arg1 : i32, i32
  }
  func.func @transform_2(%arg0: i32, %arg1: i32, %arg2: i32) -> (i32, i32) {
    %c0_i32 = arith.constant 0 : i32
    %c0_i32_0 = arith.constant 0 : i32
    return %c0_i32, %arg1 : i32, i32
  }
  func.func @transform_3(%arg0: i32, %arg1: i32, %arg2: i32) -> (i32, i32) {
    %c0_i32 = arith.constant 0 : i32
    %c0_i32_0 = arith.constant 0 : i32
    return %c0_i32, %arg1 : i32, i32
  }
  func.func @transform_4(%arg0: i32, %arg1: i32, %arg2: i32) -> (i32, i32) {
    %c0_i32 = arith.constant 0 : i32
    return %arg0, %arg1 : i32, i32
  }
}

</mosaic_0001>

<bundles_post_ra>
// kernel: forward.7
= control target key start
LH: loop header
LB: loop body
LE: loop exit
PB: predicated region body
PF: predicated region fallthrough
CT: control target
= control target key end

     0   :  { %s1311_s15 = smov 0   ;;  %s1313_s16 = smov 0   ;;  %s1498_s0 = inlined_call_operand.vmem [shape: bf16[1280,128], index: 0, kind: input, shape index: {}]   ;;  %s1499_s1 = inlined_call_operand.vmem [shape: bf16[128,128], index: 1, kind: input, shape index: {}]   ;;  %s1500_s2 = inlined_call_operand.vmem [shape: f32[1,128], index: 2, kind: input, shape index: {}]   ;;  %s1501_s3 = inlined_call_operand.vmem [shape: f32[1,128], index: 3, kind: input, shape index: {}]   ;;  %s1502_s4 = inlined_call_operand.vmem [shape: f32[1280,128], index: 4, kind: output, shape index: {}]  }
   0x1   :  { %s1315_s17 = smov 0  }
   0x2 LB: > { %s33_s18 = sadd.s32 1, %s1280_s16  ;;  %p1093_p0 = scmp.ge.s32.totalorder %s1284_s17, 1  ;;  %s1284_s17 = sphi %s1315_s17, %s14_s17   ;;  %s1280_s16 = sphi %s1313_s16, %s1504_s16   ;;  %s1276_s15 = sphi %s1311_s15, %s1503_s15  }
   0x3   : > { %p35_p1 = scmp.ge.s32.totalorder %s33_s18, 5  ;;  %p221_p2 = scmp.lt.s32.totalorder %s1284_s17, 6 }
   0x5   : > { %s1506_s18 = smov (%p35_p1, %s33_s18), 0  ;;  %p222_p3 = pnand %p1093_p0, %p221_p2 }
   0x6   : > { %s1094_s21 = sshll.u32 (!%p222_p3), %s1276_s15, 5 }
   0x7   : > { %225 = sbr.rel (%p222_p3) target bundleno = 275 (0x113), region = 36  ;;  %p268_p4 = scmp.lt.s32.totalorder (!%p222_p3), %s1094_s21, 159 }
   0xc   : > { %v1238_v0 = vld [vmem:[%s1499_s1 + $0x38] sm:$0xff]   ;;  %v1239_v1 = vld [vmem:[%s1499_s1 + $0x30] sm:$0xff]   ;;  %s1508_s21 = smov (!%p268_p4, %s1094_s21), 159  ;;  %v1240_v2 = vld [vmem:[%s1499_s1 + $0x28] sm:$0xff]  }
   0xd   : > { %1150 = vmatprep.subr.bf16.mxu0 %v1238_v0  ;;  %1198 = vmatprep.subr.bf16.mxu1 %v1238_v0  ;;  %s1095_s26 = sshll.u32 %s1508_s21, 2  ;;  %v1241_v3 = vld [vmem:[%s1499_s1 + $0x20] sm:$0xff]   ;;  %v1242_v6 = vld [vmem:[%s1499_s1 + $0x18] sm:$0xff]   ;;  %v1243_v7 = vld [vmem:[%s1499_s1 + $0x10] sm:$0xff]   ;;  %s1097_s22 = sshll.u32 %s1508_s21, 3 }
   0xe   : > { %1151 = vmatpush3.bf16.msra.mxu0 %v1238_v0  ;;  %1206 = vmatpush3.bf16.msra.mxu1 %v1238_v0  ;;  %s1344_s29 = scalar_lea.vmem %s1498_s0, %s1095_s26  ;;  %v1244_v8 = vld [vmem:[%s1499_s1 + $0x8] sm:$0xff]   ;;  %v1245_v9 = vld [vmem:[%s1499_s1] sm:$0xff]   ;;  %s1397_s25 = scalar_lea.vmem %s1502_s4, %s1097_s22 }
   0xf   : > { %1152 = vmatprep.subr.bf16.mxu0 %v1239_v1  ;;  %1199 = vmatprep.subr.bf16.mxu1 %v1239_v1  ;;  %v1246_v4 = vld [vmem:[%s1344_s29] sm:$0xff]   ;;  %v1248_v10 = vld [vmem:[%s1344_s29 + $0x8] sm:$0xff]   ;;  %v1250_v12 = vld [vmem:[%s1344_s29 + $0x10] sm:$0xff]  }
  0x10   : > { %v1247_v5 = vld [vmem:[%s1344_s29 + $0x40] sm:$0xff]   ;;  %1166 = vmatprep.mubr.bf16.mxu0 %v1246_v4  ;;  %v1249_v11 = vld [vmem:[%s1344_s29 + $0x48] sm:$0xff]   ;;  %v1251_v13 = vld [vmem:[%s1344_s29 + $0x50] sm:$0xff]  }
  0x11   : > { %1182 = vmatprep.mubr.bf16.mxu1 %v1247_v5  ;;  %v1252_v14 = vld [vmem:[%s1344_s29 + $0x18] sm:$0xff]   ;;  %v1254_v16 = vld [vmem:[%s1344_s29 + $0x20] sm:$0xff]   ;;  %v1256_v18 = vld [vmem:[%s1344_s29 + $0x28] sm:$0xff]  }
  0x12   : > { %1153 = vmatpush3.bf16.msra.mxu0 %v1239_v1  ;;  %1207 = vmatpush3.bf16.msra.mxu1 %v1239_v1  ;;  %v1253_v15 = vld [vmem:[%s1344_s29 + $0x58] sm:$0xff]   ;;  %v1255_v17 = vld [vmem:[%s1344_s29 + $0x60] sm:$0xff]   ;;  %v1257_v19 = vld [vmem:[%s1344_s29 + $0x68] sm:$0xff]  }
  0x13   : > { %1154 = vmatprep.subr.bf16.mxu0 %v1240_v2  ;;  %1200 = vmatprep.subr.bf16.mxu1 %v1240_v2  ;;  %v1258_v20 = vld [vmem:[%s1344_s29 + $0x30] sm:$0xff]   ;;  %v1260_v22 = vld [vmem:[%s1344_s29 + $0x38] sm:$0xff]   ;;  %v1380_v24 = vld [vmem:[%s1500_s2] ss:$0 sm:$0xff] }
  0x14   : > { %v1259_v21 = vld [vmem:[%s1344_s29 + $0x70] sm:$0xff]   ;;  %v1261_v23 = vld [vmem:[%s1344_s29 + $0x78] sm:$0xff]   ;;  %v1385_v26 = vld [vmem:[%s1501_s3] ss:$0 sm:$0xff] }
  0x16   : > { %1155 = vmatpush3.bf16.msra.mxu0 %v1240_v2  ;;  %1208 = vmatpush3.bf16.msra.mxu1 %v1240_v2 }
  0x17   : > { %1156 = vmatprep.subr.bf16.mxu0 %v1241_v3  ;;  %1201 = vmatprep.subr.bf16.mxu1 %v1241_v3 }
  0x1a   : > { %1157 = vmatpush3.bf16.msra.mxu0 %v1241_v3  ;;  %1209 = vmatpush3.bf16.msra.mxu1 %v1241_v3 }
  0x1b   : > { %1158 = vmatprep.subr.bf16.mxu0 %v1242_v6  ;;  %1202 = vmatprep.subr.bf16.mxu1 %v1242_v6 }
  0x1e   : > { %1159 = vmatpush3.bf16.msra.mxu0 %v1242_v6  ;;  %1210 = vmatpush3.bf16.msra.mxu1 %v1242_v6 }
  0x1f   : > { %1160 = vmatprep.subr.bf16.mxu0 %v1243_v7  ;;  %1203 = vmatprep.subr.bf16.mxu1 %v1243_v7 }
  0x22   : > { %1161 = vmatpush3.bf16.msra.mxu0 %v1243_v7  ;;  %1211 = vmatpush3.bf16.msra.mxu1 %v1243_v7 }
  0x23   : > { %1162 = vmatprep.subr.bf16.mxu0 %v1244_v8  ;;  %1204 = vmatprep.subr.bf16.mxu1 %v1244_v8 }
  0x26   : > { %1163 = vmatpush3.bf16.msra.mxu0 %v1244_v8  ;;  %1212 = vmatpush3.bf16.msra.mxu1 %v1244_v8 }
  0x27   : > { %1164 = vmatprep.subr.bf16.mxu0 %v1245_v9  ;;  %1205 = vmatprep.subr.bf16.mxu1 %v1245_v9 }
  0x2a   : > { %1165 = vmatpush3.bf16.msra.mxu0 %v1245_v9  ;;  %1213 = vmatpush3.bf16.msra.mxu1 %v1245_v9 }
  0x2d   : > { %1167 = vmatmul.mubr.bf16.vlgmr.msra.gmra.mxu0 %v1248_v10  ;;  %1183 = vmatmul.mubr.bf16.vlgmr.msra.gmra.mxu1 %v1249_v11 }
  0x2e   : > { %1170 = vmatprep.mubr.bf16.mxu0 %v1250_v12  ;;  %1186 = vmatprep.mubr.bf16.mxu1 %v1251_v13 }
  0x35   : > { %1171 = vmatmul.mubr.bf16.gmra.mxu0 %v1252_v14  ;;  %1187 = vmatmul.mubr.bf16.gmra.mxu1 %v1253_v15 }
  0x36   : > { %1174 = vmatprep.mubr.bf16.mxu0 %v1254_v16  ;;  %1190 = vmatprep.mubr.bf16.mxu1 %v1255_v17 }
  0x3d   : > { %1175 = vmatmul.mubr.bf16.gmra.mxu0 %v1256_v18  ;;  %1191 = vmatmul.mubr.bf16.gmra.mxu1 %v1257_v19 }
  0x3e   : > { %1178 = vmatprep.mubr.bf16.mxu0 %v1258_v20  ;;  %1194 = vmatprep.mubr.bf16.mxu1 %v1259_v21 }
  0x45   : > { %1179 = vmatmul.mubr.bf16.gmra.mxu0 %v1260_v22  ;;  %1195 = vmatmul.mubr.bf16.gmra.mxu1 %v1261_v23 }
  0xed   : > { %v1168_v25 = vpop.f32.mrf.mxu0  ;;  %v1184_v27 = vpop.f32.mrf.mxu1 }
  0xee   : > { %v830_v28 = vmul.f32 %v1168_v25, %v1380_v24  ;;  %v846_v29 = vmul.f32 %v1184_v27, %v1380_v24 }
  0xef   : > { %v595_v30 = vpop.f32.mrf.mxu0  ;;  %v659_v31 = vpop.f32.mrf.mxu1 }
  0xf0   : > { %v869_v32 = vadd.f32 %v1385_v26, %v830_v28  ;;  %v885_v33 = vadd.f32 %v1385_v26, %v846_v29  ;;  %v828_v34 = vmul.f32 %v1380_v24, %v595_v30  ;;  %v844_v35 = vmul.f32 %v1380_v24, %v659_v31 }
  0xf1   : > { %v1169_v36 = vpop.f32.mrf.mxu0  ;;  %v1185_v37 = vpop.f32.mrf.mxu1 }
  0xf2   : > { %v901_v38 = vmax.f32 %v869_v32, 0.0  ;;  %v917_v39 = vmax.f32 %v885_v33, 0.0  ;;  %v867_v40 = vadd.f32 %v1385_v26, %v828_v34  ;;  %v883_v41 = vadd.f32 %v1385_v26, %v844_v35 }
  0xf3   : > { %v831_v42 = vmul.f32 %v1169_v36, %v1380_v24  ;;  %v847_v43 = vmul.f32 %v1185_v37, %v1380_v24  ;;  %v598_v44 = vpop.f32.mrf.mxu0  ;;  %v662_v45 = vpop.f32.mrf.mxu1 }
  0xf4   : > { %933 = vst [vmem:[%s1397_s25 + $0x10] sm:$0xff] %v901_v38  ;;  %949 = vst [vmem:[%s1397_s25 + $0x90] sm:$0xff] %v917_v39  ;;  %v899_v46 = vmax.f32 %v867_v40, 0.0  ;;  %v915_v47 = vmax.f32 %v883_v41, 0.0  ;;  %v829_v48 = vmul.f32 %v1380_v24, %v598_v44  ;;  %v845_v49 = vmul.f32 %v1380_v24, %v662_v45 }
  0xf5   : > { %v870_v50 = vadd.f32 %v1385_v26, %v831_v42  ;;  %v886_v51 = vadd.f32 %v1385_v26, %v847_v43  ;;  %v1172_v52 = vpop.f32.mrf.mxu0  ;;  %v1188_v53 = vpop.f32.mrf.mxu1 }
  0xf6   : > { %931 = vst [vmem:[%s1397_s25] sm:$0xff] %v899_v46  ;;  %947 = vst [vmem:[%s1397_s25 + $0x80] sm:$0xff] %v915_v47  ;;  %v868_v54 = vadd.f32 %v1385_v26, %v829_v48  ;;  %v884_v55 = vadd.f32 %v1385_v26, %v845_v49  ;;  %v834_v56 = vmul.f32 %v1172_v52, %v1380_v24 }
  0xf7   : > { %v850_v57 = vmul.f32 %v1188_v53, %v1380_v24  ;;  %v902_v58 = vmax.f32 %v870_v50, 0.0  ;;  %v918_v59 = vmax.f32 %v886_v51, 0.0  ;;  %v611_v60 = vpop.f32.mrf.mxu0  ;;  %v675_v61 = vpop.f32.mrf.mxu1 }
  0xf8   : > { %v900_v62 = vmax.f32 %v868_v54, 0.0  ;;  %v916_v63 = vmax.f32 %v884_v55, 0.0  ;;  %v873_v0 = vadd.f32 %v1385_v26, %v834_v56  ;;  %v832_v2 = vmul.f32 %v1380_v24, %v611_v60 }
  0xf9   : > { %v889_v1 = vadd.f32 %v1385_v26, %v850_v57  ;;  %934 = vst [vmem:[%s1397_s25 + $0x18] sm:$0xff] %v902_v58  ;;  %950 = vst [vmem:[%s1397_s25 + $0x98] sm:$0xff] %v918_v59  ;;  %v848_v3 = vmul.f32 %v1380_v24, %v675_v61  ;;  %v1173_v4 = vpop.f32.mrf.mxu0  ;;  %v1189_v5 = vpop.f32.mrf.mxu1 }
  0xfa   : > { %932 = vst [vmem:[%s1397_s25 + $0x8] sm:$0xff] %v900_v62  ;;  %948 = vst [vmem:[%s1397_s25 + $0x88] sm:$0xff] %v916_v63  ;;  %v905_v6 = vmax.f32 %v873_v0, 0.0  ;;  %v835_v8 = vmul.f32 %v1173_v4, %v1380_v24  ;;  %v851_v9 = vmul.f32 %v1189_v5, %v1380_v24  ;;  %v871_v10 = vadd.f32 %v1385_v26, %v832_v2 }
  0xfb   : > { %v921_v7 = vmax.f32 %v889_v1, 0.0  ;;  %v887_v11 = vadd.f32 %v1385_v26, %v848_v3  ;;  %v614_v12 = vpop.f32.mrf.mxu0  ;;  %v678_v13 = vpop.f32.mrf.mxu1 }
  0xfc   : > { %937 = vst [vmem:[%s1397_s25 + $0x30] sm:$0xff] %v905_v6  ;;  %v874_v14 = vadd.f32 %v1385_v26, %v835_v8  ;;  %v890_v15 = vadd.f32 %v1385_v26, %v851_v9  ;;  %v833_v16 = vmul.f32 %v1380_v24, %v614_v12  ;;  %v849_v17 = vmul.f32 %v1380_v24, %v678_v13 }
  0xfd   : > { %953 = vst [vmem:[%s1397_s25 + $0xb0] sm:$0xff] %v921_v7  ;;  %v903_v18 = vmax.f32 %v871_v10, 0.0  ;;  %v919_v19 = vmax.f32 %v887_v11, 0.0  ;;  %v1176_v20 = vpop.f32.mrf.mxu0  ;;  %v1192_v21 = vpop.f32.mrf.mxu1 }
  0xfe   : > { %v906_v22 = vmax.f32 %v874_v14, 0.0  ;;  %v922_v23 = vmax.f32 %v890_v15, 0.0  ;;  %v872_v25 = vadd.f32 %v1385_v26, %v833_v16  ;;  %v888_v27 = vadd.f32 %v1385_v26, %v849_v17 }
  0xff   : > { %935 = vst [vmem:[%s1397_s25 + $0x20] sm:$0xff] %v903_v18  ;;  %951 = vst [vmem:[%s1397_s25 + $0xa0] sm:$0xff] %v919_v19  ;;  %v838_v28 = vmul.f32 %v1176_v20, %v1380_v24  ;;  %v854_v29 = vmul.f32 %v1192_v21, %v1380_v24  ;;  %v627_v30 = vpop.f32.mrf.mxu0  ;;  %v691_v31 = vpop.f32.mrf.mxu1 }
 0x100   : > { %938 = vst [vmem:[%s1397_s25 + $0x38] sm:$0xff] %v906_v22  ;;  %954 = vst [vmem:[%s1397_s25 + $0xb8] sm:$0xff] %v922_v23  ;;  %v904_v32 = vmax.f32 %v872_v25, 0.0  ;;  %v920_v33 = vmax.f32 %v888_v27, 0.0  ;;  %v836_v34 = vmul.f32 %v1380_v24, %v627_v30  ;;  %v852_v35 = vmul.f32 %v1380_v24, %v691_v31 }
 0x101   : > { %v877_v36 = vadd.f32 %v1385_v26, %v838_v28  ;;  %v893_v37 = vadd.f32 %v1385_v26, %v854_v29  ;;  %v1177_v38 = vpop.f32.mrf.mxu0  ;;  %v1193_v39 = vpop.f32.mrf.mxu1 }
 0x102   : > { %936 = vst [vmem:[%s1397_s25 + $0x28] sm:$0xff] %v904_v32  ;;  %952 = vst [vmem:[%s1397_s25 + $0xa8] sm:$0xff] %v920_v33  ;;  %v875_v40 = vadd.f32 %v1385_v26, %v836_v34  ;;  %v891_v41 = vadd.f32 %v1385_v26, %v852_v35  ;;  %v839_v42 = vmul.f32 %v1177_v38, %v1380_v24 }
 0x103   : > { %v855_v43 = vmul.f32 %v1193_v39, %v1380_v24  ;;  %v909_v44 = vmax.f32 %v877_v36, 0.0  ;;  %v925_v45 = vmax.f32 %v893_v37, 0.0  ;;  %v630_v46 = vpop.f32.mrf.mxu0  ;;  %v694_v47 = vpop.f32.mrf.mxu1 }
 0x104   : > { %v907_v48 = vmax.f32 %v875_v40, 0.0  ;;  %v923_v49 = vmax.f32 %v891_v41, 0.0  ;;  %v878_v50 = vadd.f32 %v1385_v26, %v839_v42  ;;  %v837_v52 = vmul.f32 %v1380_v24, %v630_v46 }
 0x105   : > { %v894_v51 = vadd.f32 %v1385_v26, %v855_v43  ;;  %941 = vst [vmem:[%s1397_s25 + $0x50] sm:$0xff] %v909_v44  ;;  %957 = vst [vmem:[%s1397_s25 + $0xd0] sm:$0xff] %v925_v45  ;;  %v853_v53 = vmul.f32 %v1380_v24, %v694_v47  ;;  %v1180_v54 = vpop.f32.mrf.mxu0  ;;  %v1196_v55 = vpop.f32.mrf.mxu1 }
 0x106   : > { %939 = vst [vmem:[%s1397_s25 + $0x40] sm:$0xff] %v907_v48  ;;  %955 = vst [vmem:[%s1397_s25 + $0xc0] sm:$0xff] %v923_v49  ;;  %v910_v56 = vmax.f32 %v878_v50, 0.0  ;;  %v842_v58 = vmul.f32 %v1180_v54, %v1380_v24  ;;  %v858_v59 = vmul.f32 %v1196_v55, %v1380_v24  ;;  %v876_v60 = vadd.f32 %v1385_v26, %v837_v52 }
 0x107   : > { %v926_v57 = vmax.f32 %v894_v51, 0.0  ;;  %v892_v61 = vadd.f32 %v1385_v26, %v853_v53  ;;  %v643_v62 = vpop.f32.mrf.mxu0  ;;  %v707_v63 = vpop.f32.mrf.mxu1 }
 0x108   : > { %942 = vst [vmem:[%s1397_s25 + $0x58] sm:$0xff] %v910_v56  ;;  %v881_v0 = vadd.f32 %v1385_v26, %v842_v58  ;;  %v897_v1 = vadd.f32 %v1385_v26, %v858_v59  ;;  %v840_v2 = vmul.f32 %v1380_v24, %v643_v62  ;;  %v856_v3 = vmul.f32 %v1380_v24, %v707_v63 }
 0x109   : > { %958 = vst [vmem:[%s1397_s25 + $0xd8] sm:$0xff] %v926_v57  ;;  %v908_v4 = vmax.f32 %v876_v60, 0.0  ;;  %v924_v5 = vmax.f32 %v892_v61, 0.0  ;;  %v1181_v6 = vpop.f32.mrf.mxu0  ;;  %v1197_v7 = vpop.f32.mrf.mxu1 }
 0x10a   : > { %v913_v8 = vmax.f32 %v881_v0, 0.0  ;;  %v929_v9 = vmax.f32 %v897_v1, 0.0  ;;  %v879_v10 = vadd.f32 %v1385_v26, %v840_v2  ;;  %v895_v11 = vadd.f32 %v1385_v26, %v856_v3 }
 0x10b   : > { %940 = vst [vmem:[%s1397_s25 + $0x48] sm:$0xff] %v908_v4  ;;  %956 = vst [vmem:[%s1397_s25 + $0xc8] sm:$0xff] %v924_v5  ;;  %v843_v12 = vmul.f32 %v1181_v6, %v1380_v24  ;;  %v859_v13 = vmul.f32 %v1197_v7, %v1380_v24  ;;  %v646_v14 = vpop.f32.mrf.mxu0  ;;  %v710_v15 = vpop.f32.mrf.mxu1 }
 0x10c   : > { %945 = vst [vmem:[%s1397_s25 + $0x70] sm:$0xff] %v913_v8  ;;  %961 = vst [vmem:[%s1397_s25 + $0xf0] sm:$0xff] %v929_v9  ;;  %v911_v16 = vmax.f32 %v879_v10, 0.0  ;;  %v927_v17 = vmax.f32 %v895_v11, 0.0  ;;  %v841_v18 = vmul.f32 %v1380_v24, %v646_v14  ;;  %v857_v19 = vmul.f32 %v1380_v24, %v710_v15 }
 0x10d   : > { %v882_v20 = vadd.f32 %v1385_v26, %v843_v12  ;;  %v898_v21 = vadd.f32 %v1385_v26, %v859_v13 }
 0x10e   : > { %943 = vst [vmem:[%s1397_s25 + $0x60] sm:$0xff] %v911_v16  ;;  %959 = vst [vmem:[%s1397_s25 + $0xe0] sm:$0xff] %v927_v17  ;;  %v880_v22 = vadd.f32 %v1385_v26, %v841_v18  ;;  %v896_v23 = vadd.f32 %v1385_v26, %v857_v19 }
 0x10f   : > { %v914_v25 = vmax.f32 %v882_v20, 0.0  ;;  %v930_v27 = vmax.f32 %v898_v21, 0.0 }
 0x110   : > { %v912_v28 = vmax.f32 %v880_v22, 0.0  ;;  %v928_v29 = vmax.f32 %v896_v23, 0.0 }
 0x111   : > { %946 = vst [vmem:[%s1397_s25 + $0x78] sm:$0xff] %v914_v25  ;;  %962 = vst [vmem:[%s1397_s25 + $0xf8] sm:$0xff] %v930_v27 }
 0x112   : > { %944 = vst [vmem:[%s1397_s25 + $0x68] sm:$0xff] %v912_v28  ;;  %960 = vst [vmem:[%s1397_s25 + $0xe8] sm:$0xff] %v928_v29 }
 0x113 PF: > { %s14_s17 = sadd.s32 1, %s1284_s17   ;;  %s1503_s15 = smov %s1280_s16 }
 0x114   : > { %p11_p5 = scmp.ge.s32.totalorder %s14_s17, 7   ;;  %s1504_s16 = smov %s1506_s18 }
 0x116   :  { %13 = sbr.rel (!%p11_p5) target bundleno = 2 (0x2), region = 83 }

// kernel: forward.8
= control target key start
LH: loop header
LB: loop body
LE: loop exit
PB: predicated region body
PF: predicated region fallthrough
CT: control target
= control target key end

     0   :  { %s2455_s0 = inlined_call_operand.vmem [shape: bf16[288,2432], index: 0, kind: input, shape index: {}]   ;;  %s2456_s1 = inlined_call_operand.vmem [shape: bf16[2432,256], index: 1, kind: input, shape index: {}]   ;;  %s2457_s2 = inlined_call_operand.vmem [shape: f32[1,256], index: 2, kind: input, shape index: {}]   ;;  %s2458_s3 = inlined_call_operand.vmem [shape: f32[1,256], index: 3, kind: input, shape index: {}]   ;;  %s2459_s4 = inlined_call_operand.vmem [shape: f32[288,256], index: 4, kind: output, shape index: {}]  }
   0x1   :  { %2463 = sst [smem:[#allocation9_spill]] %s2455_s0 }
   0x2   :  { %2464 = sst [smem:[#allocation10_spill]] %s2456_s1 }
   0x3   :  { %s1961_s15 = smov 0   ;;  %s1963_s16 = smov 0  }
   0x4   :  { %s1965_s17 = smov 0   ;;  %s1967_s18 = smov 0  }
   0x5   :  { %s1969_s19 = smov 0   ;;  %s1971_s20 = smov 0  }
   0x6   :  { %s1973_s21 = smov 0   ;;  %s1975_s22 = smov 0  }
   0x7   :  { %s1977_s23 = smov 0   ;;  %s1979_s24 = smov 0  }
   0x8   :  { %s1981_s25 = smov 0  }
   0x9 LB: > { %2465 = sst [smem:[#allocation6_spill]] %s1929_s24  ;;  %s1590_s26 = sadd.s32 4294967295, %s1933_s25   ;;  %s1933_s25 = sphi %s1981_s25, %s14_s25   ;;  %s1929_s24 = sphi %s1979_s24, %s2475_s24   ;;  %s1925_s23 = sphi %s1977_s23, %s2483_s23   ;;  %s1921_s22 = sphi %s1975_s22, %s2473_s22   ;;  %s1917_s21 = sphi %s1973_s21, %s2482_s21   ;;  %s1913_s20 = sphi %s1971_s20, %s2481_s20   ;;  %s1909_s19 = sphi %s1969_s19, %s2480_s19   ;;  %s1905_s18 = sphi %s1967_s18, %s2479_s18   ;;  %s1901_s17 = sphi %s1965_s17, %s2478_s17   ;;  %s1897_s16 = sphi %s1963_s16, %s2477_s16   ;;  %s1893_s15 = sphi %s1961_s15, %s2476_s15  }
   0xa   : > { %s26_s27 = sadd.s32 1, %s1925_s23  ;;  %s29_s28 = sadd.s32 1, %s1929_s24 }
   0xb   : > { %p27_p0 = scmp.ge.s32.totalorder %s26_s27, 19  ;;  %s42_s29 = sadd.s32 1, %s1913_s20 }
   0xc   : > { %p49_p1 = scmp.ne.s32.totalorder %s1913_s20, %s1909_s19  ;;  %p50_p2 = scmp.eq.s32.totalorder %s1933_s25, 0 }
   0xd   : > { %s2485_s27 = smov (%p27_p0, %s26_s27), 0  ;;  %s2487_s28 = smov (!%p27_p0, %s29_s28), %s1929_s24 }
   0xe   : > { %2466 = sst [smem:[#allocation7_spill]] %s2485_s27  ;;  %s38_s30 = ssub.s32 %s1925_s23, %s2485_s27 }
   0xf   : > { %p31_p3 = scmp.ge.s32.totalorder %s2487_s28, 2  ;;  %p40_p4 = scmp.eq.s32.totalorder %s38_s30, 0 }
  0x10   : > { %p2028_p5 = por %p50_p2, %p49_p1  ;;  %s70_s6 = sadd.s32 1, %s1905_s18 }
  0x11   : > { %s2489_s28 = smov (%p31_p3, %s2487_s28), 0  ;;  %p77_p6 = scmp.ne.s32.totalorder %s1905_s18, %s1901_s17 }
  0x12   : > { %2468 = sst [smem:[#allocation8_spill]] %s2489_s28  ;;  %s66_s8 = ssub.s32 %s1929_s24, %s2489_s28 }
  0x13   : > { %s2036_s7 = scalar_select %p40_p4, %s1913_s20, %s42_s29  }
  0x14   : > { %s67_s9 = sor.u32 %s66_s8, %s38_s30  ;;  %p148_p7 = scmp.eq.s32.totalorder %s66_s8, 0 }
  0x15   : > { %p68_p8 = scmp.eq.s32.totalorder %s67_s9, 0  ;;  %p2042_p9 = por %p77_p6, %p50_p2 }
  0x16   : > { %s150_s11 = sadd.s32 1, %s1897_s16  ;;  %p160_p10 = scmp.ne.s32.totalorder %s1897_s16, %s1893_s15 }
  0x17   : > { %s2050_s12 = scalar_select %p68_p8, %s1905_s18, %s70_s6  }
  0x18   : > { %s2053_s13 = scalar_select %p148_p7, %s1897_s16, %s150_s11  }
  0x19   : > { %p161_p11 = scmp.eq.s32.totalorder %s1590_s26, 37  ;;  %p1593_p13 = scmp.ge.s32.totalorder %s1933_s25, 38 }
  0x1b   : > { %p2055_p12 = por %p161_p11, %p160_p10  ;;  %183 = sbr.rel (%p1593_p13) target bundleno = 86 (0x56), region = 16 }
  0x20   : > { %186 = sbr.rel (!%p2028_p5) target bundleno = 66 (0x42), region = 20  ;;  %s188_s29 = sand.u32 (%p2028_p5), 1, %s1913_s20  }
  0x21   : > { %s1594_s30 = sshll.u32 (%p2028_p5), %s1925_s23, 2  ;;  %s1729_s8 = smul.u32 (%p2028_p5), 144, %s188_s29 }
  0x22   : > { %s2471_s0 = sld [smem:[#allocation9_spill]] (%p2028_p5) }
  0x23   : > { %s2074_s26 = scalar_lea.vmem (%p2028_p5), [#allocation3], %s1729_s8 }
  0x28   : > { %s2067_s11 = scalar_lea.vmem %s2471_s0, %s1594_s30 }
  0x29   : > { %v212_v0 = vld [vmem:[%s2067_s11] sm:$0xf]  ;;  %v214_v1 = vld [vmem:[%s2067_s11 + $0x4c] sm:$0xf]  ;;  %v216_v2 = vld [vmem:[%s2067_s11 + $0x98] sm:$0xf] }
  0x2a   : > { %v218_v3 = vld [vmem:[%s2067_s11 + $0xe4] sm:$0xf]  ;;  %v220_v4 = vld [vmem:[%s2067_s11 + $0x130] sm:$0xf]  ;;  %213 = vst [vmem:[%s2074_s26] sm:$0xf] %v212_v0 }
  0x2b   : > { %215 = vst [vmem:[%s2074_s26 + $0x4] sm:$0xf] %v214_v1  ;;  %217 = vst [vmem:[%s2074_s26 + $0x8] sm:$0xf] %v216_v2  ;;  %v222_v5 = vld [vmem:[%s2067_s11 + $0x17c] sm:$0xf] }
  0x2c   : > { %219 = vst [vmem:[%s2074_s26 + $0xc] sm:$0xf] %v218_v3  ;;  %221 = vst [vmem:[%s2074_s26 + $0x10] sm:$0xf] %v220_v4  ;;  %v224_v6 = vld [vmem:[%s2067_s11 + $0x1c8] sm:$0xf] }
  0x2d   : > { %v226_v7 = vld [vmem:[%s2067_s11 + $0x214] sm:$0xf]  ;;  %223 = vst [vmem:[%s2074_s26 + $0x14] sm:$0xf] %v222_v5  ;;  %225 = vst [vmem:[%s2074_s26 + $0x18] sm:$0xf] %v224_v6 }
  0x2e   : > { %227 = vst [vmem:[%s2074_s26 + $0x1c] sm:$0xf] %v226_v7  ;;  %v228_v8 = vld [vmem:[%s2067_s11 + $0x260] sm:$0xf]  ;;  %v230_v9 = vld [vmem:[%s2067_s11 + $0x2ac] sm:$0xf] }
  0x2f   : > { %v232_v10 = vld [vmem:[%s2067_s11 + $0x2f8] sm:$0xf]  ;;  %229 = vst [vmem:[%s2074_s26 + $0x20] sm:$0xf] %v228_v8  ;;  %231 = vst [vmem:[%s2074_s26 + $0x24] sm:$0xf] %v230_v9 }
  0x30   : > { %233 = vst [vmem:[%s2074_s26 + $0x28] sm:$0xf] %v232_v10  ;;  %v234_v11 = vld [vmem:[%s2067_s11 + $0x344] sm:$0xf]  ;;  %v236_v12 = vld [vmem:[%s2067_s11 + $0x390] sm:$0xf] }
  0x31   : > { %v238_v13 = vld [vmem:[%s2067_s11 + $0x3dc] sm:$0xf]  ;;  %235 = vst [vmem:[%s2074_s26 + $0x2c] sm:$0xf] %v234_v11  ;;  %237 = vst [vmem:[%s2074_s26 + $0x30] sm:$0xf] %v236_v12 }
  0x32   : > { %239 = vst [vmem:[%s2074_s26 + $0x34] sm:$0xf] %v238_v13  ;;  %v240_v14 = vld [vmem:[%s2067_s11 + $0x428] sm:$0xf]  ;;  %v242_v15 = vld [vmem:[%s2067_s11 + $0x474] sm:$0xf] }
  0x33   : > { %v244_v16 = vld [vmem:[%s2067_s11 + $0x4c0] sm:$0xf]  ;;  %241 = vst [vmem:[%s2074_s26 + $0x38] sm:$0xf] %v240_v14  ;;  %243 = vst [vmem:[%s2074_s26 + $0x3c] sm:$0xf] %v242_v15 }
  0x34   : > { %245 = vst [vmem:[%s2074_s26 + $0x40] sm:$0xf] %v244_v16  ;;  %v246_v17 = vld [vmem:[%s2067_s11 + $0x50c] sm:$0xf]  ;;  %v248_v18 = vld [vmem:[%s2067_s11 + $0x558] sm:$0xf] }
  0x35   : > { %v250_v19 = vld [vmem:[%s2067_s11 + $0x5a4] sm:$0xf]  ;;  %247 = vst [vmem:[%s2074_s26 + $0x44] sm:$0xf] %v246_v17  ;;  %249 = vst [vmem:[%s2074_s26 + $0x48] sm:$0xf] %v248_v18 }
  0x36   : > { %251 = vst [vmem:[%s2074_s26 + $0x4c] sm:$0xf] %v250_v19  ;;  %v252_v20 = vld [vmem:[%s2067_s11 + $0x5f0] sm:$0xf]  ;;  %v254_v21 = vld [vmem:[%s2067_s11 + $0x63c] sm:$0xf] }
  0x37   : > { %v256_v22 = vld [vmem:[%s2067_s11 + $0x688] sm:$0xf]  ;;  %253 = vst [vmem:[%s2074_s26 + $0x50] sm:$0xf] %v252_v20  ;;  %255 = vst [vmem:[%s2074_s26 + $0x54] sm:$0xf] %v254_v21 }
  0x38   : > { %257 = vst [vmem:[%s2074_s26 + $0x58] sm:$0xf] %v256_v22  ;;  %v258_v23 = vld [vmem:[%s2067_s11 + $0x6d4] sm:$0xf]  ;;  %v260_v24 = vld [vmem:[%s2067_s11 + $0x720] sm:$0xf] }
  0x39   : > { %v262_v25 = vld [vmem:[%s2067_s11 + $0x76c] sm:$0xf]  ;;  %259 = vst [vmem:[%s2074_s26 + $0x5c] sm:$0xf] %v258_v23  ;;  %261 = vst [vmem:[%s2074_s26 + $0x60] sm:$0xf] %v260_v24 }
  0x3a   : > { %263 = vst [vmem:[%s2074_s26 + $0x64] sm:$0xf] %v262_v25  ;;  %v264_v26 = vld [vmem:[%s2067_s11 + $0x7b8] sm:$0xf]  ;;  %v266_v27 = vld [vmem:[%s2067_s11 + $0x804] sm:$0xf] }
  0x3b   : > { %v268_v28 = vld [vmem:[%s2067_s11 + $0x850] sm:$0xf]  ;;  %265 = vst [vmem:[%s2074_s26 + $0x68] sm:$0xf] %v264_v26  ;;  %267 = vst [vmem:[%s2074_s26 + $0x6c] sm:$0xf] %v266_v27 }
  0x3c   : > { %269 = vst [vmem:[%s2074_s26 + $0x70] sm:$0xf] %v268_v28  ;;  %v270_v29 = vld [vmem:[%s2067_s11 + $0x89c] sm:$0xf]  ;;  %v272_v30 = vld [vmem:[%s2067_s11 + $0x8e8] sm:$0xf] }
  0x3d   : > { %v274_v31 = vld [vmem:[%s2067_s11 + $0x934] sm:$0xf]  ;;  %271 = vst [vmem:[%s2074_s26 + $0x74] sm:$0xf] %v270_v29  ;;  %273 = vst [vmem:[%s2074_s26 + $0x78] sm:$0xf] %v272_v30 }
  0x3e   : > { %275 = vst [vmem:[%s2074_s26 + $0x7c] sm:$0xf] %v274_v31  ;;  %v276_v32 = vld [vmem:[%s2067_s11 + $0x980] sm:$0xf]  ;;  %v278_v33 = vld [vmem:[%s2067_s11 + $0x9cc] sm:$0xf] }
  0x3f   : > { %v280_v34 = vld [vmem:[%s2067_s11 + $0xa18] sm:$0xf]  ;;  %277 = vst [vmem:[%s2074_s26 + $0x80] sm:$0xf] %v276_v32  ;;  %279 = vst [vmem:[%s2074_s26 + $0x84] sm:$0xf] %v278_v33 }
  0x40   : > { %281 = vst [vmem:[%s2074_s26 + $0x88] sm:$0xf] %v280_v34  ;;  %v282_v35 = vld [vmem:[%s2067_s11 + $0xa64] sm:$0xf] }
  0x41   : > { %283 = vst [vmem:[%s2074_s26 + $0x8c] sm:$0xf] %v282_v35 }
  0x42 PF: > { %379 = sbr.rel (!%p2042_p9) target bundleno = 86 (0x56), region = 61  ;;  %s381_s5 = sand.u32 (%p2042_p9), 1, %s1905_s18  }
  0x43   : > { %s1634_s29 = sshll.u32 (%p2042_p9), %s1925_s23, 5  ;;  %s1595_s30 = sshll.u32 (%p2042_p9), %s381_s5, 6 }
  0x44   : > { %s386_s8 = sadd.s32 (%p2042_p9), %s1929_s24, %s1634_s29  ;;  %s2472_s1 = sld [smem:[#allocation10_spill]] (%p2042_p9) }
  0x45   : > { %s1598_s6 = sshll.u32 (%p2042_p9), %s386_s8, 2  ;;  %s383_s10 = scalar_lea.vmem (%p2042_p9), [#allocation4], %s1595_s30 }
  0x4a   : > { %s2151_s28 = scalar_lea.vmem %s2472_s1, %s1598_s6 }
  0x4b   : > { %v405_v36 = vld [vmem:[%s2151_s28] sm:$0xf]  ;;  %v407_v37 = vld [vmem:[%s2151_s28 + $0x8] sm:$0xf]  ;;  %v409_v38 = vld [vmem:[%s2151_s28 + $0x10] sm:$0xf] }
  0x4c   : > { %406 = vst [vmem:[%s383_s10] sm:$0xf] %v405_v36  ;;  %408 = vst [vmem:[%s383_s10 + $0x4] sm:$0xf] %v407_v37  ;;  %v411_v39 = vld [vmem:[%s2151_s28 + $0x18] sm:$0xf] }
  0x4d   : > { %410 = vst [vmem:[%s383_s10 + $0x8] sm:$0xf] %v409_v38  ;;  %v413_v40 = vld [vmem:[%s2151_s28 + $0x20] sm:$0xf]  ;;  %v415_v41 = vld [vmem:[%s2151_s28 + $0x28] sm:$0xf] }
  0x4e   : > { %412 = vst [vmem:[%s383_s10 + $0xc] sm:$0xf] %v411_v39  ;;  %414 = vst [vmem:[%s383_s10 + $0x10] sm:$0xf] %v413_v40  ;;  %v417_v42 = vld [vmem:[%s2151_s28 + $0x30] sm:$0xf] }
  0x4f   : > { %416 = vst [vmem:[%s383_s10 + $0x14] sm:$0xf] %v415_v41  ;;  %v419_v43 = vld [vmem:[%s2151_s28 + $0x38] sm:$0xf]  ;;  %v421_v44 = vld [vmem:[%s2151_s28 + $0x40] sm:$0xf] }
  0x50   : > { %418 = vst [vmem:[%s383_s10 + $0x18] sm:$0xf] %v417_v42  ;;  %420 = vst [vmem:[%s383_s10 + $0x1c] sm:$0xf] %v419_v43  ;;  %v423_v45 = vld [vmem:[%s2151_s28 + $0x48] sm:$0xf] }
  0x51   : > { %422 = vst [vmem:[%s383_s10 + $0x20] sm:$0xf] %v421_v44  ;;  %v425_v46 = vld [vmem:[%s2151_s28 + $0x50] sm:$0xf]  ;;  %v427_v47 = vld [vmem:[%s2151_s28 + $0x58] sm:$0xf] }
  0x52   : > { %424 = vst [vmem:[%s383_s10 + $0x24] sm:$0xf] %v423_v45  ;;  %426 = vst [vmem:[%s383_s10 + $0x28] sm:$0xf] %v425_v46  ;;  %v429_v48 = vld [vmem:[%s2151_s28 + $0x60] sm:$0xf] }
  0x53   : > { %428 = vst [vmem:[%s383_s10 + $0x2c] sm:$0xf] %v427_v47  ;;  %v431_v49 = vld [vmem:[%s2151_s28 + $0x68] sm:$0xf]  ;;  %v433_v50 = vld [vmem:[%s2151_s28 + $0x70] sm:$0xf] }
  0x54   : > { %430 = vst [vmem:[%s383_s10 + $0x30] sm:$0xf] %v429_v48  ;;  %432 = vst [vmem:[%s383_s10 + $0x34] sm:$0xf] %v431_v49  ;;  %v435_v51 = vld [vmem:[%s2151_s28 + $0x78] sm:$0xf] }
  0x55   : > { %434 = vst [vmem:[%s383_s10 + $0x38] sm:$0xf] %v433_v50  ;;  %436 = vst [vmem:[%s383_s10 + $0x3c] sm:$0xf] %v435_v51 }
  0x56 PF: > { %p1599_p0 = scmp.ge.s32.totalorder %s1933_s25, 1  ;;  %p503_p1 = scmp.lt.s32.totalorder %s1933_s25, 39 }
  0x58   : > { %p504_p2 = pnand %p1599_p0, %p503_p1 }
  0x59   : > { %s510_s0 = sand.u32 (!%p504_p2), 1, %s1909_s19   ;;  %s517_s11 = sand.u32 (!%p504_p2), 1, %s1901_s17  }
  0x5a   : > { %507 = sbr.rel (%p504_p2) target bundleno = 442 (0x1ba), region = 110  ;;  %s1600_s5 = sshll.u32 (!%p504_p2), %s517_s11, 6 }
  0x5b   : > { %s1730_s26 = smul.u32 (!%p504_p2), 144, %s510_s0  ;;  %s548_s29 = sand.u32 (!%p504_p2), 1, %s1893_s15  }
  0x5c   : > { %s1731_s28 = smul.u32 (!%p504_p2), 288, %s548_s29  ;;  %p553_p3 = scmp.lt.s32.totalorder (!%p504_p2), %s1921_s22, 1 }
  0x5d   : > { %s2186_s24 = scalar_lea.vmem (!%p504_p2), [#allocation3], %s1730_s26  ;;  %s2188_s17 = scalar_lea.vmem (!%p504_p2), [#allocation4], %s1600_s5 }
  0x5e   : > { %s2190_s19 = scalar_lea.vmem (!%p504_p2), [#allocation5], %s1731_s28  ;;  %p1601_p4 = scmp.ne.s32.totalorder (!%p504_p2), %s1917_s21, 0 }
  0x5f   : > { %s2176_s30 = scalar_select %p553_p3, %s1921_s22, 1 }
  0x60   : > { %564 = sbr.rel (%p1601_p4) target bundleno = 120 (0x78), region = 122 }
  0x61   : > { %s555_s9 = scalar_lea.vmem %s2457_s2, %s2176_s30  ;;  %s558_s27 = scalar_lea.vmem %s2458_s3, %s2176_s30 }
  0x65   : > { %v1935_v52 = vmov 0.0  }
  0x66   : > { %565 = vst [vmem:[#allocation2 + $0xb0] sm:$0xff] %v1935_v52  ;;  %566 = vst [vmem:[#allocation2 + $0xd0] sm:$0xff] %v1935_v52 }
  0x67   : > { %567 = vst [vmem:[#allocation2 + $0x10] sm:$0xff] %v1935_v52  ;;  %568 = vst [vmem:[#allocation2 + $0x48] sm:$0xff] %v1935_v52 }
  0x68   : > { %569 = vst [vmem:[#allocation2 + $0x108] sm:$0xff] %v1935_v52  ;;  %570 = vst [vmem:[#allocation2 + $0x68] sm:$0xff] %v1935_v52 }
  0x69   : > { %571 = vst [vmem:[#allocation2 + $0x30] sm:$0xff] %v1935_v52  ;;  %572 = vst [vmem:[#allocation2 + $0x18] sm:$0xff] %v1935_v52 }
  0x6a   : > { %573 = vst [vmem:[#allocation2 + $0x80] sm:$0xff] %v1935_v52  ;;  %574 = vst [vmem:[#allocation2 + $0x110] sm:$0xff] %v1935_v52 }
  0x6b   : > { %575 = vst [vmem:[#allocation2 + $0x118] sm:$0xff] %v1935_v52  ;;  %576 = vst [vmem:[#allocation2 + $0x98] sm:$0xff] %v1935_v52 }
  0x6c   : > { %577 = vst [vmem:[#allocation2 + $0xf8] sm:$0xff] %v1935_v52  ;;  %578 = vst [vmem:[#allocation2 + $0x38] sm:$0xff] %v1935_v52 }
  0x6d   : > { %579 = vst [vmem:[#allocation2 + $0x8] sm:$0xff] %v1935_v52  ;;  %580 = vst [vmem:[#allocation2 + $0x78] sm:$0xff] %v1935_v52 }
  0x6e   : > { %581 = vst [vmem:[#allocation2 + $0x20] sm:$0xff] %v1935_v52  ;;  %582 = vst [vmem:[#allocation2 + $0xc8] sm:$0xff] %v1935_v52 }
  0x6f   : > { %583 = vst [vmem:[#allocation2 + $0x90] sm:$0xff] %v1935_v52  ;;  %584 = vst [vmem:[#allocation2 + $0xa0] sm:$0xff] %v1935_v52 }
  0x70   : > { %585 = vst [vmem:[#allocation2 + $0x70] sm:$0xff] %v1935_v52  ;;  %586 = vst [vmem:[#allocation2 + $0x58] sm:$0xff] %v1935_v52 }
  0x71   : > { %587 = vst [vmem:[#allocation2 + $0xe0] sm:$0xff] %v1935_v52  ;;  %588 = vst [vmem:[#allocation2 + $0x60] sm:$0xff] %v1935_v52 }
  0x72   : > { %589 = vst [vmem:[#allocation2 + $0xa8] sm:$0xff] %v1935_v52  ;;  %590 = vst [vmem:[#allocation2 + $0x88] sm:$0xff] %v1935_v52 }
  0x73   : > { %591 = vst [vmem:[#allocation2 + $0xd8] sm:$0xff] %v1935_v52  ;;  %592 = vst [vmem:[#allocation2 + $0xc0] sm:$0xff] %v1935_v52 }
  0x74   : > { %593 = vst [vmem:[#allocation2 + $0x50] sm:$0xff] %v1935_v52  ;;  %594 = vst [vmem:[#allocation2 + $0xf0] sm:$0xff] %v1935_v52 }
  0x75   : > { %595 = vst [vmem:[#allocation2 + $0xb8] sm:$0xff] %v1935_v52  ;;  %596 = vst [vmem:[#allocation2 + $0x28] sm:$0xff] %v1935_v52 }
  0x76   : > { %597 = vst [vmem:[#allocation2 + $0x100] sm:$0xff] %v1935_v52  ;;  %598 = vst [vmem:[#allocation2] sm:$0xff] %v1935_v52 }
  0x77   : > { %599 = vst [vmem:[#allocation2 + $0x40] sm:$0xff] %v1935_v52  ;;  %600 = vst [vmem:[#allocation2 + $0xe8] sm:$0xff] %v1935_v52 }
  0x78 PF: > { %v1821_v53 = vld [vmem:[%s2188_s17 + $0x38] sm:$0xff]   ;;  %v1822_v54 = vld [vmem:[%s2188_s17 + $0x30] sm:$0xff]   ;;  %v1823_v55 = vld [vmem:[%s2188_s17 + $0x28] sm:$0xff]   ;;  %p1628_p5 = scmp.ne.s32.totalorder %s1917_s21, 18 }
  0x79   : > { %1661 = vmatprep.subr.bf16.mxu0 %v1821_v53  ;;  %1713 = vmatprep.subr.bf16.mxu1 %v1821_v53  ;;  %v1824_v56 = vld [vmem:[%s2188_s17 + $0x20] sm:$0xff]   ;;  %v1825_v59 = vld [vmem:[%s2188_s17 + $0x18] sm:$0xff]   ;;  %v1826_v60 = vld [vmem:[%s2188_s17 + $0x10] sm:$0xff]  }
  0x7a   : > { %1662 = vmatpush3.bf16.msra.mxu0 %v1821_v53  ;;  %1721 = vmatpush3.bf16.msra.mxu1 %v1821_v53  ;;  %v1829_v57 = vld [vmem:[%s2186_s24] sm:$0xff]   ;;  %v1831_v58 = vld [vmem:[%s2186_s24 + $0x50] sm:$0xff]   ;;  %v1827_v61 = vld [vmem:[%s2188_s17 + $0x8] sm:$0xff]  }
  0x7b   : > { %1663 = vmatprep.subr.bf16.mxu0 %v1822_v54  ;;  %1714 = vmatprep.subr.bf16.mxu1 %v1822_v54  ;;  %v1828_v62 = vld [vmem:[%s2188_s17] sm:$0xff]   ;;  %v1830_v63 = vld [vmem:[%s2186_s24 + $0x8] sm:$0xff]   ;;  %v1832_v0 = vld [vmem:[%s2186_s24 + $0x58] sm:$0xff]  }
  0x7c   : > { %1677 = vmatprep.mubr.bf16.mxu0 %v1829_v57  ;;  %1697 = vmatprep.mubr.bf16.mxu1 %v1831_v58  ;;  %v1833_v1 = vld [vmem:[%s2186_s24 + $0x10] sm:$0xff]   ;;  %v1835_v2 = vld [vmem:[%s2186_s24 + $0x60] sm:$0xff]   ;;  %v1834_v3 = vld [vmem:[%s2186_s24 + $0x18] sm:$0xff]  }
  0x7d   : > { %v1836_v4 = vld [vmem:[%s2186_s24 + $0x68] sm:$0xff]   ;;  %v1837_v5 = vld [vmem:[%s2186_s24 + $0x20] sm:$0xff]   ;;  %v1839_v6 = vld [vmem:[%s2186_s24 + $0x70] sm:$0xff]  }
  0x7e   : > { %1664 = vmatpush3.bf16.msra.mxu0 %v1822_v54  ;;  %1722 = vmatpush3.bf16.msra.mxu1 %v1822_v54  ;;  %v1838_v7 = vld [vmem:[%s2186_s24 + $0x28] sm:$0xff]   ;;  %v1840_v8 = vld [vmem:[%s2186_s24 + $0x78] sm:$0xff]   ;;  %v1841_v9 = vld [vmem:[%s2186_s24 + $0x30] sm:$0xff]  }
  0x7f   : > { %1665 = vmatprep.subr.bf16.mxu0 %v1823_v55  ;;  %1715 = vmatprep.subr.bf16.mxu1 %v1823_v55  ;;  %v1843_v10 = vld [vmem:[%s2186_s24 + $0x80] sm:$0xff]   ;;  %v1842_v11 = vld [vmem:[%s2186_s24 + $0x38] sm:$0xff]   ;;  %v1844_v12 = vld [vmem:[%s2186_s24 + $0x88] sm:$0xff]  }
  0x80   : > { %v1845_v13 = vld [vmem:[%s2186_s24 + $0x40] sm:$0xff]   ;;  %v1846_v14 = vld [vmem:[%s2186_s24 + $0x48] sm:$0xff]  }
  0x81   : > { %v603_v15 = vld [vmem:[#allocation2 + $0x10] sm:$0xff]  ;;  %v623_v16 = vld [vmem:[#allocation2 + $0xe0] sm:$0xff]  ;;  %v604_v24 = vld [vmem:[#allocation2 + $0x48] sm:$0xff] }
  0x82   : > { %1666 = vmatpush3.bf16.msra.mxu0 %v1823_v55  ;;  %1723 = vmatpush3.bf16.msra.mxu1 %v1823_v55  ;;  %v601_v18 = vld [vmem:[#allocation2 + $0xb0] sm:$0xff]  ;;  %v624_v26 = vld [vmem:[#allocation2 + $0x60] sm:$0xff]  ;;  %v622_v32 = vld [vmem:[#allocation2 + $0x58] sm:$0xff] }
  0x83   : > { %1667 = vmatprep.subr.bf16.mxu0 %v1824_v56  ;;  %1716 = vmatprep.subr.bf16.mxu1 %v1824_v56  ;;  %v621_v20 = vld [vmem:[#allocation2 + $0x70] sm:$0xff]  ;;  %v627_v38 = vld [vmem:[#allocation2 + $0xd8] sm:$0xff]  ;;  %v605_v42 = vld [vmem:[#allocation2 + $0x108] sm:$0xff] }
  0x84   : > { %v602_v30 = vld [vmem:[#allocation2 + $0xd0] sm:$0xff]  ;;  %v625_v44 = vld [vmem:[#allocation2 + $0xa8] sm:$0xff]  ;;  %v608_v48 = vld [vmem:[#allocation2 + $0x18] sm:$0xff] }
  0x85   : > { %v607_v36 = vld [vmem:[#allocation2 + $0x30] sm:$0xff]  ;;  %v628_v50 = vld [vmem:[#allocation2 + $0xc0] sm:$0xff]  ;;  %v606_v54 = vld [vmem:[#allocation2 + $0x68] sm:$0xff] }
  0x86   : > { %1668 = vmatpush3.bf16.msra.mxu0 %v1824_v56  ;;  %1724 = vmatpush3.bf16.msra.mxu1 %v1824_v56  ;;  %v626_v56 = vld [vmem:[#allocation2 + $0x88] sm:$0xff] }
  0x87   : > { %1669 = vmatprep.subr.bf16.mxu0 %v1825_v59  ;;  %1717 = vmatprep.subr.bf16.mxu1 %v1825_v59 }
  0x8a   : > { %1670 = vmatpush3.bf16.msra.mxu0 %v1825_v59  ;;  %1725 = vmatpush3.bf16.msra.mxu1 %v1825_v59 }
  0x8b   : > { %1671 = vmatprep.subr.bf16.mxu0 %v1826_v60  ;;  %1718 = vmatprep.subr.bf16.mxu1 %v1826_v60 }
  0x8e   : > { %1672 = vmatpush3.bf16.msra.mxu0 %v1826_v60  ;;  %1726 = vmatpush3.bf16.msra.mxu1 %v1826_v60  ;;  %v611_v60 = vld [vmem:[#allocation2 + $0x118] sm:$0xff] }
  0x8f   : > { %1673 = vmatprep.subr.bf16.mxu0 %v1827_v61  ;;  %1719 = vmatprep.subr.bf16.mxu1 %v1827_v61 }
  0x92   : > { %1674 = vmatpush3.bf16.msra.mxu0 %v1827_v61  ;;  %1727 = vmatpush3.bf16.msra.mxu1 %v1827_v61 }
  0x93   : > { %1675 = vmatprep.subr.bf16.mxu0 %v1828_v62  ;;  %1720 = vmatprep.subr.bf16.mxu1 %v1828_v62 }
  0x96   : > { %1676 = vmatpush3.bf16.msra.mxu0 %v1828_v62  ;;  %1728 = vmatpush3.bf16.msra.mxu1 %v1828_v62  ;;  %v631_v62 = vld [vmem:[#allocation2 + $0xb8] sm:$0xff] }
  0x99   : > { %1678 = vmatmul.mubr.bf16.vlgmr.msra.gmra.mxu0 %v1830_v63  ;;  %1698 = vmatmul.mubr.bf16.vlgmr.msra.gmra.mxu1 %v1832_v0 }
  0x9a   : > { %1681 = vmatprep.mubr.bf16.mxu0 %v1833_v1  ;;  %1701 = vmatprep.mubr.bf16.mxu1 %v1835_v2  ;;  %v609_v2 = vld [vmem:[#allocation2 + $0x80] sm:$0xff] }
  0xa1   : > { %1682 = vmatmul.mubr.bf16.gmra.mxu0 %v1834_v3  ;;  %1702 = vmatmul.mubr.bf16.gmra.mxu1 %v1836_v4  ;;  %v629_v4 = vld [vmem:[#allocation2 + $0x50] sm:$0xff] }
  0xa2   : > { %1685 = vmatprep.mubr.bf16.mxu0 %v1837_v5  ;;  %1705 = vmatprep.mubr.bf16.mxu1 %v1839_v6 }
  0xa9   : > { %1686 = vmatmul.mubr.bf16.gmra.mxu0 %v1838_v7  ;;  %1706 = vmatmul.mubr.bf16.gmra.mxu1 %v1840_v8  ;;  %v612_v8 = vld [vmem:[#allocation2 + $0x98] sm:$0xff] }
  0xaa   : > { %1689 = vmatprep.mubr.bf16.mxu0 %v1841_v9  ;;  %1709 = vmatprep.mubr.bf16.mxu1 %v1843_v10  ;;  %v632_v10 = vld [vmem:[#allocation2 + $0x28] sm:$0xff] }
  0xb1   : > { %1690 = vmatmul.mubr.bf16.gmra.mxu0 %v1842_v11  ;;  %1710 = vmatmul.mubr.bf16.gmra.mxu1 %v1844_v12 }
  0xb2   : > { %1693 = vmatprep.mubr.bf16.mxu0 %v1845_v13 }
  0xb9   : > { %1694 = vmatmul.mubr.bf16.gmra.mxu0 %v1846_v14  ;;  %v610_v14 = vld [vmem:[#allocation2 + $0x110] sm:$0xff] }
 0x159   : > { %v1679_v17 = vpop.f32.mrf.mxu0  ;;  %v1699_v19 = vpop.f32.mrf.mxu1 }
 0x15a   : > { %v1024_v21 = vadd.f32 %v1679_v17, %v603_v15  ;;  %v1044_v22 = vadd.f32 %v1699_v19, %v623_v16  ;;  %v630_v16 = vld [vmem:[#allocation2 + $0xf0] sm:$0xff] }
 0x15b   : > { %v879_v23 = vpop.f32.mrf.mxu0  ;;  %v959_v25 = vpop.f32.mrf.mxu1 }
 0x15c   : > { %1060 = vst [vmem:[#allocation2 + $0x10] sm:$0xff] %v1024_v21  ;;  %v1022_v27 = vadd.f32 %v879_v23, %v601_v18  ;;  %1080 = vst [vmem:[#allocation2 + $0xe0] sm:$0xff] %v1044_v22  ;;  %v1042_v28 = vadd.f32 %v959_v25, %v621_v20  ;;  %v615_v20 = vld [vmem:[#allocation2 + $0x8] sm:$0xff]  ;;  %v635_v22 = vld [vmem:[#allocation2 + $0x40] sm:$0xff] }
 0x15d   : > { %v1680_v29 = vpop.f32.mrf.mxu0  ;;  %v1700_v31 = vpop.f32.mrf.mxu1 }
 0x15e   : > { %1058 = vst [vmem:[#allocation2 + $0xb0] sm:$0xff] %v1022_v27  ;;  %v1025_v33 = vadd.f32 %v1680_v29, %v604_v24  ;;  %1078 = vst [vmem:[#allocation2 + $0x70] sm:$0xff] %v1042_v28  ;;  %v1045_v34 = vadd.f32 %v1700_v31, %v624_v26  ;;  %v613_v26 = vld [vmem:[#allocation2 + $0xf8] sm:$0xff]  ;;  %v633_v28 = vld [vmem:[#allocation2 + $0x100] sm:$0xff] }
 0x15f   : > { %v882_v35 = vpop.f32.mrf.mxu0  ;;  %v962_v37 = vpop.f32.mrf.mxu1 }
 0x160   : > { %1061 = vst [vmem:[#allocation2 + $0x48] sm:$0xff] %v1025_v33  ;;  %v1023_v39 = vadd.f32 %v882_v35, %v602_v30  ;;  %1081 = vst [vmem:[#allocation2 + $0x60] sm:$0xff] %v1045_v34  ;;  %v1043_v40 = vadd.f32 %v962_v37, %v622_v32  ;;  %v616_v32 = vld [vmem:[#allocation2 + $0x78] sm:$0xff]  ;;  %v636_v34 = vld [vmem:[#allocation2 + $0xe8] sm:$0xff] }
 0x161   : > { %v1683_v41 = vpop.f32.mrf.mxu0  ;;  %v1703_v43 = vpop.f32.mrf.mxu1 }
 0x162   : > { %1059 = vst [vmem:[#allocation2 + $0xd0] sm:$0xff] %v1023_v39  ;;  %v1028_v45 = vadd.f32 %v1683_v41, %v607_v36  ;;  %1079 = vst [vmem:[#allocation2 + $0x58] sm:$0xff] %v1043_v40  ;;  %v1048_v46 = vadd.f32 %v1703_v43, %v627_v38  ;;  %v614_v38 = vld [vmem:[#allocation2 + $0x38] sm:$0xff]  ;;  %v634_v40 = vld [vmem:[#allocation2] sm:$0xff] }
 0x163   : > { %v895_v47 = vpop.f32.mrf.mxu0  ;;  %v975_v49 = vpop.f32.mrf.mxu1 }
 0x164   : > { %1064 = vst [vmem:[#allocation2 + $0x30] sm:$0xff] %v1028_v45  ;;  %v1026_v51 = vadd.f32 %v895_v47, %v605_v42  ;;  %1084 = vst [vmem:[#allocation2 + $0xd8] sm:$0xff] %v1048_v46  ;;  %v1046_v52 = vadd.f32 %v975_v49, %v625_v44  ;;  %v619_v44 = vld [vmem:[#allocation2 + $0x90] sm:$0xff]  ;;  %v617_v49 = vld [vmem:[#allocation2 + $0x20] sm:$0xff] }
 0x165   : > { %v1684_v53 = vpop.f32.mrf.mxu0  ;;  %v1704_v55 = vpop.f32.mrf.mxu1 }
 0x166   : > { %1062 = vst [vmem:[#allocation2 + $0x108] sm:$0xff] %v1026_v51  ;;  %v1029_v57 = vadd.f32 %v1684_v53, %v608_v48  ;;  %1082 = vst [vmem:[#allocation2 + $0xa8] sm:$0xff] %v1046_v52  ;;  %v1049_v58 = vadd.f32 %v1704_v55, %v628_v50  ;;  %v620_v52 = vld [vmem:[#allocation2 + $0xa0] sm:$0xff]  ;;  %v618_v55 = vld [vmem:[#allocation2 + $0xc8] sm:$0xff] }
 0x167   : > { %v898_v59 = vpop.f32.mrf.mxu0  ;;  %v978_v61 = vpop.f32.mrf.mxu1 }
 0x168   : > { %1065 = vst [vmem:[#allocation2 + $0x18] sm:$0xff] %v1029_v57  ;;  %v1027_v63 = vadd.f32 %v898_v59, %v606_v54  ;;  %1085 = vst [vmem:[#allocation2 + $0xc0] sm:$0xff] %v1049_v58  ;;  %v1047_v0 = vadd.f32 %v978_v61, %v626_v56 }
 0x169   : > { %v1687_v1 = vpop.f32.mrf.mxu0  ;;  %v1707_v3 = vpop.f32.mrf.mxu1 }
 0x16a   : > { %1063 = vst [vmem:[#allocation2 + $0x68] sm:$0xff] %v1027_v63  ;;  %v1032_v5 = vadd.f32 %v1687_v1, %v611_v60  ;;  %1083 = vst [vmem:[#allocation2 + $0x88] sm:$0xff] %v1047_v0  ;;  %v1052_v6 = vadd.f32 %v1707_v3, %v631_v62 }
 0x16b   : > { %v911_v7 = vpop.f32.mrf.mxu0  ;;  %v991_v9 = vpop.f32.mrf.mxu1 }
 0x16c   : > { %1068 = vst [vmem:[#allocation2 + $0x118] sm:$0xff] %v1032_v5  ;;  %v1030_v11 = vadd.f32 %v911_v7, %v609_v2  ;;  %1088 = vst [vmem:[#allocation2 + $0xb8] sm:$0xff] %v1052_v6  ;;  %v1050_v12 = vadd.f32 %v991_v9, %v629_v4 }
 0x16d   : > { %v1688_v13 = vpop.f32.mrf.mxu0  ;;  %v1708_v15 = vpop.f32.mrf.mxu1 }
 0x16e   : > { %1066 = vst [vmem:[#allocation2 + $0x80] sm:$0xff] %v1030_v11  ;;  %v1033_v17 = vadd.f32 %v1688_v13, %v612_v8  ;;  %1086 = vst [vmem:[#allocation2 + $0x50] sm:$0xff] %v1050_v12  ;;  %v1053_v18 = vadd.f32 %v1708_v15, %v632_v10 }
 0x16f   : > { %v914_v19 = vpop.f32.mrf.mxu0  ;;  %v994_v21 = vpop.f32.mrf.mxu1 }
 0x170   : > { %1069 = vst [vmem:[#allocation2 + $0x98] sm:$0xff] %v1033_v17  ;;  %v1031_v23 = vadd.f32 %v914_v19, %v610_v14  ;;  %1089 = vst [vmem:[#allocation2 + $0x28] sm:$0xff] %v1053_v18  ;;  %v1051_v24 = vadd.f32 %v994_v21, %v630_v16 }
 0x171   : > { %v1691_v25 = vpop.f32.mrf.mxu0  ;;  %v1711_v27 = vpop.f32.mrf.mxu1 }
 0x172   : > { %1067 = vst [vmem:[#allocation2 + $0x110] sm:$0xff] %v1031_v23  ;;  %v1036_v29 = vadd.f32 %v1691_v25, %v615_v20  ;;  %1087 = vst [vmem:[#allocation2 + $0xf0] sm:$0xff] %v1051_v24  ;;  %v1056_v30 = vadd.f32 %v1711_v27, %v635_v22 }
 0x173   : > { %v927_v31 = vpop.f32.mrf.mxu0  ;;  %v1007_v33 = vpop.f32.mrf.mxu1 }
 0x174   : > { %1072 = vst [vmem:[#allocation2 + $0x8] sm:$0xff] %v1036_v29  ;;  %v1034_v35 = vadd.f32 %v927_v31, %v613_v26  ;;  %1092 = vst [vmem:[#allocation2 + $0x40] sm:$0xff] %v1056_v30  ;;  %v1054_v36 = vadd.f32 %v1007_v33, %v633_v28 }
 0x175   : > { %v1692_v37 = vpop.f32.mrf.mxu0  ;;  %v1712_v39 = vpop.f32.mrf.mxu1 }
 0x176   : > { %1070 = vst [vmem:[#allocation2 + $0xf8] sm:$0xff] %v1034_v35  ;;  %v1037_v41 = vadd.f32 %v1692_v37, %v616_v32  ;;  %1090 = vst [vmem:[#allocation2 + $0x100] sm:$0xff] %v1054_v36  ;;  %v1057_v42 = vadd.f32 %v1712_v39, %v636_v34 }
 0x177   : > { %v930_v43 = vpop.f32.mrf.mxu0  ;;  %v1010_v45 = vpop.f32.mrf.mxu1 }
 0x178   : > { %1073 = vst [vmem:[#allocation2 + $0x78] sm:$0xff] %v1037_v41  ;;  %v1035_v46 = vadd.f32 %v930_v43, %v614_v38  ;;  %1093 = vst [vmem:[#allocation2 + $0xe8] sm:$0xff] %v1057_v42  ;;  %v1055_v47 = vadd.f32 %v1010_v45, %v634_v40 }
 0x179   : > { %v1695_v48 = vpop.f32.mrf.mxu0 }
 0x17a   : > { %1071 = vst [vmem:[#allocation2 + $0x38] sm:$0xff] %v1035_v46  ;;  %v1040_v50 = vadd.f32 %v1695_v48, %v619_v44  ;;  %1091 = vst [vmem:[#allocation2] sm:$0xff] %v1055_v47 }
 0x17b   : > { %v943_v51 = vpop.f32.mrf.mxu0 }
 0x17c   : > { %1076 = vst [vmem:[#allocation2 + $0x90] sm:$0xff] %v1040_v50  ;;  %v1038_v53 = vadd.f32 %v943_v51, %v617_v49 }
 0x17d   : > { %v1696_v54 = vpop.f32.mrf.mxu0 }
 0x17e   : > { %1074 = vst [vmem:[#allocation2 + $0x20] sm:$0xff] %v1038_v53  ;;  %v1041_v56 = vadd.f32 %v1696_v54, %v620_v52  ;;  %1097 = sbr.rel (%p1628_p5) target bundleno = 422 (0x1a6), region = 126 }
 0x17f   : > { %v946_v57 = vpop.f32.mrf.mxu0 }
 0x180   : > { %1077 = vst [vmem:[#allocation2 + $0xa0] sm:$0xff] %v1041_v56  ;;  %v1039_v58 = vadd.f32 %v946_v57, %v618_v55 }
 0x182   : > { %1075 = vst [vmem:[#allocation2 + $0xc8] sm:$0xff] %v1039_v58 }
 0x183   : > { %v1098_v59 = vld [vmem:[#allocation2 + $0xb0] sm:$0xff]  ;;  %v2225_v60 = vld [vmem:[%s555_s9] ss:$0 sm:$0xff]  ;;  %v1101_v1 = vld [vmem:[#allocation2 + $0x48] sm:$0xff] }
 0x184   : > { %v2232_v61 = vld [vmem:[%s558_s27] ss:$0 sm:$0xff]  ;;  %v1141_v62 = vmul.f32 %v2225_v60, %v1098_v59  ;;  %v1099_v63 = vld [vmem:[#allocation2 + $0xd0] sm:$0xff]  ;;  %v1144_v4 = vmul.f32 %v2225_v60, %v1101_v1  ;;  %v1102_v5 = vld [vmem:[#allocation2 + $0x108] sm:$0xff] }
 0x185   : > { %v1100_v0 = vld [vmem:[#allocation2 + $0x10] sm:$0xff]  ;;  %v1142_v2 = vmul.f32 %v2225_v60, %v1099_v63  ;;  %v1103_v6 = vld [vmem:[#allocation2 + $0x68] sm:$0xff]  ;;  %v1145_v9 = vmul.f32 %v2225_v60, %v1102_v5  ;;  %v1105_v12 = vld [vmem:[#allocation2 + $0x18] sm:$0xff] }
 0x186   : > { %v1143_v3 = vmul.f32 %v2225_v60, %v1100_v0  ;;  %v1104_v7 = vld [vmem:[#allocation2 + $0x30] sm:$0xff]  ;;  %v1184_v8 = vadd.f32 %v2232_v61, %v1141_v62  ;;  %v1146_v10 = vmul.f32 %v2225_v60, %v1103_v6  ;;  %v1187_v15 = vadd.f32 %v2232_v61, %v1144_v4  ;;  %v1106_v17 = vld [vmem:[#allocation2 + $0x80] sm:$0xff]  ;;  %v1108_v23 = vld [vmem:[#allocation2 + $0x118] sm:$0xff] }
 0x187   : > { %v1147_v11 = vmul.f32 %v2225_v60, %v1104_v7  ;;  %v1185_v13 = vadd.f32 %v2232_v61, %v1142_v2  ;;  %v1148_v16 = vmul.f32 %v2225_v60, %v1105_v12  ;;  %v1188_v19 = vadd.f32 %v2232_v61, %v1145_v9  ;;  %v1107_v22 = vld [vmem:[#allocation2 + $0x110] sm:$0xff]  ;;  %v1109_v24 = vld [vmem:[#allocation2 + $0x98] sm:$0xff]  ;;  %v1112_v31 = vld [vmem:[#allocation2 + $0x8] sm:$0xff] }
 0x188   : > { %v1186_v14 = vadd.f32 %v2232_v61, %v1143_v3  ;;  %v1220_v18 = vmax.f32 %v1184_v8, 0.0  ;;  %v1189_v20 = vadd.f32 %v2232_v61, %v1146_v10  ;;  %v1223_v27 = vmax.f32 %v1187_v15, 0.0  ;;  %v1110_v29 = vld [vmem:[#allocation2 + $0xf8] sm:$0xff]  ;;  %v1114_v49 = vld [vmem:[#allocation2 + $0x20] sm:$0xff]  ;;  %v1116_v55 = vld [vmem:[#allocation2 + $0x90] sm:$0xff] }
 0x189   : > { %v1190_v21 = vadd.f32 %v2232_v61, %v1147_v11  ;;  %v1221_v25 = vmax.f32 %v1185_v13, 0.0  ;;  %v1191_v28 = vadd.f32 %v2232_v61, %v1148_v16  ;;  %v1111_v30 = vld [vmem:[#allocation2 + $0x38] sm:$0xff]  ;;  %v1224_v32 = vmax.f32 %v1188_v19, 0.0  ;;  %v1115_v54 = vld [vmem:[#allocation2 + $0xc8] sm:$0xff]  ;;  %v1117_v56 = vld [vmem:[#allocation2 + $0xa0] sm:$0xff] }
 0x18a   : > { %v1222_v26 = vmax.f32 %v1186_v14, 0.0  ;;  %1256 = vst [vmem:[%s2190_s19] sm:$0xff] %v1220_v18  ;;  %v1225_v33 = vmax.f32 %v1189_v20, 0.0  ;;  %v1149_v35 = vmul.f32 %v2225_v60, %v1106_v17  ;;  %v1113_v36 = vld [vmem:[#allocation2 + $0x78] sm:$0xff]  ;;  %1259 = vst [vmem:[%s2190_s19 + $0x18] sm:$0xff] %v1223_v27  ;;  %v1150_v38 = vmul.f32 %v2225_v60, %v1107_v22  ;;  %v1118_v63 = vld [vmem:[#allocation2 + $0x70] sm:$0xff] }
 0x18b   : > { %v1226_v34 = vmax.f32 %v1190_v21, 0.0  ;;  %1257 = vst [vmem:[%s2190_s19 + $0x8] sm:$0xff] %v1221_v25  ;;  %v1227_v37 = vmax.f32 %v1191_v28, 0.0  ;;  %v1151_v39 = vmul.f32 %v2225_v60, %v1108_v23  ;;  %v1152_v40 = vmul.f32 %v2225_v60, %v1109_v24  ;;  %1260 = vst [vmem:[%s2190_s19 + $0x20] sm:$0xff] %v1224_v32  ;;  %v1119_v0 = vld [vmem:[#allocation2 + $0x58] sm:$0xff]  ;;  %v1120_v1 = vld [vmem:[#allocation2 + $0xe0] sm:$0xff] }
 0x18c   : > { %1258 = vst [vmem:[%s2190_s19 + $0x10] sm:$0xff] %v1222_v26  ;;  %1261 = vst [vmem:[%s2190_s19 + $0x28] sm:$0xff] %v1225_v33  ;;  %v1192_v41 = vadd.f32 %v2232_v61, %v1149_v35  ;;  %v1153_v42 = vmul.f32 %v2225_v60, %v1110_v29  ;;  %v1154_v43 = vmul.f32 %v2225_v60, %v1111_v30  ;;  %v1121_v6 = vld [vmem:[#allocation2 + $0x60] sm:$0xff]  ;;  %v1122_v19 = vld [vmem:[#allocation2 + $0xa8] sm:$0xff] }
 0x18d   : > { %1262 = vst [vmem:[%s2190_s19 + $0x30] sm:$0xff] %v1226_v34  ;;  %v1155_v44 = vmul.f32 %v2225_v60, %v1112_v31  ;;  %1263 = vst [vmem:[%s2190_s19 + $0x38] sm:$0xff] %v1227_v37  ;;  %v1193_v45 = vadd.f32 %v2232_v61, %v1150_v38  ;;  %v1194_v46 = vadd.f32 %v2232_v61, %v1151_v39  ;;  %v1123_v24 = vld [vmem:[#allocation2 + $0x88] sm:$0xff]  ;;  %v1124_v25 = vld [vmem:[#allocation2 + $0xd8] sm:$0xff] }
 0x18e   : > { %v1195_v47 = vadd.f32 %v2232_v61, %v1152_v40  ;;  %v1156_v48 = vmul.f32 %v2225_v60, %v1113_v36  ;;  %v1228_v50 = vmax.f32 %v1192_v41, 0.0  ;;  %v1196_v51 = vadd.f32 %v2232_v61, %v1153_v42  ;;  %v1125_v26 = vld [vmem:[#allocation2 + $0xc0] sm:$0xff]  ;;  %v1126_v31 = vld [vmem:[#allocation2 + $0x50] sm:$0xff]  ;;  %v1128_v33 = vld [vmem:[#allocation2 + $0xb8] sm:$0xff] }
 0x18f   : > { %v1197_v52 = vadd.f32 %v2232_v61, %v1154_v43  ;;  %v1198_v53 = vadd.f32 %v2232_v61, %v1155_v44  ;;  %v1229_v57 = vmax.f32 %v1193_v45, 0.0  ;;  %v1230_v58 = vmax.f32 %v1194_v46, 0.0  ;;  %v1127_v32 = vld [vmem:[#allocation2 + $0xf0] sm:$0xff]  ;;  %v1129_v38 = vld [vmem:[#allocation2 + $0x28] sm:$0xff] }
 0x190   : > { %v1231_v59 = vmax.f32 %v1195_v47, 0.0  ;;  %v1199_v62 = vadd.f32 %v2232_v61, %v1156_v48  ;;  %1264 = vst [vmem:[%s2190_s19 + $0x40] sm:$0xff] %v1228_v50  ;;  %v1232_v2 = vmax.f32 %v1196_v51, 0.0  ;;  %v1157_v5 = vmul.f32 %v2225_v60, %v1114_v49  ;;  %v1130_v51 = vld [vmem:[#allocation2 + $0x100] sm:$0xff] }
 0x191   : > { %v1233_v3 = vmax.f32 %v1197_v52, 0.0  ;;  %v1234_v4 = vmax.f32 %v1198_v53, 0.0  ;;  %1265 = vst [vmem:[%s2190_s19 + $0x48] sm:$0xff] %v1229_v57  ;;  %1266 = vst [vmem:[%s2190_s19 + $0x50] sm:$0xff] %v1230_v58  ;;  %v1158_v8 = vmul.f32 %v2225_v60, %v1115_v54  ;;  %v1159_v9 = vmul.f32 %v2225_v60, %v1116_v55  ;;  %v1132_v57 = vld [vmem:[#allocation2 + $0x40] sm:$0xff]  ;;  %v1133_v58 = vld [vmem:[#allocation2 + $0xe8] sm:$0xff] }
 0x192   : > { %1267 = vst [vmem:[%s2190_s19 + $0x58] sm:$0xff] %v1231_v59  ;;  %v1235_v7 = vmax.f32 %v1199_v62, 0.0  ;;  %v1160_v10 = vmul.f32 %v2225_v60, %v1117_v56  ;;  %1268 = vst [vmem:[%s2190_s19 + $0x60] sm:$0xff] %v1232_v2  ;;  %v1200_v11 = vadd.f32 %v2232_v61, %v1157_v5  ;;  %v1161_v12 = vmul.f32 %v2225_v60, %v1118_v63  ;;  %v1131_v56 = vld [vmem:[#allocation2] sm:$0xff] }
 0x193   : > { %1269 = vst [vmem:[%s2190_s19 + $0x68] sm:$0xff] %v1233_v3  ;;  %1270 = vst [vmem:[%s2190_s19 + $0x70] sm:$0xff] %v1234_v4  ;;  %v1162_v13 = vmul.f32 %v2225_v60, %v1119_v0  ;;  %v1163_v14 = vmul.f32 %v2225_v60, %v1120_v1  ;;  %v1201_v15 = vadd.f32 %v2232_v61, %v1158_v8 }
 0x194   : > { %1271 = vst [vmem:[%s2190_s19 + $0x78] sm:$0xff] %v1235_v7  ;;  %v1202_v16 = vadd.f32 %v2232_v61, %v1159_v9  ;;  %v1203_v17 = vadd.f32 %v2232_v61, %v1160_v10  ;;  %v1164_v18 = vmul.f32 %v2225_v60, %v1121_v6  ;;  %v1236_v20 = vmax.f32 %v1200_v11, 0.0 }
 0x195   : > { %v1204_v21 = vadd.f32 %v2232_v61, %v1161_v12  ;;  %v1205_v22 = vadd.f32 %v2232_v61, %v1162_v13  ;;  %v1206_v23 = vadd.f32 %v2232_v61, %v1163_v14  ;;  %v1237_v27 = vmax.f32 %v1201_v15, 0.0 }
 0x196   : > { %v1238_v28 = vmax.f32 %v1202_v16, 0.0  ;;  %v1239_v29 = vmax.f32 %v1203_v17, 0.0  ;;  %v1207_v30 = vadd.f32 %v2232_v61, %v1164_v18  ;;  %1272 = vst [vmem:[%s2190_s19 + $0x80] sm:$0xff] %v1236_v20  ;;  %v1165_v37 = vmul.f32 %v2225_v60, %v1122_v19 }
 0x197   : > { %v1240_v34 = vmax.f32 %v1204_v21, 0.0  ;;  %v1241_v35 = vmax.f32 %v1205_v22, 0.0  ;;  %v1242_v36 = vmax.f32 %v1206_v23, 0.0  ;;  %1273 = vst [vmem:[%s2190_s19 + $0x88] sm:$0xff] %v1237_v27  ;;  %v1166_v40 = vmul.f32 %v2225_v60, %v1123_v24 }
 0x198   : > { %1274 = vst [vmem:[%s2190_s19 + $0x90] sm:$0xff] %v1238_v28  ;;  %1275 = vst [vmem:[%s2190_s19 + $0x98] sm:$0xff] %v1239_v29  ;;  %v1243_v39 = vmax.f32 %v1207_v30, 0.0  ;;  %v1167_v41 = vmul.f32 %v2225_v60, %v1124_v25  ;;  %v1168_v42 = vmul.f32 %v2225_v60, %v1125_v26  ;;  %v1208_v43 = vadd.f32 %v2232_v61, %v1165_v37 }
 0x199   : > { %1276 = vst [vmem:[%s2190_s19 + $0xa0] sm:$0xff] %v1240_v34  ;;  %1277 = vst [vmem:[%s2190_s19 + $0xa8] sm:$0xff] %v1241_v35  ;;  %v1169_v44 = vmul.f32 %v2225_v60, %v1126_v31  ;;  %v1170_v45 = vmul.f32 %v2225_v60, %v1127_v32  ;;  %v1171_v46 = vmul.f32 %v2225_v60, %v1128_v33 }
 0x19a   : > { %1278 = vst [vmem:[%s2190_s19 + $0xb0] sm:$0xff] %v1242_v36  ;;  %1279 = vst [vmem:[%s2190_s19 + $0xb8] sm:$0xff] %v1243_v39  ;;  %v1209_v47 = vadd.f32 %v2232_v61, %v1166_v40  ;;  %v1210_v48 = vadd.f32 %v2232_v61, %v1167_v41  ;;  %v1211_v49 = vadd.f32 %v2232_v61, %v1168_v42  ;;  %v1244_v52 = vmax.f32 %v1208_v43, 0.0 }
 0x19b   : > { %v1172_v50 = vmul.f32 %v2225_v60, %v1129_v38  ;;  %v1212_v53 = vadd.f32 %v2232_v61, %v1169_v44  ;;  %v1213_v54 = vadd.f32 %v2232_v61, %v1170_v45  ;;  %v1214_v55 = vadd.f32 %v2232_v61, %v1171_v46 }
 0x19c   : > { %v1245_v59 = vmax.f32 %v1209_v47, 0.0  ;;  %v1246_v62 = vmax.f32 %v1210_v48, 0.0  ;;  %v1247_v63 = vmax.f32 %v1211_v49, 0.0  ;;  %1280 = vst [vmem:[%s2190_s19 + $0xc0] sm:$0xff] %v1244_v52  ;;  %v1173_v4 = vmul.f32 %v2225_v60, %v1130_v51 }
 0x19d   : > { %v1215_v0 = vadd.f32 %v2232_v61, %v1172_v50  ;;  %v1248_v1 = vmax.f32 %v1212_v53, 0.0  ;;  %v1249_v2 = vmax.f32 %v1213_v54, 0.0  ;;  %v1250_v3 = vmax.f32 %v1214_v55, 0.0 }
 0x19e   : > { %1281 = vst [vmem:[%s2190_s19 + $0xc8] sm:$0xff] %v1245_v59  ;;  %1282 = vst [vmem:[%s2190_s19 + $0xd0] sm:$0xff] %v1246_v62  ;;  %v1174_v6 = vmul.f32 %v2225_v60, %v1131_v56  ;;  %v1175_v7 = vmul.f32 %v2225_v60, %v1132_v57  ;;  %v1176_v8 = vmul.f32 %v2225_v60, %v1133_v58 }
 0x19f   : > { %1283 = vst [vmem:[%s2190_s19 + $0xd8] sm:$0xff] %v1247_v63  ;;  %v1251_v5 = vmax.f32 %v1215_v0, 0.0  ;;  %1284 = vst [vmem:[%s2190_s19 + $0xe0] sm:$0xff] %v1248_v1  ;;  %v1216_v9 = vadd.f32 %v2232_v61, %v1173_v4 }
 0x1a0   : > { %1285 = vst [vmem:[%s2190_s19 + $0xe8] sm:$0xff] %v1249_v2  ;;  %1286 = vst [vmem:[%s2190_s19 + $0xf0] sm:$0xff] %v1250_v3  ;;  %v1217_v10 = vadd.f32 %v2232_v61, %v1174_v6  ;;  %v1218_v11 = vadd.f32 %v2232_v61, %v1175_v7  ;;  %v1219_v12 = vadd.f32 %v2232_v61, %v1176_v8 }
 0x1a1   : > { %1287 = vst [vmem:[%s2190_s19 + $0xf8] sm:$0xff] %v1251_v5  ;;  %v1252_v13 = vmax.f32 %v1216_v9, 0.0 }
 0x1a2   : > { %v1253_v14 = vmax.f32 %v1217_v10, 0.0  ;;  %v1254_v15 = vmax.f32 %v1218_v11, 0.0  ;;  %v1255_v16 = vmax.f32 %v1219_v12, 0.0 }
 0x1a3   : > { %1288 = vst [vmem:[%s2190_s19 + $0x100] sm:$0xff] %v1252_v13 }
 0x1a4   : > { %1289 = vst [vmem:[%s2190_s19 + $0x108] sm:$0xff] %v1253_v14  ;;  %1290 = vst [vmem:[%s2190_s19 + $0x110] sm:$0xff] %v1254_v15 }
 0x1a5   : > { %1291 = vst [vmem:[%s2190_s19 + $0x118] sm:$0xff] %v1255_v16 }
 0x1a6 PF: > { %1298 = sbr.rel (!%p2055_p12) target bundleno = 442 (0x1ba), region = 130  ;;  %s1631_s21 = sshll.u32 (%p2055_p12), %s1921_s22, 3  ;;  %v1402_v60 = vld [vmem:[%s2190_s19] sm:$0xff] (%p2055_p12)  ;;  %v1404_v61 = vld [vmem:[%s2190_s19 + $0x8] sm:$0xff] (%p2055_p12)  ;;  %v1406_v17 = vld [vmem:[%s2190_s19 + $0x10] sm:$0xff] (%p2055_p12) }
 0x1a7   : > { %s2351_s26 = scalar_lea.vmem (%p2055_p12), %s2459_s4, %s1631_s21  ;;  %v1408_v18 = vld [vmem:[%s2190_s19 + $0x18] sm:$0xff] (%p2055_p12)  ;;  %v1410_v19 = vld [vmem:[%s2190_s19 + $0x20] sm:$0xff] (%p2055_p12)  ;;  %v1412_v20 = vld [vmem:[%s2190_s19 + $0x28] sm:$0xff] (%p2055_p12) }
 0x1a8   : > { %1403 = vst [vmem:[%s2351_s26] sm:$0xff] (%p2055_p12), %v1402_v60  ;;  %1405 = vst [vmem:[%s2351_s26 + $0x10] sm:$0xff] (%p2055_p12), %v1404_v61  ;;  %v1414_v21 = vld [vmem:[%s2190_s19 + $0x30] sm:$0xff] (%p2055_p12)  ;;  %v1416_v22 = vld [vmem:[%s2190_s19 + $0x38] sm:$0xff] (%p2055_p12) }
 0x1a9   : > { %1407 = vst [vmem:[%s2351_s26 + $0x20] sm:$0xff] (%p2055_p12), %v1406_v17  ;;  %1409 = vst [vmem:[%s2351_s26 + $0x30] sm:$0xff] (%p2055_p12), %v1408_v18  ;;  %v1418_v23 = vld [vmem:[%s2190_s19 + $0x40] sm:$0xff] (%p2055_p12)  ;;  %v1420_v24 = vld [vmem:[%s2190_s19 + $0x48] sm:$0xff] (%p2055_p12) }
 0x1aa   : > { %1411 = vst [vmem:[%s2351_s26 + $0x40] sm:$0xff] (%p2055_p12), %v1410_v19  ;;  %1413 = vst [vmem:[%s2351_s26 + $0x50] sm:$0xff] (%p2055_p12), %v1412_v20  ;;  %v1422_v25 = vld [vmem:[%s2190_s19 + $0x50] sm:$0xff] (%p2055_p12)  ;;  %v1424_v26 = vld [vmem:[%s2190_s19 + $0x58] sm:$0xff] (%p2055_p12) }
 0x1ab   : > { %1415 = vst [vmem:[%s2351_s26 + $0x60] sm:$0xff] %v1414_v21  ;;  %1417 = vst [vmem:[%s2351_s26 + $0x70] sm:$0xff] %v1416_v22  ;;  %v1426_v27 = vld [vmem:[%s2190_s19 + $0x60] sm:$0xff]  ;;  %v1428_v28 = vld [vmem:[%s2190_s19 + $0x68] sm:$0xff] }
 0x1ac   : > { %1419 = vst [vmem:[%s2351_s26 + $0x80] sm:$0xff] %v1418_v23  ;;  %1421 = vst [vmem:[%s2351_s26 + $0x90] sm:$0xff] %v1420_v24  ;;  %v1430_v29 = vld [vmem:[%s2190_s19 + $0x70] sm:$0xff]  ;;  %v1432_v30 = vld [vmem:[%s2190_s19 + $0x78] sm:$0xff] }
 0x1ad   : > { %1423 = vst [vmem:[%s2351_s26 + $0xa0] sm:$0xff] %v1422_v25  ;;  %1425 = vst [vmem:[%s2351_s26 + $0xb0] sm:$0xff] %v1424_v26  ;;  %v1434_v31 = vld [vmem:[%s2190_s19 + $0x80] sm:$0xff]  ;;  %v1436_v32 = vld [vmem:[%s2190_s19 + $0x88] sm:$0xff] }
 0x1ae   : > { %1427 = vst [vmem:[%s2351_s26 + $0xc0] sm:$0xff] %v1426_v27  ;;  %1429 = vst [vmem:[%s2351_s26 + $0xd0] sm:$0xff] %v1428_v28  ;;  %v1438_v33 = vld [vmem:[%s2190_s19 + $0x90] sm:$0xff]  ;;  %v1440_v34 = vld [vmem:[%s2190_s19 + $0x98] sm:$0xff] }
 0x1af   : > { %1431 = vst [vmem:[%s2351_s26 + $0xe0] sm:$0xff] %v1430_v29  ;;  %1433 = vst [vmem:[%s2351_s26 + $0xf0] sm:$0xff] %v1432_v30  ;;  %v1442_v35 = vld [vmem:[%s2190_s19 + $0xa0] sm:$0xff]  ;;  %v1444_v36 = vld [vmem:[%s2190_s19 + $0xa8] sm:$0xff] }
 0x1b0   : > { %1435 = vst [vmem:[%s2351_s26 + $0x100] sm:$0xff] %v1434_v31  ;;  %1437 = vst [vmem:[%s2351_s26 + $0x110] sm:$0xff] %v1436_v32  ;;  %v1446_v37 = vld [vmem:[%s2190_s19 + $0xb0] sm:$0xff]  ;;  %v1448_v38 = vld [vmem:[%s2190_s19 + $0xb8] sm:$0xff] }
 0x1b1   : > { %1439 = vst [vmem:[%s2351_s26 + $0x120] sm:$0xff] %v1438_v33  ;;  %1441 = vst [vmem:[%s2351_s26 + $0x130] sm:$0xff] %v1440_v34  ;;  %v1450_v39 = vld [vmem:[%s2190_s19 + $0xc0] sm:$0xff]  ;;  %v1452_v40 = vld [vmem:[%s2190_s19 + $0xc8] sm:$0xff] }
 0x1b2   : > { %1443 = vst [vmem:[%s2351_s26 + $0x140] sm:$0xff] %v1442_v35  ;;  %1445 = vst [vmem:[%s2351_s26 + $0x150] sm:$0xff] %v1444_v36  ;;  %v1454_v41 = vld [vmem:[%s2190_s19 + $0xd0] sm:$0xff]  ;;  %v1456_v42 = vld [vmem:[%s2190_s19 + $0xd8] sm:$0xff] }
 0x1b3   : > { %1447 = vst [vmem:[%s2351_s26 + $0x160] sm:$0xff] %v1446_v37  ;;  %1449 = vst [vmem:[%s2351_s26 + $0x170] sm:$0xff] %v1448_v38  ;;  %v1458_v43 = vld [vmem:[%s2190_s19 + $0xe0] sm:$0xff]  ;;  %v1460_v44 = vld [vmem:[%s2190_s19 + $0xe8] sm:$0xff] }
 0x1b4   : > { %1451 = vst [vmem:[%s2351_s26 + $0x180] sm:$0xff] %v1450_v39  ;;  %1453 = vst [vmem:[%s2351_s26 + $0x190] sm:$0xff] %v1452_v40  ;;  %v1462_v45 = vld [vmem:[%s2190_s19 + $0xf0] sm:$0xff]  ;;  %v1464_v46 = vld [vmem:[%s2190_s19 + $0xf8] sm:$0xff] }
 0x1b5   : > { %1455 = vst [vmem:[%s2351_s26 + $0x1a0] sm:$0xff] %v1454_v41  ;;  %1457 = vst [vmem:[%s2351_s26 + $0x1b0] sm:$0xff] %v1456_v42  ;;  %v1466_v47 = vld [vmem:[%s2190_s19 + $0x100] sm:$0xff]  ;;  %v1468_v48 = vld [vmem:[%s2190_s19 + $0x108] sm:$0xff] }
 0x1b6   : > { %1459 = vst [vmem:[%s2351_s26 + $0x1c0] sm:$0xff] %v1458_v43  ;;  %1461 = vst [vmem:[%s2351_s26 + $0x1d0] sm:$0xff] %v1460_v44  ;;  %v1470_v49 = vld [vmem:[%s2190_s19 + $0x110] sm:$0xff]  ;;  %v1472_v50 = vld [vmem:[%s2190_s19 + $0x118] sm:$0xff] }
 0x1b7   : > { %1463 = vst [vmem:[%s2351_s26 + $0x1e0] sm:$0xff] %v1462_v45  ;;  %1465 = vst [vmem:[%s2351_s26 + $0x1f0] sm:$0xff] %v1464_v46 }
 0x1b8   : > { %1467 = vst [vmem:[%s2351_s26 + $0x200] sm:$0xff] %v1466_v47  ;;  %1469 = vst [vmem:[%s2351_s26 + $0x210] sm:$0xff] %v1468_v48 }
 0x1b9   : > { %1471 = vst [vmem:[%s2351_s26 + $0x220] sm:$0xff] %v1470_v49  ;;  %1473 = vst [vmem:[%s2351_s26 + $0x230] sm:$0xff] %v1472_v50 }
 0x1ba PF: > { %s14_s25 = sadd.s32 1, %s1933_s25   ;;  %s2473_s22 = sld [smem:[#allocation6_spill]] }
 0x1bb   : > { %p11_p6 = scmp.ge.s32.totalorder %s14_s25, 40   ;;  %s2474_s14 = sld [smem:[#allocation7_spill]] }
 0x1bc   : > { %s2475_s24 = sld [smem:[#allocation8_spill]]  ;;  %s2476_s15 = smov %s1897_s16 }
 0x1bd   : > { %s2477_s16 = smov %s2053_s13  ;;  %s2478_s17 = smov %s1905_s18 }
 0x1be   : > { %s2479_s18 = smov %s2050_s12  ;;  %s2480_s19 = smov %s1913_s20 }
 0x1bf   : > { %s2481_s20 = smov %s2036_s7  ;;  %s2482_s21 = smov %s1925_s23 }
 0x1c0   :  { %13 = sbr.rel (!%p11_p6) target bundleno = 9 (0x9), region = 213 }
 0x1c1   : > { %s2483_s23 = smov %s2474_s14 }

// kernel: forward.9
= control target key start
LH: loop header
LB: loop body
LE: loop exit
PB: predicated region body
PF: predicated region fallthrough
CT: control target
= control target key end

     0   :  { %s2951_s0 = inlined_call_operand.vmem [shape: bf16[72,2304], index: 0, kind: input, shape index: {}]   ;;  %s2952_s1 = inlined_call_operand.vmem [shape: bf16[2304,384], index: 1, kind: input, shape index: {}]   ;;  %s2953_s2 = inlined_call_operand.vmem [shape: f32[1,384], index: 2, kind: input, shape index: {}]   ;;  %s2954_s3 = inlined_call_operand.vmem [shape: f32[1,384], index: 3, kind: input, shape index: {}]   ;;  %s2955_s4 = inlined_call_operand.vmem [shape: f32[72,384], index: 4, kind: output, shape index: {}]  }
   0x1   :  { %2959 = sst [smem:[#allocation9_spill]] %s2951_s0 }
   0x2   :  { %2960 = sst [smem:[#allocation10_spill]] %s2952_s1 }
   0x3   :  { %s2380_s15 = smov 0   ;;  %s2382_s16 = smov 0  }
   0x4   :  { %s2384_s17 = smov 0   ;;  %s2386_s18 = smov 0  }
   0x5   :  { %s2388_s19 = smov 0   ;;  %s2390_s20 = smov 0  }
   0x6   :  { %s2392_s21 = smov 0   ;;  %s2394_s22 = smov 0  }
   0x7   :  { %s2396_s23 = smov 0   ;;  %s2398_s24 = smov 0  }
   0x8   :  { %s2400_s25 = smov 0  }
   0x9 LB: > { %2961 = sst [smem:[#allocation6_spill]] %s2348_s24  ;;  %s1833_s26 = sadd.s32 4294967295, %s2352_s25   ;;  %s2352_s25 = sphi %s2400_s25, %s14_s25   ;;  %s2348_s24 = sphi %s2398_s24, %s2971_s24   ;;  %s2344_s23 = sphi %s2396_s23, %s2979_s23   ;;  %s2340_s22 = sphi %s2394_s22, %s2969_s22   ;;  %s2336_s21 = sphi %s2392_s21, %s2978_s21   ;;  %s2332_s20 = sphi %s2390_s20, %s2977_s20   ;;  %s2328_s19 = sphi %s2388_s19, %s2976_s19   ;;  %s2324_s18 = sphi %s2386_s18, %s2975_s18   ;;  %s2320_s17 = sphi %s2384_s17, %s2974_s17   ;;  %s2316_s16 = sphi %s2382_s16, %s2973_s16   ;;  %s2312_s15 = sphi %s2380_s15, %s2972_s15  }
   0xa   : > { %s26_s27 = sadd.s32 1, %s2344_s23  ;;  %s29_s28 = sadd.s32 1, %s2348_s24 }
   0xb   : > { %p27_p0 = scmp.ge.s32.totalorder %s26_s27, 3  ;;  %s42_s29 = sadd.s32 1, %s2332_s20 }
   0xc   : > { %p49_p1 = scmp.ne.s32.totalorder %s2332_s20, %s2328_s19  ;;  %p50_p2 = scmp.eq.s32.totalorder %s2352_s25, 0 }
   0xd   : > { %s2981_s27 = smov (%p27_p0, %s26_s27), 0  ;;  %s2983_s28 = smov (!%p27_p0, %s29_s28), %s2348_s24 }
   0xe   : > { %2962 = sst [smem:[#allocation7_spill]] %s2981_s27  ;;  %s38_s30 = ssub.s32 %s2344_s23, %s2981_s27 }
   0xf   : > { %p31_p3 = scmp.ge.s32.totalorder %s2983_s28, 3  ;;  %p40_p4 = scmp.eq.s32.totalorder %s38_s30, 0 }
  0x10   : > { %p2447_p5 = por %p50_p2, %p49_p1  ;;  %s70_s6 = sadd.s32 1, %s2324_s18 }
  0x11   : > { %s2985_s28 = smov (%p31_p3, %s2983_s28), 0  ;;  %p77_p6 = scmp.ne.s32.totalorder %s2324_s18, %s2320_s17 }
  0x12   : > { %2964 = sst [smem:[#allocation8_spill]] %s2985_s28  ;;  %s66_s8 = ssub.s32 %s2348_s24, %s2985_s28 }
  0x13   : > { %s2455_s7 = scalar_select %p40_p4, %s2332_s20, %s42_s29  }
  0x14   : > { %s67_s9 = sor.u32 %s66_s8, %s38_s30  ;;  %p148_p7 = scmp.eq.s32.totalorder %s66_s8, 0 }
  0x15   : > { %p68_p8 = scmp.eq.s32.totalorder %s67_s9, 0  ;;  %p2461_p9 = por %p77_p6, %p50_p2 }
  0x16   : > { %s150_s11 = sadd.s32 1, %s2316_s16  ;;  %p160_p10 = scmp.ne.s32.totalorder %s2316_s16, %s2312_s15 }
  0x17   : > { %s2469_s12 = scalar_select %p68_p8, %s2324_s18, %s70_s6  }
  0x18   : > { %s2472_s13 = scalar_select %p148_p7, %s2316_s16, %s150_s11  }
  0x19   : > { %p161_p11 = scmp.eq.s32.totalorder %s1833_s26, 8  ;;  %p1836_p13 = scmp.ge.s32.totalorder %s2352_s25, 9 }
  0x1b   : > { %p2474_p12 = por %p161_p11, %p160_p10  ;;  %183 = sbr.rel (%p1836_p13) target bundleno = 128 (0x80), region = 16 }
  0x20   : > { %186 = sbr.rel (!%p2447_p5) target bundleno = 55 (0x37), region = 20  ;;  %s188_s29 = sand.u32 (%p2447_p5), 1, %s2332_s20  }
  0x21   : > { %s1925_s30 = smul.u32 (%p2447_p5), 24, %s2344_s23  ;;  %s2967_s0 = sld [smem:[#allocation9_spill]] (%p2447_p5) }
  0x22   : > { %s2080_s8 = smul.u32 (%p2447_p5), 216, %s188_s29 }
  0x24   : > { %s2491_s26 = scalar_lea.vmem (%p2447_p5), [#allocation3], %s2080_s8 }
  0x27   : > { %s2486_s11 = scalar_lea.vmem %s2967_s0, %s1925_s30 }
  0x28   : > { %v209_v0 = vld [vmem:[%s2486_s11] sm:$0xff]  ;;  %v211_v1 = vld [vmem:[%s2486_s11 + $0x8] sm:$0xff]  ;;  %v213_v2 = vld [vmem:[%s2486_s11 + $0x10] sm:$0xff] }
  0x29   : > { %210 = vst [vmem:[%s2491_s26] sm:$0xff] %v209_v0  ;;  %212 = vst [vmem:[%s2491_s26 + $0x8] sm:$0xff] %v211_v1  ;;  %v215_v3 = vld [vmem:[%s2486_s11 + $0x48] sm:$0xff]  ;;  %v217_v4 = vld [vmem:[%s2486_s11 + $0x50] sm:$0xff] }
  0x2a   : > { %214 = vst [vmem:[%s2491_s26 + $0x10] sm:$0xff] %v213_v2  ;;  %v219_v5 = vld [vmem:[%s2486_s11 + $0x58] sm:$0xff]  ;;  %216 = vst [vmem:[%s2491_s26 + $0x18] sm:$0xff] %v215_v3  ;;  %v221_v6 = vld [vmem:[%s2486_s11 + $0x90] sm:$0xff] }
  0x2b   : > { %218 = vst [vmem:[%s2491_s26 + $0x20] sm:$0xff] %v217_v4  ;;  %220 = vst [vmem:[%s2491_s26 + $0x28] sm:$0xff] %v219_v5  ;;  %v223_v7 = vld [vmem:[%s2486_s11 + $0x98] sm:$0xff]  ;;  %v225_v8 = vld [vmem:[%s2486_s11 + $0xa0] sm:$0xff] }
  0x2c   : > { %222 = vst [vmem:[%s2491_s26 + $0x30] sm:$0xff] %v221_v6  ;;  %224 = vst [vmem:[%s2491_s26 + $0x38] sm:$0xff] %v223_v7  ;;  %v227_v9 = vld [vmem:[%s2486_s11 + $0xd8] sm:$0xff]  ;;  %v229_v10 = vld [vmem:[%s2486_s11 + $0xe0] sm:$0xff] }
  0x2d   : > { %226 = vst [vmem:[%s2491_s26 + $0x40] sm:$0xff] %v225_v8  ;;  %v231_v11 = vld [vmem:[%s2486_s11 + $0xe8] sm:$0xff]  ;;  %228 = vst [vmem:[%s2491_s26 + $0x48] sm:$0xff] %v227_v9  ;;  %v233_v12 = vld [vmem:[%s2486_s11 + $0x120] sm:$0xff] }
  0x2e   : > { %230 = vst [vmem:[%s2491_s26 + $0x50] sm:$0xff] %v229_v10  ;;  %232 = vst [vmem:[%s2491_s26 + $0x58] sm:$0xff] %v231_v11  ;;  %v235_v13 = vld [vmem:[%s2486_s11 + $0x128] sm:$0xff]  ;;  %v237_v14 = vld [vmem:[%s2486_s11 + $0x130] sm:$0xff] }
  0x2f   : > { %234 = vst [vmem:[%s2491_s26 + $0x60] sm:$0xff] %v233_v12  ;;  %236 = vst [vmem:[%s2491_s26 + $0x68] sm:$0xff] %v235_v13  ;;  %v239_v15 = vld [vmem:[%s2486_s11 + $0x168] sm:$0xff]  ;;  %v241_v16 = vld [vmem:[%s2486_s11 + $0x170] sm:$0xff] }
  0x30   : > { %238 = vst [vmem:[%s2491_s26 + $0x70] sm:$0xff] %v237_v14  ;;  %v243_v17 = vld [vmem:[%s2486_s11 + $0x178] sm:$0xff]  ;;  %240 = vst [vmem:[%s2491_s26 + $0x78] sm:$0xff] %v239_v15  ;;  %v245_v18 = vld [vmem:[%s2486_s11 + $0x1b0] sm:$0xff] }
  0x31   : > { %242 = vst [vmem:[%s2491_s26 + $0x80] sm:$0xff] %v241_v16  ;;  %244 = vst [vmem:[%s2491_s26 + $0x88] sm:$0xff] %v243_v17  ;;  %v247_v19 = vld [vmem:[%s2486_s11 + $0x1b8] sm:$0xff]  ;;  %v249_v20 = vld [vmem:[%s2486_s11 + $0x1c0] sm:$0xff] }
  0x32   : > { %246 = vst [vmem:[%s2491_s26 + $0x90] sm:$0xff] %v245_v18  ;;  %248 = vst [vmem:[%s2491_s26 + $0x98] sm:$0xff] %v247_v19  ;;  %v251_v21 = vld [vmem:[%s2486_s11 + $0x1f8] sm:$0xff]  ;;  %v253_v22 = vld [vmem:[%s2486_s11 + $0x200] sm:$0xff] }
  0x33   : > { %250 = vst [vmem:[%s2491_s26 + $0xa0] sm:$0xff] %v249_v20  ;;  %v255_v23 = vld [vmem:[%s2486_s11 + $0x208] sm:$0xff]  ;;  %252 = vst [vmem:[%s2491_s26 + $0xa8] sm:$0xff] %v251_v21  ;;  %v257_v24 = vld [vmem:[%s2486_s11 + $0x240] sm:$0xff] }
  0x34   : > { %254 = vst [vmem:[%s2491_s26 + $0xb0] sm:$0xff] %v253_v22  ;;  %256 = vst [vmem:[%s2491_s26 + $0xb8] sm:$0xff] %v255_v23  ;;  %v259_v25 = vld [vmem:[%s2486_s11 + $0x248] sm:$0xff]  ;;  %v261_v26 = vld [vmem:[%s2486_s11 + $0x250] sm:$0xff] }
  0x35   : > { %258 = vst [vmem:[%s2491_s26 + $0xc0] sm:$0xff] %v257_v24  ;;  %260 = vst [vmem:[%s2491_s26 + $0xc8] sm:$0xff] %v259_v25 }
  0x36   : > { %262 = vst [vmem:[%s2491_s26 + $0xd0] sm:$0xff] %v261_v26 }
  0x37 PF: > { %268 = sbr.rel (!%p2461_p9) target bundleno = 128 (0x80), region = 43  ;;  %s270_s5 = sand.u32 (%p2461_p9), 1, %s2324_s18  }
  0x38   : > { %s2081_s29 = smul.u32 (%p2461_p9), 384, %s270_s5  ;;  %s2968_s1 = sld [smem:[#allocation10_spill]] (%p2461_p9) }
  0x39   : > { %s2086_s30 = smul.u32 (%p2461_p9), 288, %s2344_s23 }
  0x3a   : > { %s2557_s10 = scalar_lea.vmem (%p2461_p9), [#allocation4], %s2081_s29 }
  0x3b   : > { %s275_s8 = sadd.s32 (%p2461_p9), %s2348_s24, %s2086_s30 }
  0x3c   : > { %s1838_s6 = sshll.u32 %s275_s8, 2 }
  0x3e   : > { %s2552_s28 = scalar_lea.vmem %s2968_s1, %s1838_s6 }
  0x3f   : > { %v294_v27 = vld [vmem:[%s2552_s28] sm:$0xf]  ;;  %v296_v28 = vld [vmem:[%s2552_s28 + $0xc] sm:$0xf]  ;;  %v298_v29 = vld [vmem:[%s2552_s28 + $0x18] sm:$0xf] }
  0x40   : > { %295 = vst [vmem:[%s2557_s10] sm:$0xf] %v294_v27  ;;  %297 = vst [vmem:[%s2557_s10 + $0x4] sm:$0xf] %v296_v28  ;;  %v300_v30 = vld [vmem:[%s2552_s28 + $0x24] sm:$0xf] }
  0x41   : > { %299 = vst [vmem:[%s2557_s10 + $0x8] sm:$0xf] %v298_v29  ;;  %v302_v31 = vld [vmem:[%s2552_s28 + $0x30] sm:$0xf]  ;;  %v304_v32 = vld [vmem:[%s2552_s28 + $0x3c] sm:$0xf] }
  0x42   : > { %301 = vst [vmem:[%s2557_s10 + $0xc] sm:$0xf] %v300_v30  ;;  %303 = vst [vmem:[%s2557_s10 + $0x10] sm:$0xf] %v302_v31  ;;  %v306_v33 = vld [vmem:[%s2552_s28 + $0x48] sm:$0xf] }
  0x43   : > { %305 = vst [vmem:[%s2557_s10 + $0x14] sm:$0xf] %v304_v32  ;;  %v308_v34 = vld [vmem:[%s2552_s28 + $0x54] sm:$0xf]  ;;  %v310_v35 = vld [vmem:[%s2552_s28 + $0x60] sm:$0xf] }
  0x44   : > { %307 = vst [vmem:[%s2557_s10 + $0x18] sm:$0xf] %v306_v33  ;;  %309 = vst [vmem:[%s2557_s10 + $0x1c] sm:$0xf] %v308_v34  ;;  %v312_v36 = vld [vmem:[%s2552_s28 + $0x6c] sm:$0xf] }
  0x45   : > { %311 = vst [vmem:[%s2557_s10 + $0x20] sm:$0xf] %v310_v35  ;;  %v314_v37 = vld [vmem:[%s2552_s28 + $0x78] sm:$0xf]  ;;  %v316_v38 = vld [vmem:[%s2552_s28 + $0x84] sm:$0xf] }
  0x46   : > { %313 = vst [vmem:[%s2557_s10 + $0x24] sm:$0xf] %v312_v36  ;;  %315 = vst [vmem:[%s2557_s10 + $0x28] sm:$0xf] %v314_v37  ;;  %v318_v39 = vld [vmem:[%s2552_s28 + $0x90] sm:$0xf] }
  0x47   : > { %317 = vst [vmem:[%s2557_s10 + $0x2c] sm:$0xf] %v316_v38  ;;  %v320_v40 = vld [vmem:[%s2552_s28 + $0x9c] sm:$0xf]  ;;  %v322_v41 = vld [vmem:[%s2552_s28 + $0xa8] sm:$0xf] }
  0x48   : > { %319 = vst [vmem:[%s2557_s10 + $0x30] sm:$0xf] %v318_v39  ;;  %321 = vst [vmem:[%s2557_s10 + $0x34] sm:$0xf] %v320_v40  ;;  %v324_v42 = vld [vmem:[%s2552_s28 + $0xb4] sm:$0xf] }
  0x49   : > { %323 = vst [vmem:[%s2557_s10 + $0x38] sm:$0xf] %v322_v41  ;;  %v326_v43 = vld [vmem:[%s2552_s28 + $0xc0] sm:$0xf]  ;;  %v328_v44 = vld [vmem:[%s2552_s28 + $0xcc] sm:$0xf] }
  0x4a   : > { %325 = vst [vmem:[%s2557_s10 + $0x3c] sm:$0xf] %v324_v42  ;;  %327 = vst [vmem:[%s2557_s10 + $0x40] sm:$0xf] %v326_v43  ;;  %v330_v45 = vld [vmem:[%s2552_s28 + $0xd8] sm:$0xf] }
  0x4b   : > { %329 = vst [vmem:[%s2557_s10 + $0x44] sm:$0xf] %v328_v44  ;;  %v332_v46 = vld [vmem:[%s2552_s28 + $0xe4] sm:$0xf]  ;;  %v334_v47 = vld [vmem:[%s2552_s28 + $0xf0] sm:$0xf] }
  0x4c   : > { %331 = vst [vmem:[%s2557_s10 + $0x48] sm:$0xf] %v330_v45  ;;  %333 = vst [vmem:[%s2557_s10 + $0x4c] sm:$0xf] %v332_v46  ;;  %v336_v48 = vld [vmem:[%s2552_s28 + $0xfc] sm:$0xf] }
  0x4d   : > { %335 = vst [vmem:[%s2557_s10 + $0x50] sm:$0xf] %v334_v47  ;;  %v338_v49 = vld [vmem:[%s2552_s28 + $0x108] sm:$0xf]  ;;  %v340_v50 = vld [vmem:[%s2552_s28 + $0x114] sm:$0xf] }
  0x4e   : > { %337 = vst [vmem:[%s2557_s10 + $0x54] sm:$0xf] %v336_v48  ;;  %339 = vst [vmem:[%s2557_s10 + $0x58] sm:$0xf] %v338_v49  ;;  %v342_v51 = vld [vmem:[%s2552_s28 + $0x120] sm:$0xf] }
  0x4f   : > { %341 = vst [vmem:[%s2557_s10 + $0x5c] sm:$0xf] %v340_v50  ;;  %v344_v52 = vld [vmem:[%s2552_s28 + $0x12c] sm:$0xf]  ;;  %v346_v53 = vld [vmem:[%s2552_s28 + $0x138] sm:$0xf] }
  0x50   : > { %343 = vst [vmem:[%s2557_s10 + $0x60] sm:$0xf] %v342_v51  ;;  %345 = vst [vmem:[%s2557_s10 + $0x64] sm:$0xf] %v344_v52  ;;  %v348_v54 = vld [vmem:[%s2552_s28 + $0x144] sm:$0xf] }
  0x51   : > { %347 = vst [vmem:[%s2557_s10 + $0x68] sm:$0xf] %v346_v53  ;;  %v350_v55 = vld [vmem:[%s2552_s28 + $0x150] sm:$0xf]  ;;  %v352_v56 = vld [vmem:[%s2552_s28 + $0x15c] sm:$0xf] }
  0x52   : > { %349 = vst [vmem:[%s2557_s10 + $0x6c] sm:$0xf] %v348_v54  ;;  %351 = vst [vmem:[%s2557_s10 + $0x70] sm:$0xf] %v350_v55  ;;  %v354_v57 = vld [vmem:[%s2552_s28 + $0x168] sm:$0xf] }
  0x53   : > { %353 = vst [vmem:[%s2557_s10 + $0x74] sm:$0xf] %v352_v56  ;;  %v356_v58 = vld [vmem:[%s2552_s28 + $0x174] sm:$0xf]  ;;  %v358_v59 = vld [vmem:[%s2552_s28 + $0x180] sm:$0xf] }
  0x54   : > { %355 = vst [vmem:[%s2557_s10 + $0x78] sm:$0xf] %v354_v57  ;;  %357 = vst [vmem:[%s2557_s10 + $0x7c] sm:$0xf] %v356_v58  ;;  %v360_v60 = vld [vmem:[%s2552_s28 + $0x18c] sm:$0xf] }
  0x55   : > { %359 = vst [vmem:[%s2557_s10 + $0x80] sm:$0xf] %v358_v59  ;;  %v362_v61 = vld [vmem:[%s2552_s28 + $0x198] sm:$0xf]  ;;  %v364_v62 = vld [vmem:[%s2552_s28 + $0x1a4] sm:$0xf] }
  0x56   : > { %361 = vst [vmem:[%s2557_s10 + $0x84] sm:$0xf] %v360_v60  ;;  %363 = vst [vmem:[%s2557_s10 + $0x88] sm:$0xf] %v362_v61  ;;  %v366_v63 = vld [vmem:[%s2552_s28 + $0x1b0] sm:$0xf] }
  0x57   : > { %365 = vst [vmem:[%s2557_s10 + $0x8c] sm:$0xf] %v364_v62  ;;  %v368_v0 = vld [vmem:[%s2552_s28 + $0x1bc] sm:$0xf]  ;;  %v370_v1 = vld [vmem:[%s2552_s28 + $0x1c8] sm:$0xf] }
  0x58   : > { %367 = vst [vmem:[%s2557_s10 + $0x90] sm:$0xf] %v366_v63  ;;  %369 = vst [vmem:[%s2557_s10 + $0x94] sm:$0xf] %v368_v0  ;;  %v372_v2 = vld [vmem:[%s2552_s28 + $0x1d4] sm:$0xf] }
  0x59   : > { %371 = vst [vmem:[%s2557_s10 + $0x98] sm:$0xf] %v370_v1  ;;  %v374_v3 = vld [vmem:[%s2552_s28 + $0x1e0] sm:$0xf]  ;;  %v376_v4 = vld [vmem:[%s2552_s28 + $0x1ec] sm:$0xf] }
  0x5a   : > { %373 = vst [vmem:[%s2557_s10 + $0x9c] sm:$0xf] %v372_v2  ;;  %375 = vst [vmem:[%s2557_s10 + $0xa0] sm:$0xf] %v374_v3  ;;  %v378_v5 = vld [vmem:[%s2552_s28 + $0x1f8] sm:$0xf] }
  0x5b   : > { %377 = vst [vmem:[%s2557_s10 + $0xa4] sm:$0xf] %v376_v4  ;;  %v380_v6 = vld [vmem:[%s2552_s28 + $0x204] sm:$0xf]  ;;  %v382_v7 = vld [vmem:[%s2552_s28 + $0x210] sm:$0xf] }
  0x5c   : > { %379 = vst [vmem:[%s2557_s10 + $0xa8] sm:$0xf] %v378_v5  ;;  %381 = vst [vmem:[%s2557_s10 + $0xac] sm:$0xf] %v380_v6  ;;  %v384_v8 = vld [vmem:[%s2552_s28 + $0x21c] sm:$0xf] }
  0x5d   : > { %383 = vst [vmem:[%s2557_s10 + $0xb0] sm:$0xf] %v382_v7  ;;  %v386_v9 = vld [vmem:[%s2552_s28 + $0x228] sm:$0xf]  ;;  %v388_v10 = vld [vmem:[%s2552_s28 + $0x234] sm:$0xf] }
  0x5e   : > { %385 = vst [vmem:[%s2557_s10 + $0xb4] sm:$0xf] %v384_v8  ;;  %387 = vst [vmem:[%s2557_s10 + $0xb8] sm:$0xf] %v386_v9  ;;  %v390_v11 = vld [vmem:[%s2552_s28 + $0x240] sm:$0xf] }
  0x5f   : > { %389 = vst [vmem:[%s2557_s10 + $0xbc] sm:$0xf] %v388_v10  ;;  %v392_v12 = vld [vmem:[%s2552_s28 + $0x24c] sm:$0xf]  ;;  %v394_v13 = vld [vmem:[%s2552_s28 + $0x258] sm:$0xf] }
  0x60   : > { %391 = vst [vmem:[%s2557_s10 + $0xc0] sm:$0xf] %v390_v11  ;;  %393 = vst [vmem:[%s2557_s10 + $0xc4] sm:$0xf] %v392_v12  ;;  %v396_v14 = vld [vmem:[%s2552_s28 + $0x264] sm:$0xf] }
  0x61   : > { %395 = vst [vmem:[%s2557_s10 + $0xc8] sm:$0xf] %v394_v13  ;;  %v398_v15 = vld [vmem:[%s2552_s28 + $0x270] sm:$0xf]  ;;  %v400_v16 = vld [vmem:[%s2552_s28 + $0x27c] sm:$0xf] }
  0x62   : > { %397 = vst [vmem:[%s2557_s10 + $0xcc] sm:$0xf] %v396_v14  ;;  %399 = vst [vmem:[%s2557_s10 + $0xd0] sm:$0xf] %v398_v15  ;;  %v402_v17 = vld [vmem:[%s2552_s28 + $0x288] sm:$0xf] }
  0x63   : > { %401 = vst [vmem:[%s2557_s10 + $0xd4] sm:$0xf] %v400_v16  ;;  %v404_v18 = vld [vmem:[%s2552_s28 + $0x294] sm:$0xf]  ;;  %v406_v19 = vld [vmem:[%s2552_s28 + $0x2a0] sm:$0xf] }
  0x64   : > { %403 = vst [vmem:[%s2557_s10 + $0xd8] sm:$0xf] %v402_v17  ;;  %405 = vst [vmem:[%s2557_s10 + $0xdc] sm:$0xf] %v404_v18  ;;  %v408_v20 = vld [vmem:[%s2552_s28 + $0x2ac] sm:$0xf] }
  0x65   : > { %407 = vst [vmem:[%s2557_s10 + $0xe0] sm:$0xf] %v406_v19  ;;  %v410_v21 = vld [vmem:[%s2552_s28 + $0x2b8] sm:$0xf]  ;;  %v412_v22 = vld [vmem:[%s2552_s28 + $0x2c4] sm:$0xf] }
  0x66   : > { %409 = vst [vmem:[%s2557_s10 + $0xe4] sm:$0xf] %v408_v20  ;;  %411 = vst [vmem:[%s2557_s10 + $0xe8] sm:$0xf] %v410_v21  ;;  %v414_v23 = vld [vmem:[%s2552_s28 + $0x2d0] sm:$0xf] }
  0x67   : > { %413 = vst [vmem:[%s2557_s10 + $0xec] sm:$0xf] %v412_v22  ;;  %v416_v24 = vld [vmem:[%s2552_s28 + $0x2dc] sm:$0xf]  ;;  %v418_v25 = vld [vmem:[%s2552_s28 + $0x2e8] sm:$0xf] }
  0x68   : > { %415 = vst [vmem:[%s2557_s10 + $0xf0] sm:$0xf] %v414_v23  ;;  %417 = vst [vmem:[%s2557_s10 + $0xf4] sm:$0xf] %v416_v24  ;;  %v420_v26 = vld [vmem:[%s2552_s28 + $0x2f4] sm:$0xf] }
  0x69   : > { %419 = vst [vmem:[%s2557_s10 + $0xf8] sm:$0xf] %v418_v25  ;;  %v422_v27 = vld [vmem:[%s2552_s28 + $0x300] sm:$0xf]  ;;  %v424_v28 = vld [vmem:[%s2552_s28 + $0x30c] sm:$0xf] }
  0x6a   : > { %421 = vst [vmem:[%s2557_s10 + $0xfc] sm:$0xf] %v420_v26  ;;  %423 = vst [vmem:[%s2557_s10 + $0x100] sm:$0xf] %v422_v27  ;;  %v426_v29 = vld [vmem:[%s2552_s28 + $0x318] sm:$0xf] }
  0x6b   : > { %425 = vst [vmem:[%s2557_s10 + $0x104] sm:$0xf] %v424_v28  ;;  %v428_v30 = vld [vmem:[%s2552_s28 + $0x324] sm:$0xf]  ;;  %v430_v31 = vld [vmem:[%s2552_s28 + $0x330] sm:$0xf] }
  0x6c   : > { %427 = vst [vmem:[%s2557_s10 + $0x108] sm:$0xf] %v426_v29  ;;  %429 = vst [vmem:[%s2557_s10 + $0x10c] sm:$0xf] %v428_v30  ;;  %v432_v32 = vld [vmem:[%s2552_s28 + $0x33c] sm:$0xf] }
  0x6d   : > { %431 = vst [vmem:[%s2557_s10 + $0x110] sm:$0xf] %v430_v31  ;;  %v434_v33 = vld [vmem:[%s2552_s28 + $0x348] sm:$0xf]  ;;  %v436_v34 = vld [vmem:[%s2552_s28 + $0x354] sm:$0xf] }
  0x6e   : > { %433 = vst [vmem:[%s2557_s10 + $0x114] sm:$0xf] %v432_v32  ;;  %435 = vst [vmem:[%s2557_s10 + $0x118] sm:$0xf] %v434_v33  ;;  %v438_v35 = vld [vmem:[%s2552_s28 + $0x360] sm:$0xf] }
  0x6f   : > { %437 = vst [vmem:[%s2557_s10 + $0x11c] sm:$0xf] %v436_v34  ;;  %v440_v36 = vld [vmem:[%s2552_s28 + $0x36c] sm:$0xf]  ;;  %v442_v37 = vld [vmem:[%s2552_s28 + $0x378] sm:$0xf] }
  0x70   : > { %439 = vst [vmem:[%s2557_s10 + $0x120] sm:$0xf] %v438_v35  ;;  %441 = vst [vmem:[%s2557_s10 + $0x124] sm:$0xf] %v440_v36  ;;  %v444_v38 = vld [vmem:[%s2552_s28 + $0x384] sm:$0xf] }
  0x71   : > { %443 = vst [vmem:[%s2557_s10 + $0x128] sm:$0xf] %v442_v37  ;;  %v446_v39 = vld [vmem:[%s2552_s28 + $0x390] sm:$0xf]  ;;  %v448_v40 = vld [vmem:[%s2552_s28 + $0x39c] sm:$0xf] }
  0x72   : > { %445 = vst [vmem:[%s2557_s10 + $0x12c] sm:$0xf] %v444_v38  ;;  %447 = vst [vmem:[%s2557_s10 + $0x130] sm:$0xf] %v446_v39  ;;  %v450_v41 = vld [vmem:[%s2552_s28 + $0x3a8] sm:$0xf] }
  0x73   : > { %449 = vst [vmem:[%s2557_s10 + $0x134] sm:$0xf] %v448_v40  ;;  %v452_v42 = vld [vmem:[%s2552_s28 + $0x3b4] sm:$0xf]  ;;  %v454_v43 = vld [vmem:[%s2552_s28 + $0x3c0] sm:$0xf] }
  0x74   : > { %451 = vst [vmem:[%s2557_s10 + $0x138] sm:$0xf] %v450_v41  ;;  %453 = vst [vmem:[%s2557_s10 + $0x13c] sm:$0xf] %v452_v42  ;;  %v456_v44 = vld [vmem:[%s2552_s28 + $0x3cc] sm:$0xf] }
  0x75   : > { %455 = vst [vmem:[%s2557_s10 + $0x140] sm:$0xf] %v454_v43  ;;  %v458_v45 = vld [vmem:[%s2552_s28 + $0x3d8] sm:$0xf]  ;;  %v460_v46 = vld [vmem:[%s2552_s28 + $0x3e4] sm:$0xf] }
  0x76   : > { %457 = vst [vmem:[%s2557_s10 + $0x144] sm:$0xf] %v456_v44  ;;  %459 = vst [vmem:[%s2557_s10 + $0x148] sm:$0xf] %v458_v45  ;;  %v462_v47 = vld [vmem:[%s2552_s28 + $0x3f0] sm:$0xf] }
  0x77   : > { %461 = vst [vmem:[%s2557_s10 + $0x14c] sm:$0xf] %v460_v46  ;;  %v464_v48 = vld [vmem:[%s2552_s28 + $0x3fc] sm:$0xf]  ;;  %v466_v49 = vld [vmem:[%s2552_s28 + $0x408] sm:$0xf] }
  0x78   : > { %463 = vst [vmem:[%s2557_s10 + $0x150] sm:$0xf] %v462_v47  ;;  %465 = vst [vmem:[%s2557_s10 + $0x154] sm:$0xf] %v464_v48  ;;  %v468_v50 = vld [vmem:[%s2552_s28 + $0x414] sm:$0xf] }
  0x79   : > { %467 = vst [vmem:[%s2557_s10 + $0x158] sm:$0xf] %v466_v49  ;;  %v470_v51 = vld [vmem:[%s2552_s28 + $0x420] sm:$0xf]  ;;  %v472_v52 = vld [vmem:[%s2552_s28 + $0x42c] sm:$0xf] }
  0x7a   : > { %469 = vst [vmem:[%s2557_s10 + $0x15c] sm:$0xf] %v468_v50  ;;  %471 = vst [vmem:[%s2557_s10 + $0x160] sm:$0xf] %v470_v51  ;;  %v474_v53 = vld [vmem:[%s2552_s28 + $0x438] sm:$0xf] }
  0x7b   : > { %473 = vst [vmem:[%s2557_s10 + $0x164] sm:$0xf] %v472_v52  ;;  %v476_v54 = vld [vmem:[%s2552_s28 + $0x444] sm:$0xf]  ;;  %v478_v55 = vld [vmem:[%s2552_s28 + $0x450] sm:$0xf] }
  0x7c   : > { %475 = vst [vmem:[%s2557_s10 + $0x168] sm:$0xf] %v474_v53  ;;  %477 = vst [vmem:[%s2557_s10 + $0x16c] sm:$0xf] %v476_v54  ;;  %v480_v56 = vld [vmem:[%s2552_s28 + $0x45c] sm:$0xf] }
  0x7d   : > { %479 = vst [vmem:[%s2557_s10 + $0x170] sm:$0xf] %v478_v55  ;;  %v482_v57 = vld [vmem:[%s2552_s28 + $0x468] sm:$0xf]  ;;  %v484_v58 = vld [vmem:[%s2552_s28 + $0x474] sm:$0xf] }
  0x7e   : > { %481 = vst [vmem:[%s2557_s10 + $0x174] sm:$0xf] %v480_v56  ;;  %483 = vst [vmem:[%s2557_s10 + $0x178] sm:$0xf] %v482_v57 }
  0x7f   : > { %485 = vst [vmem:[%s2557_s10 + $0x17c] sm:$0xf] %v484_v58 }
  0x80 PF: > { %p1839_p0 = scmp.ge.s32.totalorder %s2352_s25, 1  ;;  %p712_p1 = scmp.lt.s32.totalorder %s2352_s25, 10 }
  0x82   : > { %p713_p2 = pnand %p1839_p0, %p712_p1 }
  0x83   : > { %s719_s0 = sand.u32 (!%p713_p2), 1, %s2328_s19   ;;  %s726_s11 = sand.u32 (!%p713_p2), 1, %s2320_s17  }
  0x84   : > { %716 = sbr.rel (%p713_p2) target bundleno = 467 (0x1d3), region = 92  ;;  %s757_s28 = sand.u32 (!%p713_p2), 1, %s2312_s15  }
  0x85   : > { %s2083_s26 = smul.u32 (!%p713_p2), 216, %s719_s0  ;;  %p763_p3 = scmp.lt.s32.totalorder (!%p713_p2), %s2340_s22, 2 }
  0x86   : > { %s2084_s5 = smul.u32 (!%p713_p2), 384, %s726_s11  ;;  %p1840_p4 = scmp.ne.s32.totalorder (!%p713_p2), %s2336_s21, 0 }
  0x87   : > { %s2085_s29 = smul.u32 (!%p713_p2), 72, %s757_s28  ;;  %s2765_s24 = scalar_lea.vmem (!%p713_p2), [#allocation3], %s2083_s26 }
  0x88   : > { %s2767_s17 = scalar_lea.vmem (!%p713_p2), [#allocation4], %s2084_s5 }
  0x89   : > { %s2755_s30 = scalar_select %p763_p3, %s2340_s22, 2 }
  0x8a   : > { %s2769_s15 = scalar_lea.vmem [#allocation5], %s2085_s29  ;;  %774 = sbr.rel (%p1840_p4) target bundleno = 149 (0x95), region = 104 }
  0x8b   : > { %s765_s9 = scalar_lea.vmem %s2953_s2, %s2755_s30  ;;  %s768_s27 = scalar_lea.vmem %s2954_s3, %s2755_s30 }
  0x8f   : > { %v2354_v59 = vmov 0.0  }
  0x90   : > { %775 = vst [vmem:[#allocation2 + $0x30] sm:$0xff] %v2354_v59  ;;  %776 = vst [vmem:[#allocation2] sm:$0xff] %v2354_v59 }
  0x91   : > { %777 = vst [vmem:[#allocation2 + $0x18] sm:$0xff] %v2354_v59  ;;  %778 = vst [vmem:[#allocation2 + $0x10] sm:$0xff] %v2354_v59 }
  0x92   : > { %779 = vst [vmem:[#allocation2 + $0x20] sm:$0xff] %v2354_v59  ;;  %780 = vst [vmem:[#allocation2 + $0x28] sm:$0xff] %v2354_v59 }
  0x93   : > { %781 = vst [vmem:[#allocation2 + $0x40] sm:$0xff] %v2354_v59  ;;  %782 = vst [vmem:[#allocation2 + $0x38] sm:$0xff] %v2354_v59 }
  0x94   : > { %783 = vst [vmem:[#allocation2 + $0x8] sm:$0xff] %v2354_v59 }
  0x95 PF: > { %v2176_v60 = vld [vmem:[%s2767_s17 + $0x78] sm:$0xff]   ;;  %v2180_v0 = vld [vmem:[%s2767_s17 + $0x70] sm:$0xff]   ;;  %v2184_v4 = vld [vmem:[%s2767_s17 + $0x68] sm:$0xff]   ;;  %p1919_p5 = scmp.ne.s32.totalorder %s2336_s21, 2 }
  0x96   : > { %v2177_v61 = vld [vmem:[%s2767_s17 + $0xf8] sm:$0xff]   ;;  %1926 = vmatprep.subr.bf16.mxu0 %v2176_v60  ;;  %v2181_v1 = vld [vmem:[%s2767_s17 + $0xf0] sm:$0xff]   ;;  %v2185_v5 = vld [vmem:[%s2767_s17 + $0xe8] sm:$0xff]  }
  0x97   : > { %v2178_v62 = vld [vmem:[%s2767_s17 + $0x38] sm:$0xff]   ;;  %1972 = vmatprep.subr.bf16.mxu1 %v2177_v61  ;;  %v2182_v2 = vld [vmem:[%s2767_s17 + $0x30] sm:$0xff]   ;;  %v2186_v6 = vld [vmem:[%s2767_s17 + $0x28] sm:$0xff]  }
  0x98   : > { %v2179_v63 = vld [vmem:[%s2767_s17 + $0xb8] sm:$0xff]   ;;  %1927 = vmatpush3.bf16.msra.mxu0 %v2178_v62  ;;  %v2183_v3 = vld [vmem:[%s2767_s17 + $0xb0] sm:$0xff]   ;;  %v2187_v7 = vld [vmem:[%s2767_s17 + $0xa8] sm:$0xff]  }
  0x99   : > { %1973 = vmatpush3.bf16.msra.mxu1 %v2179_v63  ;;  %1928 = vmatprep.subr.bf16.mxu0 %v2180_v0  ;;  %v2188_v8 = vld [vmem:[%s2767_s17 + $0x60] sm:$0xff]   ;;  %v2192_v12 = vld [vmem:[%s2767_s17 + $0x58] sm:$0xff]   ;;  %v2196_v16 = vld [vmem:[%s2767_s17 + $0x50] sm:$0xff]  }
  0x9a   : > { %1974 = vmatprep.subr.bf16.mxu1 %v2181_v1  ;;  %v2189_v9 = vld [vmem:[%s2767_s17 + $0xe0] sm:$0xff]   ;;  %v2193_v13 = vld [vmem:[%s2767_s17 + $0xd8] sm:$0xff]   ;;  %v2197_v17 = vld [vmem:[%s2767_s17 + $0xd0] sm:$0xff]  }
  0x9b   : > { %v2190_v10 = vld [vmem:[%s2767_s17 + $0x20] sm:$0xff]   ;;  %v2194_v14 = vld [vmem:[%s2767_s17 + $0x18] sm:$0xff]   ;;  %v2198_v18 = vld [vmem:[%s2767_s17 + $0x10] sm:$0xff]  }
  0x9c   : > { %1929 = vmatpush3.bf16.msra.mxu0 %v2182_v2  ;;  %v2191_v11 = vld [vmem:[%s2767_s17 + $0xa0] sm:$0xff]   ;;  %v2195_v15 = vld [vmem:[%s2767_s17 + $0x98] sm:$0xff]   ;;  %v2199_v19 = vld [vmem:[%s2767_s17 + $0x90] sm:$0xff]  }
  0x9d   : > { %1975 = vmatpush3.bf16.msra.mxu1 %v2183_v3  ;;  %1930 = vmatprep.subr.bf16.mxu0 %v2184_v4  ;;  %v2200_v20 = vld [vmem:[%s2767_s17 + $0x48] sm:$0xff]   ;;  %v2204_v24 = vld [vmem:[%s2767_s17 + $0x40] sm:$0xff]   ;;  %v2214_v32 = vld [vmem:[%s2767_s17 + $0x178] sm:$0xff]  }
  0x9e   : > { %1976 = vmatprep.subr.bf16.mxu1 %v2185_v5  ;;  %v2201_v21 = vld [vmem:[%s2767_s17 + $0xc8] sm:$0xff]   ;;  %v2205_v25 = vld [vmem:[%s2767_s17 + $0xc0] sm:$0xff]   ;;  %v2215_v33 = vld [vmem:[%s2767_s17 + $0x138] sm:$0xff]  }
  0x9f   : > { %v2202_v22 = vld [vmem:[%s2767_s17 + $0x8] sm:$0xff]   ;;  %v2206_v26 = vld [vmem:[%s2767_s17] sm:$0xff]   ;;  %v2216_v34 = vld [vmem:[%s2767_s17 + $0x170] sm:$0xff]  }
  0xa0   : > { %1931 = vmatpush3.bf16.msra.mxu0 %v2186_v6  ;;  %v2203_v23 = vld [vmem:[%s2767_s17 + $0x88] sm:$0xff]   ;;  %v2207_v27 = vld [vmem:[%s2767_s17 + $0x80] sm:$0xff]   ;;  %v2217_v35 = vld [vmem:[%s2767_s17 + $0x130] sm:$0xff]  }
  0xa1   : > { %1977 = vmatpush3.bf16.msra.mxu1 %v2187_v7  ;;  %1932 = vmatprep.subr.bf16.mxu0 %v2188_v8  ;;  %v2208_v28 = vld [vmem:[%s2765_s24] ss:$24 sps:$4 sm:$0xff]   ;;  %v2210_v29 = vld [vmem:[%s2765_s24 + $0x4] ss:$24 sps:$4 sm:$0xff]   ;;  %v2218_v36 = vld [vmem:[%s2765_s24 + $0x34] ss:$24 sps:$4 sm:$0xff]  }
  0xa2   : > { %1978 = vmatprep.subr.bf16.mxu1 %v2189_v9  ;;  %v2211_v30 = vld [vmem:[%s2765_s24 + $0x8] ss:$24 sps:$4 sm:$0xff]   ;;  %v2213_v31 = vld [vmem:[%s2765_s24 + $0xc] ss:$24 sps:$4 sm:$0xff]   ;;  %1377 = vmatprep.mubr.bf16.mxu0 %v2210_v29  ;;  %v2220_v37 = vld [vmem:[%s2765_s24 + $0x3c] ss:$24 sps:$4 sm:$0xff]  }
  0xa3   : > { %1449 = vmatprep.mubr.bf16.mxu1 %v2213_v31  ;;  %v2222_v38 = vld [vmem:[%s2765_s24 + $0x30] ss:$24 sps:$4 sm:$0xff]   ;;  %v2224_v40 = vld [vmem:[%s2767_s17 + $0x168] sm:$0xff]   ;;  %v2236_v50 = vld [vmem:[%s2765_s24 + $0x94] ss:$24 sps:$4 sm:$0xff]  }
  0xa4   : > { %1933 = vmatpush3.bf16.msra.mxu0 %v2190_v10  ;;  %v2223_v39 = vld [vmem:[%s2765_s24 + $0x38] ss:$24 sps:$4 sm:$0xff]   ;;  %v2226_v42 = vld [vmem:[%s2765_s24 + $0x64] ss:$24 sps:$4 sm:$0xff]   ;;  %v2232_v46 = vld [vmem:[%s2765_s24 + $0x68] ss:$24 sps:$4 sm:$0xff]  }
  0xa5   : > { %1979 = vmatpush3.bf16.msra.mxu1 %v2191_v11  ;;  %1934 = vmatprep.subr.bf16.mxu0 %v2192_v12  ;;  %v2225_v41 = vld [vmem:[%s2767_s17 + $0x128] sm:$0xff]   ;;  %v2230_v44 = vld [vmem:[%s2767_s17 + $0x160] sm:$0xff]   ;;  %v2234_v48 = vld [vmem:[%s2767_s17 + $0x158] sm:$0xff]  }
  0xa6   : > { %1980 = vmatprep.subr.bf16.mxu1 %v2193_v13  ;;  %v2228_v43 = vld [vmem:[%s2765_s24 + $0x6c] ss:$24 sps:$4 sm:$0xff]   ;;  %v2231_v45 = vld [vmem:[%s2765_s24 + $0x60] ss:$24 sps:$4 sm:$0xff]   ;;  %v2238_v51 = vld [vmem:[%s2765_s24 + $0x9c] ss:$24 sps:$4 sm:$0xff]  }
  0xa7   : > { %v2233_v47 = vld [vmem:[%s2767_s17 + $0x120] sm:$0xff]   ;;  %v2235_v49 = vld [vmem:[%s2767_s17 + $0x118] sm:$0xff]   ;;  %v2242_v52 = vld [vmem:[%s2767_s17 + $0x150] sm:$0xff]  }
  0xa8   : > { %1935 = vmatpush3.bf16.msra.mxu0 %v2194_v14  ;;  %v2240_v53 = vld [vmem:[%s2765_s24 + $0x90] ss:$24 sps:$4 sm:$0xff]   ;;  %v2244_v55 = vld [vmem:[%s2767_s17 + $0x148] sm:$0xff]   ;;  %v2254_v2 = vld [vmem:[%s2765_s24 + $0x14] ss:$24 sps:$4 sm:$0xff]  }
  0xa9   : > { %1981 = vmatpush3.bf16.msra.mxu1 %v2195_v15  ;;  %1936 = vmatprep.subr.bf16.mxu0 %v2196_v16  ;;  %v2243_v54 = vld [vmem:[%s2767_s17 + $0x110] sm:$0xff]   ;;  %v2241_v58 = vld [vmem:[%s2765_s24 + $0x98] ss:$24 sps:$4 sm:$0xff]  }
  0xaa   : > { %1982 = vmatprep.subr.bf16.mxu1 %v2197_v17  ;;  %v817_v56 = vld [vmem:[%s2765_s24 + $0xc0] sm:$0xff]  ;;  %v818_v57 = vld [vmem:[%s2765_s24 + $0xc8] sm:$0xff]  ;;  %v2250_v62 = vld [vmem:[%s2767_s17 + $0x140] sm:$0xff]  }
  0xab   : > { %v1866_v59 = vcombine.high %v817_v56, %v817_v56  ;;  %v1868_v60 = vcombine.high %v818_v57, %v818_v57  ;;  %v2247_v61 = vld [vmem:[%s2767_s17 + $0x108] sm:$0xff]   ;;  %v2251_v63 = vld [vmem:[%s2767_s17 + $0x100] sm:$0xff]   ;;  %v1865_v0 = vcombine.low %v817_v56, %v817_v56  ;;  %v1867_v1 = vcombine.low %v818_v57, %v818_v57 }
  0xac   : > { %1937 = vmatpush3.bf16.msra.mxu0 %v2198_v18  ;;  %v2257_v3 = vld [vmem:[%s2765_s24 + $0xa4] ss:$24 sps:$4 sm:$0xff]   ;;  %v819_v4 = vld [vmem:[%s2765_s24 + $0xd0] sm:$0xff]  ;;  %v2255_v6 = vld [vmem:[%s2765_s24 + $0xa0] ss:$24 sps:$4 sm:$0xff]  }
  0xad   : > { %1983 = vmatpush3.bf16.msra.mxu1 %v2199_v19  ;;  %1938 = vmatprep.subr.bf16.mxu0 %v2200_v20  ;;  %v2252_v5 = vld [vmem:[%s2765_s24 + $0x10] ss:$24 sps:$4 sm:$0xff]   ;;  %v2258_v7 = vld [vmem:[%s2765_s24 + $0x44] ss:$24 sps:$4 sm:$0xff]   ;;  %v1870_v8 = vcombine.high %v819_v4, %v819_v4  ;;  %v2261_v9 = vld [vmem:[%s2765_s24 + $0x40] ss:$24 sps:$4 sm:$0xff]   ;;  %v1869_v10 = vcombine.low %v819_v4, %v819_v4 }
  0xae   : > { %1984 = vmatprep.subr.bf16.mxu1 %v2201_v21  ;;  %v2263_v11 = vld [vmem:[%s2765_s24 + $0x74] ss:$24 sps:$4 sm:$0xff]   ;;  %v2265_v12 = vld [vmem:[%s2765_s24 + $0x70] ss:$24 sps:$4 sm:$0xff]  }
  0xaf   : > { %v784_v4 = vld [vmem:[#allocation2 + $0x30] sm:$0xff] }
  0xb0   : > { %1939 = vmatpush3.bf16.msra.mxu0 %v2202_v22 }
  0xb1   : > { %1985 = vmatpush3.bf16.msra.mxu1 %v2203_v23  ;;  %1940 = vmatprep.subr.bf16.mxu0 %v2204_v24 }
  0xb2   : > { %1986 = vmatprep.subr.bf16.mxu1 %v2205_v25 }
  0xb4   : > { %1941 = vmatpush3.bf16.msra.mxu0 %v2206_v26 }
  0xb5   : > { %1987 = vmatpush3.bf16.msra.mxu1 %v2207_v27  ;;  %2018 = vmatprep.subr.bf16.mxu0 %v2214_v32 }
  0xb6   : > { %2064 = vmatprep.subr.bf16.mxu1 %v2214_v32 }
  0xb7   : > { %1378 = vmatmul.mubr.bf16.vlgmr.msra.gmra.mxu0 %v2208_v28 }
  0xb8   : > { %1450 = vmatmul.mubr.bf16.vlgmr.msra.gmra.mxu1 %v2211_v30  ;;  %2019 = vmatpush3.bf16.msra.mxu0 %v2215_v33 }
  0xb9   : > { %2020 = vmatprep.subr.bf16.mxu0 %v2216_v34  ;;  %2072 = vmatpush3.bf16.msra.mxu1 %v2215_v33 }
  0xba   : > { %2065 = vmatprep.subr.bf16.mxu1 %v2216_v34  ;;  %1385 = vmatprep.mubr.bf16.mxu0 %v2218_v36 }
  0xbb   : > { %1457 = vmatprep.mubr.bf16.mxu1 %v2220_v37 }
  0xbc   : > { %2021 = vmatpush3.bf16.msra.mxu0 %v2217_v35 }
  0xbd   : > { %2073 = vmatpush3.bf16.msra.mxu1 %v2217_v35  ;;  %2022 = vmatprep.subr.bf16.mxu0 %v2224_v40 }
  0xbe   : > { %2066 = vmatprep.subr.bf16.mxu1 %v2224_v40 }
  0xbf   : > { %1386 = vmatmul.mubr.bf16.gmra.mxu0 %v2222_v38 }
  0xc0   : > { %1458 = vmatmul.mubr.bf16.gmra.mxu1 %v2223_v39  ;;  %2023 = vmatpush3.bf16.msra.mxu0 %v2225_v41 }
  0xc1   : > { %1393 = vmatprep.mubr.bf16.mxu0 %v2226_v42  ;;  %1465 = vmatprep.mubr.bf16.mxu1 %v2228_v43 }
  0xc2   : > { %2074 = vmatpush3.bf16.msra.mxu1 %v2225_v41  ;;  %2024 = vmatprep.subr.bf16.mxu0 %v2230_v44 }
  0xc3   : > { %2067 = vmatprep.subr.bf16.mxu1 %v2230_v44 }
  0xc4   : > { %2025 = vmatpush3.bf16.msra.mxu0 %v2233_v47 }
  0xc5   : > { %2026 = vmatprep.subr.bf16.mxu0 %v2234_v48 }
  0xc6   : > { %2075 = vmatpush3.bf16.msra.mxu1 %v2233_v47 }
  0xc7   : > { %1394 = vmatmul.mubr.bf16.gmra.mxu0 %v2231_v45  ;;  %2068 = vmatprep.subr.bf16.mxu1 %v2234_v48 }
  0xc8   : > { %1466 = vmatmul.mubr.bf16.gmra.mxu1 %v2232_v46  ;;  %1401 = vmatprep.mubr.bf16.mxu0 %v2236_v50 }
  0xc9   : > { %2027 = vmatpush3.bf16.msra.mxu0 %v2235_v49  ;;  %1473 = vmatprep.mubr.bf16.mxu1 %v2238_v51 }
  0xca   : > { %2076 = vmatpush3.bf16.msra.mxu1 %v2235_v49  ;;  %2028 = vmatprep.subr.bf16.mxu0 %v2242_v52 }
  0xcb   : > { %2069 = vmatprep.subr.bf16.mxu1 %v2242_v52 }
  0xcd   : > { %2029 = vmatpush3.bf16.msra.mxu0 %v2243_v54 }
  0xce   : > { %2077 = vmatpush3.bf16.msra.mxu1 %v2243_v54  ;;  %2030 = vmatprep.subr.bf16.mxu0 %v2244_v55 }
  0xcf   : > { %1402 = vmatmul.mubr.bf16.gmra.mxu0 %v2240_v53  ;;  %2070 = vmatprep.subr.bf16.mxu1 %v2244_v55 }
  0xd0   : > { %1474 = vmatmul.mubr.bf16.gmra.mxu1 %v2241_v58  ;;  %1409 = vmatprep.mubr.bf16.mxu0 %v1866_v59 }
  0xd1   : > { %1481 = vmatprep.mubr.bf16.mxu1 %v1868_v60  ;;  %2031 = vmatpush3.bf16.msra.mxu0 %v2247_v61 }
  0xd2   : > { %2078 = vmatpush3.bf16.msra.mxu1 %v2247_v61  ;;  %2032 = vmatprep.subr.bf16.mxu0 %v2250_v62 }
  0xd3   : > { %2071 = vmatprep.subr.bf16.mxu1 %v2250_v62 }
  0xd5   : > { %2033 = vmatpush3.bf16.msra.mxu0 %v2251_v63 }
  0xd6   : > { %2079 = vmatpush3.bf16.msra.mxu1 %v2251_v63 }
  0xd7   : > { %1410 = vmatmul.mubr.bf16.gmra.mxu0 %v1865_v0 }
  0xd8   : > { %1482 = vmatmul.mubr.bf16.gmra.mxu1 %v1867_v1  ;;  %1521 = vmatprep.mubr.bf16.mxu0 %v2254_v2 }
  0xd9   : > { %1545 = vmatprep.mubr.bf16.mxu1 %v2257_v3 }
  0xdf   : > { %1522 = vmatmul.mubr.bf16.vlgmr.msra.gmra.mxu0 %v2252_v5 }
  0xe0   : > { %1546 = vmatmul.mubr.bf16.vlgmr.msra.gmra.mxu1 %v2255_v6  ;;  %1529 = vmatprep.mubr.bf16.mxu0 %v2258_v7 }
  0xe1   : > { %1553 = vmatprep.mubr.bf16.mxu1 %v1870_v8  ;;  %v790_v8 = vld [vmem:[#allocation2 + $0x40] sm:$0xff] }
  0xe7   : > { %1530 = vmatmul.mubr.bf16.gmra.mxu0 %v2261_v9 }
  0xe8   : > { %1554 = vmatmul.mubr.bf16.gmra.mxu1 %v1869_v10  ;;  %1537 = vmatprep.mubr.bf16.mxu0 %v2263_v11 }
  0xef   : > { %1538 = vmatmul.mubr.bf16.gmra.mxu0 %v2265_v12 }
 0x177   : > { %v1942_v13 = vpop.f32.mrf.mxu0 }
 0x178   : > { %v1988_v14 = vpop.f32.mrf.mxu1 }
 0x179   : > { %v1943_v15 = vpop.f32.mrf.mxu0 }
 0x17a   : > { %v1989_v16 = vpop.f32.mrf.mxu1  ;;  %v1944_v51 = vadd.f32 %v1943_v15, %v1942_v13 }
 0x17b   : > { %v1945_v17 = vpop.f32.mrf.mxu0  ;;  %v1990_v52 = vadd.f32 %v1989_v16, %v1988_v14 }
 0x17c   : > { %v1991_v18 = vpop.f32.mrf.mxu1 }
 0x17d   : > { %v1946_v19 = vpop.f32.mrf.mxu0  ;;  %v1452_v59 = vadd.f32 %v1990_v52, %v1944_v51 }
 0x17e   : > { %v1992_v20 = vpop.f32.mrf.mxu1  ;;  %v1947_v60 = vadd.f32 %v1946_v19, %v1945_v17 }
 0x17f   : > { %v1948_v21 = vpop.f32.mrf.mxu0  ;;  %v1993_v62 = vadd.f32 %v1992_v20, %v1991_v18 }
 0x180   : > { %v1994_v22 = vpop.f32.mrf.mxu1 }
 0x181   : > { %v1949_v23 = vpop.f32.mrf.mxu0  ;;  %v1455_v14 = vadd.f32 %v1993_v62, %v1947_v60 }
 0x182   : > { %v1995_v24 = vpop.f32.mrf.mxu1  ;;  %v1950_v10 = vadd.f32 %v1949_v23, %v1948_v21 }
 0x183   : > { %v2847_v25 = vpop.f32.mrf.mxu0  ;;  %v1996_v11 = vadd.f32 %v1995_v24, %v1994_v22 }
 0x184   : > { %v2849_v26 = vpop.f32.mrf.mxu1 }
 0x185   : > { %v2851_v27 = vpop.f32.mrf.mxu0 }
 0x186   : > { %v2853_v28 = vpop.f32.mrf.mxu1  ;;  %v1953_v23 = vadd.f32 %v2851_v27, %v2847_v25 }
 0x187   : > { %v2855_v29 = vpop.f32.mrf.mxu0  ;;  %v1999_v24 = vadd.f32 %v2853_v28, %v2849_v26 }
 0x188   : > { %v2857_v30 = vpop.f32.mrf.mxu1 }
 0x189   : > { %v2859_v31 = vpop.f32.mrf.mxu0  ;;  %v1463_v28 = vadd.f32 %v1999_v24, %v1953_v23 }
 0x18a   : > { %v2861_v32 = vpop.f32.mrf.mxu1 }
 0x18b   : > { %v2863_v33 = vpop.f32.mrf.mxu0  ;;  %v2002_v25 = vadd.f32 %v2861_v32, %v2857_v30 }
 0x18c   : > { %v2865_v34 = vpop.f32.mrf.mxu1 }
 0x18d   : > { %v2867_v35 = vpop.f32.mrf.mxu0 }
 0x18e   : > { %v2869_v36 = vpop.f32.mrf.mxu1 }
 0x18f   : > { %v1960_v37 = vpop.f32.mrf.mxu0  ;;  %v2005_v30 = vadd.f32 %v2869_v36, %v2865_v34 }
 0x190   : > { %v2006_v38 = vpop.f32.mrf.mxu1 }
 0x191   : > { %v1961_v39 = vpop.f32.mrf.mxu0 }
 0x192   : > { %v2007_v40 = vpop.f32.mrf.mxu1  ;;  %v1962_v55 = vadd.f32 %v1961_v39, %v1960_v37 }
 0x193   : > { %v1963_v41 = vpop.f32.mrf.mxu0  ;;  %v2008_v56 = vadd.f32 %v2007_v40, %v2006_v38  ;;  %v785_v38 = vld [vmem:[#allocation2] sm:$0xff] }
 0x194   : > { %v2009_v42 = vpop.f32.mrf.mxu1 }
 0x195   : > { %v1964_v43 = vpop.f32.mrf.mxu0  ;;  %v1476_v3 = vadd.f32 %v2008_v56, %v1962_v55  ;;  %v1956_v56 = vadd.f32 %v2859_v31, %v2855_v29  ;;  %v1959_v29 = vadd.f32 %v2867_v35, %v2863_v33 }
 0x196   : > { %v2010_v44 = vpop.f32.mrf.mxu1  ;;  %v1965_v63 = vadd.f32 %v1964_v43, %v1963_v41 }
 0x197   : > { %v1966_v45 = vpop.f32.mrf.mxu0  ;;  %v2011_v0 = vadd.f32 %v2010_v44, %v2009_v42  ;;  %v791_v42 = vld [vmem:[#allocation2 + $0x38] sm:$0xff]  ;;  %v1460_v44 = vadd.f32 %v1996_v11, %v1950_v10 }
 0x198   : > { %v2012_v46 = vpop.f32.mrf.mxu1 }
 0x199   : > { %v1967_v47 = vpop.f32.mrf.mxu0  ;;  %v1479_v15 = vadd.f32 %v2011_v0, %v1965_v63  ;;  %v1468_v0 = vadd.f32 %v2002_v25, %v1956_v56 }
 0x19a   : > { %v2013_v48 = vpop.f32.mrf.mxu1  ;;  %v1968_v19 = vadd.f32 %v1967_v47, %v1966_v45 }
 0x19b   : > { %v1969_v49 = vpop.f32.mrf.mxu0  ;;  %v2014_v20 = vadd.f32 %v2013_v48, %v2012_v46 }
 0x19c   : > { %v2015_v50 = vpop.f32.mrf.mxu1 }
 0x19d   : > { %v1970_v53 = vpop.f32.mrf.mxu0  ;;  %v1484_v48 = vadd.f32 %v2014_v20, %v1968_v19  ;;  %v786_v50 = vld [vmem:[#allocation2 + $0x18] sm:$0xff] }
 0x19e   : > { %v2016_v54 = vpop.f32.mrf.mxu1 }
 0x19f   : > { %v2034_v57 = vpop.f32.mrf.mxu0  ;;  %v792_v54 = vld [vmem:[#allocation2 + $0x8] sm:$0xff] }
 0x1a0   : > { %v2052_v58 = vpop.f32.mrf.mxu1 }
 0x1a1   : > { %v2035_v61 = vpop.f32.mrf.mxu0 }
 0x1a2   : > { %v2036_v1 = vadd.f32 %v2035_v61, %v2034_v57  ;;  %v2053_v2 = vpop.f32.mrf.mxu1  ;;  %v787_v61 = vld [vmem:[#allocation2 + $0x10] sm:$0xff] }
 0x1a3   : > { %v2054_v5 = vadd.f32 %v2053_v2, %v2052_v58  ;;  %v2037_v6 = vpop.f32.mrf.mxu0  ;;  %v788_v2 = vld [vmem:[#allocation2 + $0x20] sm:$0xff] }
 0x1a4   : > { %v1524_v7 = vadd.f32 %v2036_v1, %v1452_v59  ;;  %v2055_v9 = vpop.f32.mrf.mxu1 }
 0x1a5   : > { %v1548_v12 = vadd.f32 %v2054_v5, %v1476_v3  ;;  %v2038_v13 = vpop.f32.mrf.mxu0 }
 0x1a6   : > { %v1561_v16 = vadd.f32 %v1524_v7, %v784_v4  ;;  %v2039_v17 = vadd.f32 %v2038_v13, %v2037_v6  ;;  %v2056_v18 = vpop.f32.mrf.mxu1  ;;  %v1471_v6 = vadd.f32 %v2005_v30, %v1959_v29 }
 0x1a7   : > { %v1567_v37 = vadd.f32 %v1548_v12, %v790_v8  ;;  %v2057_v39 = vadd.f32 %v2056_v18, %v2055_v9  ;;  %v2040_v40 = vpop.f32.mrf.mxu0  ;;  %v789_v9 = vld [vmem:[#allocation2 + $0x28] sm:$0xff] }
 0x1a8   : > { %1570 = vst [vmem:[#allocation2 + $0x30] sm:$0xff] %v1561_v16  ;;  %v1527_v41 = vadd.f32 %v2039_v17, %v1455_v14  ;;  %v2058_v43 = vpop.f32.mrf.mxu1 }
 0x1a9   : > { %1576 = vst [vmem:[#allocation2 + $0x40] sm:$0xff] %v1567_v37  ;;  %v1551_v21 = vadd.f32 %v2057_v39, %v1479_v15  ;;  %v2041_v22 = vpop.f32.mrf.mxu0 }
 0x1aa   : > { %v1562_v45 = vadd.f32 %v1527_v41, %v785_v38  ;;  %v2042_v46 = vadd.f32 %v2041_v22, %v2040_v40  ;;  %v2059_v47 = vpop.f32.mrf.mxu1 }
 0x1ab   : > { %v1568_v49 = vadd.f32 %v1551_v21, %v791_v42  ;;  %v2060_v51 = vadd.f32 %v2059_v47, %v2058_v43  ;;  %v2043_v52 = vpop.f32.mrf.mxu0 }
 0x1ac   : > { %1571 = vst [vmem:[#allocation2] sm:$0xff] %v1562_v45  ;;  %v1532_v53 = vadd.f32 %v2042_v46, %v1460_v44  ;;  %v2061_v55 = vpop.f32.mrf.mxu1 }
 0x1ad   : > { %1577 = vst [vmem:[#allocation2 + $0x38] sm:$0xff] %v1568_v49  ;;  %v1556_v26 = vadd.f32 %v2060_v51, %v1484_v48  ;;  %v2044_v27 = vpop.f32.mrf.mxu0 }
 0x1ae   : > { %v1563_v57 = vadd.f32 %v1532_v53, %v786_v50  ;;  %v2045_v58 = vadd.f32 %v2044_v27, %v2043_v52  ;;  %v2062_v59 = vpop.f32.mrf.mxu1 }
 0x1af   : > { %v1569_v60 = vadd.f32 %v1556_v26, %v792_v54  ;;  %v2046_v62 = vpop.f32.mrf.mxu0 }
 0x1b0   : > { %1572 = vst [vmem:[#allocation2 + $0x18] sm:$0xff] %v1563_v57  ;;  %v1535_v63 = vadd.f32 %v2045_v58, %v1463_v28 }
 0x1b1   : > { %1578 = vst [vmem:[#allocation2 + $0x8] sm:$0xff] %v1569_v60  ;;  %v2047_v1 = vpop.f32.mrf.mxu0 }
 0x1b2   : > { %v1564_v31 = vadd.f32 %v1535_v63, %v787_v61  ;;  %v2048_v32 = vadd.f32 %v2047_v1, %v2046_v62 }
 0x1b3   : > { %v2049_v3 = vpop.f32.mrf.mxu0 }
 0x1b4   : > { %1573 = vst [vmem:[#allocation2 + $0x10] sm:$0xff] %v1564_v31  ;;  %v1540_v4 = vadd.f32 %v2048_v32, %v1468_v0 }
 0x1b5   : > { %v2050_v5 = vpop.f32.mrf.mxu0 }
 0x1b6   : > { %v1565_v7 = vadd.f32 %v1540_v4, %v788_v2  ;;  %v2051_v8 = vadd.f32 %v2050_v5, %v2049_v3 }
 0x1b8   : > { %1574 = vst [vmem:[#allocation2 + $0x20] sm:$0xff] %v1565_v7  ;;  %v1543_v10 = vadd.f32 %v2051_v8, %v1471_v6  ;;  %1582 = sbr.rel (%p1919_p5) target bundleno = 459 (0x1cb), region = 108 }
 0x1ba   : > { %v1566_v11 = vadd.f32 %v1543_v10, %v789_v9 }
 0x1bc   : > { %1575 = vst [vmem:[#allocation2 + $0x28] sm:$0xff] %v1566_v11 }
 0x1bd   : > { %v1583_v33 = vld [vmem:[#allocation2 + $0x30] sm:$0xff]  ;;  %v1920_v34 = vld [vmem:[%s765_s9] ss:$0 sm:$0xff]  ;;  %v1585_v13 = vld [vmem:[#allocation2 + $0x18] sm:$0xff] }
 0x1be   : > { %v1921_v35 = vld [vmem:[%s768_s27] ss:$0 sm:$0xff]  ;;  %v1599_v36 = vmul.f32 %v1920_v34, %v1583_v33  ;;  %v1586_v14 = vld [vmem:[#allocation2 + $0x10] sm:$0xff]  ;;  %v1601_v16 = vmul.f32 %v1920_v34, %v1585_v13  ;;  %v1590_v41 = vld [vmem:[#allocation2 + $0x38] sm:$0xff] }
 0x1bf   : > { %v1584_v12 = vld [vmem:[#allocation2] sm:$0xff]  ;;  %v1602_v17 = vmul.f32 %v1920_v34, %v1586_v14  ;;  %v1606_v21 = vmul.f32 %v1920_v34, %v1590_v41  ;;  %v1591_v22 = vld [vmem:[#allocation2 + $0x8] sm:$0xff] }
 0x1c0   : > { %v1600_v15 = vmul.f32 %v1920_v34, %v1584_v12  ;;  %v1587_v18 = vld [vmem:[#allocation2 + $0x20] sm:$0xff]  ;;  %v1615_v37 = vadd.f32 %v1921_v35, %v1599_v36  ;;  %v1617_v43 = vadd.f32 %v1921_v35, %v1601_v16  ;;  %v1607_v54 = vmul.f32 %v1920_v34, %v1591_v22 }
 0x1c1   : > { %v1589_v20 = vld [vmem:[#allocation2 + $0x40] sm:$0xff]  ;;  %v1603_v38 = vmul.f32 %v1920_v34, %v1587_v18  ;;  %v1618_v44 = vadd.f32 %v1921_v35, %v1602_v17  ;;  %v1622_v50 = vadd.f32 %v1921_v35, %v1606_v21 }
 0x1c2   : > { %v1605_v40 = vmul.f32 %v1920_v34, %v1589_v20  ;;  %v1616_v42 = vadd.f32 %v1921_v35, %v1600_v15  ;;  %v1624_v23 = vmax.f32 %v1615_v37, 0.0  ;;  %v1626_v48 = vmax.f32 %v1617_v43, 0.0 }
 0x1c3   : > { %v1588_v19 = vld [vmem:[#allocation2 + $0x28] sm:$0xff]  ;;  %v1619_v24 = vadd.f32 %v1921_v35, %v1603_v38  ;;  %v1627_v49 = vmax.f32 %v1618_v44, 0.0  ;;  %v1631_v55 = vmax.f32 %v1622_v50, 0.0  ;;  %v1623_v56 = vadd.f32 %v1921_v35, %v1607_v54 }
 0x1c4   : > { %v1604_v39 = vmul.f32 %v1920_v34, %v1588_v19  ;;  %v1621_v46 = vadd.f32 %v1921_v35, %v1605_v40  ;;  %v1625_v47 = vmax.f32 %v1616_v42, 0.0  ;;  %1633 = vst [vmem:[%s2769_s15] sm:$0xff] %v1624_v23  ;;  %1635 = vst [vmem:[%s2769_s15 + $0x10] sm:$0xff] %v1626_v48 }
 0x1c5   : > { %v1628_v51 = vmax.f32 %v1619_v24, 0.0  ;;  %1636 = vst [vmem:[%s2769_s15 + $0x18] sm:$0xff] %v1627_v49  ;;  %1640 = vst [vmem:[%s2769_s15 + $0x38] sm:$0xff] %v1631_v55  ;;  %v1632_v25 = vmax.f32 %v1623_v56, 0.0 }
 0x1c6   : > { %v1620_v45 = vadd.f32 %v1921_v35, %v1604_v39  ;;  %v1630_v53 = vmax.f32 %v1621_v46, 0.0  ;;  %1634 = vst [vmem:[%s2769_s15 + $0x8] sm:$0xff] %v1625_v47 }
 0x1c7   : > { %1637 = vst [vmem:[%s2769_s15 + $0x20] sm:$0xff] %v1628_v51  ;;  %1641 = vst [vmem:[%s2769_s15 + $0x40] sm:$0xff] %v1632_v25 }
 0x1c8   : > { %v1629_v52 = vmax.f32 %v1620_v45, 0.0  ;;  %1639 = vst [vmem:[%s2769_s15 + $0x30] sm:$0xff] %v1630_v53 }
 0x1ca   : > { %1638 = vst [vmem:[%s2769_s15 + $0x28] sm:$0xff] %v1629_v52 }
 0x1cb PF: > { %1648 = sbr.rel (!%p2474_p12) target bundleno = 467 (0x1d3), region = 112  ;;  %s1922_s21 = sshll.u32 (%p2474_p12), %s2340_s22, 3  ;;  %v1698_v26 = vld [vmem:[%s2769_s15] sm:$0xff] (%p2474_p12)  ;;  %v1702_v28 = vld [vmem:[%s2769_s15 + $0x10] sm:$0xff] (%p2474_p12) }
 0x1cc   : > { %s1653_s26 = scalar_lea.vmem (%p2474_p12), %s2955_s4, %s1922_s21  ;;  %v1704_v57 = vld [vmem:[%s2769_s15 + $0x18] sm:$0xff] (%p2474_p12) }
 0x1cd   : > { %v1700_v27 = vld [vmem:[%s2769_s15 + $0x8] sm:$0xff] (%p2474_p12)  ;;  %1699 = vst [vmem:[%s1653_s26] sm:$0xff] (%p2474_p12), %v1698_v26  ;;  %1703 = vst [vmem:[%s1653_s26 + $0x30] sm:$0xff] (%p2474_p12), %v1702_v28  ;;  %v1712_v61 = vld [vmem:[%s2769_s15 + $0x38] sm:$0xff] (%p2474_p12) }
 0x1ce   : > { %v1706_v58 = vld [vmem:[%s2769_s15 + $0x20] sm:$0xff] (%p2474_p12)  ;;  %1701 = vst [vmem:[%s1653_s26 + $0x18] sm:$0xff] (%p2474_p12), %v1700_v27  ;;  %1705 = vst [vmem:[%s1653_s26 + $0x48] sm:$0xff] (%p2474_p12), %v1704_v57 }
 0x1cf   : > { %1707 = vst [vmem:[%s1653_s26 + $0x60] sm:$0xff] (%p2474_p12), %v1706_v58  ;;  %v1710_v60 = vld [vmem:[%s2769_s15 + $0x30] sm:$0xff] (%p2474_p12)  ;;  %v1714_v62 = vld [vmem:[%s2769_s15 + $0x40] sm:$0xff] (%p2474_p12)  ;;  %1713 = vst [vmem:[%s1653_s26 + $0xa8] sm:$0xff] (%p2474_p12), %v1712_v61 }
 0x1d0   : > { %1711 = vst [vmem:[%s1653_s26 + $0x90] sm:$0xff] %v1710_v60  ;;  %1715 = vst [vmem:[%s1653_s26 + $0xc0] sm:$0xff] %v1714_v62 }
 0x1d1   : > { %v1708_v59 = vld [vmem:[%s2769_s15 + $0x28] sm:$0xff] }
 0x1d2   : > { %1709 = vst [vmem:[%s1653_s26 + $0x78] sm:$0xff] %v1708_v59 }
 0x1d3 PF: > { %s14_s25 = sadd.s32 1, %s2352_s25   ;;  %s2969_s22 = sld [smem:[#allocation6_spill]] }
 0x1d4   : > { %p11_p6 = scmp.ge.s32.totalorder %s14_s25, 11   ;;  %s2970_s14 = sld [smem:[#allocation7_spill]] }
 0x1d5   : > { %s2971_s24 = sld [smem:[#allocation8_spill]]  ;;  %s2972_s15 = smov %s2316_s16 }
 0x1d6   : > { %s2973_s16 = smov %s2472_s13  ;;  %s2974_s17 = smov %s2324_s18 }
 0x1d7   : > { %s2975_s18 = smov %s2469_s12  ;;  %s2976_s19 = smov %s2332_s20 }
 0x1d8   : > { %s2977_s20 = smov %s2455_s7  ;;  %s2978_s21 = smov %s2344_s23 }
 0x1d9   :  { %13 = sbr.rel (!%p11_p6) target bundleno = 9 (0x9), region = 195 }
 0x1da   : > { %s2979_s23 = smov %s2970_s14 }

// kernel: forward.10
= control target key start
LH: loop header
LB: loop body
LE: loop exit
PB: predicated region body
PF: predicated region fallthrough
CT: control target
= control target key end

     0   :  { %s2124_s0 = inlined_call_operand.vmem [shape: bf16[72,3456], index: 0, kind: input, shape index: {}]   ;;  %s2125_s1 = inlined_call_operand.vmem [shape: bf16[3456,384], index: 1, kind: input, shape index: {}]   ;;  %s2126_s2 = inlined_call_operand.vmem [shape: f32[1,384], index: 2, kind: input, shape index: {}]   ;;  %s2127_s3 = inlined_call_operand.vmem [shape: f32[1,384], index: 3, kind: input, shape index: {}]   ;;  %s2128_s4 = inlined_call_operand.vmem [shape: f32[72,384], index: 4, kind: output, shape index: {}]  }
   0x1   :  { %2132 = sst [smem:[#allocation9_spill]] %s2124_s0 }
   0x2   :  { %2133 = sst [smem:[#allocation10_spill]] %s2125_s1 }
   0x3   :  { %s1722_s15 = smov 0   ;;  %s1724_s16 = smov 0  }
   0x4   :  { %s1726_s17 = smov 0   ;;  %s1728_s18 = smov 0  }
   0x5   :  { %s1730_s19 = smov 0   ;;  %s1732_s20 = smov 0  }
   0x6   :  { %s1734_s21 = smov 0   ;;  %s1736_s22 = smov 0  }
   0x7   :  { %s1738_s23 = smov 0   ;;  %s1740_s24 = smov 0  }
   0x8   :  { %s1742_s25 = smov 0  }
   0x9 LB: > { %2134 = sst [smem:[#allocation6_spill]] %s1688_s24  ;;  %s1298_s26 = sadd.s32 4294967295, %s1692_s25   ;;  %s1692_s25 = sphi %s1742_s25, %s14_s25   ;;  %s1688_s24 = sphi %s1740_s24, %s2144_s24   ;;  %s1684_s23 = sphi %s1738_s23, %s2152_s23   ;;  %s1680_s22 = sphi %s1736_s22, %s2142_s22   ;;  %s1676_s21 = sphi %s1734_s21, %s2151_s21   ;;  %s1672_s20 = sphi %s1732_s20, %s2150_s20   ;;  %s1668_s19 = sphi %s1730_s19, %s2149_s19   ;;  %s1664_s18 = sphi %s1728_s18, %s2148_s18   ;;  %s1660_s17 = sphi %s1726_s17, %s2147_s17   ;;  %s1656_s16 = sphi %s1724_s16, %s2146_s16   ;;  %s1652_s15 = sphi %s1722_s15, %s2145_s15  }
   0xa   : > { %s26_s27 = sadd.s32 1, %s1684_s23  ;;  %s29_s28 = sadd.s32 1, %s1688_s24 }
   0xb   : > { %p27_p0 = scmp.ge.s32.totalorder %s26_s27, 9  ;;  %s42_s29 = sadd.s32 1, %s1672_s20 }
   0xc   : > { %p49_p1 = scmp.ne.s32.totalorder %s1672_s20, %s1668_s19  ;;  %p50_p2 = scmp.eq.s32.totalorder %s1692_s25, 0 }
   0xd   : > { %s2154_s27 = smov (%p27_p0, %s26_s27), 0  ;;  %s2156_s28 = smov (!%p27_p0, %s29_s28), %s1688_s24 }
   0xe   : > { %2135 = sst [smem:[#allocation7_spill]] %s2154_s27  ;;  %s38_s30 = ssub.s32 %s1684_s23, %s2154_s27 }
   0xf   : > { %p31_p3 = scmp.ge.s32.totalorder %s2156_s28, 3  ;;  %p40_p4 = scmp.eq.s32.totalorder %s38_s30, 0 }
  0x10   : > { %p1789_p5 = por %p50_p2, %p49_p1  ;;  %s70_s6 = sadd.s32 1, %s1664_s18 }
  0x11   : > { %s2158_s28 = smov (%p31_p3, %s2156_s28), 0  ;;  %p77_p6 = scmp.ne.s32.totalorder %s1664_s18, %s1660_s17 }
  0x12   : > { %2137 = sst [smem:[#allocation8_spill]] %s2158_s28  ;;  %s66_s8 = ssub.s32 %s1688_s24, %s2158_s28 }
  0x13   : > { %s1797_s7 = scalar_select %p40_p4, %s1672_s20, %s42_s29  }
  0x14   : > { %s67_s9 = sor.u32 %s66_s8, %s38_s30  ;;  %p148_p7 = scmp.eq.s32.totalorder %s66_s8, 0 }
  0x15   : > { %p68_p8 = scmp.eq.s32.totalorder %s67_s9, 0  ;;  %p1803_p9 = por %p77_p6, %p50_p2 }
  0x16   : > { %s150_s11 = sadd.s32 1, %s1656_s16  ;;  %p160_p10 = scmp.ne.s32.totalorder %s1656_s16, %s1652_s15 }
  0x17   : > { %s1811_s12 = scalar_select %p68_p8, %s1664_s18, %s70_s6  }
  0x18   : > { %s1814_s13 = scalar_select %p148_p7, %s1656_s16, %s150_s11  }
  0x19   : > { %p161_p11 = scmp.eq.s32.totalorder %s1298_s26, 26  ;;  %p1301_p13 = scmp.ge.s32.totalorder %s1692_s25, 27 }
  0x1b   : > { %p1816_p12 = por %p161_p11, %p160_p10  ;;  %183 = sbr.rel (%p1301_p13) target bundleno = 92 (0x5c), region = 16 }
  0x20   : > { %186 = sbr.rel (!%p1789_p5) target bundleno = 51 (0x33), region = 20  ;;  %s188_s29 = sand.u32 (%p1789_p5), 1, %s1672_s20  }
  0x21   : > { %s1369_s30 = smul.u32 (%p1789_p5), 12, %s1684_s23  ;;  %s2140_s0 = sld [smem:[#allocation9_spill]] (%p1789_p5) }
  0x22   : > { %s1465_s8 = smul.u32 (%p1789_p5), 108, %s188_s29 }
  0x24   : > { %s1833_s26 = scalar_lea.vmem (%p1789_p5), [#allocation3], %s1465_s8 }
  0x27   : > { %s1828_s11 = scalar_lea.vmem %s2140_s0, %s1369_s30 }
  0x28   : > { %v211_v0 = vld [vmem:[%s1828_s11] sm:$0xff]  ;;  %v213_v1 = vld [vmem:[%s1828_s11 + $0x6c] sm:$0xff]  ;;  %v215_v2 = vld [vmem:[%s1828_s11 + $0xd8] sm:$0xff] }
  0x29   : > { %212 = vst [vmem:[%s1833_s26] sm:$0xff] %v211_v0  ;;  %214 = vst [vmem:[%s1833_s26 + $0xc] sm:$0xff] %v213_v1  ;;  %v217_v3 = vld [vmem:[%s1828_s11 + $0x144] sm:$0xff]  ;;  %v219_v4 = vld [vmem:[%s1828_s11 + $0x1b0] sm:$0xff] }
  0x2a   : > { %216 = vst [vmem:[%s1833_s26 + $0x18] sm:$0xff] %v215_v2  ;;  %v221_v5 = vld [vmem:[%s1828_s11 + $0x21c] sm:$0xff]  ;;  %218 = vst [vmem:[%s1833_s26 + $0x24] sm:$0xff] %v217_v3  ;;  %v223_v6 = vld [vmem:[%s1828_s11 + $0x288] sm:$0xff] }
  0x2b   : > { %220 = vst [vmem:[%s1833_s26 + $0x30] sm:$0xff] %v219_v4  ;;  %222 = vst [vmem:[%s1833_s26 + $0x3c] sm:$0xff] %v221_v5  ;;  %v225_v7 = vld [vmem:[%s1828_s11 + $0x2f4] sm:$0xff]  ;;  %v227_v8 = vld [vmem:[%s1828_s11 + $0x360] sm:$0xff] }
  0x2c   : > { %224 = vst [vmem:[%s1833_s26 + $0x48] sm:$0xff] %v223_v6  ;;  %226 = vst [vmem:[%s1833_s26 + $0x54] sm:$0xff] %v225_v7  ;;  %v1303_v9 = vld [vmem:[%s1828_s11 + $0x8] sm:$0xf]  ;;  %v1305_v10 = vld [vmem:[%s1828_s11 + $0x74] sm:$0xf] }
  0x2d   : > { %228 = vst [vmem:[%s1833_s26 + $0x60] sm:$0xff] %v227_v8  ;;  %v1307_v11 = vld [vmem:[%s1828_s11 + $0xe0] sm:$0xf]  ;;  %1304 = vst [vmem:[%s1833_s26 + $0x8] sm:$0xf] %v1303_v9 }
  0x2e   : > { %1306 = vst [vmem:[%s1833_s26 + $0x14] sm:$0xf] %v1305_v10  ;;  %1308 = vst [vmem:[%s1833_s26 + $0x20] sm:$0xf] %v1307_v11  ;;  %v1309_v12 = vld [vmem:[%s1828_s11 + $0x14c] sm:$0xf] }
  0x2f   : > { %v1311_v13 = vld [vmem:[%s1828_s11 + $0x1b8] sm:$0xf]  ;;  %v1313_v14 = vld [vmem:[%s1828_s11 + $0x224] sm:$0xf]  ;;  %1310 = vst [vmem:[%s1833_s26 + $0x2c] sm:$0xf] %v1309_v12 }
  0x30   : > { %1312 = vst [vmem:[%s1833_s26 + $0x38] sm:$0xf] %v1311_v13  ;;  %1314 = vst [vmem:[%s1833_s26 + $0x44] sm:$0xf] %v1313_v14  ;;  %v1315_v15 = vld [vmem:[%s1828_s11 + $0x290] sm:$0xf] }
  0x31   : > { %v1317_v16 = vld [vmem:[%s1828_s11 + $0x2fc] sm:$0xf]  ;;  %v1319_v17 = vld [vmem:[%s1828_s11 + $0x368] sm:$0xf]  ;;  %1316 = vst [vmem:[%s1833_s26 + $0x50] sm:$0xf] %v1315_v15 }
  0x32   : > { %1318 = vst [vmem:[%s1833_s26 + $0x5c] sm:$0xf] %v1317_v16  ;;  %1320 = vst [vmem:[%s1833_s26 + $0x68] sm:$0xf] %v1319_v17 }
  0x33 PF: > { %260 = sbr.rel (!%p1803_p9) target bundleno = 92 (0x5c), region = 46  ;;  %s262_s5 = sand.u32 (%p1803_p9), 1, %s1664_s18  }
  0x34   : > { %s1466_s29 = smul.u32 (%p1803_p9), 192, %s262_s5  ;;  %s2141_s1 = sld [smem:[#allocation10_spill]] (%p1803_p9) }
  0x35   : > { %s1471_s30 = smul.u32 (%p1803_p9), 144, %s1684_s23 }
  0x36   : > { %s1881_s10 = scalar_lea.vmem (%p1803_p9), [#allocation4], %s1466_s29 }
  0x37   : > { %s267_s8 = sadd.s32 (%p1803_p9), %s1688_s24, %s1471_s30 }
  0x38   : > { %s1321_s6 = sshll.u32 %s267_s8, 2 }
  0x3a   : > { %s1876_s28 = scalar_lea.vmem %s2141_s1, %s1321_s6 }
  0x3b   : > { %v286_v18 = vld [vmem:[%s1876_s28] sm:$0xf]  ;;  %v288_v19 = vld [vmem:[%s1876_s28 + $0xc] sm:$0xf]  ;;  %v290_v20 = vld [vmem:[%s1876_s28 + $0x18] sm:$0xf] }
  0x3c   : > { %287 = vst [vmem:[%s1881_s10] sm:$0xf] %v286_v18  ;;  %289 = vst [vmem:[%s1881_s10 + $0x4] sm:$0xf] %v288_v19  ;;  %v292_v21 = vld [vmem:[%s1876_s28 + $0x24] sm:$0xf] }
  0x3d   : > { %291 = vst [vmem:[%s1881_s10 + $0x8] sm:$0xf] %v290_v20  ;;  %v294_v22 = vld [vmem:[%s1876_s28 + $0x30] sm:$0xf]  ;;  %v296_v23 = vld [vmem:[%s1876_s28 + $0x3c] sm:$0xf] }
  0x3e   : > { %293 = vst [vmem:[%s1881_s10 + $0xc] sm:$0xf] %v292_v21  ;;  %295 = vst [vmem:[%s1881_s10 + $0x10] sm:$0xf] %v294_v22  ;;  %v298_v24 = vld [vmem:[%s1876_s28 + $0x48] sm:$0xf] }
  0x3f   : > { %297 = vst [vmem:[%s1881_s10 + $0x14] sm:$0xf] %v296_v23  ;;  %v300_v25 = vld [vmem:[%s1876_s28 + $0x54] sm:$0xf]  ;;  %v302_v26 = vld [vmem:[%s1876_s28 + $0x60] sm:$0xf] }
  0x40   : > { %299 = vst [vmem:[%s1881_s10 + $0x18] sm:$0xf] %v298_v24  ;;  %301 = vst [vmem:[%s1881_s10 + $0x1c] sm:$0xf] %v300_v25  ;;  %v304_v27 = vld [vmem:[%s1876_s28 + $0x6c] sm:$0xf] }
  0x41   : > { %303 = vst [vmem:[%s1881_s10 + $0x20] sm:$0xf] %v302_v26  ;;  %v306_v28 = vld [vmem:[%s1876_s28 + $0x78] sm:$0xf]  ;;  %v308_v29 = vld [vmem:[%s1876_s28 + $0x84] sm:$0xf] }
  0x42   : > { %305 = vst [vmem:[%s1881_s10 + $0x24] sm:$0xf] %v304_v27  ;;  %307 = vst [vmem:[%s1881_s10 + $0x28] sm:$0xf] %v306_v28  ;;  %v310_v30 = vld [vmem:[%s1876_s28 + $0x90] sm:$0xf] }
  0x43   : > { %309 = vst [vmem:[%s1881_s10 + $0x2c] sm:$0xf] %v308_v29  ;;  %v312_v31 = vld [vmem:[%s1876_s28 + $0x9c] sm:$0xf]  ;;  %v314_v32 = vld [vmem:[%s1876_s28 + $0xa8] sm:$0xf] }
  0x44   : > { %311 = vst [vmem:[%s1881_s10 + $0x30] sm:$0xf] %v310_v30  ;;  %313 = vst [vmem:[%s1881_s10 + $0x34] sm:$0xf] %v312_v31  ;;  %v316_v33 = vld [vmem:[%s1876_s28 + $0xb4] sm:$0xf] }
  0x45   : > { %315 = vst [vmem:[%s1881_s10 + $0x38] sm:$0xf] %v314_v32  ;;  %v318_v34 = vld [vmem:[%s1876_s28 + $0xc0] sm:$0xf]  ;;  %v320_v35 = vld [vmem:[%s1876_s28 + $0xcc] sm:$0xf] }
  0x46   : > { %317 = vst [vmem:[%s1881_s10 + $0x3c] sm:$0xf] %v316_v33  ;;  %319 = vst [vmem:[%s1881_s10 + $0x40] sm:$0xf] %v318_v34  ;;  %v322_v36 = vld [vmem:[%s1876_s28 + $0xd8] sm:$0xf] }
  0x47   : > { %321 = vst [vmem:[%s1881_s10 + $0x44] sm:$0xf] %v320_v35  ;;  %v324_v37 = vld [vmem:[%s1876_s28 + $0xe4] sm:$0xf]  ;;  %v326_v38 = vld [vmem:[%s1876_s28 + $0xf0] sm:$0xf] }
  0x48   : > { %323 = vst [vmem:[%s1881_s10 + $0x48] sm:$0xf] %v322_v36  ;;  %325 = vst [vmem:[%s1881_s10 + $0x4c] sm:$0xf] %v324_v37  ;;  %v328_v39 = vld [vmem:[%s1876_s28 + $0xfc] sm:$0xf] }
  0x49   : > { %327 = vst [vmem:[%s1881_s10 + $0x50] sm:$0xf] %v326_v38  ;;  %v330_v40 = vld [vmem:[%s1876_s28 + $0x108] sm:$0xf]  ;;  %v332_v41 = vld [vmem:[%s1876_s28 + $0x114] sm:$0xf] }
  0x4a   : > { %329 = vst [vmem:[%s1881_s10 + $0x54] sm:$0xf] %v328_v39  ;;  %331 = vst [vmem:[%s1881_s10 + $0x58] sm:$0xf] %v330_v40  ;;  %v334_v42 = vld [vmem:[%s1876_s28 + $0x120] sm:$0xf] }
  0x4b   : > { %333 = vst [vmem:[%s1881_s10 + $0x5c] sm:$0xf] %v332_v41  ;;  %v336_v43 = vld [vmem:[%s1876_s28 + $0x12c] sm:$0xf]  ;;  %v338_v44 = vld [vmem:[%s1876_s28 + $0x138] sm:$0xf] }
  0x4c   : > { %335 = vst [vmem:[%s1881_s10 + $0x60] sm:$0xf] %v334_v42  ;;  %337 = vst [vmem:[%s1881_s10 + $0x64] sm:$0xf] %v336_v43  ;;  %v340_v45 = vld [vmem:[%s1876_s28 + $0x144] sm:$0xf] }
  0x4d   : > { %339 = vst [vmem:[%s1881_s10 + $0x68] sm:$0xf] %v338_v44  ;;  %v342_v46 = vld [vmem:[%s1876_s28 + $0x150] sm:$0xf]  ;;  %v344_v47 = vld [vmem:[%s1876_s28 + $0x15c] sm:$0xf] }
  0x4e   : > { %341 = vst [vmem:[%s1881_s10 + $0x6c] sm:$0xf] %v340_v45  ;;  %343 = vst [vmem:[%s1881_s10 + $0x70] sm:$0xf] %v342_v46  ;;  %v346_v48 = vld [vmem:[%s1876_s28 + $0x168] sm:$0xf] }
  0x4f   : > { %345 = vst [vmem:[%s1881_s10 + $0x74] sm:$0xf] %v344_v47  ;;  %v348_v49 = vld [vmem:[%s1876_s28 + $0x174] sm:$0xf]  ;;  %v350_v50 = vld [vmem:[%s1876_s28 + $0x180] sm:$0xf] }
  0x50   : > { %347 = vst [vmem:[%s1881_s10 + $0x78] sm:$0xf] %v346_v48  ;;  %349 = vst [vmem:[%s1881_s10 + $0x7c] sm:$0xf] %v348_v49  ;;  %v352_v51 = vld [vmem:[%s1876_s28 + $0x18c] sm:$0xf] }
  0x51   : > { %351 = vst [vmem:[%s1881_s10 + $0x80] sm:$0xf] %v350_v50  ;;  %v354_v52 = vld [vmem:[%s1876_s28 + $0x198] sm:$0xf]  ;;  %v356_v53 = vld [vmem:[%s1876_s28 + $0x1a4] sm:$0xf] }
  0x52   : > { %353 = vst [vmem:[%s1881_s10 + $0x84] sm:$0xf] %v352_v51  ;;  %355 = vst [vmem:[%s1881_s10 + $0x88] sm:$0xf] %v354_v52  ;;  %v358_v54 = vld [vmem:[%s1876_s28 + $0x1b0] sm:$0xf] }
  0x53   : > { %357 = vst [vmem:[%s1881_s10 + $0x8c] sm:$0xf] %v356_v53  ;;  %v360_v55 = vld [vmem:[%s1876_s28 + $0x1bc] sm:$0xf]  ;;  %v362_v56 = vld [vmem:[%s1876_s28 + $0x1c8] sm:$0xf] }
  0x54   : > { %359 = vst [vmem:[%s1881_s10 + $0x90] sm:$0xf] %v358_v54  ;;  %361 = vst [vmem:[%s1881_s10 + $0x94] sm:$0xf] %v360_v55  ;;  %v364_v57 = vld [vmem:[%s1876_s28 + $0x1d4] sm:$0xf] }
  0x55   : > { %363 = vst [vmem:[%s1881_s10 + $0x98] sm:$0xf] %v362_v56  ;;  %v366_v58 = vld [vmem:[%s1876_s28 + $0x1e0] sm:$0xf]  ;;  %v368_v59 = vld [vmem:[%s1876_s28 + $0x1ec] sm:$0xf] }
  0x56   : > { %365 = vst [vmem:[%s1881_s10 + $0x9c] sm:$0xf] %v364_v57  ;;  %367 = vst [vmem:[%s1881_s10 + $0xa0] sm:$0xf] %v366_v58  ;;  %v370_v60 = vld [vmem:[%s1876_s28 + $0x1f8] sm:$0xf] }
  0x57   : > { %369 = vst [vmem:[%s1881_s10 + $0xa4] sm:$0xf] %v368_v59  ;;  %v372_v61 = vld [vmem:[%s1876_s28 + $0x204] sm:$0xf]  ;;  %v374_v62 = vld [vmem:[%s1876_s28 + $0x210] sm:$0xf] }
  0x58   : > { %371 = vst [vmem:[%s1881_s10 + $0xa8] sm:$0xf] %v370_v60  ;;  %373 = vst [vmem:[%s1881_s10 + $0xac] sm:$0xf] %v372_v61  ;;  %v376_v63 = vld [vmem:[%s1876_s28 + $0x21c] sm:$0xf] }
  0x59   : > { %375 = vst [vmem:[%s1881_s10 + $0xb0] sm:$0xf] %v374_v62  ;;  %v378_v0 = vld [vmem:[%s1876_s28 + $0x228] sm:$0xf]  ;;  %v380_v1 = vld [vmem:[%s1876_s28 + $0x234] sm:$0xf] }
  0x5a   : > { %377 = vst [vmem:[%s1881_s10 + $0xb4] sm:$0xf] %v376_v63  ;;  %379 = vst [vmem:[%s1881_s10 + $0xb8] sm:$0xf] %v378_v0 }
  0x5b   : > { %381 = vst [vmem:[%s1881_s10 + $0xbc] sm:$0xf] %v380_v1 }
  0x5c PF: > { %p1322_p0 = scmp.ge.s32.totalorder %s1692_s25, 1  ;;  %p512_p1 = scmp.lt.s32.totalorder %s1692_s25, 28 }
  0x5e   : > { %p513_p2 = pnand %p1322_p0, %p512_p1 }
  0x5f   : > { %s519_s0 = sand.u32 (!%p513_p2), 1, %s1668_s19   ;;  %s526_s11 = sand.u32 (!%p513_p2), 1, %s1660_s17  }
  0x60   : > { %516 = sbr.rel (%p513_p2) target bundleno = 403 (0x193), region = 95  ;;  %s557_s28 = sand.u32 (!%p513_p2), 1, %s1652_s15  }
  0x61   : > { %s1468_s26 = smul.u32 (!%p513_p2), 108, %s519_s0  ;;  %p563_p3 = scmp.lt.s32.totalorder (!%p513_p2), %s1680_s22, 2 }
  0x62   : > { %s1469_s5 = smul.u32 (!%p513_p2), 192, %s526_s11  ;;  %p1323_p4 = scmp.ne.s32.totalorder (!%p513_p2), %s1676_s21, 0 }
  0x63   : > { %s1470_s29 = smul.u32 (!%p513_p2), 72, %s557_s28  ;;  %s1993_s24 = scalar_lea.vmem (!%p513_p2), [#allocation3], %s1468_s26 }
  0x64   : > { %s1995_s17 = scalar_lea.vmem (!%p513_p2), [#allocation4], %s1469_s5 }
  0x65   : > { %s1983_s30 = scalar_select %p563_p3, %s1680_s22, 2 }
  0x66   : > { %s1997_s15 = scalar_lea.vmem [#allocation5], %s1470_s29  ;;  %574 = sbr.rel (%p1323_p4) target bundleno = 113 (0x71), region = 107 }
  0x67   : > { %s565_s9 = scalar_lea.vmem %s2126_s2, %s1983_s30  ;;  %s568_s27 = scalar_lea.vmem %s2127_s3, %s1983_s30 }
  0x6b   : > { %v1694_v2 = vmov 0.0  }
  0x6c   : > { %575 = vst [vmem:[#allocation2 + $0x30] sm:$0xff] %v1694_v2  ;;  %576 = vst [vmem:[#allocation2] sm:$0xff] %v1694_v2 }
  0x6d   : > { %577 = vst [vmem:[#allocation2 + $0x18] sm:$0xff] %v1694_v2  ;;  %578 = vst [vmem:[#allocation2 + $0x10] sm:$0xff] %v1694_v2 }
  0x6e   : > { %579 = vst [vmem:[#allocation2 + $0x20] sm:$0xff] %v1694_v2  ;;  %580 = vst [vmem:[#allocation2 + $0x28] sm:$0xff] %v1694_v2 }
  0x6f   : > { %581 = vst [vmem:[#allocation2 + $0x40] sm:$0xff] %v1694_v2  ;;  %582 = vst [vmem:[#allocation2 + $0x38] sm:$0xff] %v1694_v2 }
  0x70   : > { %583 = vst [vmem:[#allocation2 + $0x8] sm:$0xff] %v1694_v2 }
  0x71 PF: > { %v1563_v3 = vld [vmem:[%s1995_s17 + $0x78] sm:$0xff]   ;;  %v1695_v4 = vmov 0.0   ;;  %vm1696_vm0 = vmmov 0   ;;  %v1566_v7 = vld [vmem:[%s1995_s17 + $0x70] sm:$0xff]   ;;  %v1569_v10 = vld [vmem:[%s1995_s17 + $0x68] sm:$0xff]   ;;  %p1363_p5 = scmp.ne.s32.totalorder %s1676_s21, 8 }
  0x72   : > { %1429 = vmatprep.subr.bf16.mxu1 %v1695_v4  ;;  %v1564_v5 = vld [vmem:[%s1995_s17 + $0xb8] sm:$0xff]   ;;  %1370 = vmatprep.subr.bf16.mxu0 %v1563_v3  ;;  %v1567_v8 = vld [vmem:[%s1995_s17 + $0xb0] sm:$0xff]   ;;  %v1570_v11 = vld [vmem:[%s1995_s17 + $0xa8] sm:$0xff]  }
  0x73   : > { %v1565_v6 = vld [vmem:[%s1995_s17 + $0x38] sm:$0xff]   ;;  %1445 = vmatprep.mubr.msk.bf16.mxu1 %vm1696_vm0, %v1695_v4  ;;  %1430 = vmatpush3.bf16.msra.mxu1 %v1564_v5  ;;  %v1568_v9 = vld [vmem:[%s1995_s17 + $0x30] sm:$0xff]   ;;  %v1571_v12 = vld [vmem:[%s1995_s17 + $0x28] sm:$0xff]  }
  0x74   : > { %1371 = vmatpush3.bf16.msra.mxu0 %v1565_v6  ;;  %1431 = vmatprep.subr.bf16.mxu1 %v1695_v4  ;;  %v1572_v13 = vld [vmem:[%s1995_s17 + $0x60] sm:$0xff]   ;;  %v1575_v16 = vld [vmem:[%s1995_s17 + $0x58] sm:$0xff]   ;;  %v1578_v19 = vld [vmem:[%s1995_s17 + $0x50] sm:$0xff]  }
  0x75   : > { %1372 = vmatprep.subr.bf16.mxu0 %v1566_v7  ;;  %v1573_v14 = vld [vmem:[%s1995_s17 + $0xa0] sm:$0xff]   ;;  %v1576_v17 = vld [vmem:[%s1995_s17 + $0x98] sm:$0xff]   ;;  %v1579_v20 = vld [vmem:[%s1995_s17 + $0x90] sm:$0xff]  }
  0x76   : > { %v1574_v15 = vld [vmem:[%s1995_s17 + $0x20] sm:$0xff]   ;;  %v1577_v18 = vld [vmem:[%s1995_s17 + $0x18] sm:$0xff]   ;;  %v1580_v21 = vld [vmem:[%s1995_s17 + $0x10] sm:$0xff]  }
  0x77   : > { %1432 = vmatpush3.bf16.msra.mxu1 %v1567_v8  ;;  %v1581_v22 = vld [vmem:[%s1995_s17 + $0x48] sm:$0xff]   ;;  %v1584_v25 = vld [vmem:[%s1995_s17 + $0x40] sm:$0xff]   ;;  %v1604_v42 = vld [vmem:[%s1993_s24 + $0x68] ss:$0 sps:$4 sm:$0xff]  }
  0x78   : > { %1373 = vmatpush3.bf16.msra.mxu0 %v1568_v9  ;;  %1433 = vmatprep.subr.bf16.mxu1 %v1695_v4  ;;  %v1582_v23 = vld [vmem:[%s1995_s17 + $0x88] sm:$0xff]   ;;  %v1585_v27 = vld [vmem:[%s1995_s17 + $0x80] sm:$0xff]   ;;  %v584_v50 = vld [vmem:[#allocation2 + $0x30] sm:$0xff] }
  0x79   : > { %1374 = vmatprep.subr.bf16.mxu0 %v1569_v10  ;;  %v1583_v24 = vld [vmem:[%s1995_s17 + $0x8] sm:$0xff]   ;;  %v1586_v28 = vld [vmem:[%s1995_s17] sm:$0xff]   ;;  %v586_v2 = vld [vmem:[#allocation2 + $0x18] sm:$0xff] }
  0x7a   : > { %v1589_v26 = vld [vmem:[%s1993_s24 + $0x4] ss:$12 sps:$4 sm:$0xff]   ;;  %v1590_v29 = vld [vmem:[%s1993_s24 + $0x8] ss:$12 sps:$4 sm:$0xff]   ;;  %v1587_v30 = vld [vmem:[%s1993_s24] ss:$12 sps:$4 sm:$0xff]  }
  0x7b   : > { %1434 = vmatpush3.bf16.msra.mxu1 %v1570_v11  ;;  %910 = vmatprep.mubr.bf16.mxu0 %v1589_v26  ;;  %v1591_v31 = vld [vmem:[%s1993_s24 + $0x1c] ss:$12 sps:$4 sm:$0xff]   ;;  %v1593_v32 = vld [vmem:[%s1993_s24 + $0x20] ss:$12 sps:$4 sm:$0xff]   ;;  %v1594_v33 = vld [vmem:[%s1993_s24 + $0x18] ss:$12 sps:$4 sm:$0xff]  }
  0x7c   : > { %1375 = vmatpush3.bf16.msra.mxu0 %v1571_v12  ;;  %1435 = vmatprep.subr.bf16.mxu1 %v1695_v4  ;;  %v1595_v34 = vld [vmem:[%s1993_s24 + $0x34] ss:$12 sps:$4 sm:$0xff]   ;;  %v1597_v35 = vld [vmem:[%s1993_s24 + $0x38] ss:$12 sps:$4 sm:$0xff]   ;;  %v1598_v36 = vld [vmem:[%s1993_s24 + $0x30] ss:$12 sps:$4 sm:$0xff]  }
  0x7d   : > { %1376 = vmatprep.subr.bf16.mxu0 %v1572_v13  ;;  %v1599_v37 = vld [vmem:[%s1993_s24 + $0x4c] ss:$12 sps:$4 sm:$0xff]   ;;  %v609_v38 = vld [vmem:[%s1993_s24 + $0x60] sm:$0xff]  ;;  %v1601_v39 = vld [vmem:[%s1993_s24 + $0x50] ss:$12 sps:$4 sm:$0xff]  }
  0x7e   : > { %v1602_v40 = vld [vmem:[%s1993_s24 + $0x48] ss:$12 sps:$4 sm:$0xff]   ;;  %v1337_v41 = vcombine.high %v609_v38, %v609_v38  ;;  %v1336_v43 = vcombine.low %v609_v38, %v609_v38  ;;  %v585_v58 = vld [vmem:[#allocation2] sm:$0xff] }
  0x7f   : > { %1436 = vmatpush3.bf16.msra.mxu1 %v1573_v14  ;;  %v587_v10 = vld [vmem:[#allocation2 + $0x10] sm:$0xff]  ;;  %v589_v26 = vld [vmem:[#allocation2 + $0x28] sm:$0xff] }
  0x80   : > { %1377 = vmatpush3.bf16.msra.mxu0 %v1574_v15  ;;  %1437 = vmatprep.subr.bf16.mxu1 %v1695_v4 }
  0x81   : > { %1378 = vmatprep.subr.bf16.mxu0 %v1575_v16 }
  0x83   : > { %1438 = vmatpush3.bf16.msra.mxu1 %v1576_v17 }
  0x84   : > { %1379 = vmatpush3.bf16.msra.mxu0 %v1577_v18  ;;  %1439 = vmatprep.subr.bf16.mxu1 %v1695_v4  ;;  %v588_v18 = vld [vmem:[#allocation2 + $0x20] sm:$0xff] }
  0x85   : > { %1380 = vmatprep.subr.bf16.mxu0 %v1578_v19 }
  0x87   : > { %1440 = vmatpush3.bf16.msra.mxu1 %v1579_v20 }
  0x88   : > { %1381 = vmatpush3.bf16.msra.mxu0 %v1580_v21  ;;  %1441 = vmatprep.subr.bf16.mxu1 %v1695_v4 }
  0x89   : > { %1382 = vmatprep.subr.bf16.mxu0 %v1581_v22 }
  0x8b   : > { %1442 = vmatpush3.bf16.msra.mxu1 %v1582_v23 }
  0x8c   : > { %1383 = vmatpush3.bf16.msra.mxu0 %v1583_v24  ;;  %1443 = vmatprep.subr.bf16.mxu1 %v1695_v4 }
  0x8d   : > { %1384 = vmatprep.subr.bf16.mxu0 %v1584_v25 }
  0x8f   : > { %1444 = vmatpush3.bf16.msra.mxu1 %v1585_v27 }
  0x90   : > { %1385 = vmatpush3.bf16.msra.mxu0 %v1586_v28 }
  0x92   : > { %1446 = vmatmul.mubr.bf16.vlgmr.msra.gmra.mxu1 %v1590_v29 }
  0x93   : > { %911 = vmatmul.mubr.bf16.vlgmr.msra.gmra.mxu0 %v1587_v30  ;;  %1449 = vmatprep.mubr.msk.bf16.mxu1 %vm1696_vm0, %v1695_v4 }
  0x94   : > { %918 = vmatprep.mubr.bf16.mxu0 %v1591_v31 }
  0x9a   : > { %1450 = vmatmul.mubr.bf16.gmra.mxu1 %v1593_v32 }
  0x9b   : > { %919 = vmatmul.mubr.bf16.gmra.mxu0 %v1594_v33  ;;  %1453 = vmatprep.mubr.msk.bf16.mxu1 %vm1696_vm0, %v1695_v4 }
  0x9c   : > { %926 = vmatprep.mubr.bf16.mxu0 %v1595_v34  ;;  %v590_v34 = vld [vmem:[#allocation2 + $0x40] sm:$0xff] }
  0xa2   : > { %1454 = vmatmul.mubr.bf16.gmra.mxu1 %v1597_v35 }
  0xa3   : > { %927 = vmatmul.mubr.bf16.gmra.mxu0 %v1598_v36  ;;  %1457 = vmatprep.mubr.msk.bf16.mxu1 %vm1696_vm0, %v1695_v4 }
  0xa4   : > { %934 = vmatprep.mubr.bf16.mxu0 %v1599_v37 }
  0xaa   : > { %1458 = vmatmul.mubr.bf16.gmra.mxu1 %v1601_v39 }
  0xab   : > { %935 = vmatmul.mubr.bf16.gmra.mxu0 %v1602_v40  ;;  %1461 = vmatprep.mubr.msk.bf16.mxu1 %vm1696_vm0, %v1695_v4 }
  0xac   : > { %942 = vmatprep.mubr.bf16.mxu0 %v1337_v41 }
  0xb2   : > { %1462 = vmatmul.mubr.bf16.gmra.mxu1 %v1604_v42  ;;  %v591_v42 = vld [vmem:[#allocation2 + $0x38] sm:$0xff] }
  0xb3   : > { %943 = vmatmul.mubr.bf16.gmra.mxu0 %v1336_v43 }
 0x152   : > { %v984_v44 = vpop.f32.mrf.mxu1 }
 0x153   : > { %v1386_v45 = vpop.f32.mrf.mxu0 }
 0x154   : > { %v1447_v46 = vpop.f32.mrf.mxu1 }
 0x155   : > { %v1387_v47 = vpop.f32.mrf.mxu0 }
 0x156   : > { %v1388_v48 = vadd.f32 %v1387_v47, %v1386_v45  ;;  %v987_v49 = vpop.f32.mrf.mxu1 }
 0x157   : > { %v1389_v51 = vpop.f32.mrf.mxu0 }
 0x158   : > { %v985_v52 = vadd.f32 %v1388_v48, %v984_v44  ;;  %v1448_v53 = vpop.f32.mrf.mxu1 }
 0x159   : > { %v1390_v54 = vpop.f32.mrf.mxu0 }
 0x15a   : > { %v1022_v55 = vadd.f32 %v985_v52, %v584_v50  ;;  %v1391_v56 = vadd.f32 %v1390_v54, %v1389_v51  ;;  %v992_v57 = vpop.f32.mrf.mxu1  ;;  %v592_v50 = vld [vmem:[#allocation2 + $0x8] sm:$0xff] }
 0x15b   : > { %v1392_v59 = vpop.f32.mrf.mxu0 }
 0x15c   : > { %1031 = vst [vmem:[#allocation2 + $0x30] sm:$0xff] %v1022_v55  ;;  %v988_v60 = vadd.f32 %v1391_v56, %v987_v49  ;;  %v1451_v61 = vpop.f32.mrf.mxu1 }
 0x15d   : > { %v1393_v62 = vpop.f32.mrf.mxu0 }
 0x15e   : > { %v1023_v63 = vadd.f32 %v988_v60, %v585_v58  ;;  %v1394_v0 = vadd.f32 %v1393_v62, %v1392_v59  ;;  %v995_v1 = vpop.f32.mrf.mxu1 }
 0x15f   : > { %v1395_v3 = vpop.f32.mrf.mxu0 }
 0x160   : > { %1032 = vst [vmem:[#allocation2] sm:$0xff] %v1023_v63  ;;  %v993_v4 = vadd.f32 %v1394_v0, %v992_v57  ;;  %v1452_v5 = vpop.f32.mrf.mxu1 }
 0x161   : > { %v1396_v6 = vpop.f32.mrf.mxu0 }
 0x162   : > { %v1024_v7 = vadd.f32 %v993_v4, %v586_v2  ;;  %v1397_v8 = vadd.f32 %v1396_v6, %v1395_v3  ;;  %v1000_v9 = vpop.f32.mrf.mxu1 }
 0x163   : > { %v1398_v11 = vpop.f32.mrf.mxu0 }
 0x164   : > { %1033 = vst [vmem:[#allocation2 + $0x18] sm:$0xff] %v1024_v7  ;;  %v996_v12 = vadd.f32 %v1397_v8, %v995_v1  ;;  %v1455_v13 = vpop.f32.mrf.mxu1 }
 0x165   : > { %v1399_v14 = vpop.f32.mrf.mxu0 }
 0x166   : > { %v1025_v15 = vadd.f32 %v996_v12, %v587_v10  ;;  %v1400_v16 = vadd.f32 %v1399_v14, %v1398_v11  ;;  %v1003_v17 = vpop.f32.mrf.mxu1 }
 0x167   : > { %v1401_v19 = vpop.f32.mrf.mxu0 }
 0x168   : > { %1034 = vst [vmem:[#allocation2 + $0x10] sm:$0xff] %v1025_v15  ;;  %v1001_v20 = vadd.f32 %v1400_v16, %v1000_v9  ;;  %v1456_v21 = vpop.f32.mrf.mxu1 }
 0x169   : > { %v1402_v22 = vpop.f32.mrf.mxu0 }
 0x16a   : > { %v1026_v23 = vadd.f32 %v1001_v20, %v588_v18  ;;  %v1403_v24 = vadd.f32 %v1402_v22, %v1401_v19  ;;  %v1008_v25 = vpop.f32.mrf.mxu1 }
 0x16b   : > { %v1404_v27 = vpop.f32.mrf.mxu0 }
 0x16c   : > { %1035 = vst [vmem:[#allocation2 + $0x20] sm:$0xff] %v1026_v23  ;;  %v1004_v28 = vadd.f32 %v1403_v24, %v1003_v17  ;;  %v1459_v29 = vpop.f32.mrf.mxu1 }
 0x16d   : > { %v1405_v30 = vpop.f32.mrf.mxu0 }
 0x16e   : > { %v1027_v31 = vadd.f32 %v1004_v28, %v589_v26  ;;  %v1406_v32 = vadd.f32 %v1405_v30, %v1404_v27  ;;  %v1011_v33 = vpop.f32.mrf.mxu1 }
 0x16f   : > { %v1407_v35 = vpop.f32.mrf.mxu0 }
 0x170   : > { %1036 = vst [vmem:[#allocation2 + $0x28] sm:$0xff] %v1027_v31  ;;  %v1009_v36 = vadd.f32 %v1406_v32, %v1008_v25  ;;  %v1460_v37 = vpop.f32.mrf.mxu1 }
 0x171   : > { %v1408_v38 = vpop.f32.mrf.mxu0 }
 0x172   : > { %v1028_v39 = vadd.f32 %v1009_v36, %v590_v34  ;;  %v1409_v40 = vadd.f32 %v1408_v38, %v1407_v35  ;;  %v1016_v41 = vpop.f32.mrf.mxu1 }
 0x173   : > { %v1410_v43 = vpop.f32.mrf.mxu0 }
 0x174   : > { %1037 = vst [vmem:[#allocation2 + $0x40] sm:$0xff] %v1028_v39  ;;  %v1012_v44 = vadd.f32 %v1409_v40, %v1011_v33  ;;  %v1463_v45 = vpop.f32.mrf.mxu1 }
 0x175   : > { %v1411_v46 = vpop.f32.mrf.mxu0 }
 0x176   : > { %v1029_v47 = vadd.f32 %v1012_v44, %v591_v42  ;;  %v1412_v48 = vadd.f32 %v1411_v46, %v1410_v43  ;;  %v1019_v49 = vpop.f32.mrf.mxu1 }
 0x177   : > { %v1413_v51 = vpop.f32.mrf.mxu0 }
 0x178   : > { %1038 = vst [vmem:[#allocation2 + $0x38] sm:$0xff] %v1029_v47  ;;  %v1017_v52 = vadd.f32 %v1412_v48, %v1016_v41  ;;  %v1464_v53 = vpop.f32.mrf.mxu1  ;;  %1043 = sbr.rel (%p1363_p5) target bundleno = 395 (0x18b), region = 111 }
 0x179   : > { %v1414_v54 = vpop.f32.mrf.mxu0 }
 0x17a   : > { %v1030_v55 = vadd.f32 %v1017_v52, %v592_v50 }
 0x17c   : > { %1039 = vst [vmem:[#allocation2 + $0x8] sm:$0xff] %v1030_v55 }
 0x17d   : > { %v1044_v56 = vld [vmem:[#allocation2 + $0x30] sm:$0xff]  ;;  %v1364_v57 = vld [vmem:[%s565_s9] ss:$0 sm:$0xff]  ;;  %v1046_v61 = vld [vmem:[#allocation2 + $0x18] sm:$0xff] }
 0x17e   : > { %v1365_v58 = vld [vmem:[%s568_s27] ss:$0 sm:$0xff]  ;;  %v1060_v59 = vmul.f32 %v1364_v57, %v1044_v56  ;;  %v1047_v62 = vld [vmem:[#allocation2 + $0x10] sm:$0xff]  ;;  %v1062_v0 = vmul.f32 %v1364_v57, %v1046_v61  ;;  %v1049_v3 = vld [vmem:[#allocation2 + $0x28] sm:$0xff] }
 0x17f   : > { %v1045_v60 = vld [vmem:[#allocation2] sm:$0xff]  ;;  %v1063_v1 = vmul.f32 %v1364_v57, %v1047_v62  ;;  %v1065_v7 = vmul.f32 %v1364_v57, %v1049_v3  ;;  %v1051_v9 = vld [vmem:[#allocation2 + $0x38] sm:$0xff] }
 0x180   : > { %v1061_v63 = vmul.f32 %v1364_v57, %v1045_v60  ;;  %v1048_v2 = vld [vmem:[#allocation2 + $0x20] sm:$0xff]  ;;  %v1076_v5 = vadd.f32 %v1365_v58, %v1060_v59  ;;  %v1078_v11 = vadd.f32 %v1365_v58, %v1062_v0  ;;  %v1067_v13 = vmul.f32 %v1364_v57, %v1051_v9 }
 0x181   : > { %v1050_v4 = vld [vmem:[#allocation2 + $0x40] sm:$0xff]  ;;  %v1064_v6 = vmul.f32 %v1364_v57, %v1048_v2  ;;  %v1079_v12 = vadd.f32 %v1365_v58, %v1063_v1  ;;  %v1081_v17 = vadd.f32 %v1365_v58, %v1065_v7 }
 0x182   : > { %v1066_v8 = vmul.f32 %v1364_v57, %v1050_v4  ;;  %v1077_v10 = vadd.f32 %v1365_v58, %v1061_v63  ;;  %v1085_v15 = vmax.f32 %v1076_v5, 0.0  ;;  %v1087_v20 = vmax.f32 %v1078_v11, 0.0 }
 0x183   : > { %v1052_v14 = vld [vmem:[#allocation2 + $0x8] sm:$0xff]  ;;  %v1080_v16 = vadd.f32 %v1365_v58, %v1064_v6  ;;  %v1088_v21 = vmax.f32 %v1079_v12, 0.0  ;;  %v1083_v22 = vadd.f32 %v1365_v58, %v1067_v13  ;;  %v1090_v24 = vmax.f32 %v1081_v17, 0.0 }
 0x184   : > { %v1082_v18 = vadd.f32 %v1365_v58, %v1066_v8  ;;  %v1086_v19 = vmax.f32 %v1077_v10, 0.0  ;;  %1094 = vst [vmem:[%s1997_s15] sm:$0xff] %v1085_v15  ;;  %v1068_v26 = vmul.f32 %v1364_v57, %v1052_v14  ;;  %1096 = vst [vmem:[%s1997_s15 + $0x10] sm:$0xff] %v1087_v20 }
 0x185   : > { %v1089_v23 = vmax.f32 %v1080_v16, 0.0  ;;  %1097 = vst [vmem:[%s1997_s15 + $0x18] sm:$0xff] %v1088_v21  ;;  %v1092_v27 = vmax.f32 %v1083_v22, 0.0  ;;  %1099 = vst [vmem:[%s1997_s15 + $0x28] sm:$0xff] %v1090_v24 }
 0x186   : > { %v1091_v25 = vmax.f32 %v1082_v18, 0.0  ;;  %1095 = vst [vmem:[%s1997_s15 + $0x8] sm:$0xff] %v1086_v19  ;;  %v1084_v28 = vadd.f32 %v1365_v58, %v1068_v26 }
 0x187   : > { %1098 = vst [vmem:[%s1997_s15 + $0x20] sm:$0xff] %v1089_v23  ;;  %1101 = vst [vmem:[%s1997_s15 + $0x38] sm:$0xff] %v1092_v27 }
 0x188   : > { %1100 = vst [vmem:[%s1997_s15 + $0x30] sm:$0xff] %v1091_v25  ;;  %v1093_v29 = vmax.f32 %v1084_v28, 0.0 }
 0x18a   : > { %1102 = vst [vmem:[%s1997_s15 + $0x40] sm:$0xff] %v1093_v29 }
 0x18b PF: > { %1109 = sbr.rel (!%p1816_p12) target bundleno = 403 (0x193), region = 115  ;;  %s1366_s21 = sshll.u32 (%p1816_p12), %s1680_s22, 3  ;;  %v1159_v30 = vld [vmem:[%s1997_s15] sm:$0xff] (%p1816_p12)  ;;  %v1163_v32 = vld [vmem:[%s1997_s15 + $0x10] sm:$0xff] (%p1816_p12) }
 0x18c   : > { %s1114_s26 = scalar_lea.vmem (%p1816_p12), %s2128_s4, %s1366_s21  ;;  %v1165_v33 = vld [vmem:[%s1997_s15 + $0x18] sm:$0xff] (%p1816_p12)  ;;  %v1169_v35 = vld [vmem:[%s1997_s15 + $0x28] sm:$0xff] (%p1816_p12) }
 0x18d   : > { %v1161_v31 = vld [vmem:[%s1997_s15 + $0x8] sm:$0xff] (%p1816_p12)  ;;  %1160 = vst [vmem:[%s1114_s26] sm:$0xff] (%p1816_p12), %v1159_v30  ;;  %1164 = vst [vmem:[%s1114_s26 + $0x30] sm:$0xff] (%p1816_p12), %v1163_v32 }
 0x18e   : > { %v1167_v34 = vld [vmem:[%s1997_s15 + $0x20] sm:$0xff] (%p1816_p12)  ;;  %1162 = vst [vmem:[%s1114_s26 + $0x18] sm:$0xff] (%p1816_p12), %v1161_v31  ;;  %1166 = vst [vmem:[%s1114_s26 + $0x48] sm:$0xff] (%p1816_p12), %v1165_v33  ;;  %v1173_v37 = vld [vmem:[%s1997_s15 + $0x38] sm:$0xff] (%p1816_p12) }
 0x18f   : > { %1168 = vst [vmem:[%s1114_s26 + $0x60] sm:$0xff] (%p1816_p12), %v1167_v34  ;;  %1170 = vst [vmem:[%s1114_s26 + $0x78] sm:$0xff] (%p1816_p12), %v1169_v35  ;;  %v1171_v36 = vld [vmem:[%s1997_s15 + $0x30] sm:$0xff] (%p1816_p12) }
 0x190   : > { %1172 = vst [vmem:[%s1114_s26 + $0x90] sm:$0xff] %v1171_v36  ;;  %1174 = vst [vmem:[%s1114_s26 + $0xa8] sm:$0xff] %v1173_v37 }
 0x191   : > { %v1175_v38 = vld [vmem:[%s1997_s15 + $0x40] sm:$0xff] }
 0x192   : > { %1176 = vst [vmem:[%s1114_s26 + $0xc0] sm:$0xff] %v1175_v38 }
 0x193 PF: > { %s14_s25 = sadd.s32 1, %s1692_s25   ;;  %s2142_s22 = sld [smem:[#allocation6_spill]] }
 0x194   : > { %p11_p6 = scmp.ge.s32.totalorder %s14_s25, 29   ;;  %s2143_s14 = sld [smem:[#allocation7_spill]] }
 0x195   : > { %s2144_s24 = sld [smem:[#allocation8_spill]]  ;;  %s2145_s15 = smov %s1656_s16 }
 0x196   : > { %s2146_s16 = smov %s1814_s13  ;;  %s2147_s17 = smov %s1664_s18 }
 0x197   : > { %s2148_s18 = smov %s1811_s12  ;;  %s2149_s19 = smov %s1672_s20 }
 0x198   : > { %s2150_s20 = smov %s1797_s7  ;;  %s2151_s21 = smov %s1684_s23 }
 0x199   :  { %13 = sbr.rel (!%p11_p6) target bundleno = 9 (0x9), region = 204 }
 0x19a   : > { %s2152_s23 = smov %s2143_s14 }

// kernel: forward.11
= control target key start
LH: loop header
LB: loop body
LE: loop exit
PB: predicated region body
PF: predicated region fallthrough
CT: control target
= control target key end

     0   :  { %s2124_s0 = inlined_call_operand.vmem [shape: bf16[72,3456], index: 0, kind: input, shape index: {}]   ;;  %s2125_s1 = inlined_call_operand.vmem [shape: bf16[3456,256], index: 1, kind: input, shape index: {}]   ;;  %s2126_s2 = inlined_call_operand.vmem [shape: f32[1,256], index: 2, kind: input, shape index: {}]   ;;  %s2127_s3 = inlined_call_operand.vmem [shape: f32[1,256], index: 3, kind: input, shape index: {}]   ;;  %s2128_s4 = inlined_call_operand.vmem [shape: f32[72,256], index: 4, kind: output, shape index: {}]  }
   0x1   :  { %2132 = sst [smem:[#allocation9_spill]] %s2124_s0 }
   0x2   :  { %2133 = sst [smem:[#allocation10_spill]] %s2125_s1 }
   0x3   :  { %s1722_s15 = smov 0   ;;  %s1724_s16 = smov 0  }
   0x4   :  { %s1726_s17 = smov 0   ;;  %s1728_s18 = smov 0  }
   0x5   :  { %s1730_s19 = smov 0   ;;  %s1732_s20 = smov 0  }
   0x6   :  { %s1734_s21 = smov 0   ;;  %s1736_s22 = smov 0  }
   0x7   :  { %s1738_s23 = smov 0   ;;  %s1740_s24 = smov 0  }
   0x8   :  { %s1742_s25 = smov 0  }
   0x9 LB: > { %2134 = sst [smem:[#allocation6_spill]] %s1688_s24  ;;  %s1298_s26 = sadd.s32 4294967295, %s1692_s25   ;;  %s1692_s25 = sphi %s1742_s25, %s14_s25   ;;  %s1688_s24 = sphi %s1740_s24, %s2144_s24   ;;  %s1684_s23 = sphi %s1738_s23, %s2152_s23   ;;  %s1680_s22 = sphi %s1736_s22, %s2142_s22   ;;  %s1676_s21 = sphi %s1734_s21, %s2151_s21   ;;  %s1672_s20 = sphi %s1732_s20, %s2150_s20   ;;  %s1668_s19 = sphi %s1730_s19, %s2149_s19   ;;  %s1664_s18 = sphi %s1728_s18, %s2148_s18   ;;  %s1660_s17 = sphi %s1726_s17, %s2147_s17   ;;  %s1656_s16 = sphi %s1724_s16, %s2146_s16   ;;  %s1652_s15 = sphi %s1722_s15, %s2145_s15  }
   0xa   : > { %s26_s27 = sadd.s32 1, %s1684_s23  ;;  %s29_s28 = sadd.s32 1, %s1688_s24 }
   0xb   : > { %p27_p0 = scmp.ge.s32.totalorder %s26_s27, 9  ;;  %s42_s29 = sadd.s32 1, %s1672_s20 }
   0xc   : > { %p49_p1 = scmp.ne.s32.totalorder %s1672_s20, %s1668_s19  ;;  %p50_p2 = scmp.eq.s32.totalorder %s1692_s25, 0 }
   0xd   : > { %s2154_s27 = smov (%p27_p0, %s26_s27), 0  ;;  %s2156_s28 = smov (!%p27_p0, %s29_s28), %s1688_s24 }
   0xe   : > { %2135 = sst [smem:[#allocation7_spill]] %s2154_s27  ;;  %s38_s30 = ssub.s32 %s1684_s23, %s2154_s27 }
   0xf   : > { %p31_p3 = scmp.ge.s32.totalorder %s2156_s28, 2  ;;  %p40_p4 = scmp.eq.s32.totalorder %s38_s30, 0 }
  0x10   : > { %p1789_p5 = por %p50_p2, %p49_p1  ;;  %s70_s6 = sadd.s32 1, %s1664_s18 }
  0x11   : > { %s2158_s28 = smov (%p31_p3, %s2156_s28), 0  ;;  %p77_p6 = scmp.ne.s32.totalorder %s1664_s18, %s1660_s17 }
  0x12   : > { %2137 = sst [smem:[#allocation8_spill]] %s2158_s28  ;;  %s66_s8 = ssub.s32 %s1688_s24, %s2158_s28 }
  0x13   : > { %s1797_s7 = scalar_select %p40_p4, %s1672_s20, %s42_s29  }
  0x14   : > { %s67_s9 = sor.u32 %s66_s8, %s38_s30  ;;  %p148_p7 = scmp.eq.s32.totalorder %s66_s8, 0 }
  0x15   : > { %p68_p8 = scmp.eq.s32.totalorder %s67_s9, 0  ;;  %p1803_p9 = por %p77_p6, %p50_p2 }
  0x16   : > { %s150_s11 = sadd.s32 1, %s1656_s16  ;;  %p160_p10 = scmp.ne.s32.totalorder %s1656_s16, %s1652_s15 }
  0x17   : > { %s1811_s12 = scalar_select %p68_p8, %s1664_s18, %s70_s6  }
  0x18   : > { %s1814_s13 = scalar_select %p148_p7, %s1656_s16, %s150_s11  }
  0x19   : > { %p161_p11 = scmp.eq.s32.totalorder %s1298_s26, 17  ;;  %p1301_p13 = scmp.ge.s32.totalorder %s1692_s25, 18 }
  0x1b   : > { %p1816_p12 = por %p161_p11, %p160_p10  ;;  %183 = sbr.rel (%p1301_p13) target bundleno = 92 (0x5c), region = 16 }
  0x20   : > { %186 = sbr.rel (!%p1789_p5) target bundleno = 51 (0x33), region = 20  ;;  %s188_s29 = sand.u32 (%p1789_p5), 1, %s1672_s20  }
  0x21   : > { %s1370_s30 = smul.u32 (%p1789_p5), 12, %s1684_s23  ;;  %s2140_s0 = sld [smem:[#allocation9_spill]] (%p1789_p5) }
  0x22   : > { %s1467_s8 = smul.u32 (%p1789_p5), 108, %s188_s29 }
  0x24   : > { %s1833_s26 = scalar_lea.vmem (%p1789_p5), [#allocation3], %s1467_s8 }
  0x27   : > { %s1828_s11 = scalar_lea.vmem %s2140_s0, %s1370_s30 }
  0x28   : > { %v211_v0 = vld [vmem:[%s1828_s11] sm:$0xff]  ;;  %v213_v1 = vld [vmem:[%s1828_s11 + $0x6c] sm:$0xff]  ;;  %v215_v2 = vld [vmem:[%s1828_s11 + $0xd8] sm:$0xff] }
  0x29   : > { %212 = vst [vmem:[%s1833_s26] sm:$0xff] %v211_v0  ;;  %214 = vst [vmem:[%s1833_s26 + $0xc] sm:$0xff] %v213_v1  ;;  %v217_v3 = vld [vmem:[%s1828_s11 + $0x144] sm:$0xff]  ;;  %v219_v4 = vld [vmem:[%s1828_s11 + $0x1b0] sm:$0xff] }
  0x2a   : > { %216 = vst [vmem:[%s1833_s26 + $0x18] sm:$0xff] %v215_v2  ;;  %v221_v5 = vld [vmem:[%s1828_s11 + $0x21c] sm:$0xff]  ;;  %218 = vst [vmem:[%s1833_s26 + $0x24] sm:$0xff] %v217_v3  ;;  %v223_v6 = vld [vmem:[%s1828_s11 + $0x288] sm:$0xff] }
  0x2b   : > { %220 = vst [vmem:[%s1833_s26 + $0x30] sm:$0xff] %v219_v4  ;;  %222 = vst [vmem:[%s1833_s26 + $0x3c] sm:$0xff] %v221_v5  ;;  %v225_v7 = vld [vmem:[%s1828_s11 + $0x2f4] sm:$0xff]  ;;  %v227_v8 = vld [vmem:[%s1828_s11 + $0x360] sm:$0xff] }
  0x2c   : > { %224 = vst [vmem:[%s1833_s26 + $0x48] sm:$0xff] %v223_v6  ;;  %226 = vst [vmem:[%s1833_s26 + $0x54] sm:$0xff] %v225_v7  ;;  %v1303_v9 = vld [vmem:[%s1828_s11 + $0x8] sm:$0xf]  ;;  %v1305_v10 = vld [vmem:[%s1828_s11 + $0x74] sm:$0xf] }
  0x2d   : > { %228 = vst [vmem:[%s1833_s26 + $0x60] sm:$0xff] %v227_v8  ;;  %v1307_v11 = vld [vmem:[%s1828_s11 + $0xe0] sm:$0xf]  ;;  %1304 = vst [vmem:[%s1833_s26 + $0x8] sm:$0xf] %v1303_v9 }
  0x2e   : > { %1306 = vst [vmem:[%s1833_s26 + $0x14] sm:$0xf] %v1305_v10  ;;  %1308 = vst [vmem:[%s1833_s26 + $0x20] sm:$0xf] %v1307_v11  ;;  %v1309_v12 = vld [vmem:[%s1828_s11 + $0x14c] sm:$0xf] }
  0x2f   : > { %v1311_v13 = vld [vmem:[%s1828_s11 + $0x1b8] sm:$0xf]  ;;  %v1313_v14 = vld [vmem:[%s1828_s11 + $0x224] sm:$0xf]  ;;  %1310 = vst [vmem:[%s1833_s26 + $0x2c] sm:$0xf] %v1309_v12 }
  0x30   : > { %1312 = vst [vmem:[%s1833_s26 + $0x38] sm:$0xf] %v1311_v13  ;;  %1314 = vst [vmem:[%s1833_s26 + $0x44] sm:$0xf] %v1313_v14  ;;  %v1315_v15 = vld [vmem:[%s1828_s11 + $0x290] sm:$0xf] }
  0x31   : > { %v1317_v16 = vld [vmem:[%s1828_s11 + $0x2fc] sm:$0xf]  ;;  %v1319_v17 = vld [vmem:[%s1828_s11 + $0x368] sm:$0xf]  ;;  %1316 = vst [vmem:[%s1833_s26 + $0x50] sm:$0xf] %v1315_v15 }
  0x32   : > { %1318 = vst [vmem:[%s1833_s26 + $0x5c] sm:$0xf] %v1317_v16  ;;  %1320 = vst [vmem:[%s1833_s26 + $0x68] sm:$0xf] %v1319_v17 }
  0x33 PF: > { %260 = sbr.rel (!%p1803_p9) target bundleno = 92 (0x5c), region = 46  ;;  %s262_s5 = sand.u32 (%p1803_p9), 1, %s1664_s18  }
  0x34   : > { %s1371_s29 = smul.u32 (%p1803_p9), 96, %s1684_s23  ;;  %s2141_s1 = sld [smem:[#allocation10_spill]] (%p1803_p9) }
  0x35   : > { %s1468_s30 = smul.u32 (%p1803_p9), 192, %s262_s5 }
  0x36   : > { %s267_s8 = sadd.s32 (%p1803_p9), %s1688_s24, %s1371_s29 }
  0x37   : > { %s1322_s6 = sshll.u32 (%p1803_p9), %s267_s8, 2  ;;  %s1881_s10 = scalar_lea.vmem (%p1803_p9), [#allocation4], %s1468_s30 }
  0x3a   : > { %s1876_s28 = scalar_lea.vmem %s2141_s1, %s1322_s6 }
  0x3b   : > { %v286_v18 = vld [vmem:[%s1876_s28] sm:$0xf]  ;;  %v288_v19 = vld [vmem:[%s1876_s28 + $0x8] sm:$0xf]  ;;  %v290_v20 = vld [vmem:[%s1876_s28 + $0x10] sm:$0xf] }
  0x3c   : > { %287 = vst [vmem:[%s1881_s10] sm:$0xf] %v286_v18  ;;  %289 = vst [vmem:[%s1881_s10 + $0x4] sm:$0xf] %v288_v19  ;;  %v292_v21 = vld [vmem:[%s1876_s28 + $0x18] sm:$0xf] }
  0x3d   : > { %291 = vst [vmem:[%s1881_s10 + $0x8] sm:$0xf] %v290_v20  ;;  %v294_v22 = vld [vmem:[%s1876_s28 + $0x20] sm:$0xf]  ;;  %v296_v23 = vld [vmem:[%s1876_s28 + $0x28] sm:$0xf] }
  0x3e   : > { %293 = vst [vmem:[%s1881_s10 + $0xc] sm:$0xf] %v292_v21  ;;  %295 = vst [vmem:[%s1881_s10 + $0x10] sm:$0xf] %v294_v22  ;;  %v298_v24 = vld [vmem:[%s1876_s28 + $0x30] sm:$0xf] }
  0x3f   : > { %297 = vst [vmem:[%s1881_s10 + $0x14] sm:$0xf] %v296_v23  ;;  %v300_v25 = vld [vmem:[%s1876_s28 + $0x38] sm:$0xf]  ;;  %v302_v26 = vld [vmem:[%s1876_s28 + $0x40] sm:$0xf] }
  0x40   : > { %299 = vst [vmem:[%s1881_s10 + $0x18] sm:$0xf] %v298_v24  ;;  %301 = vst [vmem:[%s1881_s10 + $0x1c] sm:$0xf] %v300_v25  ;;  %v304_v27 = vld [vmem:[%s1876_s28 + $0x48] sm:$0xf] }
  0x41   : > { %303 = vst [vmem:[%s1881_s10 + $0x20] sm:$0xf] %v302_v26  ;;  %v306_v28 = vld [vmem:[%s1876_s28 + $0x50] sm:$0xf]  ;;  %v308_v29 = vld [vmem:[%s1876_s28 + $0x58] sm:$0xf] }
  0x42   : > { %305 = vst [vmem:[%s1881_s10 + $0x24] sm:$0xf] %v304_v27  ;;  %307 = vst [vmem:[%s1881_s10 + $0x28] sm:$0xf] %v306_v28  ;;  %v310_v30 = vld [vmem:[%s1876_s28 + $0x60] sm:$0xf] }
  0x43   : > { %309 = vst [vmem:[%s1881_s10 + $0x2c] sm:$0xf] %v308_v29  ;;  %v312_v31 = vld [vmem:[%s1876_s28 + $0x68] sm:$0xf]  ;;  %v314_v32 = vld [vmem:[%s1876_s28 + $0x70] sm:$0xf] }
  0x44   : > { %311 = vst [vmem:[%s1881_s10 + $0x30] sm:$0xf] %v310_v30  ;;  %313 = vst [vmem:[%s1881_s10 + $0x34] sm:$0xf] %v312_v31  ;;  %v316_v33 = vld [vmem:[%s1876_s28 + $0x78] sm:$0xf] }
  0x45   : > { %315 = vst [vmem:[%s1881_s10 + $0x38] sm:$0xf] %v314_v32  ;;  %v318_v34 = vld [vmem:[%s1876_s28 + $0x80] sm:$0xf]  ;;  %v320_v35 = vld [vmem:[%s1876_s28 + $0x88] sm:$0xf] }
  0x46   : > { %317 = vst [vmem:[%s1881_s10 + $0x3c] sm:$0xf] %v316_v33  ;;  %319 = vst [vmem:[%s1881_s10 + $0x40] sm:$0xf] %v318_v34  ;;  %v322_v36 = vld [vmem:[%s1876_s28 + $0x90] sm:$0xf] }
  0x47   : > { %321 = vst [vmem:[%s1881_s10 + $0x44] sm:$0xf] %v320_v35  ;;  %v324_v37 = vld [vmem:[%s1876_s28 + $0x98] sm:$0xf]  ;;  %v326_v38 = vld [vmem:[%s1876_s28 + $0xa0] sm:$0xf] }
  0x48   : > { %323 = vst [vmem:[%s1881_s10 + $0x48] sm:$0xf] %v322_v36  ;;  %325 = vst [vmem:[%s1881_s10 + $0x4c] sm:$0xf] %v324_v37  ;;  %v328_v39 = vld [vmem:[%s1876_s28 + $0xa8] sm:$0xf] }
  0x49   : > { %327 = vst [vmem:[%s1881_s10 + $0x50] sm:$0xf] %v326_v38  ;;  %v330_v40 = vld [vmem:[%s1876_s28 + $0xb0] sm:$0xf]  ;;  %v332_v41 = vld [vmem:[%s1876_s28 + $0xb8] sm:$0xf] }
  0x4a   : > { %329 = vst [vmem:[%s1881_s10 + $0x54] sm:$0xf] %v328_v39  ;;  %331 = vst [vmem:[%s1881_s10 + $0x58] sm:$0xf] %v330_v40  ;;  %v334_v42 = vld [vmem:[%s1876_s28 + $0xc0] sm:$0xf] }
  0x4b   : > { %333 = vst [vmem:[%s1881_s10 + $0x5c] sm:$0xf] %v332_v41  ;;  %v336_v43 = vld [vmem:[%s1876_s28 + $0xc8] sm:$0xf]  ;;  %v338_v44 = vld [vmem:[%s1876_s28 + $0xd0] sm:$0xf] }
  0x4c   : > { %335 = vst [vmem:[%s1881_s10 + $0x60] sm:$0xf] %v334_v42  ;;  %337 = vst [vmem:[%s1881_s10 + $0x64] sm:$0xf] %v336_v43  ;;  %v340_v45 = vld [vmem:[%s1876_s28 + $0xd8] sm:$0xf] }
  0x4d   : > { %339 = vst [vmem:[%s1881_s10 + $0x68] sm:$0xf] %v338_v44  ;;  %v342_v46 = vld [vmem:[%s1876_s28 + $0xe0] sm:$0xf]  ;;  %v344_v47 = vld [vmem:[%s1876_s28 + $0xe8] sm:$0xf] }
  0x4e   : > { %341 = vst [vmem:[%s1881_s10 + $0x6c] sm:$0xf] %v340_v45  ;;  %343 = vst [vmem:[%s1881_s10 + $0x70] sm:$0xf] %v342_v46  ;;  %v346_v48 = vld [vmem:[%s1876_s28 + $0xf0] sm:$0xf] }
  0x4f   : > { %345 = vst [vmem:[%s1881_s10 + $0x74] sm:$0xf] %v344_v47  ;;  %v348_v49 = vld [vmem:[%s1876_s28 + $0xf8] sm:$0xf]  ;;  %v350_v50 = vld [vmem:[%s1876_s28 + $0x100] sm:$0xf] }
  0x50   : > { %347 = vst [vmem:[%s1881_s10 + $0x78] sm:$0xf] %v346_v48  ;;  %349 = vst [vmem:[%s1881_s10 + $0x7c] sm:$0xf] %v348_v49  ;;  %v352_v51 = vld [vmem:[%s1876_s28 + $0x108] sm:$0xf] }
  0x51   : > { %351 = vst [vmem:[%s1881_s10 + $0x80] sm:$0xf] %v350_v50  ;;  %v354_v52 = vld [vmem:[%s1876_s28 + $0x110] sm:$0xf]  ;;  %v356_v53 = vld [vmem:[%s1876_s28 + $0x118] sm:$0xf] }
  0x52   : > { %353 = vst [vmem:[%s1881_s10 + $0x84] sm:$0xf] %v352_v51  ;;  %355 = vst [vmem:[%s1881_s10 + $0x88] sm:$0xf] %v354_v52  ;;  %v358_v54 = vld [vmem:[%s1876_s28 + $0x120] sm:$0xf] }
  0x53   : > { %357 = vst [vmem:[%s1881_s10 + $0x8c] sm:$0xf] %v356_v53  ;;  %v360_v55 = vld [vmem:[%s1876_s28 + $0x128] sm:$0xf]  ;;  %v362_v56 = vld [vmem:[%s1876_s28 + $0x130] sm:$0xf] }
  0x54   : > { %359 = vst [vmem:[%s1881_s10 + $0x90] sm:$0xf] %v358_v54  ;;  %361 = vst [vmem:[%s1881_s10 + $0x94] sm:$0xf] %v360_v55  ;;  %v364_v57 = vld [vmem:[%s1876_s28 + $0x138] sm:$0xf] }
  0x55   : > { %363 = vst [vmem:[%s1881_s10 + $0x98] sm:$0xf] %v362_v56  ;;  %v366_v58 = vld [vmem:[%s1876_s28 + $0x140] sm:$0xf]  ;;  %v368_v59 = vld [vmem:[%s1876_s28 + $0x148] sm:$0xf] }
  0x56   : > { %365 = vst [vmem:[%s1881_s10 + $0x9c] sm:$0xf] %v364_v57  ;;  %367 = vst [vmem:[%s1881_s10 + $0xa0] sm:$0xf] %v366_v58  ;;  %v370_v60 = vld [vmem:[%s1876_s28 + $0x150] sm:$0xf] }
  0x57   : > { %369 = vst [vmem:[%s1881_s10 + $0xa4] sm:$0xf] %v368_v59  ;;  %v372_v61 = vld [vmem:[%s1876_s28 + $0x158] sm:$0xf]  ;;  %v374_v62 = vld [vmem:[%s1876_s28 + $0x160] sm:$0xf] }
  0x58   : > { %371 = vst [vmem:[%s1881_s10 + $0xa8] sm:$0xf] %v370_v60  ;;  %373 = vst [vmem:[%s1881_s10 + $0xac] sm:$0xf] %v372_v61  ;;  %v376_v63 = vld [vmem:[%s1876_s28 + $0x168] sm:$0xf] }
  0x59   : > { %375 = vst [vmem:[%s1881_s10 + $0xb0] sm:$0xf] %v374_v62  ;;  %v378_v0 = vld [vmem:[%s1876_s28 + $0x170] sm:$0xf]  ;;  %v380_v1 = vld [vmem:[%s1876_s28 + $0x178] sm:$0xf] }
  0x5a   : > { %377 = vst [vmem:[%s1881_s10 + $0xb4] sm:$0xf] %v376_v63  ;;  %379 = vst [vmem:[%s1881_s10 + $0xb8] sm:$0xf] %v378_v0 }
  0x5b   : > { %381 = vst [vmem:[%s1881_s10 + $0xbc] sm:$0xf] %v380_v1 }
  0x5c PF: > { %p1323_p0 = scmp.ge.s32.totalorder %s1692_s25, 1  ;;  %p512_p1 = scmp.lt.s32.totalorder %s1692_s25, 19 }
  0x5e   : > { %p513_p2 = pnand %p1323_p0, %p512_p1 }
  0x5f   : > { %s519_s0 = sand.u32 (!%p513_p2), 1, %s1668_s19   ;;  %s526_s11 = sand.u32 (!%p513_p2), 1, %s1660_s17  }
  0x60   : > { %516 = sbr.rel (%p513_p2) target bundleno = 403 (0x193), region = 95  ;;  %s557_s28 = sand.u32 (!%p513_p2), 1, %s1652_s15  }
  0x61   : > { %s1469_s26 = smul.u32 (!%p513_p2), 108, %s519_s0  ;;  %p563_p3 = scmp.lt.s32.totalorder (!%p513_p2), %s1680_s22, 1 }
  0x62   : > { %s1470_s5 = smul.u32 (!%p513_p2), 192, %s526_s11  ;;  %p1324_p4 = scmp.ne.s32.totalorder (!%p513_p2), %s1676_s21, 0 }
  0x63   : > { %s1471_s29 = smul.u32 (!%p513_p2), 72, %s557_s28  ;;  %s1993_s24 = scalar_lea.vmem (!%p513_p2), [#allocation3], %s1469_s26 }
  0x64   : > { %s1995_s17 = scalar_lea.vmem (!%p513_p2), [#allocation4], %s1470_s5 }
  0x65   : > { %s1983_s30 = scalar_select %p563_p3, %s1680_s22, 1 }
  0x66   : > { %s1997_s15 = scalar_lea.vmem [#allocation5], %s1471_s29  ;;  %574 = sbr.rel (%p1324_p4) target bundleno = 113 (0x71), region = 107 }
  0x67   : > { %s565_s9 = scalar_lea.vmem %s2126_s2, %s1983_s30  ;;  %s568_s27 = scalar_lea.vmem %s2127_s3, %s1983_s30 }
  0x6b   : > { %v1694_v2 = vmov 0.0  }
  0x6c   : > { %575 = vst [vmem:[#allocation2 + $0x30] sm:$0xff] %v1694_v2  ;;  %576 = vst [vmem:[#allocation2] sm:$0xff] %v1694_v2 }
  0x6d   : > { %577 = vst [vmem:[#allocation2 + $0x18] sm:$0xff] %v1694_v2  ;;  %578 = vst [vmem:[#allocation2 + $0x10] sm:$0xff] %v1694_v2 }
  0x6e   : > { %579 = vst [vmem:[#allocation2 + $0x20] sm:$0xff] %v1694_v2  ;;  %580 = vst [vmem:[#allocation2 + $0x28] sm:$0xff] %v1694_v2 }
  0x6f   : > { %581 = vst [vmem:[#allocation2 + $0x40] sm:$0xff] %v1694_v2  ;;  %582 = vst [vmem:[#allocation2 + $0x38] sm:$0xff] %v1694_v2 }
  0x70   : > { %583 = vst [vmem:[#allocation2 + $0x8] sm:$0xff] %v1694_v2 }
  0x71 PF: > { %v1563_v3 = vld [vmem:[%s1995_s17 + $0x78] sm:$0xff]   ;;  %v1695_v4 = vmov 0.0   ;;  %vm1696_vm0 = vmmov 0   ;;  %v1566_v7 = vld [vmem:[%s1995_s17 + $0x70] sm:$0xff]   ;;  %v1569_v10 = vld [vmem:[%s1995_s17 + $0x68] sm:$0xff]   ;;  %p1364_p5 = scmp.ne.s32.totalorder %s1676_s21, 8 }
  0x72   : > { %1431 = vmatprep.subr.bf16.mxu1 %v1695_v4  ;;  %v1564_v5 = vld [vmem:[%s1995_s17 + $0xb8] sm:$0xff]   ;;  %1372 = vmatprep.subr.bf16.mxu0 %v1563_v3  ;;  %v1567_v8 = vld [vmem:[%s1995_s17 + $0xb0] sm:$0xff]   ;;  %v1570_v11 = vld [vmem:[%s1995_s17 + $0xa8] sm:$0xff]  }
  0x73   : > { %v1565_v6 = vld [vmem:[%s1995_s17 + $0x38] sm:$0xff]   ;;  %1447 = vmatprep.mubr.msk.bf16.mxu1 %vm1696_vm0, %v1695_v4  ;;  %1432 = vmatpush3.bf16.msra.mxu1 %v1564_v5  ;;  %v1568_v9 = vld [vmem:[%s1995_s17 + $0x30] sm:$0xff]   ;;  %v1571_v12 = vld [vmem:[%s1995_s17 + $0x28] sm:$0xff]  }
  0x74   : > { %1373 = vmatpush3.bf16.msra.mxu0 %v1565_v6  ;;  %1433 = vmatprep.subr.bf16.mxu1 %v1695_v4  ;;  %v1572_v13 = vld [vmem:[%s1995_s17 + $0x60] sm:$0xff]   ;;  %v1575_v16 = vld [vmem:[%s1995_s17 + $0x58] sm:$0xff]   ;;  %v1578_v19 = vld [vmem:[%s1995_s17 + $0x50] sm:$0xff]  }
  0x75   : > { %1374 = vmatprep.subr.bf16.mxu0 %v1566_v7  ;;  %v1573_v14 = vld [vmem:[%s1995_s17 + $0xa0] sm:$0xff]   ;;  %v1576_v17 = vld [vmem:[%s1995_s17 + $0x98] sm:$0xff]   ;;  %v1579_v20 = vld [vmem:[%s1995_s17 + $0x90] sm:$0xff]  }
  0x76   : > { %v1574_v15 = vld [vmem:[%s1995_s17 + $0x20] sm:$0xff]   ;;  %v1577_v18 = vld [vmem:[%s1995_s17 + $0x18] sm:$0xff]   ;;  %v1580_v21 = vld [vmem:[%s1995_s17 + $0x10] sm:$0xff]  }
  0x77   : > { %1434 = vmatpush3.bf16.msra.mxu1 %v1567_v8  ;;  %v1581_v22 = vld [vmem:[%s1995_s17 + $0x48] sm:$0xff]   ;;  %v1584_v25 = vld [vmem:[%s1995_s17 + $0x40] sm:$0xff]   ;;  %v1604_v42 = vld [vmem:[%s1993_s24 + $0x68] ss:$0 sps:$4 sm:$0xff]  }
  0x78   : > { %1375 = vmatpush3.bf16.msra.mxu0 %v1568_v9  ;;  %1435 = vmatprep.subr.bf16.mxu1 %v1695_v4  ;;  %v1582_v23 = vld [vmem:[%s1995_s17 + $0x88] sm:$0xff]   ;;  %v1585_v27 = vld [vmem:[%s1995_s17 + $0x80] sm:$0xff]   ;;  %v584_v50 = vld [vmem:[#allocation2 + $0x30] sm:$0xff] }
  0x79   : > { %1376 = vmatprep.subr.bf16.mxu0 %v1569_v10  ;;  %v1583_v24 = vld [vmem:[%s1995_s17 + $0x8] sm:$0xff]   ;;  %v1586_v28 = vld [vmem:[%s1995_s17] sm:$0xff]   ;;  %v586_v2 = vld [vmem:[#allocation2 + $0x18] sm:$0xff] }
  0x7a   : > { %v1589_v26 = vld [vmem:[%s1993_s24 + $0x4] ss:$12 sps:$4 sm:$0xff]   ;;  %v1590_v29 = vld [vmem:[%s1993_s24 + $0x8] ss:$12 sps:$4 sm:$0xff]   ;;  %v1587_v30 = vld [vmem:[%s1993_s24] ss:$12 sps:$4 sm:$0xff]  }
  0x7b   : > { %1436 = vmatpush3.bf16.msra.mxu1 %v1570_v11  ;;  %910 = vmatprep.mubr.bf16.mxu0 %v1589_v26  ;;  %v1591_v31 = vld [vmem:[%s1993_s24 + $0x1c] ss:$12 sps:$4 sm:$0xff]   ;;  %v1593_v32 = vld [vmem:[%s1993_s24 + $0x20] ss:$12 sps:$4 sm:$0xff]   ;;  %v1594_v33 = vld [vmem:[%s1993_s24 + $0x18] ss:$12 sps:$4 sm:$0xff]  }
  0x7c   : > { %1377 = vmatpush3.bf16.msra.mxu0 %v1571_v12  ;;  %1437 = vmatprep.subr.bf16.mxu1 %v1695_v4  ;;  %v1595_v34 = vld [vmem:[%s1993_s24 + $0x34] ss:$12 sps:$4 sm:$0xff]   ;;  %v1597_v35 = vld [vmem:[%s1993_s24 + $0x38] ss:$12 sps:$4 sm:$0xff]   ;;  %v1598_v36 = vld [vmem:[%s1993_s24 + $0x30] ss:$12 sps:$4 sm:$0xff]  }
  0x7d   : > { %1378 = vmatprep.subr.bf16.mxu0 %v1572_v13  ;;  %v1599_v37 = vld [vmem:[%s1993_s24 + $0x4c] ss:$12 sps:$4 sm:$0xff]   ;;  %v609_v38 = vld [vmem:[%s1993_s24 + $0x60] sm:$0xff]  ;;  %v1601_v39 = vld [vmem:[%s1993_s24 + $0x50] ss:$12 sps:$4 sm:$0xff]  }
  0x7e   : > { %v1602_v40 = vld [vmem:[%s1993_s24 + $0x48] ss:$12 sps:$4 sm:$0xff]   ;;  %v1338_v41 = vcombine.high %v609_v38, %v609_v38  ;;  %v1337_v43 = vcombine.low %v609_v38, %v609_v38  ;;  %v585_v58 = vld [vmem:[#allocation2] sm:$0xff] }
  0x7f   : > { %1438 = vmatpush3.bf16.msra.mxu1 %v1573_v14  ;;  %v587_v10 = vld [vmem:[#allocation2 + $0x10] sm:$0xff]  ;;  %v589_v26 = vld [vmem:[#allocation2 + $0x28] sm:$0xff] }
  0x80   : > { %1379 = vmatpush3.bf16.msra.mxu0 %v1574_v15  ;;  %1439 = vmatprep.subr.bf16.mxu1 %v1695_v4 }
  0x81   : > { %1380 = vmatprep.subr.bf16.mxu0 %v1575_v16 }
  0x83   : > { %1440 = vmatpush3.bf16.msra.mxu1 %v1576_v17 }
  0x84   : > { %1381 = vmatpush3.bf16.msra.mxu0 %v1577_v18  ;;  %1441 = vmatprep.subr.bf16.mxu1 %v1695_v4  ;;  %v588_v18 = vld [vmem:[#allocation2 + $0x20] sm:$0xff] }
  0x85   : > { %1382 = vmatprep.subr.bf16.mxu0 %v1578_v19 }
  0x87   : > { %1442 = vmatpush3.bf16.msra.mxu1 %v1579_v20 }
  0x88   : > { %1383 = vmatpush3.bf16.msra.mxu0 %v1580_v21  ;;  %1443 = vmatprep.subr.bf16.mxu1 %v1695_v4 }
  0x89   : > { %1384 = vmatprep.subr.bf16.mxu0 %v1581_v22 }
  0x8b   : > { %1444 = vmatpush3.bf16.msra.mxu1 %v1582_v23 }
  0x8c   : > { %1385 = vmatpush3.bf16.msra.mxu0 %v1583_v24  ;;  %1445 = vmatprep.subr.bf16.mxu1 %v1695_v4 }
  0x8d   : > { %1386 = vmatprep.subr.bf16.mxu0 %v1584_v25 }
  0x8f   : > { %1446 = vmatpush3.bf16.msra.mxu1 %v1585_v27 }
  0x90   : > { %1387 = vmatpush3.bf16.msra.mxu0 %v1586_v28 }
  0x92   : > { %1448 = vmatmul.mubr.bf16.vlgmr.msra.gmra.mxu1 %v1590_v29 }
  0x93   : > { %911 = vmatmul.mubr.bf16.vlgmr.msra.gmra.mxu0 %v1587_v30  ;;  %1451 = vmatprep.mubr.msk.bf16.mxu1 %vm1696_vm0, %v1695_v4 }
  0x94   : > { %918 = vmatprep.mubr.bf16.mxu0 %v1591_v31 }
  0x9a   : > { %1452 = vmatmul.mubr.bf16.gmra.mxu1 %v1593_v32 }
  0x9b   : > { %919 = vmatmul.mubr.bf16.gmra.mxu0 %v1594_v33  ;;  %1455 = vmatprep.mubr.msk.bf16.mxu1 %vm1696_vm0, %v1695_v4 }
  0x9c   : > { %926 = vmatprep.mubr.bf16.mxu0 %v1595_v34  ;;  %v590_v34 = vld [vmem:[#allocation2 + $0x40] sm:$0xff] }
  0xa2   : > { %1456 = vmatmul.mubr.bf16.gmra.mxu1 %v1597_v35 }
  0xa3   : > { %927 = vmatmul.mubr.bf16.gmra.mxu0 %v1598_v36  ;;  %1459 = vmatprep.mubr.msk.bf16.mxu1 %vm1696_vm0, %v1695_v4 }
  0xa4   : > { %934 = vmatprep.mubr.bf16.mxu0 %v1599_v37 }
  0xaa   : > { %1460 = vmatmul.mubr.bf16.gmra.mxu1 %v1601_v39 }
  0xab   : > { %935 = vmatmul.mubr.bf16.gmra.mxu0 %v1602_v40  ;;  %1463 = vmatprep.mubr.msk.bf16.mxu1 %vm1696_vm0, %v1695_v4 }
  0xac   : > { %942 = vmatprep.mubr.bf16.mxu0 %v1338_v41 }
  0xb2   : > { %1464 = vmatmul.mubr.bf16.gmra.mxu1 %v1604_v42  ;;  %v591_v42 = vld [vmem:[#allocation2 + $0x38] sm:$0xff] }
  0xb3   : > { %943 = vmatmul.mubr.bf16.gmra.mxu0 %v1337_v43 }
 0x152   : > { %v984_v44 = vpop.f32.mrf.mxu1 }
 0x153   : > { %v1388_v45 = vpop.f32.mrf.mxu0 }
 0x154   : > { %v1449_v46 = vpop.f32.mrf.mxu1 }
 0x155   : > { %v1389_v47 = vpop.f32.mrf.mxu0 }
 0x156   : > { %v1390_v48 = vadd.f32 %v1389_v47, %v1388_v45  ;;  %v987_v49 = vpop.f32.mrf.mxu1 }
 0x157   : > { %v1391_v51 = vpop.f32.mrf.mxu0 }
 0x158   : > { %v985_v52 = vadd.f32 %v1390_v48, %v984_v44  ;;  %v1450_v53 = vpop.f32.mrf.mxu1 }
 0x159   : > { %v1392_v54 = vpop.f32.mrf.mxu0 }
 0x15a   : > { %v1022_v55 = vadd.f32 %v985_v52, %v584_v50  ;;  %v1393_v56 = vadd.f32 %v1392_v54, %v1391_v51  ;;  %v992_v57 = vpop.f32.mrf.mxu1  ;;  %v592_v50 = vld [vmem:[#allocation2 + $0x8] sm:$0xff] }
 0x15b   : > { %v1394_v59 = vpop.f32.mrf.mxu0 }
 0x15c   : > { %1031 = vst [vmem:[#allocation2 + $0x30] sm:$0xff] %v1022_v55  ;;  %v988_v60 = vadd.f32 %v1393_v56, %v987_v49  ;;  %v1453_v61 = vpop.f32.mrf.mxu1 }
 0x15d   : > { %v1395_v62 = vpop.f32.mrf.mxu0 }
 0x15e   : > { %v1023_v63 = vadd.f32 %v988_v60, %v585_v58  ;;  %v1396_v0 = vadd.f32 %v1395_v62, %v1394_v59  ;;  %v995_v1 = vpop.f32.mrf.mxu1 }
 0x15f   : > { %v1397_v3 = vpop.f32.mrf.mxu0 }
 0x160   : > { %1032 = vst [vmem:[#allocation2] sm:$0xff] %v1023_v63  ;;  %v993_v4 = vadd.f32 %v1396_v0, %v992_v57  ;;  %v1454_v5 = vpop.f32.mrf.mxu1 }
 0x161   : > { %v1398_v6 = vpop.f32.mrf.mxu0 }
 0x162   : > { %v1024_v7 = vadd.f32 %v993_v4, %v586_v2  ;;  %v1399_v8 = vadd.f32 %v1398_v6, %v1397_v3  ;;  %v1000_v9 = vpop.f32.mrf.mxu1 }
 0x163   : > { %v1400_v11 = vpop.f32.mrf.mxu0 }
 0x164   : > { %1033 = vst [vmem:[#allocation2 + $0x18] sm:$0xff] %v1024_v7  ;;  %v996_v12 = vadd.f32 %v1399_v8, %v995_v1  ;;  %v1457_v13 = vpop.f32.mrf.mxu1 }
 0x165   : > { %v1401_v14 = vpop.f32.mrf.mxu0 }
 0x166   : > { %v1025_v15 = vadd.f32 %v996_v12, %v587_v10  ;;  %v1402_v16 = vadd.f32 %v1401_v14, %v1400_v11  ;;  %v1003_v17 = vpop.f32.mrf.mxu1 }
 0x167   : > { %v1403_v19 = vpop.f32.mrf.mxu0 }
 0x168   : > { %1034 = vst [vmem:[#allocation2 + $0x10] sm:$0xff] %v1025_v15  ;;  %v1001_v20 = vadd.f32 %v1402_v16, %v1000_v9  ;;  %v1458_v21 = vpop.f32.mrf.mxu1 }
 0x169   : > { %v1404_v22 = vpop.f32.mrf.mxu0 }
 0x16a   : > { %v1026_v23 = vadd.f32 %v1001_v20, %v588_v18  ;;  %v1405_v24 = vadd.f32 %v1404_v22, %v1403_v19  ;;  %v1008_v25 = vpop.f32.mrf.mxu1 }
 0x16b   : > { %v1406_v27 = vpop.f32.mrf.mxu0 }
 0x16c   : > { %1035 = vst [vmem:[#allocation2 + $0x20] sm:$0xff] %v1026_v23  ;;  %v1004_v28 = vadd.f32 %v1405_v24, %v1003_v17  ;;  %v1461_v29 = vpop.f32.mrf.mxu1 }
 0x16d   : > { %v1407_v30 = vpop.f32.mrf.mxu0 }
 0x16e   : > { %v1027_v31 = vadd.f32 %v1004_v28, %v589_v26  ;;  %v1408_v32 = vadd.f32 %v1407_v30, %v1406_v27  ;;  %v1011_v33 = vpop.f32.mrf.mxu1 }
 0x16f   : > { %v1409_v35 = vpop.f32.mrf.mxu0 }
 0x170   : > { %1036 = vst [vmem:[#allocation2 + $0x28] sm:$0xff] %v1027_v31  ;;  %v1009_v36 = vadd.f32 %v1408_v32, %v1008_v25  ;;  %v1462_v37 = vpop.f32.mrf.mxu1 }
 0x171   : > { %v1410_v38 = vpop.f32.mrf.mxu0 }
 0x172   : > { %v1028_v39 = vadd.f32 %v1009_v36, %v590_v34  ;;  %v1411_v40 = vadd.f32 %v1410_v38, %v1409_v35  ;;  %v1016_v41 = vpop.f32.mrf.mxu1 }
 0x173   : > { %v1412_v43 = vpop.f32.mrf.mxu0 }
 0x174   : > { %1037 = vst [vmem:[#allocation2 + $0x40] sm:$0xff] %v1028_v39  ;;  %v1012_v44 = vadd.f32 %v1411_v40, %v1011_v33  ;;  %v1465_v45 = vpop.f32.mrf.mxu1 }
 0x175   : > { %v1413_v46 = vpop.f32.mrf.mxu0 }
 0x176   : > { %v1029_v47 = vadd.f32 %v1012_v44, %v591_v42  ;;  %v1414_v48 = vadd.f32 %v1413_v46, %v1412_v43  ;;  %v1019_v49 = vpop.f32.mrf.mxu1 }
 0x177   : > { %v1415_v51 = vpop.f32.mrf.mxu0 }
 0x178   : > { %1038 = vst [vmem:[#allocation2 + $0x38] sm:$0xff] %v1029_v47  ;;  %v1017_v52 = vadd.f32 %v1414_v48, %v1016_v41  ;;  %v1466_v53 = vpop.f32.mrf.mxu1  ;;  %1043 = sbr.rel (%p1364_p5) target bundleno = 395 (0x18b), region = 111 }
 0x179   : > { %v1416_v54 = vpop.f32.mrf.mxu0 }
 0x17a   : > { %v1030_v55 = vadd.f32 %v1017_v52, %v592_v50 }
 0x17c   : > { %1039 = vst [vmem:[#allocation2 + $0x8] sm:$0xff] %v1030_v55 }
 0x17d   : > { %v1044_v56 = vld [vmem:[#allocation2 + $0x30] sm:$0xff]  ;;  %v1365_v57 = vld [vmem:[%s565_s9] ss:$0 sm:$0xff]  ;;  %v1046_v61 = vld [vmem:[#allocation2 + $0x18] sm:$0xff] }
 0x17e   : > { %v1366_v58 = vld [vmem:[%s568_s27] ss:$0 sm:$0xff]  ;;  %v1060_v59 = vmul.f32 %v1365_v57, %v1044_v56  ;;  %v1047_v62 = vld [vmem:[#allocation2 + $0x10] sm:$0xff]  ;;  %v1062_v0 = vmul.f32 %v1365_v57, %v1046_v61  ;;  %v1049_v3 = vld [vmem:[#allocation2 + $0x28] sm:$0xff] }
 0x17f   : > { %v1045_v60 = vld [vmem:[#allocation2] sm:$0xff]  ;;  %v1063_v1 = vmul.f32 %v1365_v57, %v1047_v62  ;;  %v1065_v7 = vmul.f32 %v1365_v57, %v1049_v3  ;;  %v1051_v9 = vld [vmem:[#allocation2 + $0x38] sm:$0xff] }
 0x180   : > { %v1061_v63 = vmul.f32 %v1365_v57, %v1045_v60  ;;  %v1048_v2 = vld [vmem:[#allocation2 + $0x20] sm:$0xff]  ;;  %v1076_v5 = vadd.f32 %v1366_v58, %v1060_v59  ;;  %v1078_v11 = vadd.f32 %v1366_v58, %v1062_v0  ;;  %v1067_v13 = vmul.f32 %v1365_v57, %v1051_v9 }
 0x181   : > { %v1050_v4 = vld [vmem:[#allocation2 + $0x40] sm:$0xff]  ;;  %v1064_v6 = vmul.f32 %v1365_v57, %v1048_v2  ;;  %v1079_v12 = vadd.f32 %v1366_v58, %v1063_v1  ;;  %v1081_v17 = vadd.f32 %v1366_v58, %v1065_v7 }
 0x182   : > { %v1066_v8 = vmul.f32 %v1365_v57, %v1050_v4  ;;  %v1077_v10 = vadd.f32 %v1366_v58, %v1061_v63  ;;  %v1085_v15 = vmax.f32 %v1076_v5, 0.0  ;;  %v1087_v20 = vmax.f32 %v1078_v11, 0.0 }
 0x183   : > { %v1052_v14 = vld [vmem:[#allocation2 + $0x8] sm:$0xff]  ;;  %v1080_v16 = vadd.f32 %v1366_v58, %v1064_v6  ;;  %v1088_v21 = vmax.f32 %v1079_v12, 0.0  ;;  %v1083_v22 = vadd.f32 %v1366_v58, %v1067_v13  ;;  %v1090_v24 = vmax.f32 %v1081_v17, 0.0 }
 0x184   : > { %v1082_v18 = vadd.f32 %v1366_v58, %v1066_v8  ;;  %v1086_v19 = vmax.f32 %v1077_v10, 0.0  ;;  %1094 = vst [vmem:[%s1997_s15] sm:$0xff] %v1085_v15  ;;  %v1068_v26 = vmul.f32 %v1365_v57, %v1052_v14  ;;  %1096 = vst [vmem:[%s1997_s15 + $0x10] sm:$0xff] %v1087_v20 }
 0x185   : > { %v1089_v23 = vmax.f32 %v1080_v16, 0.0  ;;  %1097 = vst [vmem:[%s1997_s15 + $0x18] sm:$0xff] %v1088_v21  ;;  %v1092_v27 = vmax.f32 %v1083_v22, 0.0  ;;  %1099 = vst [vmem:[%s1997_s15 + $0x28] sm:$0xff] %v1090_v24 }
 0x186   : > { %v1091_v25 = vmax.f32 %v1082_v18, 0.0  ;;  %1095 = vst [vmem:[%s1997_s15 + $0x8] sm:$0xff] %v1086_v19  ;;  %v1084_v28 = vadd.f32 %v1366_v58, %v1068_v26 }
 0x187   : > { %1098 = vst [vmem:[%s1997_s15 + $0x20] sm:$0xff] %v1089_v23  ;;  %1101 = vst [vmem:[%s1997_s15 + $0x38] sm:$0xff] %v1092_v27 }
 0x188   : > { %1100 = vst [vmem:[%s1997_s15 + $0x30] sm:$0xff] %v1091_v25  ;;  %v1093_v29 = vmax.f32 %v1084_v28, 0.0 }
 0x18a   : > { %1102 = vst [vmem:[%s1997_s15 + $0x40] sm:$0xff] %v1093_v29 }
 0x18b PF: > { %1109 = sbr.rel (!%p1816_p12) target bundleno = 403 (0x193), region = 115  ;;  %s1367_s21 = sshll.u32 (%p1816_p12), %s1680_s22, 3  ;;  %v1159_v30 = vld [vmem:[%s1997_s15] sm:$0xff] (%p1816_p12)  ;;  %v1163_v32 = vld [vmem:[%s1997_s15 + $0x10] sm:$0xff] (%p1816_p12) }
 0x18c   : > { %s1114_s26 = scalar_lea.vmem (%p1816_p12), %s2128_s4, %s1367_s21  ;;  %v1165_v33 = vld [vmem:[%s1997_s15 + $0x18] sm:$0xff] (%p1816_p12)  ;;  %v1169_v35 = vld [vmem:[%s1997_s15 + $0x28] sm:$0xff] (%p1816_p12) }
 0x18d   : > { %v1161_v31 = vld [vmem:[%s1997_s15 + $0x8] sm:$0xff] (%p1816_p12)  ;;  %1160 = vst [vmem:[%s1114_s26] sm:$0xff] (%p1816_p12), %v1159_v30  ;;  %1164 = vst [vmem:[%s1114_s26 + $0x20] sm:$0xff] (%p1816_p12), %v1163_v32 }
 0x18e   : > { %v1167_v34 = vld [vmem:[%s1997_s15 + $0x20] sm:$0xff] (%p1816_p12)  ;;  %1162 = vst [vmem:[%s1114_s26 + $0x10] sm:$0xff] (%p1816_p12), %v1161_v31  ;;  %1166 = vst [vmem:[%s1114_s26 + $0x30] sm:$0xff] (%p1816_p12), %v1165_v33  ;;  %v1173_v37 = vld [vmem:[%s1997_s15 + $0x38] sm:$0xff] (%p1816_p12) }
 0x18f   : > { %1168 = vst [vmem:[%s1114_s26 + $0x40] sm:$0xff] (%p1816_p12), %v1167_v34  ;;  %1170 = vst [vmem:[%s1114_s26 + $0x50] sm:$0xff] (%p1816_p12), %v1169_v35  ;;  %v1171_v36 = vld [vmem:[%s1997_s15 + $0x30] sm:$0xff] (%p1816_p12) }
 0x190   : > { %1172 = vst [vmem:[%s1114_s26 + $0x60] sm:$0xff] %v1171_v36  ;;  %1174 = vst [vmem:[%s1114_s26 + $0x70] sm:$0xff] %v1173_v37 }
 0x191   : > { %v1175_v38 = vld [vmem:[%s1997_s15 + $0x40] sm:$0xff] }
 0x192   : > { %1176 = vst [vmem:[%s1114_s26 + $0x80] sm:$0xff] %v1175_v38 }
 0x193 PF: > { %s14_s25 = sadd.s32 1, %s1692_s25   ;;  %s2142_s22 = sld [smem:[#allocation6_spill]] }
 0x194   : > { %p11_p6 = scmp.ge.s32.totalorder %s14_s25, 20   ;;  %s2143_s14 = sld [smem:[#allocation7_spill]] }
 0x195   : > { %s2144_s24 = sld [smem:[#allocation8_spill]]  ;;  %s2145_s15 = smov %s1656_s16 }
 0x196   : > { %s2146_s16 = smov %s1814_s13  ;;  %s2147_s17 = smov %s1664_s18 }
 0x197   : > { %s2148_s18 = smov %s1811_s12  ;;  %s2149_s19 = smov %s1672_s20 }
 0x198   : > { %s2150_s20 = smov %s1797_s7  ;;  %s2151_s21 = smov %s1684_s23 }
 0x199   :  { %13 = sbr.rel (!%p11_p6) target bundleno = 9 (0x9), region = 204 }
 0x19a   : > { %s2152_s23 = smov %s2143_s14 }

// kernel: forward.12
= control target key start
LH: loop header
LB: loop body
LE: loop exit
PB: predicated region body
PF: predicated region fallthrough
CT: control target
= control target key end

     0   :  { %s3004_s15 = smov 0   ;;  %s3006_s16 = smov 0   ;;  %s3742_s0 = inlined_call_operand.vmem [shape: bf16[8,2304], index: 0, kind: input, shape index: {}]   ;;  %s3743_s1 = inlined_call_operand.vmem [shape: bf16[2304,4096], index: 1, kind: input, shape index: {}]   ;;  %s3744_s2 = inlined_call_operand.vmem [shape: f32[1,4096], index: 2, kind: input, shape index: {}]   ;;  %s3745_s3 = inlined_call_operand.vmem [shape: f32[1,4096], index: 3, kind: input, shape index: {}]   ;;  %s3746_s4 = inlined_call_operand.vmem [shape: f32[8,4096], index: 4, kind: output, shape index: {}]  }
   0x1   :  { %s3008_s17 = smov 0   ;;  %s3010_s18 = smov 0  }
   0x2   :  { %s3012_s19 = smov 0   ;;  %s3014_s20 = smov 0  }
   0x3   :  { %s3016_s21 = smov 0  }
   0x4 LB: > { %s26_s22 = sadd.s32 1, %s2968_s19  ;;  %s29_s23 = sadd.s32 1, %s2972_s20  ;;  %s2976_s21 = sphi %s3016_s21, %s14_s21   ;;  %s2972_s20 = sphi %s3014_s20, %s3752_s20   ;;  %s2968_s19 = sphi %s3012_s19, %s3751_s19   ;;  %s2964_s18 = sphi %s3010_s18, %s3750_s18   ;;  %s2960_s17 = sphi %s3008_s17, %s3749_s17   ;;  %s2956_s16 = sphi %s3006_s16, %s3748_s16   ;;  %s2952_s15 = sphi %s3004_s15, %s3747_s15  }
   0x5   : > { %p27_p0 = scmp.ge.s32.totalorder %s26_s22, 3  ;;  %p77_p1 = scmp.ne.s32.totalorder %s2956_s16, %s2952_s15 }
   0x6   : > { %p78_p2 = scmp.eq.s32.totalorder %s2976_s21, 0  ;;  %s70_s27 = sadd.s32 1, %s2956_s16 }
   0x7   : > { %s3754_s22 = smov (%p27_p0, %s26_s22), 0  ;;  %s3756_s23 = smov (!%p27_p0, %s29_s23), %s2972_s20 }
   0x8   : > { %p79_p3 = por %p78_p2, %p77_p1  ;;  %p31_p4 = scmp.ge.s32.totalorder %s3756_s23, 8 }
   0x9   : > { %s65_s24 = ssub.s32 %s2968_s19, %s3754_s22  ;;  %p2356_p6 = scmp.ge.s32.totalorder %s2976_s21, 24 }
   0xa   : > { %s3758_s23 = smov (%p31_p4, %s3756_s23), 0 }
   0xb   : > { %s66_s25 = ssub.s32 %s2972_s20, %s3758_s23  ;;  %183 = sbr.rel (%p2356_p6) target bundleno = 120 (0x78), region = 16 }
   0xc   : > { %s67_s26 = sor.u32 %s66_s25, %s65_s24 }
   0xd   : > { %p68_p5 = scmp.eq.s32.totalorder %s67_s26, 0 }
   0xf   : > { %s3055_s28 = scalar_select %p68_p5, %s2956_s16, %s70_s27  }
  0x10   : > { %199 = sbr.rel (!%p79_p3) target bundleno = 120 (0x78), region = 24  ;;  %s201_s29 = sand.u32 (%p79_p3), 1, %s2956_s16  }
  0x11   : > { %s2569_s30 = smul.u32 (%p79_p3), 1536, %s201_s29  ;;  %s2357_s5 = sshll.u32 (%p79_p3), %s2972_s20, 2 }
  0x12   : > { %s2568_s6 = smul.u32 (%p79_p3), 3072, %s2968_s19 }
  0x13   : > { %s3069_s12 = scalar_lea.vmem (%p79_p3), [#allocation3], %s2569_s30 }
  0x14   : > { %s207_s7 = sadd.s32 (%p79_p3), %s2568_s6, %s2357_s5 }
  0x15   : > { %s2359_s8 = sshll.u32 %s207_s7, 2 }
  0x16   : > { %s3064_s11 = scalar_lea.vmem %s3743_s1, %s2359_s8 }
  0x17   : > { %v222_v0 = vld [vmem:[%s3064_s11] sm:$0xff]  ;;  %v224_v1 = vld [vmem:[%s3064_s11 + $0x8] sm:$0xff] }
  0x18   : > { %v226_v2 = vld [vmem:[%s3064_s11 + $0x80] sm:$0xff]  ;;  %223 = vst [vmem:[%s3069_s12] sm:$0xff] %v222_v0  ;;  %225 = vst [vmem:[%s3069_s12 + $0x8] sm:$0xff] %v224_v1  ;;  %v228_v3 = vld [vmem:[%s3064_s11 + $0x88] sm:$0xff] }
  0x19   : > { %227 = vst [vmem:[%s3069_s12 + $0x10] sm:$0xff] %v226_v2  ;;  %v230_v4 = vld [vmem:[%s3064_s11 + $0x100] sm:$0xff]  ;;  %v232_v5 = vld [vmem:[%s3064_s11 + $0x108] sm:$0xff]  ;;  %229 = vst [vmem:[%s3069_s12 + $0x18] sm:$0xff] %v228_v3 }
  0x1a   : > { %231 = vst [vmem:[%s3069_s12 + $0x20] sm:$0xff] %v230_v4  ;;  %233 = vst [vmem:[%s3069_s12 + $0x28] sm:$0xff] %v232_v5  ;;  %v234_v6 = vld [vmem:[%s3064_s11 + $0x180] sm:$0xff]  ;;  %v236_v7 = vld [vmem:[%s3064_s11 + $0x188] sm:$0xff] }
  0x1b   : > { %v238_v8 = vld [vmem:[%s3064_s11 + $0x200] sm:$0xff]  ;;  %235 = vst [vmem:[%s3069_s12 + $0x30] sm:$0xff] %v234_v6  ;;  %237 = vst [vmem:[%s3069_s12 + $0x38] sm:$0xff] %v236_v7  ;;  %v240_v9 = vld [vmem:[%s3064_s11 + $0x208] sm:$0xff] }
  0x1c   : > { %239 = vst [vmem:[%s3069_s12 + $0x40] sm:$0xff] %v238_v8  ;;  %v242_v10 = vld [vmem:[%s3064_s11 + $0x280] sm:$0xff]  ;;  %v244_v11 = vld [vmem:[%s3064_s11 + $0x288] sm:$0xff]  ;;  %241 = vst [vmem:[%s3069_s12 + $0x48] sm:$0xff] %v240_v9 }
  0x1d   : > { %243 = vst [vmem:[%s3069_s12 + $0x50] sm:$0xff] %v242_v10  ;;  %245 = vst [vmem:[%s3069_s12 + $0x58] sm:$0xff] %v244_v11  ;;  %v246_v12 = vld [vmem:[%s3064_s11 + $0x300] sm:$0xff]  ;;  %v248_v13 = vld [vmem:[%s3064_s11 + $0x308] sm:$0xff] }
  0x1e   : > { %v250_v14 = vld [vmem:[%s3064_s11 + $0x380] sm:$0xff]  ;;  %247 = vst [vmem:[%s3069_s12 + $0x60] sm:$0xff] %v246_v12  ;;  %249 = vst [vmem:[%s3069_s12 + $0x68] sm:$0xff] %v248_v13  ;;  %v252_v15 = vld [vmem:[%s3064_s11 + $0x388] sm:$0xff] }
  0x1f   : > { %251 = vst [vmem:[%s3069_s12 + $0x70] sm:$0xff] %v250_v14  ;;  %v254_v16 = vld [vmem:[%s3064_s11 + $0x400] sm:$0xff]  ;;  %v256_v17 = vld [vmem:[%s3064_s11 + $0x408] sm:$0xff]  ;;  %253 = vst [vmem:[%s3069_s12 + $0x78] sm:$0xff] %v252_v15 }
  0x20   : > { %255 = vst [vmem:[%s3069_s12 + $0x80] sm:$0xff] %v254_v16  ;;  %257 = vst [vmem:[%s3069_s12 + $0x88] sm:$0xff] %v256_v17  ;;  %v258_v18 = vld [vmem:[%s3064_s11 + $0x480] sm:$0xff]  ;;  %v260_v19 = vld [vmem:[%s3064_s11 + $0x488] sm:$0xff] }
  0x21   : > { %v262_v20 = vld [vmem:[%s3064_s11 + $0x500] sm:$0xff]  ;;  %259 = vst [vmem:[%s3069_s12 + $0x90] sm:$0xff] %v258_v18  ;;  %261 = vst [vmem:[%s3069_s12 + $0x98] sm:$0xff] %v260_v19  ;;  %v264_v21 = vld [vmem:[%s3064_s11 + $0x508] sm:$0xff] }
  0x22   : > { %263 = vst [vmem:[%s3069_s12 + $0xa0] sm:$0xff] %v262_v20  ;;  %v266_v22 = vld [vmem:[%s3064_s11 + $0x580] sm:$0xff]  ;;  %v268_v23 = vld [vmem:[%s3064_s11 + $0x588] sm:$0xff]  ;;  %265 = vst [vmem:[%s3069_s12 + $0xa8] sm:$0xff] %v264_v21 }
  0x23   : > { %267 = vst [vmem:[%s3069_s12 + $0xb0] sm:$0xff] %v266_v22  ;;  %269 = vst [vmem:[%s3069_s12 + $0xb8] sm:$0xff] %v268_v23  ;;  %v270_v24 = vld [vmem:[%s3064_s11 + $0x600] sm:$0xff]  ;;  %v272_v25 = vld [vmem:[%s3064_s11 + $0x608] sm:$0xff] }
  0x24   : > { %v274_v26 = vld [vmem:[%s3064_s11 + $0x680] sm:$0xff]  ;;  %271 = vst [vmem:[%s3069_s12 + $0xc0] sm:$0xff] %v270_v24  ;;  %273 = vst [vmem:[%s3069_s12 + $0xc8] sm:$0xff] %v272_v25  ;;  %v276_v27 = vld [vmem:[%s3064_s11 + $0x688] sm:$0xff] }
  0x25   : > { %275 = vst [vmem:[%s3069_s12 + $0xd0] sm:$0xff] %v274_v26  ;;  %v278_v28 = vld [vmem:[%s3064_s11 + $0x700] sm:$0xff]  ;;  %v280_v29 = vld [vmem:[%s3064_s11 + $0x708] sm:$0xff]  ;;  %277 = vst [vmem:[%s3069_s12 + $0xd8] sm:$0xff] %v276_v27 }
  0x26   : > { %279 = vst [vmem:[%s3069_s12 + $0xe0] sm:$0xff] %v278_v28  ;;  %281 = vst [vmem:[%s3069_s12 + $0xe8] sm:$0xff] %v280_v29  ;;  %v282_v30 = vld [vmem:[%s3064_s11 + $0x780] sm:$0xff]  ;;  %v284_v31 = vld [vmem:[%s3064_s11 + $0x788] sm:$0xff] }
  0x27   : > { %v286_v32 = vld [vmem:[%s3064_s11 + $0x800] sm:$0xff]  ;;  %283 = vst [vmem:[%s3069_s12 + $0xf0] sm:$0xff] %v282_v30  ;;  %285 = vst [vmem:[%s3069_s12 + $0xf8] sm:$0xff] %v284_v31  ;;  %v288_v33 = vld [vmem:[%s3064_s11 + $0x808] sm:$0xff] }
  0x28   : > { %287 = vst [vmem:[%s3069_s12 + $0x100] sm:$0xff] %v286_v32  ;;  %v290_v34 = vld [vmem:[%s3064_s11 + $0x880] sm:$0xff]  ;;  %v292_v35 = vld [vmem:[%s3064_s11 + $0x888] sm:$0xff]  ;;  %289 = vst [vmem:[%s3069_s12 + $0x108] sm:$0xff] %v288_v33 }
  0x29   : > { %291 = vst [vmem:[%s3069_s12 + $0x110] sm:$0xff] %v290_v34  ;;  %293 = vst [vmem:[%s3069_s12 + $0x118] sm:$0xff] %v292_v35  ;;  %v294_v36 = vld [vmem:[%s3064_s11 + $0x900] sm:$0xff]  ;;  %v296_v37 = vld [vmem:[%s3064_s11 + $0x908] sm:$0xff] }
  0x2a   : > { %v298_v38 = vld [vmem:[%s3064_s11 + $0x980] sm:$0xff]  ;;  %295 = vst [vmem:[%s3069_s12 + $0x120] sm:$0xff] %v294_v36  ;;  %297 = vst [vmem:[%s3069_s12 + $0x128] sm:$0xff] %v296_v37  ;;  %v300_v39 = vld [vmem:[%s3064_s11 + $0x988] sm:$0xff] }
  0x2b   : > { %299 = vst [vmem:[%s3069_s12 + $0x130] sm:$0xff] %v298_v38  ;;  %v302_v40 = vld [vmem:[%s3064_s11 + $0xa00] sm:$0xff]  ;;  %v304_v41 = vld [vmem:[%s3064_s11 + $0xa08] sm:$0xff]  ;;  %301 = vst [vmem:[%s3069_s12 + $0x138] sm:$0xff] %v300_v39 }
  0x2c   : > { %303 = vst [vmem:[%s3069_s12 + $0x140] sm:$0xff] %v302_v40  ;;  %305 = vst [vmem:[%s3069_s12 + $0x148] sm:$0xff] %v304_v41  ;;  %v306_v42 = vld [vmem:[%s3064_s11 + $0xa80] sm:$0xff]  ;;  %v308_v43 = vld [vmem:[%s3064_s11 + $0xa88] sm:$0xff] }
  0x2d   : > { %v310_v44 = vld [vmem:[%s3064_s11 + $0xb00] sm:$0xff]  ;;  %307 = vst [vmem:[%s3069_s12 + $0x150] sm:$0xff] %v306_v42  ;;  %309 = vst [vmem:[%s3069_s12 + $0x158] sm:$0xff] %v308_v43  ;;  %v312_v45 = vld [vmem:[%s3064_s11 + $0xb08] sm:$0xff] }
  0x2e   : > { %311 = vst [vmem:[%s3069_s12 + $0x160] sm:$0xff] %v310_v44  ;;  %v314_v46 = vld [vmem:[%s3064_s11 + $0xb80] sm:$0xff]  ;;  %v316_v47 = vld [vmem:[%s3064_s11 + $0xb88] sm:$0xff]  ;;  %313 = vst [vmem:[%s3069_s12 + $0x168] sm:$0xff] %v312_v45 }
  0x2f   : > { %315 = vst [vmem:[%s3069_s12 + $0x170] sm:$0xff] %v314_v46  ;;  %317 = vst [vmem:[%s3069_s12 + $0x178] sm:$0xff] %v316_v47  ;;  %v318_v48 = vld [vmem:[%s3064_s11 + $0xc00] sm:$0xff]  ;;  %v320_v49 = vld [vmem:[%s3064_s11 + $0xc08] sm:$0xff] }
  0x30   : > { %v322_v50 = vld [vmem:[%s3064_s11 + $0xc80] sm:$0xff]  ;;  %319 = vst [vmem:[%s3069_s12 + $0x180] sm:$0xff] %v318_v48  ;;  %321 = vst [vmem:[%s3069_s12 + $0x188] sm:$0xff] %v320_v49  ;;  %v324_v51 = vld [vmem:[%s3064_s11 + $0xc88] sm:$0xff] }
  0x31   : > { %323 = vst [vmem:[%s3069_s12 + $0x190] sm:$0xff] %v322_v50  ;;  %v326_v52 = vld [vmem:[%s3064_s11 + $0xd00] sm:$0xff]  ;;  %v328_v53 = vld [vmem:[%s3064_s11 + $0xd08] sm:$0xff]  ;;  %325 = vst [vmem:[%s3069_s12 + $0x198] sm:$0xff] %v324_v51 }
  0x32   : > { %327 = vst [vmem:[%s3069_s12 + $0x1a0] sm:$0xff] %v326_v52  ;;  %329 = vst [vmem:[%s3069_s12 + $0x1a8] sm:$0xff] %v328_v53  ;;  %v330_v54 = vld [vmem:[%s3064_s11 + $0xd80] sm:$0xff]  ;;  %v332_v55 = vld [vmem:[%s3064_s11 + $0xd88] sm:$0xff] }
  0x33   : > { %v334_v56 = vld [vmem:[%s3064_s11 + $0xe00] sm:$0xff]  ;;  %331 = vst [vmem:[%s3069_s12 + $0x1b0] sm:$0xff] %v330_v54  ;;  %333 = vst [vmem:[%s3069_s12 + $0x1b8] sm:$0xff] %v332_v55  ;;  %v336_v57 = vld [vmem:[%s3064_s11 + $0xe08] sm:$0xff] }
  0x34   : > { %335 = vst [vmem:[%s3069_s12 + $0x1c0] sm:$0xff] %v334_v56  ;;  %v338_v58 = vld [vmem:[%s3064_s11 + $0xe80] sm:$0xff]  ;;  %v340_v59 = vld [vmem:[%s3064_s11 + $0xe88] sm:$0xff]  ;;  %337 = vst [vmem:[%s3069_s12 + $0x1c8] sm:$0xff] %v336_v57 }
  0x35   : > { %339 = vst [vmem:[%s3069_s12 + $0x1d0] sm:$0xff] %v338_v58  ;;  %341 = vst [vmem:[%s3069_s12 + $0x1d8] sm:$0xff] %v340_v59  ;;  %v342_v60 = vld [vmem:[%s3064_s11 + $0xf00] sm:$0xff]  ;;  %v344_v61 = vld [vmem:[%s3064_s11 + $0xf08] sm:$0xff] }
  0x36   : > { %v346_v62 = vld [vmem:[%s3064_s11 + $0xf80] sm:$0xff]  ;;  %343 = vst [vmem:[%s3069_s12 + $0x1e0] sm:$0xff] %v342_v60  ;;  %345 = vst [vmem:[%s3069_s12 + $0x1e8] sm:$0xff] %v344_v61  ;;  %v348_v63 = vld [vmem:[%s3064_s11 + $0xf88] sm:$0xff] }
  0x37   : > { %347 = vst [vmem:[%s3069_s12 + $0x1f0] sm:$0xff] %v346_v62  ;;  %v350_v0 = vld [vmem:[%s3064_s11 + $0x1000] sm:$0xff]  ;;  %v352_v1 = vld [vmem:[%s3064_s11 + $0x1008] sm:$0xff]  ;;  %349 = vst [vmem:[%s3069_s12 + $0x1f8] sm:$0xff] %v348_v63 }
  0x38   : > { %351 = vst [vmem:[%s3069_s12 + $0x200] sm:$0xff] %v350_v0  ;;  %353 = vst [vmem:[%s3069_s12 + $0x208] sm:$0xff] %v352_v1  ;;  %v354_v2 = vld [vmem:[%s3064_s11 + $0x1080] sm:$0xff]  ;;  %v356_v3 = vld [vmem:[%s3064_s11 + $0x1088] sm:$0xff] }
  0x39   : > { %v358_v4 = vld [vmem:[%s3064_s11 + $0x1100] sm:$0xff]  ;;  %355 = vst [vmem:[%s3069_s12 + $0x210] sm:$0xff] %v354_v2  ;;  %357 = vst [vmem:[%s3069_s12 + $0x218] sm:$0xff] %v356_v3  ;;  %v360_v5 = vld [vmem:[%s3064_s11 + $0x1108] sm:$0xff] }
  0x3a   : > { %359 = vst [vmem:[%s3069_s12 + $0x220] sm:$0xff] %v358_v4  ;;  %v362_v6 = vld [vmem:[%s3064_s11 + $0x1180] sm:$0xff]  ;;  %v364_v7 = vld [vmem:[%s3064_s11 + $0x1188] sm:$0xff]  ;;  %361 = vst [vmem:[%s3069_s12 + $0x228] sm:$0xff] %v360_v5 }
  0x3b   : > { %363 = vst [vmem:[%s3069_s12 + $0x230] sm:$0xff] %v362_v6  ;;  %365 = vst [vmem:[%s3069_s12 + $0x238] sm:$0xff] %v364_v7  ;;  %v366_v8 = vld [vmem:[%s3064_s11 + $0x1200] sm:$0xff]  ;;  %v368_v9 = vld [vmem:[%s3064_s11 + $0x1208] sm:$0xff] }
  0x3c   : > { %v370_v10 = vld [vmem:[%s3064_s11 + $0x1280] sm:$0xff]  ;;  %367 = vst [vmem:[%s3069_s12 + $0x240] sm:$0xff] %v366_v8  ;;  %369 = vst [vmem:[%s3069_s12 + $0x248] sm:$0xff] %v368_v9  ;;  %v372_v11 = vld [vmem:[%s3064_s11 + $0x1288] sm:$0xff] }
  0x3d   : > { %371 = vst [vmem:[%s3069_s12 + $0x250] sm:$0xff] %v370_v10  ;;  %v374_v12 = vld [vmem:[%s3064_s11 + $0x1300] sm:$0xff]  ;;  %v376_v13 = vld [vmem:[%s3064_s11 + $0x1308] sm:$0xff]  ;;  %373 = vst [vmem:[%s3069_s12 + $0x258] sm:$0xff] %v372_v11 }
  0x3e   : > { %375 = vst [vmem:[%s3069_s12 + $0x260] sm:$0xff] %v374_v12  ;;  %377 = vst [vmem:[%s3069_s12 + $0x268] sm:$0xff] %v376_v13  ;;  %v378_v14 = vld [vmem:[%s3064_s11 + $0x1380] sm:$0xff]  ;;  %v380_v15 = vld [vmem:[%s3064_s11 + $0x1388] sm:$0xff] }
  0x3f   : > { %v382_v16 = vld [vmem:[%s3064_s11 + $0x1400] sm:$0xff]  ;;  %379 = vst [vmem:[%s3069_s12 + $0x270] sm:$0xff] %v378_v14  ;;  %381 = vst [vmem:[%s3069_s12 + $0x278] sm:$0xff] %v380_v15  ;;  %v384_v17 = vld [vmem:[%s3064_s11 + $0x1408] sm:$0xff] }
  0x40   : > { %383 = vst [vmem:[%s3069_s12 + $0x280] sm:$0xff] %v382_v16  ;;  %v386_v18 = vld [vmem:[%s3064_s11 + $0x1480] sm:$0xff]  ;;  %v388_v19 = vld [vmem:[%s3064_s11 + $0x1488] sm:$0xff]  ;;  %385 = vst [vmem:[%s3069_s12 + $0x288] sm:$0xff] %v384_v17 }
  0x41   : > { %387 = vst [vmem:[%s3069_s12 + $0x290] sm:$0xff] %v386_v18  ;;  %389 = vst [vmem:[%s3069_s12 + $0x298] sm:$0xff] %v388_v19  ;;  %v390_v20 = vld [vmem:[%s3064_s11 + $0x1500] sm:$0xff]  ;;  %v392_v21 = vld [vmem:[%s3064_s11 + $0x1508] sm:$0xff] }
  0x42   : > { %v394_v22 = vld [vmem:[%s3064_s11 + $0x1580] sm:$0xff]  ;;  %391 = vst [vmem:[%s3069_s12 + $0x2a0] sm:$0xff] %v390_v20  ;;  %393 = vst [vmem:[%s3069_s12 + $0x2a8] sm:$0xff] %v392_v21  ;;  %v396_v23 = vld [vmem:[%s3064_s11 + $0x1588] sm:$0xff] }
  0x43   : > { %395 = vst [vmem:[%s3069_s12 + $0x2b0] sm:$0xff] %v394_v22  ;;  %v398_v24 = vld [vmem:[%s3064_s11 + $0x1600] sm:$0xff]  ;;  %v400_v25 = vld [vmem:[%s3064_s11 + $0x1608] sm:$0xff]  ;;  %397 = vst [vmem:[%s3069_s12 + $0x2b8] sm:$0xff] %v396_v23 }
  0x44   : > { %399 = vst [vmem:[%s3069_s12 + $0x2c0] sm:$0xff] %v398_v24  ;;  %401 = vst [vmem:[%s3069_s12 + $0x2c8] sm:$0xff] %v400_v25  ;;  %v402_v26 = vld [vmem:[%s3064_s11 + $0x1680] sm:$0xff]  ;;  %v404_v27 = vld [vmem:[%s3064_s11 + $0x1688] sm:$0xff] }
  0x45   : > { %v406_v28 = vld [vmem:[%s3064_s11 + $0x1700] sm:$0xff]  ;;  %403 = vst [vmem:[%s3069_s12 + $0x2d0] sm:$0xff] %v402_v26  ;;  %405 = vst [vmem:[%s3069_s12 + $0x2d8] sm:$0xff] %v404_v27  ;;  %v408_v29 = vld [vmem:[%s3064_s11 + $0x1708] sm:$0xff] }
  0x46   : > { %407 = vst [vmem:[%s3069_s12 + $0x2e0] sm:$0xff] %v406_v28  ;;  %v410_v30 = vld [vmem:[%s3064_s11 + $0x1780] sm:$0xff]  ;;  %v412_v31 = vld [vmem:[%s3064_s11 + $0x1788] sm:$0xff]  ;;  %409 = vst [vmem:[%s3069_s12 + $0x2e8] sm:$0xff] %v408_v29 }
  0x47   : > { %411 = vst [vmem:[%s3069_s12 + $0x2f0] sm:$0xff] %v410_v30  ;;  %413 = vst [vmem:[%s3069_s12 + $0x2f8] sm:$0xff] %v412_v31  ;;  %v414_v32 = vld [vmem:[%s3064_s11 + $0x1800] sm:$0xff]  ;;  %v416_v33 = vld [vmem:[%s3064_s11 + $0x1808] sm:$0xff] }
  0x48   : > { %v418_v34 = vld [vmem:[%s3064_s11 + $0x1880] sm:$0xff]  ;;  %415 = vst [vmem:[%s3069_s12 + $0x300] sm:$0xff] %v414_v32  ;;  %417 = vst [vmem:[%s3069_s12 + $0x308] sm:$0xff] %v416_v33  ;;  %v420_v35 = vld [vmem:[%s3064_s11 + $0x1888] sm:$0xff] }
  0x49   : > { %419 = vst [vmem:[%s3069_s12 + $0x310] sm:$0xff] %v418_v34  ;;  %v422_v36 = vld [vmem:[%s3064_s11 + $0x1900] sm:$0xff]  ;;  %v424_v37 = vld [vmem:[%s3064_s11 + $0x1908] sm:$0xff]  ;;  %421 = vst [vmem:[%s3069_s12 + $0x318] sm:$0xff] %v420_v35 }
  0x4a   : > { %423 = vst [vmem:[%s3069_s12 + $0x320] sm:$0xff] %v422_v36  ;;  %425 = vst [vmem:[%s3069_s12 + $0x328] sm:$0xff] %v424_v37  ;;  %v426_v38 = vld [vmem:[%s3064_s11 + $0x1980] sm:$0xff]  ;;  %v428_v39 = vld [vmem:[%s3064_s11 + $0x1988] sm:$0xff] }
  0x4b   : > { %v430_v40 = vld [vmem:[%s3064_s11 + $0x1a00] sm:$0xff]  ;;  %427 = vst [vmem:[%s3069_s12 + $0x330] sm:$0xff] %v426_v38  ;;  %429 = vst [vmem:[%s3069_s12 + $0x338] sm:$0xff] %v428_v39  ;;  %v432_v41 = vld [vmem:[%s3064_s11 + $0x1a08] sm:$0xff] }
  0x4c   : > { %431 = vst [vmem:[%s3069_s12 + $0x340] sm:$0xff] %v430_v40  ;;  %v434_v42 = vld [vmem:[%s3064_s11 + $0x1a80] sm:$0xff]  ;;  %v436_v43 = vld [vmem:[%s3064_s11 + $0x1a88] sm:$0xff]  ;;  %433 = vst [vmem:[%s3069_s12 + $0x348] sm:$0xff] %v432_v41 }
  0x4d   : > { %435 = vst [vmem:[%s3069_s12 + $0x350] sm:$0xff] %v434_v42  ;;  %437 = vst [vmem:[%s3069_s12 + $0x358] sm:$0xff] %v436_v43  ;;  %v438_v44 = vld [vmem:[%s3064_s11 + $0x1b00] sm:$0xff]  ;;  %v440_v45 = vld [vmem:[%s3064_s11 + $0x1b08] sm:$0xff] }
  0x4e   : > { %v442_v46 = vld [vmem:[%s3064_s11 + $0x1b80] sm:$0xff]  ;;  %439 = vst [vmem:[%s3069_s12 + $0x360] sm:$0xff] %v438_v44  ;;  %441 = vst [vmem:[%s3069_s12 + $0x368] sm:$0xff] %v440_v45  ;;  %v444_v47 = vld [vmem:[%s3064_s11 + $0x1b88] sm:$0xff] }
  0x4f   : > { %443 = vst [vmem:[%s3069_s12 + $0x370] sm:$0xff] %v442_v46  ;;  %v446_v48 = vld [vmem:[%s3064_s11 + $0x1c00] sm:$0xff]  ;;  %v448_v49 = vld [vmem:[%s3064_s11 + $0x1c08] sm:$0xff]  ;;  %445 = vst [vmem:[%s3069_s12 + $0x378] sm:$0xff] %v444_v47 }
  0x50   : > { %447 = vst [vmem:[%s3069_s12 + $0x380] sm:$0xff] %v446_v48  ;;  %449 = vst [vmem:[%s3069_s12 + $0x388] sm:$0xff] %v448_v49  ;;  %v450_v50 = vld [vmem:[%s3064_s11 + $0x1c80] sm:$0xff]  ;;  %v452_v51 = vld [vmem:[%s3064_s11 + $0x1c88] sm:$0xff] }
  0x51   : > { %v454_v52 = vld [vmem:[%s3064_s11 + $0x1d00] sm:$0xff]  ;;  %451 = vst [vmem:[%s3069_s12 + $0x390] sm:$0xff] %v450_v50  ;;  %453 = vst [vmem:[%s3069_s12 + $0x398] sm:$0xff] %v452_v51  ;;  %v456_v53 = vld [vmem:[%s3064_s11 + $0x1d08] sm:$0xff] }
  0x52   : > { %455 = vst [vmem:[%s3069_s12 + $0x3a0] sm:$0xff] %v454_v52  ;;  %v458_v54 = vld [vmem:[%s3064_s11 + $0x1d80] sm:$0xff]  ;;  %v460_v55 = vld [vmem:[%s3064_s11 + $0x1d88] sm:$0xff]  ;;  %457 = vst [vmem:[%s3069_s12 + $0x3a8] sm:$0xff] %v456_v53 }
  0x53   : > { %459 = vst [vmem:[%s3069_s12 + $0x3b0] sm:$0xff] %v458_v54  ;;  %461 = vst [vmem:[%s3069_s12 + $0x3b8] sm:$0xff] %v460_v55  ;;  %v462_v56 = vld [vmem:[%s3064_s11 + $0x1e00] sm:$0xff]  ;;  %v464_v57 = vld [vmem:[%s3064_s11 + $0x1e08] sm:$0xff] }
  0x54   : > { %v466_v58 = vld [vmem:[%s3064_s11 + $0x1e80] sm:$0xff]  ;;  %463 = vst [vmem:[%s3069_s12 + $0x3c0] sm:$0xff] %v462_v56  ;;  %465 = vst [vmem:[%s3069_s12 + $0x3c8] sm:$0xff] %v464_v57  ;;  %v468_v59 = vld [vmem:[%s3064_s11 + $0x1e88] sm:$0xff] }
  0x55   : > { %467 = vst [vmem:[%s3069_s12 + $0x3d0] sm:$0xff] %v466_v58  ;;  %v470_v60 = vld [vmem:[%s3064_s11 + $0x1f00] sm:$0xff]  ;;  %v472_v61 = vld [vmem:[%s3064_s11 + $0x1f08] sm:$0xff]  ;;  %469 = vst [vmem:[%s3069_s12 + $0x3d8] sm:$0xff] %v468_v59 }
  0x56   : > { %471 = vst [vmem:[%s3069_s12 + $0x3e0] sm:$0xff] %v470_v60  ;;  %473 = vst [vmem:[%s3069_s12 + $0x3e8] sm:$0xff] %v472_v61  ;;  %v474_v62 = vld [vmem:[%s3064_s11 + $0x1f80] sm:$0xff]  ;;  %v476_v63 = vld [vmem:[%s3064_s11 + $0x1f88] sm:$0xff] }
  0x57   : > { %v478_v0 = vld [vmem:[%s3064_s11 + $0x2000] sm:$0xff]  ;;  %475 = vst [vmem:[%s3069_s12 + $0x3f0] sm:$0xff] %v474_v62  ;;  %477 = vst [vmem:[%s3069_s12 + $0x3f8] sm:$0xff] %v476_v63  ;;  %v480_v1 = vld [vmem:[%s3064_s11 + $0x2008] sm:$0xff] }
  0x58   : > { %479 = vst [vmem:[%s3069_s12 + $0x400] sm:$0xff] %v478_v0  ;;  %v482_v2 = vld [vmem:[%s3064_s11 + $0x2080] sm:$0xff]  ;;  %v484_v3 = vld [vmem:[%s3064_s11 + $0x2088] sm:$0xff]  ;;  %481 = vst [vmem:[%s3069_s12 + $0x408] sm:$0xff] %v480_v1 }
  0x59   : > { %483 = vst [vmem:[%s3069_s12 + $0x410] sm:$0xff] %v482_v2  ;;  %485 = vst [vmem:[%s3069_s12 + $0x418] sm:$0xff] %v484_v3  ;;  %v486_v4 = vld [vmem:[%s3064_s11 + $0x2100] sm:$0xff]  ;;  %v488_v5 = vld [vmem:[%s3064_s11 + $0x2108] sm:$0xff] }
  0x5a   : > { %v490_v6 = vld [vmem:[%s3064_s11 + $0x2180] sm:$0xff]  ;;  %487 = vst [vmem:[%s3069_s12 + $0x420] sm:$0xff] %v486_v4  ;;  %489 = vst [vmem:[%s3069_s12 + $0x428] sm:$0xff] %v488_v5  ;;  %v492_v7 = vld [vmem:[%s3064_s11 + $0x2188] sm:$0xff] }
  0x5b   : > { %491 = vst [vmem:[%s3069_s12 + $0x430] sm:$0xff] %v490_v6  ;;  %v494_v8 = vld [vmem:[%s3064_s11 + $0x2200] sm:$0xff]  ;;  %v496_v9 = vld [vmem:[%s3064_s11 + $0x2208] sm:$0xff]  ;;  %493 = vst [vmem:[%s3069_s12 + $0x438] sm:$0xff] %v492_v7 }
  0x5c   : > { %495 = vst [vmem:[%s3069_s12 + $0x440] sm:$0xff] %v494_v8  ;;  %497 = vst [vmem:[%s3069_s12 + $0x448] sm:$0xff] %v496_v9  ;;  %v498_v10 = vld [vmem:[%s3064_s11 + $0x2280] sm:$0xff]  ;;  %v500_v11 = vld [vmem:[%s3064_s11 + $0x2288] sm:$0xff] }
  0x5d   : > { %v502_v12 = vld [vmem:[%s3064_s11 + $0x2300] sm:$0xff]  ;;  %499 = vst [vmem:[%s3069_s12 + $0x450] sm:$0xff] %v498_v10  ;;  %501 = vst [vmem:[%s3069_s12 + $0x458] sm:$0xff] %v500_v11  ;;  %v504_v13 = vld [vmem:[%s3064_s11 + $0x2308] sm:$0xff] }
  0x5e   : > { %503 = vst [vmem:[%s3069_s12 + $0x460] sm:$0xff] %v502_v12  ;;  %v506_v14 = vld [vmem:[%s3064_s11 + $0x2380] sm:$0xff]  ;;  %v508_v15 = vld [vmem:[%s3064_s11 + $0x2388] sm:$0xff]  ;;  %505 = vst [vmem:[%s3069_s12 + $0x468] sm:$0xff] %v504_v13 }
  0x5f   : > { %507 = vst [vmem:[%s3069_s12 + $0x470] sm:$0xff] %v506_v14  ;;  %509 = vst [vmem:[%s3069_s12 + $0x478] sm:$0xff] %v508_v15  ;;  %v510_v16 = vld [vmem:[%s3064_s11 + $0x2400] sm:$0xff]  ;;  %v512_v17 = vld [vmem:[%s3064_s11 + $0x2408] sm:$0xff] }
  0x60   : > { %v514_v18 = vld [vmem:[%s3064_s11 + $0x2480] sm:$0xff]  ;;  %511 = vst [vmem:[%s3069_s12 + $0x480] sm:$0xff] %v510_v16  ;;  %513 = vst [vmem:[%s3069_s12 + $0x488] sm:$0xff] %v512_v17  ;;  %v516_v19 = vld [vmem:[%s3064_s11 + $0x2488] sm:$0xff] }
  0x61   : > { %515 = vst [vmem:[%s3069_s12 + $0x490] sm:$0xff] %v514_v18  ;;  %v518_v20 = vld [vmem:[%s3064_s11 + $0x2500] sm:$0xff]  ;;  %v520_v21 = vld [vmem:[%s3064_s11 + $0x2508] sm:$0xff]  ;;  %517 = vst [vmem:[%s3069_s12 + $0x498] sm:$0xff] %v516_v19 }
  0x62   : > { %519 = vst [vmem:[%s3069_s12 + $0x4a0] sm:$0xff] %v518_v20  ;;  %521 = vst [vmem:[%s3069_s12 + $0x4a8] sm:$0xff] %v520_v21  ;;  %v522_v22 = vld [vmem:[%s3064_s11 + $0x2580] sm:$0xff]  ;;  %v524_v23 = vld [vmem:[%s3064_s11 + $0x2588] sm:$0xff] }
  0x63   : > { %v526_v24 = vld [vmem:[%s3064_s11 + $0x2600] sm:$0xff]  ;;  %523 = vst [vmem:[%s3069_s12 + $0x4b0] sm:$0xff] %v522_v22  ;;  %525 = vst [vmem:[%s3069_s12 + $0x4b8] sm:$0xff] %v524_v23  ;;  %v528_v25 = vld [vmem:[%s3064_s11 + $0x2608] sm:$0xff] }
  0x64   : > { %527 = vst [vmem:[%s3069_s12 + $0x4c0] sm:$0xff] %v526_v24  ;;  %v530_v26 = vld [vmem:[%s3064_s11 + $0x2680] sm:$0xff]  ;;  %v532_v27 = vld [vmem:[%s3064_s11 + $0x2688] sm:$0xff]  ;;  %529 = vst [vmem:[%s3069_s12 + $0x4c8] sm:$0xff] %v528_v25 }
  0x65   : > { %531 = vst [vmem:[%s3069_s12 + $0x4d0] sm:$0xff] %v530_v26  ;;  %533 = vst [vmem:[%s3069_s12 + $0x4d8] sm:$0xff] %v532_v27  ;;  %v534_v28 = vld [vmem:[%s3064_s11 + $0x2700] sm:$0xff]  ;;  %v536_v29 = vld [vmem:[%s3064_s11 + $0x2708] sm:$0xff] }
  0x66   : > { %v538_v30 = vld [vmem:[%s3064_s11 + $0x2780] sm:$0xff]  ;;  %535 = vst [vmem:[%s3069_s12 + $0x4e0] sm:$0xff] %v534_v28  ;;  %537 = vst [vmem:[%s3069_s12 + $0x4e8] sm:$0xff] %v536_v29  ;;  %v540_v31 = vld [vmem:[%s3064_s11 + $0x2788] sm:$0xff] }
  0x67   : > { %539 = vst [vmem:[%s3069_s12 + $0x4f0] sm:$0xff] %v538_v30  ;;  %v542_v32 = vld [vmem:[%s3064_s11 + $0x2800] sm:$0xff]  ;;  %v544_v33 = vld [vmem:[%s3064_s11 + $0x2808] sm:$0xff]  ;;  %541 = vst [vmem:[%s3069_s12 + $0x4f8] sm:$0xff] %v540_v31 }
  0x68   : > { %543 = vst [vmem:[%s3069_s12 + $0x500] sm:$0xff] %v542_v32  ;;  %545 = vst [vmem:[%s3069_s12 + $0x508] sm:$0xff] %v544_v33  ;;  %v546_v34 = vld [vmem:[%s3064_s11 + $0x2880] sm:$0xff]  ;;  %v548_v35 = vld [vmem:[%s3064_s11 + $0x2888] sm:$0xff] }
  0x69   : > { %v550_v36 = vld [vmem:[%s3064_s11 + $0x2900] sm:$0xff]  ;;  %547 = vst [vmem:[%s3069_s12 + $0x510] sm:$0xff] %v546_v34  ;;  %549 = vst [vmem:[%s3069_s12 + $0x518] sm:$0xff] %v548_v35  ;;  %v552_v37 = vld [vmem:[%s3064_s11 + $0x2908] sm:$0xff] }
  0x6a   : > { %551 = vst [vmem:[%s3069_s12 + $0x520] sm:$0xff] %v550_v36  ;;  %v554_v38 = vld [vmem:[%s3064_s11 + $0x2980] sm:$0xff]  ;;  %v556_v39 = vld [vmem:[%s3064_s11 + $0x2988] sm:$0xff]  ;;  %553 = vst [vmem:[%s3069_s12 + $0x528] sm:$0xff] %v552_v37 }
  0x6b   : > { %555 = vst [vmem:[%s3069_s12 + $0x530] sm:$0xff] %v554_v38  ;;  %557 = vst [vmem:[%s3069_s12 + $0x538] sm:$0xff] %v556_v39  ;;  %v558_v40 = vld [vmem:[%s3064_s11 + $0x2a00] sm:$0xff]  ;;  %v560_v41 = vld [vmem:[%s3064_s11 + $0x2a08] sm:$0xff] }
  0x6c   : > { %v562_v42 = vld [vmem:[%s3064_s11 + $0x2a80] sm:$0xff]  ;;  %559 = vst [vmem:[%s3069_s12 + $0x540] sm:$0xff] %v558_v40  ;;  %561 = vst [vmem:[%s3069_s12 + $0x548] sm:$0xff] %v560_v41  ;;  %v564_v43 = vld [vmem:[%s3064_s11 + $0x2a88] sm:$0xff] }
  0x6d   : > { %563 = vst [vmem:[%s3069_s12 + $0x550] sm:$0xff] %v562_v42  ;;  %v566_v44 = vld [vmem:[%s3064_s11 + $0x2b00] sm:$0xff]  ;;  %v568_v45 = vld [vmem:[%s3064_s11 + $0x2b08] sm:$0xff]  ;;  %565 = vst [vmem:[%s3069_s12 + $0x558] sm:$0xff] %v564_v43 }
  0x6e   : > { %567 = vst [vmem:[%s3069_s12 + $0x560] sm:$0xff] %v566_v44  ;;  %569 = vst [vmem:[%s3069_s12 + $0x568] sm:$0xff] %v568_v45  ;;  %v570_v46 = vld [vmem:[%s3064_s11 + $0x2b80] sm:$0xff]  ;;  %v572_v47 = vld [vmem:[%s3064_s11 + $0x2b88] sm:$0xff] }
  0x6f   : > { %v574_v48 = vld [vmem:[%s3064_s11 + $0x2c00] sm:$0xff]  ;;  %571 = vst [vmem:[%s3069_s12 + $0x570] sm:$0xff] %v570_v46  ;;  %573 = vst [vmem:[%s3069_s12 + $0x578] sm:$0xff] %v572_v47  ;;  %v576_v49 = vld [vmem:[%s3064_s11 + $0x2c08] sm:$0xff] }
  0x70   : > { %575 = vst [vmem:[%s3069_s12 + $0x580] sm:$0xff] %v574_v48  ;;  %v578_v50 = vld [vmem:[%s3064_s11 + $0x2c80] sm:$0xff]  ;;  %v580_v51 = vld [vmem:[%s3064_s11 + $0x2c88] sm:$0xff]  ;;  %577 = vst [vmem:[%s3069_s12 + $0x588] sm:$0xff] %v576_v49 }
  0x71   : > { %579 = vst [vmem:[%s3069_s12 + $0x590] sm:$0xff] %v578_v50  ;;  %581 = vst [vmem:[%s3069_s12 + $0x598] sm:$0xff] %v580_v51  ;;  %v582_v52 = vld [vmem:[%s3064_s11 + $0x2d00] sm:$0xff]  ;;  %v584_v53 = vld [vmem:[%s3064_s11 + $0x2d08] sm:$0xff] }
  0x72   : > { %v586_v54 = vld [vmem:[%s3064_s11 + $0x2d80] sm:$0xff]  ;;  %583 = vst [vmem:[%s3069_s12 + $0x5a0] sm:$0xff] %v582_v52  ;;  %585 = vst [vmem:[%s3069_s12 + $0x5a8] sm:$0xff] %v584_v53  ;;  %v588_v55 = vld [vmem:[%s3064_s11 + $0x2d88] sm:$0xff] }
  0x73   : > { %587 = vst [vmem:[%s3069_s12 + $0x5b0] sm:$0xff] %v586_v54  ;;  %v590_v56 = vld [vmem:[%s3064_s11 + $0x2e00] sm:$0xff]  ;;  %v592_v57 = vld [vmem:[%s3064_s11 + $0x2e08] sm:$0xff]  ;;  %589 = vst [vmem:[%s3069_s12 + $0x5b8] sm:$0xff] %v588_v55 }
  0x74   : > { %591 = vst [vmem:[%s3069_s12 + $0x5c0] sm:$0xff] %v590_v56  ;;  %593 = vst [vmem:[%s3069_s12 + $0x5c8] sm:$0xff] %v592_v57  ;;  %v594_v58 = vld [vmem:[%s3064_s11 + $0x2e80] sm:$0xff]  ;;  %v596_v59 = vld [vmem:[%s3064_s11 + $0x2e88] sm:$0xff] }
  0x75   : > { %v598_v60 = vld [vmem:[%s3064_s11 + $0x2f00] sm:$0xff]  ;;  %595 = vst [vmem:[%s3069_s12 + $0x5d0] sm:$0xff] %v594_v58  ;;  %597 = vst [vmem:[%s3069_s12 + $0x5d8] sm:$0xff] %v596_v59  ;;  %v600_v61 = vld [vmem:[%s3064_s11 + $0x2f08] sm:$0xff] }
  0x76   : > { %599 = vst [vmem:[%s3069_s12 + $0x5e0] sm:$0xff] %v598_v60  ;;  %v602_v62 = vld [vmem:[%s3064_s11 + $0x2f80] sm:$0xff]  ;;  %v604_v63 = vld [vmem:[%s3064_s11 + $0x2f88] sm:$0xff]  ;;  %601 = vst [vmem:[%s3069_s12 + $0x5e8] sm:$0xff] %v600_v61 }
  0x77   : > { %603 = vst [vmem:[%s3069_s12 + $0x5f0] sm:$0xff] %v602_v62  ;;  %605 = vst [vmem:[%s3069_s12 + $0x5f8] sm:$0xff] %v604_v63 }
  0x78 PF: > { %p2360_p7 = scmp.ge.s32.totalorder %s2976_s21, 1  ;;  %p626_p8 = scmp.lt.s32.totalorder %s2976_s21, 25 }
  0x7a   : > { %p627_p9 = pnand %p2360_p7, %p626_p8 }
  0x7b   : > { %s633_s13 = sand.u32 (!%p627_p9), 1, %s2952_s15   ;;  %s679_s14 = smul.u32 (!%p627_p9), 6, %s2960_s17 }
  0x7c   : > { %630 = sbr.rel (%p627_p9) target bundleno = 551 (0x227), region = 55  ;;  %s2362_s25 = sshll.u32 (!%p627_p9), %s2964_s18, 2 }
  0x7d   : > { %s2570_s24 = smul.u32 (!%p627_p9), 1536, %s633_s13  ;;  %p682_p10 = scmp.lt.s32.totalorder (!%p627_p9), %s679_s14, 17 }
  0x7e   : > { %p692_p11 = scmp.lt.s32.totalorder (!%p627_p9), %s2362_s25, 31  ;;  %p2366_p12 = scmp.ne.s32.totalorder (!%p627_p9), %s2960_s17, 0 }
  0x7f   : > { %s3478_s13 = scalar_lea.vmem (!%p627_p9), [#allocation3], %s2570_s24 }
  0x81   : > { %s3760_s14 = smov (!%p682_p10, %s679_s14), 17  ;;  %s3762_s25 = smov (!%p692_p11, %s2362_s25), 31 }
  0x82   : > { %s2361_s26 = sshll.u32 %s3760_s14, 2  ;;  %s694_s15 = scalar_lea.vmem %s3744_s2, %s3762_s25 }
  0x83   : > { %s3462_s30 = scalar_lea.vmem %s3742_s0, %s2361_s26  ;;  %s699_s8 = scalar_lea.vmem %s3745_s3, %s3762_s25 }
  0x84   : > { %s2365_s9 = sshll.u32 %s3762_s25, 3  ;;  %714 = sbr.rel (%p2366_p12) target bundleno = 140 (0x8c), region = 63 }
  0x85   : > { %s3476_s12 = scalar_lea.vmem %s3746_s4, %s2365_s9 }
  0x89   : > { %v2978_v0 = vmov 0.0  }
  0x8a   : > { %715 = vst [vmem:[#allocation2 + $0x10] sm:$0xff] %v2978_v0  ;;  %716 = vst [vmem:[#allocation2] sm:$0xff] %v2978_v0 }
  0x8b   : > { %717 = vst [vmem:[#allocation2 + $0x18] sm:$0xff] %v2978_v0  ;;  %718 = vst [vmem:[#allocation2 + $0x8] sm:$0xff] %v2978_v0 }
  0x8c PF: > { %v2628_v1 = vld [vmem:[%s3478_s13 + $0xe4] ss:$16 sps:$4 sm:$0xff]   ;;  %v2632_v3 = vld [vmem:[%s3478_s13 + $0xe0] ss:$16 sps:$4 sm:$0xff]   ;;  %v724_v49 = vld [vmem:[%s3462_s30 + $0x8] sm:$0xff]  ;;  %p2565_p13 = scmp.ne.s32.totalorder %s2960_s17, 2 }
  0x8d   : > { %v2630_v2 = vld [vmem:[%s3478_s13 + $0x2e4] ss:$16 sps:$4 sm:$0xff]   ;;  %1899 = vmatprep.subr.bf16.mxu0 %v2628_v1  ;;  %v2633_v4 = vld [vmem:[%s3478_s13 + $0x2e0] ss:$16 sps:$4 sm:$0xff]   ;;  %v3533_v52 = vcombine.high %v724_v49, %v724_v49 }
  0x8e   : > { %1940 = vmatprep.subr.bf16.mxu1 %v2630_v2  ;;  %v2634_v5 = vld [vmem:[%s3478_s13 + $0xc4] ss:$16 sps:$4 sm:$0xff]   ;;  %1900 = vmatpush1.bf16.msra.mxu0 %v2632_v3  ;;  %v2638_v7 = vld [vmem:[%s3478_s13 + $0xc0] ss:$16 sps:$4 sm:$0xff]  }
  0x8f   : > { %1941 = vmatpush1.bf16.msra.mxu1 %v2633_v4  ;;  %v2636_v6 = vld [vmem:[%s3478_s13 + $0x2c4] ss:$16 sps:$4 sm:$0xff]   ;;  %1901 = vmatprep.subr.bf16.mxu0 %v2634_v5  ;;  %v2639_v8 = vld [vmem:[%s3478_s13 + $0x2c0] ss:$16 sps:$4 sm:$0xff]  }
  0x90   : > { %1942 = vmatprep.subr.bf16.mxu1 %v2636_v6  ;;  %v2640_v9 = vld [vmem:[%s3478_s13 + $0xa4] ss:$16 sps:$4 sm:$0xff]   ;;  %v2644_v11 = vld [vmem:[%s3478_s13 + $0xa0] ss:$16 sps:$4 sm:$0xff]   ;;  %1972 = vmatprep.mubr.bf16.mxu1 %v3533_v52  ;;  %v2733_v6 = vld [vmem:[%s3478_s13 + $0xec] ss:$16 sps:$4 sm:$0xff]  }
  0x91   : > { %v2642_v10 = vld [vmem:[%s3478_s13 + $0x2a4] ss:$16 sps:$4 sm:$0xff]   ;;  %v2645_v12 = vld [vmem:[%s3478_s13 + $0x2a0] ss:$16 sps:$4 sm:$0xff]  }
  0x92   : > { %1902 = vmatpush1.bf16.msra.mxu0 %v2638_v7  ;;  %v2646_v13 = vld [vmem:[%s3478_s13 + $0x84] ss:$16 sps:$4 sm:$0xff]   ;;  %v2650_v15 = vld [vmem:[%s3478_s13 + $0x80] ss:$16 sps:$4 sm:$0xff]  }
  0x93   : > { %1943 = vmatpush1.bf16.msra.mxu1 %v2639_v8  ;;  %1903 = vmatprep.subr.bf16.mxu0 %v2640_v9  ;;  %v2648_v14 = vld [vmem:[%s3478_s13 + $0x284] ss:$16 sps:$4 sm:$0xff]   ;;  %v2651_v16 = vld [vmem:[%s3478_s13 + $0x280] ss:$16 sps:$4 sm:$0xff]   ;;  %v3557_v8 = vcombine.low %v724_v49, %v724_v49 }
  0x94   : > { %1944 = vmatprep.subr.bf16.mxu1 %v2642_v10  ;;  %v2652_v17 = vld [vmem:[%s3478_s13 + $0x64] ss:$16 sps:$4 sm:$0xff]   ;;  %v2656_v19 = vld [vmem:[%s3478_s13 + $0x60] ss:$16 sps:$4 sm:$0xff]   ;;  %v2731_v10 = vld [vmem:[%s3478_s13 + $0xe8] ss:$16 sps:$4 sm:$0xff]  }
  0x95   : > { %v2654_v18 = vld [vmem:[%s3478_s13 + $0x264] ss:$16 sps:$4 sm:$0xff]   ;;  %v2657_v20 = vld [vmem:[%s3478_s13 + $0x260] ss:$16 sps:$4 sm:$0xff]  }
  0x96   : > { %1904 = vmatpush1.bf16.msra.mxu0 %v2644_v11  ;;  %v2658_v21 = vld [vmem:[%s3478_s13 + $0x44] ss:$16 sps:$4 sm:$0xff]   ;;  %v2662_v23 = vld [vmem:[%s3478_s13 + $0x40] ss:$16 sps:$4 sm:$0xff]  }
  0x97   : > { %1945 = vmatpush1.bf16.msra.mxu1 %v2645_v12  ;;  %1905 = vmatprep.subr.bf16.mxu0 %v2646_v13  ;;  %v2660_v22 = vld [vmem:[%s3478_s13 + $0x244] ss:$16 sps:$4 sm:$0xff]   ;;  %v2663_v24 = vld [vmem:[%s3478_s13 + $0x240] ss:$16 sps:$4 sm:$0xff]   ;;  %v2739_v12 = vld [vmem:[%s3478_s13 + $0xcc] ss:$16 sps:$4 sm:$0xff]  }
  0x98   : > { %1946 = vmatprep.subr.bf16.mxu1 %v2648_v14  ;;  %v2664_v25 = vld [vmem:[%s3478_s13 + $0x24] ss:$16 sps:$4 sm:$0xff]   ;;  %v2668_v27 = vld [vmem:[%s3478_s13 + $0x20] ss:$16 sps:$4 sm:$0xff]   ;;  %v2737_v14 = vld [vmem:[%s3478_s13 + $0xc8] ss:$16 sps:$4 sm:$0xff]  }
  0x99   : > { %v2666_v26 = vld [vmem:[%s3478_s13 + $0x224] ss:$16 sps:$4 sm:$0xff]   ;;  %v2669_v28 = vld [vmem:[%s3478_s13 + $0x220] ss:$16 sps:$4 sm:$0xff]  }
  0x9a   : > { %1906 = vmatpush1.bf16.msra.mxu0 %v2650_v15  ;;  %v2670_v29 = vld [vmem:[%s3478_s13 + $0x4] ss:$16 sps:$4 sm:$0xff]   ;;  %v2674_v31 = vld [vmem:[%s3478_s13] ss:$16 sps:$4 sm:$0xff]  }
  0x9b   : > { %1947 = vmatpush1.bf16.msra.mxu1 %v2651_v16  ;;  %1907 = vmatprep.subr.bf16.mxu0 %v2652_v17  ;;  %v2672_v30 = vld [vmem:[%s3478_s13 + $0x204] ss:$16 sps:$4 sm:$0xff]   ;;  %v2675_v32 = vld [vmem:[%s3478_s13 + $0x200] ss:$16 sps:$4 sm:$0xff]   ;;  %v2745_v16 = vld [vmem:[%s3478_s13 + $0xac] ss:$16 sps:$4 sm:$0xff]  }
  0x9c   : > { %1948 = vmatprep.subr.bf16.mxu1 %v2654_v18  ;;  %v2676_v33 = vld [vmem:[%s3478_s13 + $0x1e4] ss:$16 sps:$4 sm:$0xff]   ;;  %v2680_v35 = vld [vmem:[%s3478_s13 + $0x1e0] ss:$16 sps:$4 sm:$0xff]   ;;  %v2743_v18 = vld [vmem:[%s3478_s13 + $0xa8] ss:$16 sps:$4 sm:$0xff]  }
  0x9d   : > { %v2678_v34 = vld [vmem:[%s3478_s13 + $0x3e4] ss:$16 sps:$4 sm:$0xff]   ;;  %v2681_v36 = vld [vmem:[%s3478_s13 + $0x3e0] ss:$16 sps:$4 sm:$0xff]  }
  0x9e   : > { %1908 = vmatpush1.bf16.msra.mxu0 %v2656_v19  ;;  %v2682_v37 = vld [vmem:[%s3478_s13 + $0x1c4] ss:$16 sps:$4 sm:$0xff]   ;;  %v2686_v39 = vld [vmem:[%s3478_s13 + $0x1c0] ss:$16 sps:$4 sm:$0xff]  }
  0x9f   : > { %1949 = vmatpush1.bf16.msra.mxu1 %v2657_v20  ;;  %1909 = vmatprep.subr.bf16.mxu0 %v2658_v21  ;;  %v2684_v38 = vld [vmem:[%s3478_s13 + $0x3c4] ss:$16 sps:$4 sm:$0xff]   ;;  %v2687_v40 = vld [vmem:[%s3478_s13 + $0x3c0] ss:$16 sps:$4 sm:$0xff]   ;;  %v2751_v20 = vld [vmem:[%s3478_s13 + $0x8c] ss:$16 sps:$4 sm:$0xff]  }
  0xa0   : > { %1950 = vmatprep.subr.bf16.mxu1 %v2660_v22  ;;  %v2688_v41 = vld [vmem:[%s3478_s13 + $0x1a4] ss:$16 sps:$4 sm:$0xff]   ;;  %v2692_v43 = vld [vmem:[%s3478_s13 + $0x1a0] ss:$16 sps:$4 sm:$0xff]   ;;  %v2749_v22 = vld [vmem:[%s3478_s13 + $0x88] ss:$16 sps:$4 sm:$0xff]  }
  0xa1   : > { %v2690_v42 = vld [vmem:[%s3478_s13 + $0x3a4] ss:$16 sps:$4 sm:$0xff]   ;;  %v2693_v44 = vld [vmem:[%s3478_s13 + $0x3a0] ss:$16 sps:$4 sm:$0xff]  }
  0xa2   : > { %1910 = vmatpush1.bf16.msra.mxu0 %v2662_v23  ;;  %v2694_v45 = vld [vmem:[%s3478_s13 + $0x184] ss:$16 sps:$4 sm:$0xff]   ;;  %v2698_v50 = vld [vmem:[%s3478_s13 + $0x180] ss:$16 sps:$4 sm:$0xff]  }
  0xa3   : > { %1951 = vmatpush1.bf16.msra.mxu1 %v2663_v24  ;;  %1911 = vmatprep.subr.bf16.mxu0 %v2664_v25  ;;  %v2696_v46 = vld [vmem:[%s3478_s13 + $0x384] ss:$16 sps:$4 sm:$0xff]   ;;  %v2699_v51 = vld [vmem:[%s3478_s13 + $0x380] ss:$16 sps:$4 sm:$0xff]   ;;  %v2757_v24 = vld [vmem:[%s3478_s13 + $0x6c] ss:$16 sps:$4 sm:$0xff]  }
  0xa4   : > { %1952 = vmatprep.subr.bf16.mxu1 %v2666_v26  ;;  %v723_v47 = vld [vmem:[%s3462_s30] sm:$0xff]  ;;  %v2755_v26 = vld [vmem:[%s3478_s13 + $0x68] ss:$16 sps:$4 sm:$0xff]  }
  0xa5   : > { %v3528_v48 = vcombine.high %v723_v47, %v723_v47  ;;  %v2700_v53 = vld [vmem:[%s3478_s13 + $0x164] ss:$16 sps:$4 sm:$0xff]   ;;  %v2704_v55 = vld [vmem:[%s3478_s13 + $0x160] ss:$16 sps:$4 sm:$0xff]   ;;  %v3555_v7 = vcombine.low %v723_v47, %v723_v47 }
  0xa6   : > { %1912 = vmatpush1.bf16.msra.mxu0 %v2668_v27  ;;  %v2702_v54 = vld [vmem:[%s3478_s13 + $0x364] ss:$16 sps:$4 sm:$0xff]   ;;  %v2705_v56 = vld [vmem:[%s3478_s13 + $0x360] ss:$16 sps:$4 sm:$0xff]  }
  0xa7   : > { %1953 = vmatpush1.bf16.msra.mxu1 %v2669_v28  ;;  %1913 = vmatprep.subr.bf16.mxu0 %v2670_v29  ;;  %v2706_v57 = vld [vmem:[%s3478_s13 + $0x144] ss:$16 sps:$4 sm:$0xff]   ;;  %v2710_v59 = vld [vmem:[%s3478_s13 + $0x140] ss:$16 sps:$4 sm:$0xff]   ;;  %v2763_v28 = vld [vmem:[%s3478_s13 + $0x4c] ss:$16 sps:$4 sm:$0xff]  }
  0xa8   : > { %1954 = vmatprep.subr.bf16.mxu1 %v2672_v30  ;;  %1931 = vmatprep.mubr.bf16.mxu0 %v3528_v48  ;;  %v2708_v58 = vld [vmem:[%s3478_s13 + $0x344] ss:$16 sps:$4 sm:$0xff]   ;;  %v2711_v60 = vld [vmem:[%s3478_s13 + $0x340] ss:$16 sps:$4 sm:$0xff]   ;;  %v2761_v30 = vld [vmem:[%s3478_s13 + $0x48] ss:$16 sps:$4 sm:$0xff]  }
  0xa9   : > { %v2712_v61 = vld [vmem:[%s3478_s13 + $0x124] ss:$16 sps:$4 sm:$0xff]   ;;  %v2716_v63 = vld [vmem:[%s3478_s13 + $0x120] ss:$16 sps:$4 sm:$0xff]  }
  0xaa   : > { %1914 = vmatpush1.bf16.msra.mxu0 %v2674_v31  ;;  %v2714_v62 = vld [vmem:[%s3478_s13 + $0x324] ss:$16 sps:$4 sm:$0xff]   ;;  %v2717_v0 = vld [vmem:[%s3478_s13 + $0x320] ss:$16 sps:$4 sm:$0xff]  }
  0xab   : > { %1955 = vmatpush1.bf16.msra.mxu1 %v2675_v32  ;;  %1915 = vmatprep.subr.bf16.mxu0 %v2676_v33  ;;  %v2718_v1 = vld [vmem:[%s3478_s13 + $0x104] ss:$16 sps:$4 sm:$0xff]   ;;  %v2722_v3 = vld [vmem:[%s3478_s13 + $0x100] ss:$16 sps:$4 sm:$0xff]   ;;  %v2769_v32 = vld [vmem:[%s3478_s13 + $0x2c] ss:$16 sps:$4 sm:$0xff]  }
  0xac   : > { %1956 = vmatprep.subr.bf16.mxu1 %v2678_v34  ;;  %v2720_v2 = vld [vmem:[%s3478_s13 + $0x304] ss:$16 sps:$4 sm:$0xff]   ;;  %v2723_v4 = vld [vmem:[%s3478_s13 + $0x300] ss:$16 sps:$4 sm:$0xff]  }
  0xad   : > { %v2730_v5 = vld [vmem:[%s3478_s13 + $0x4e4] ss:$16 sps:$4 sm:$0xff]   ;;  %v2728_v9 = vld [vmem:[%s3478_s13 + $0x4e0] ss:$16 sps:$4 sm:$0xff]  }
  0xae   : > { %1916 = vmatpush2.bf16.msra.mxu0 %v2680_v35  ;;  %v2736_v11 = vld [vmem:[%s3478_s13 + $0x4c4] ss:$16 sps:$4 sm:$0xff]   ;;  %v2734_v13 = vld [vmem:[%s3478_s13 + $0x4c0] ss:$16 sps:$4 sm:$0xff]  }
  0xaf   : > { %1957 = vmatpush2.bf16.msra.mxu1 %v2681_v36  ;;  %1917 = vmatprep.subr.bf16.mxu0 %v2682_v37  ;;  %v2742_v15 = vld [vmem:[%s3478_s13 + $0x4a4] ss:$16 sps:$4 sm:$0xff]   ;;  %v2740_v17 = vld [vmem:[%s3478_s13 + $0x4a0] ss:$16 sps:$4 sm:$0xff]   ;;  %v2767_v36 = vld [vmem:[%s3478_s13 + $0x28] ss:$16 sps:$4 sm:$0xff]  }
  0xb0   : > { %1958 = vmatprep.subr.bf16.mxu1 %v2684_v38  ;;  %v2748_v19 = vld [vmem:[%s3478_s13 + $0x484] ss:$16 sps:$4 sm:$0xff]   ;;  %v2746_v21 = vld [vmem:[%s3478_s13 + $0x480] ss:$16 sps:$4 sm:$0xff]   ;;  %v2775_v38 = vld [vmem:[%s3478_s13 + $0xc] ss:$16 sps:$4 sm:$0xff]  }
  0xb1   : > { %v2754_v23 = vld [vmem:[%s3478_s13 + $0x464] ss:$16 sps:$4 sm:$0xff]   ;;  %v2752_v25 = vld [vmem:[%s3478_s13 + $0x460] ss:$16 sps:$4 sm:$0xff]  }
  0xb2   : > { %1918 = vmatpush2.bf16.msra.mxu0 %v2686_v39  ;;  %v2760_v27 = vld [vmem:[%s3478_s13 + $0x444] ss:$16 sps:$4 sm:$0xff]   ;;  %v2758_v29 = vld [vmem:[%s3478_s13 + $0x440] ss:$16 sps:$4 sm:$0xff]  }
  0xb3   : > { %1959 = vmatpush2.bf16.msra.mxu1 %v2687_v40  ;;  %1919 = vmatprep.subr.bf16.mxu0 %v2688_v41  ;;  %v2766_v31 = vld [vmem:[%s3478_s13 + $0x424] ss:$16 sps:$4 sm:$0xff]   ;;  %v2764_v34 = vld [vmem:[%s3478_s13 + $0x420] ss:$16 sps:$4 sm:$0xff]   ;;  %v2773_v40 = vld [vmem:[%s3478_s13 + $0x8] ss:$16 sps:$4 sm:$0xff]  }
  0xb4   : > { %1960 = vmatprep.subr.bf16.mxu1 %v2690_v42  ;;  %v3587_v33 = vld [vmem:[%s3462_s30 + $0x10] sm:$0xff]  ;;  %v2781_v42 = vld [vmem:[%s3478_s13 + $0x1ec] ss:$16 sps:$4 sm:$0xff]  }
  0xb5   : > { %v3592_v35 = vcombine.high %v3587_v33, %v3587_v33  ;;  %v2772_v37 = vld [vmem:[%s3478_s13 + $0x404] ss:$16 sps:$4 sm:$0xff]   ;;  %v2770_v39 = vld [vmem:[%s3478_s13 + $0x400] ss:$16 sps:$4 sm:$0xff]  }
  0xb6   : > { %1920 = vmatpush2.bf16.msra.mxu0 %v2692_v43  ;;  %v2778_v41 = vld [vmem:[%s3478_s13 + $0x5e4] ss:$16 sps:$4 sm:$0xff]   ;;  %v2776_v43 = vld [vmem:[%s3478_s13 + $0x5e0] ss:$16 sps:$4 sm:$0xff]  }
  0xb7   : > { %1961 = vmatpush2.bf16.msra.mxu1 %v2693_v44  ;;  %1921 = vmatprep.subr.bf16.mxu0 %v2694_v45  ;;  %v2779_v44 = vld [vmem:[%s3478_s13 + $0x1e8] ss:$16 sps:$4 sm:$0xff]   ;;  %v2784_v45 = vld [vmem:[%s3478_s13 + $0x5c4] ss:$16 sps:$4 sm:$0xff]   ;;  %v2782_v47 = vld [vmem:[%s3478_s13 + $0x5c0] ss:$16 sps:$4 sm:$0xff]  }
  0xb8   : > { %1962 = vmatprep.subr.bf16.mxu1 %v2696_v46  ;;  %v2787_v46 = vld [vmem:[%s3478_s13 + $0x1cc] ss:$16 sps:$4 sm:$0xff]   ;;  %v2790_v49 = vld [vmem:[%s3478_s13 + $0x5a4] ss:$16 sps:$4 sm:$0xff]  }
  0xba   : > { %1922 = vmatpush2.bf16.msra.mxu0 %v2698_v50  ;;  %v2793_v50 = vld [vmem:[%s3478_s13 + $0x1ac] ss:$16 sps:$4 sm:$0xff]  }
  0xbb   : > { %1963 = vmatpush2.bf16.msra.mxu1 %v2699_v51  ;;  %1923 = vmatprep.subr.bf16.mxu0 %v2700_v53  ;;  %v2788_v51 = vld [vmem:[%s3478_s13 + $0x5a0] ss:$16 sps:$4 sm:$0xff]   ;;  %v2791_v53 = vld [vmem:[%s3478_s13 + $0x1a8] ss:$16 sps:$4 sm:$0xff]  }
  0xbc   : > { %1964 = vmatprep.subr.bf16.mxu1 %v2702_v54  ;;  %v2796_v54 = vld [vmem:[%s3478_s13 + $0x584] ss:$16 sps:$4 sm:$0xff]  }
  0xbe   : > { %1924 = vmatpush2.bf16.msra.mxu0 %v2704_v55  ;;  %v2799_v55 = vld [vmem:[%s3478_s13 + $0x18c] ss:$16 sps:$4 sm:$0xff]  }
  0xbf   : > { %1965 = vmatpush2.bf16.msra.mxu1 %v2705_v56  ;;  %1925 = vmatprep.subr.bf16.mxu0 %v2706_v57  ;;  %v2794_v56 = vld [vmem:[%s3478_s13 + $0x580] ss:$16 sps:$4 sm:$0xff]   ;;  %v2797_v57 = vld [vmem:[%s3478_s13 + $0x188] ss:$16 sps:$4 sm:$0xff]  }
  0xc0   : > { %1966 = vmatprep.subr.bf16.mxu1 %v2708_v58  ;;  %v2802_v58 = vld [vmem:[%s3478_s13 + $0x564] ss:$16 sps:$4 sm:$0xff]  }
  0xc2   : > { %1926 = vmatpush2.bf16.msra.mxu0 %v2710_v59  ;;  %v2805_v59 = vld [vmem:[%s3478_s13 + $0x16c] ss:$16 sps:$4 sm:$0xff]  }
  0xc3   : > { %1967 = vmatpush2.bf16.msra.mxu1 %v2711_v60  ;;  %1927 = vmatprep.subr.bf16.mxu0 %v2712_v61  ;;  %v2800_v60 = vld [vmem:[%s3478_s13 + $0x560] ss:$16 sps:$4 sm:$0xff]   ;;  %v2803_v61 = vld [vmem:[%s3478_s13 + $0x168] ss:$16 sps:$4 sm:$0xff]  }
  0xc4   : > { %1968 = vmatprep.subr.bf16.mxu1 %v2714_v62  ;;  %v2808_v62 = vld [vmem:[%s3478_s13 + $0x544] ss:$16 sps:$4 sm:$0xff]  }
  0xc6   : > { %1928 = vmatpush2.bf16.msra.mxu0 %v2716_v63  ;;  %v2811_v63 = vld [vmem:[%s3478_s13 + $0x14c] ss:$16 sps:$4 sm:$0xff]  }
  0xc7   : > { %1969 = vmatpush2.bf16.msra.mxu1 %v2717_v0  ;;  %1929 = vmatprep.subr.bf16.mxu0 %v2718_v1  ;;  %v2806_v0 = vld [vmem:[%s3478_s13 + $0x540] ss:$16 sps:$4 sm:$0xff]   ;;  %v2809_v1 = vld [vmem:[%s3478_s13 + $0x148] ss:$16 sps:$4 sm:$0xff]  }
  0xc8   : > { %1970 = vmatprep.subr.bf16.mxu1 %v2720_v2  ;;  %v2814_v2 = vld [vmem:[%s3478_s13 + $0x524] ss:$16 sps:$4 sm:$0xff]  }
  0xca   : > { %1930 = vmatpush2.bf16.msra.mxu0 %v2722_v3  ;;  %v2817_v3 = vld [vmem:[%s3478_s13 + $0x12c] ss:$16 sps:$4 sm:$0xff]  }
  0xcb   : > { %1971 = vmatpush2.bf16.msra.mxu1 %v2723_v4  ;;  %1981 = vmatprep.subr.bf16.mxu0 %v2730_v5  ;;  %v2812_v4 = vld [vmem:[%s3478_s13 + $0x520] ss:$16 sps:$4 sm:$0xff]   ;;  %v2815_v5 = vld [vmem:[%s3478_s13 + $0x128] ss:$16 sps:$4 sm:$0xff]  }
  0xcc   : > { %2022 = vmatprep.subr.bf16.mxu1 %v2733_v6  ;;  %v2820_v6 = vld [vmem:[%s3478_s13 + $0x504] ss:$16 sps:$4 sm:$0xff]  }
  0xcd   : > { %1932 = vmatmul.mubr.bf16.vlgmr.msra.gmra.mxu0 %v3555_v7 }
  0xce   : > { %1973 = vmatmul.mubr.bf16.vlgmr.msra.gmra.mxu1 %v3557_v8  ;;  %1982 = vmatpush1.bf16.msra.mxu0 %v2728_v9  ;;  %v2823_v9 = vld [vmem:[%s3478_s13 + $0x10c] ss:$16 sps:$4 sm:$0xff]  }
  0xcf   : > { %2023 = vmatpush1.bf16.msra.mxu1 %v2731_v10  ;;  %1983 = vmatprep.subr.bf16.mxu0 %v2736_v11  ;;  %v2818_v10 = vld [vmem:[%s3478_s13 + $0x500] ss:$16 sps:$4 sm:$0xff]   ;;  %v2821_v11 = vld [vmem:[%s3478_s13 + $0x108] ss:$16 sps:$4 sm:$0xff]  }
  0xd0   : > { %2024 = vmatprep.subr.bf16.mxu1 %v2739_v12  ;;  %2054 = vmatprep.mubr.bf16.mxu1 %v3528_v48  ;;  %v2785_v48 = vld [vmem:[%s3478_s13 + $0x1c8] ss:$16 sps:$4 sm:$0xff]   ;;  %v2828_v12 = vld [vmem:[%s3478_s13 + $0x2ec] ss:$16 sps:$4 sm:$0xff]  }
  0xd1   : > { %2013 = vmatprep.mubr.bf16.mxu0 %v3592_v35 }
  0xd2   : > { %1984 = vmatpush1.bf16.msra.mxu0 %v2734_v13  ;;  %v2831_v13 = vld [vmem:[%s3478_s13 + $0x4ec] ss:$16 sps:$4 sm:$0xff]  }
  0xd3   : > { %2025 = vmatpush1.bf16.msra.mxu1 %v2737_v14  ;;  %1985 = vmatprep.subr.bf16.mxu0 %v2742_v15  ;;  %v3636_v14 = vcombine.low %v3587_v33, %v3587_v33  ;;  %v2826_v15 = vld [vmem:[%s3478_s13 + $0x2e8] ss:$16 sps:$4 sm:$0xff]  }
  0xd4   : > { %2026 = vmatprep.subr.bf16.mxu1 %v2745_v16  ;;  %v2829_v16 = vld [vmem:[%s3478_s13 + $0x4e8] ss:$16 sps:$4 sm:$0xff]  }
  0xd5   : > { %v2856_v33 = vld [vmem:[%s3478_s13 + $0x248] ss:$16 sps:$4 sm:$0xff]  }
  0xd6   : > { %1986 = vmatpush1.bf16.msra.mxu0 %v2740_v17  ;;  %v2834_v17 = vld [vmem:[%s3478_s13 + $0x2cc] ss:$16 sps:$4 sm:$0xff]  }
  0xd7   : > { %2027 = vmatpush1.bf16.msra.mxu1 %v2743_v18  ;;  %1987 = vmatprep.subr.bf16.mxu0 %v2748_v19  ;;  %v2837_v18 = vld [vmem:[%s3478_s13 + $0x4cc] ss:$16 sps:$4 sm:$0xff]   ;;  %v2832_v19 = vld [vmem:[%s3478_s13 + $0x2c8] ss:$16 sps:$4 sm:$0xff]  }
  0xd8   : > { %2028 = vmatprep.subr.bf16.mxu1 %v2751_v20  ;;  %v2835_v20 = vld [vmem:[%s3478_s13 + $0x4c8] ss:$16 sps:$4 sm:$0xff]  }
  0xda   : > { %1988 = vmatpush1.bf16.msra.mxu0 %v2746_v21  ;;  %v2840_v21 = vld [vmem:[%s3478_s13 + $0x2ac] ss:$16 sps:$4 sm:$0xff]  }
  0xdb   : > { %2029 = vmatpush1.bf16.msra.mxu1 %v2749_v22  ;;  %1989 = vmatprep.subr.bf16.mxu0 %v2754_v23  ;;  %v2843_v22 = vld [vmem:[%s3478_s13 + $0x4ac] ss:$16 sps:$4 sm:$0xff]   ;;  %v2841_v23 = vld [vmem:[%s3478_s13 + $0x4a8] ss:$16 sps:$4 sm:$0xff]  }
  0xdc   : > { %2030 = vmatprep.subr.bf16.mxu1 %v2757_v24  ;;  %v2846_v24 = vld [vmem:[%s3478_s13 + $0x28c] ss:$16 sps:$4 sm:$0xff]  }
  0xde   : > { %1990 = vmatpush1.bf16.msra.mxu0 %v2752_v25  ;;  %v2849_v25 = vld [vmem:[%s3478_s13 + $0x48c] ss:$16 sps:$4 sm:$0xff]  }
  0xdf   : > { %2031 = vmatpush1.bf16.msra.mxu1 %v2755_v26  ;;  %1991 = vmatprep.subr.bf16.mxu0 %v2760_v27  ;;  %v2844_v26 = vld [vmem:[%s3478_s13 + $0x288] ss:$16 sps:$4 sm:$0xff]   ;;  %v2852_v27 = vld [vmem:[%s3478_s13 + $0x26c] ss:$16 sps:$4 sm:$0xff]  }
  0xe0   : > { %2032 = vmatprep.subr.bf16.mxu1 %v2763_v28  ;;  %v2855_v28 = vld [vmem:[%s3478_s13 + $0x46c] ss:$16 sps:$4 sm:$0xff]  }
  0xe2   : > { %1992 = vmatpush1.bf16.msra.mxu0 %v2758_v29  ;;  %v2850_v29 = vld [vmem:[%s3478_s13 + $0x268] ss:$16 sps:$4 sm:$0xff]  }
  0xe3   : > { %2033 = vmatpush1.bf16.msra.mxu1 %v2761_v30  ;;  %1993 = vmatprep.subr.bf16.mxu0 %v2766_v31  ;;  %v2853_v30 = vld [vmem:[%s3478_s13 + $0x468] ss:$16 sps:$4 sm:$0xff]   ;;  %v2858_v31 = vld [vmem:[%s3478_s13 + $0x24c] ss:$16 sps:$4 sm:$0xff]  }
  0xe4   : > { %2034 = vmatprep.subr.bf16.mxu1 %v2769_v32  ;;  %v2861_v32 = vld [vmem:[%s3478_s13 + $0x44c] ss:$16 sps:$4 sm:$0xff]  }
  0xe6   : > { %1994 = vmatpush1.bf16.msra.mxu0 %v2764_v34  ;;  %v2859_v34 = vld [vmem:[%s3478_s13 + $0x448] ss:$16 sps:$4 sm:$0xff]  }
  0xe7   : > { %2035 = vmatpush1.bf16.msra.mxu1 %v2767_v36  ;;  %1995 = vmatprep.subr.bf16.mxu0 %v2772_v37  ;;  %v2867_v36 = vld [vmem:[%s3478_s13 + $0x42c] ss:$16 sps:$4 sm:$0xff]   ;;  %v2862_v37 = vld [vmem:[%s3478_s13 + $0x228] ss:$16 sps:$4 sm:$0xff]  }
  0xe8   : > { %2036 = vmatprep.subr.bf16.mxu1 %v2775_v38  ;;  %v2865_v38 = vld [vmem:[%s3478_s13 + $0x428] ss:$16 sps:$4 sm:$0xff]  }
  0xea   : > { %1996 = vmatpush1.bf16.msra.mxu0 %v2770_v39  ;;  %v2870_v39 = vld [vmem:[%s3478_s13 + $0x20c] ss:$16 sps:$4 sm:$0xff]  }
  0xeb   : > { %2037 = vmatpush1.bf16.msra.mxu1 %v2773_v40  ;;  %1997 = vmatprep.subr.bf16.mxu0 %v2778_v41  ;;  %v2873_v40 = vld [vmem:[%s3478_s13 + $0x40c] ss:$16 sps:$4 sm:$0xff]   ;;  %v2868_v41 = vld [vmem:[%s3478_s13 + $0x208] ss:$16 sps:$4 sm:$0xff]  }
  0xec   : > { %2038 = vmatprep.subr.bf16.mxu1 %v2781_v42  ;;  %v2871_v42 = vld [vmem:[%s3478_s13 + $0x408] ss:$16 sps:$4 sm:$0xff]  }
  0xee   : > { %1998 = vmatpush2.bf16.msra.mxu0 %v2776_v43  ;;  %v2876_v43 = vld [vmem:[%s3478_s13 + $0x3ec] ss:$16 sps:$4 sm:$0xff]  }
  0xef   : > { %2039 = vmatpush2.bf16.msra.mxu1 %v2779_v44  ;;  %1999 = vmatprep.subr.bf16.mxu0 %v2784_v45  ;;  %v2879_v44 = vld [vmem:[%s3478_s13 + $0x5ec] ss:$16 sps:$4 sm:$0xff]   ;;  %v2874_v45 = vld [vmem:[%s3478_s13 + $0x3e8] ss:$16 sps:$4 sm:$0xff]  }
  0xf0   : > { %2040 = vmatprep.subr.bf16.mxu1 %v2787_v46  ;;  %v2877_v46 = vld [vmem:[%s3478_s13 + $0x5e8] ss:$16 sps:$4 sm:$0xff]  }
  0xf2   : > { %2000 = vmatpush2.bf16.msra.mxu0 %v2782_v47  ;;  %v2882_v47 = vld [vmem:[%s3478_s13 + $0x3cc] ss:$16 sps:$4 sm:$0xff]  }
  0xf3   : > { %2041 = vmatpush2.bf16.msra.mxu1 %v2785_v48  ;;  %2001 = vmatprep.subr.bf16.mxu0 %v2790_v49  ;;  %v2885_v48 = vld [vmem:[%s3478_s13 + $0x5cc] ss:$16 sps:$4 sm:$0xff]   ;;  %v2880_v49 = vld [vmem:[%s3478_s13 + $0x3c8] ss:$16 sps:$4 sm:$0xff]  }
  0xf4   : > { %2042 = vmatprep.subr.bf16.mxu1 %v2793_v50  ;;  %v2883_v50 = vld [vmem:[%s3478_s13 + $0x5c8] ss:$16 sps:$4 sm:$0xff]  }
  0xf6   : > { %2002 = vmatpush2.bf16.msra.mxu0 %v2788_v51  ;;  %v2888_v51 = vld [vmem:[%s3478_s13 + $0x3ac] ss:$16 sps:$4 sm:$0xff]  }
  0xf7   : > { %2043 = vmatpush2.bf16.msra.mxu1 %v2791_v53  ;;  %2003 = vmatprep.subr.bf16.mxu0 %v2796_v54  ;;  %v2891_v53 = vld [vmem:[%s3478_s13 + $0x5ac] ss:$16 sps:$4 sm:$0xff]   ;;  %v2886_v54 = vld [vmem:[%s3478_s13 + $0x3a8] ss:$16 sps:$4 sm:$0xff]  }
  0xf8   : > { %2044 = vmatprep.subr.bf16.mxu1 %v2799_v55  ;;  %v2889_v55 = vld [vmem:[%s3478_s13 + $0x5a8] ss:$16 sps:$4 sm:$0xff]  }
  0xfa   : > { %2004 = vmatpush2.bf16.msra.mxu0 %v2794_v56  ;;  %v2894_v56 = vld [vmem:[%s3478_s13 + $0x38c] ss:$16 sps:$4 sm:$0xff]  }
  0xfb   : > { %2045 = vmatpush2.bf16.msra.mxu1 %v2797_v57  ;;  %2005 = vmatprep.subr.bf16.mxu0 %v2802_v58  ;;  %v2897_v57 = vld [vmem:[%s3478_s13 + $0x58c] ss:$16 sps:$4 sm:$0xff]   ;;  %v2892_v58 = vld [vmem:[%s3478_s13 + $0x388] ss:$16 sps:$4 sm:$0xff]  }
  0xfc   : > { %2046 = vmatprep.subr.bf16.mxu1 %v2805_v59  ;;  %v2895_v59 = vld [vmem:[%s3478_s13 + $0x588] ss:$16 sps:$4 sm:$0xff]  }
  0xfe   : > { %2006 = vmatpush2.bf16.msra.mxu0 %v2800_v60  ;;  %v2900_v60 = vld [vmem:[%s3478_s13 + $0x36c] ss:$16 sps:$4 sm:$0xff]  }
  0xff   : > { %2047 = vmatpush2.bf16.msra.mxu1 %v2803_v61  ;;  %2007 = vmatprep.subr.bf16.mxu0 %v2808_v62  ;;  %v2903_v61 = vld [vmem:[%s3478_s13 + $0x56c] ss:$16 sps:$4 sm:$0xff]   ;;  %v2898_v62 = vld [vmem:[%s3478_s13 + $0x368] ss:$16 sps:$4 sm:$0xff]  }
 0x100   : > { %2048 = vmatprep.subr.bf16.mxu1 %v2811_v63  ;;  %v2901_v63 = vld [vmem:[%s3478_s13 + $0x568] ss:$16 sps:$4 sm:$0xff]  }
 0x102   : > { %2008 = vmatpush2.bf16.msra.mxu0 %v2806_v0  ;;  %v2906_v0 = vld [vmem:[%s3478_s13 + $0x34c] ss:$16 sps:$4 sm:$0xff]  }
 0x103   : > { %2049 = vmatpush2.bf16.msra.mxu1 %v2809_v1  ;;  %2009 = vmatprep.subr.bf16.mxu0 %v2814_v2  ;;  %v2909_v1 = vld [vmem:[%s3478_s13 + $0x54c] ss:$16 sps:$4 sm:$0xff]   ;;  %v2904_v2 = vld [vmem:[%s3478_s13 + $0x348] ss:$16 sps:$4 sm:$0xff]  }
 0x104   : > { %2050 = vmatprep.subr.bf16.mxu1 %v2817_v3  ;;  %v2907_v3 = vld [vmem:[%s3478_s13 + $0x548] ss:$16 sps:$4 sm:$0xff]  }
 0x106   : > { %2010 = vmatpush2.bf16.msra.mxu0 %v2812_v4  ;;  %v2912_v4 = vld [vmem:[%s3478_s13 + $0x32c] ss:$16 sps:$4 sm:$0xff]  }
 0x107   : > { %2051 = vmatpush2.bf16.msra.mxu1 %v2815_v5  ;;  %2011 = vmatprep.subr.bf16.mxu0 %v2820_v6  ;;  %v2915_v5 = vld [vmem:[%s3478_s13 + $0x52c] ss:$16 sps:$4 sm:$0xff]   ;;  %v2910_v6 = vld [vmem:[%s3478_s13 + $0x328] ss:$16 sps:$4 sm:$0xff]  }
 0x108   : > { %2052 = vmatprep.subr.bf16.mxu1 %v2823_v9  ;;  %v2913_v9 = vld [vmem:[%s3478_s13 + $0x528] ss:$16 sps:$4 sm:$0xff]  }
 0x10a   : > { %2012 = vmatpush2.bf16.msra.mxu0 %v2818_v10  ;;  %v2918_v10 = vld [vmem:[%s3478_s13 + $0x30c] ss:$16 sps:$4 sm:$0xff]  }
 0x10b   : > { %2053 = vmatpush2.bf16.msra.mxu1 %v2821_v11  ;;  %2063 = vmatprep.subr.bf16.mxu0 %v2828_v12  ;;  %v2921_v11 = vld [vmem:[%s3478_s13 + $0x50c] ss:$16 sps:$4 sm:$0xff]   ;;  %v2916_v12 = vld [vmem:[%s3478_s13 + $0x308] ss:$16 sps:$4 sm:$0xff]  }
 0x10c   : > { %2104 = vmatprep.subr.bf16.mxu1 %v2831_v13  ;;  %v2919_v13 = vld [vmem:[%s3478_s13 + $0x508] ss:$16 sps:$4 sm:$0xff]  }
 0x10d   : > { %2014 = vmatmul.mubr.bf16.vlgmr.msra.gmra.mxu0 %v3636_v14 }
 0x10e   : > { %2055 = vmatmul.mubr.bf16.vlgmr.msra.gmra.mxu1 %v3555_v7  ;;  %2064 = vmatpush1.bf16.msra.mxu0 %v2826_v15  ;;  %v2838_v7 = vld [vmem:[%s3478_s13 + $0x2a8] ss:$16 sps:$4 sm:$0xff]  }
 0x10f   : > { %2105 = vmatpush1.bf16.msra.mxu1 %v2829_v16  ;;  %2065 = vmatprep.subr.bf16.mxu0 %v2834_v17 }
 0x110   : > { %2106 = vmatprep.subr.bf16.mxu1 %v2837_v18  ;;  %2095 = vmatprep.mubr.bf16.mxu0 %v3533_v52  ;;  %v2847_v52 = vld [vmem:[%s3478_s13 + $0x488] ss:$16 sps:$4 sm:$0xff]  }
 0x111   : > { %2136 = vmatprep.mubr.bf16.mxu1 %v3592_v35  ;;  %v2864_v35 = vld [vmem:[%s3478_s13 + $0x22c] ss:$16 sps:$4 sm:$0xff]  }
 0x112   : > { %2066 = vmatpush1.bf16.msra.mxu0 %v2832_v19 }
 0x113   : > { %2107 = vmatpush1.bf16.msra.mxu1 %v2835_v20  ;;  %2067 = vmatprep.subr.bf16.mxu0 %v2840_v21 }
 0x114   : > { %2108 = vmatprep.subr.bf16.mxu1 %v2843_v22 }
 0x116   : > { %2068 = vmatpush1.bf16.msra.mxu0 %v2838_v7 }
 0x117   : > { %2109 = vmatpush1.bf16.msra.mxu1 %v2841_v23  ;;  %2069 = vmatprep.subr.bf16.mxu0 %v2846_v24  ;;  %v719_v23 = vld [vmem:[#allocation2 + $0x10] sm:$0xff] }
 0x118   : > { %2110 = vmatprep.subr.bf16.mxu1 %v2849_v25 }
 0x11a   : > { %2070 = vmatpush1.bf16.msra.mxu0 %v2844_v26 }
 0x11b   : > { %2111 = vmatpush1.bf16.msra.mxu1 %v2847_v52  ;;  %2071 = vmatprep.subr.bf16.mxu0 %v2852_v27  ;;  %v720_v27 = vld [vmem:[#allocation2] sm:$0xff] }
 0x11c   : > { %2112 = vmatprep.subr.bf16.mxu1 %v2855_v28 }
 0x11e   : > { %2072 = vmatpush1.bf16.msra.mxu0 %v2850_v29 }
 0x11f   : > { %2113 = vmatpush1.bf16.msra.mxu1 %v2853_v30  ;;  %2073 = vmatprep.subr.bf16.mxu0 %v2858_v31 }
 0x120   : > { %2114 = vmatprep.subr.bf16.mxu1 %v2861_v32 }
 0x122   : > { %2074 = vmatpush1.bf16.msra.mxu0 %v2856_v33 }
 0x123   : > { %2115 = vmatpush1.bf16.msra.mxu1 %v2859_v34  ;;  %2075 = vmatprep.subr.bf16.mxu0 %v2864_v35 }
 0x124   : > { %2116 = vmatprep.subr.bf16.mxu1 %v2867_v36 }
 0x126   : > { %2076 = vmatpush1.bf16.msra.mxu0 %v2862_v37 }
 0x127   : > { %2117 = vmatpush1.bf16.msra.mxu1 %v2865_v38  ;;  %2077 = vmatprep.subr.bf16.mxu0 %v2870_v39  ;;  %v721_v38 = vld [vmem:[#allocation2 + $0x18] sm:$0xff] }
 0x128   : > { %2118 = vmatprep.subr.bf16.mxu1 %v2873_v40 }
 0x12a   : > { %2078 = vmatpush1.bf16.msra.mxu0 %v2868_v41 }
 0x12b   : > { %2119 = vmatpush1.bf16.msra.mxu1 %v2871_v42  ;;  %2079 = vmatprep.subr.bf16.mxu0 %v2876_v43  ;;  %v722_v43 = vld [vmem:[#allocation2 + $0x8] sm:$0xff] }
 0x12c   : > { %2120 = vmatprep.subr.bf16.mxu1 %v2879_v44 }
 0x12e   : > { %2080 = vmatpush2.bf16.msra.mxu0 %v2874_v45 }
 0x12f   : > { %2121 = vmatpush2.bf16.msra.mxu1 %v2877_v46  ;;  %2081 = vmatprep.subr.bf16.mxu0 %v2882_v47 }
 0x130   : > { %2122 = vmatprep.subr.bf16.mxu1 %v2885_v48 }
 0x132   : > { %2082 = vmatpush2.bf16.msra.mxu0 %v2880_v49 }
 0x133   : > { %2123 = vmatpush2.bf16.msra.mxu1 %v2883_v50  ;;  %2083 = vmatprep.subr.bf16.mxu0 %v2888_v51 }
 0x134   : > { %2124 = vmatprep.subr.bf16.mxu1 %v2891_v53 }
 0x136   : > { %2084 = vmatpush2.bf16.msra.mxu0 %v2886_v54 }
 0x137   : > { %2125 = vmatpush2.bf16.msra.mxu1 %v2889_v55  ;;  %2085 = vmatprep.subr.bf16.mxu0 %v2894_v56 }
 0x138   : > { %2126 = vmatprep.subr.bf16.mxu1 %v2897_v57 }
 0x13a   : > { %2086 = vmatpush2.bf16.msra.mxu0 %v2892_v58 }
 0x13b   : > { %2127 = vmatpush2.bf16.msra.mxu1 %v2895_v59  ;;  %2087 = vmatprep.subr.bf16.mxu0 %v2900_v60 }
 0x13c   : > { %2128 = vmatprep.subr.bf16.mxu1 %v2903_v61 }
 0x13e   : > { %2088 = vmatpush2.bf16.msra.mxu0 %v2898_v62 }
 0x13f   : > { %2129 = vmatpush2.bf16.msra.mxu1 %v2901_v63  ;;  %2089 = vmatprep.subr.bf16.mxu0 %v2906_v0 }
 0x140   : > { %2130 = vmatprep.subr.bf16.mxu1 %v2909_v1 }
 0x142   : > { %2090 = vmatpush2.bf16.msra.mxu0 %v2904_v2 }
 0x143   : > { %2131 = vmatpush2.bf16.msra.mxu1 %v2907_v3  ;;  %2091 = vmatprep.subr.bf16.mxu0 %v2912_v4 }
 0x144   : > { %2132 = vmatprep.subr.bf16.mxu1 %v2915_v5 }
 0x146   : > { %2092 = vmatpush2.bf16.msra.mxu0 %v2910_v6 }
 0x147   : > { %2133 = vmatpush2.bf16.msra.mxu1 %v2913_v9  ;;  %2093 = vmatprep.subr.bf16.mxu0 %v2918_v10 }
 0x148   : > { %2134 = vmatprep.subr.bf16.mxu1 %v2921_v11 }
 0x14a   : > { %2094 = vmatpush2.bf16.msra.mxu0 %v2916_v12 }
 0x14b   : > { %2135 = vmatpush2.bf16.msra.mxu1 %v2919_v13 }
 0x14d   : > { %2096 = vmatmul.mubr.bf16.vlgmr.msra.gmra.mxu0 %v3557_v8 }
 0x14e   : > { %2137 = vmatmul.mubr.bf16.vlgmr.msra.gmra.mxu1 %v3636_v14 }
 0x18d   : > { %v1933_v15 = vpop.f32.mrf.mxu0 }
 0x18e   : > { %v1974_v16 = vpop.f32.mrf.mxu1 }
 0x18f   : > { %v1935_v17 = vpop.f32.mrf.mxu0  ;;  %v1975_v7 = vadd.f32 %v1974_v16, %v1933_v15 }
 0x190   : > { %v1976_v18 = vpop.f32.mrf.mxu1 }
 0x191   : > { %v1937_v19 = vpop.f32.mrf.mxu0  ;;  %v1977_v26 = vadd.f32 %v1976_v18, %v1935_v17 }
 0x192   : > { %v1978_v20 = vpop.f32.mrf.mxu1 }
 0x193   : > { %v1938_v21 = vpop.f32.mrf.mxu0 }
 0x194   : > { %v1979_v22 = vpop.f32.mrf.mxu1 }
 0x1cd   : > { %v2015_v24 = vpop.f32.mrf.mxu0 }
 0x1ce   : > { %v2056_v25 = vpop.f32.mrf.mxu1  ;;  %v2016_v52 = vadd.f32 %v2015_v24, %v1975_v7 }
 0x1cf   : > { %v2017_v28 = vpop.f32.mrf.mxu0 }
 0x1d0   : > { %v2058_v29 = vpop.f32.mrf.mxu1  ;;  %v2145_v8 = vadd.f32 %v2016_v52, %v719_v23  ;;  %v2018_v30 = vadd.f32 %v2017_v28, %v1977_v26 }
 0x1d1   : > { %v2019_v14 = vpop.f32.mrf.mxu0 }
 0x1d2   : > { %v2060_v31 = vpop.f32.mrf.mxu1  ;;  %2149 = vst [vmem:[#allocation2 + $0x10] sm:$0xff] %v2145_v8  ;;  %v2146_v32 = vadd.f32 %v2018_v30, %v720_v27 }
 0x1d3   : > { %v2020_v33 = vpop.f32.mrf.mxu0 }
 0x1d4   : > { %v2061_v34 = vpop.f32.mrf.mxu1  ;;  %2150 = vst [vmem:[#allocation2] sm:$0xff] %v2146_v32 }
 0x20d   : > { %v2097_v35 = vpop.f32.mrf.mxu0 }
 0x20e   : > { %v2138_v36 = vpop.f32.mrf.mxu1  ;;  %v2098_v37 = vadd.f32 %v2097_v35, %v2056_v25 }
 0x20f   : > { %v2099_v39 = vpop.f32.mrf.mxu0 }
 0x210   : > { %v2140_v40 = vpop.f32.mrf.mxu1  ;;  %v2139_v41 = vadd.f32 %v2138_v36, %v2098_v37  ;;  %v2100_v42 = vadd.f32 %v2099_v39, %v2058_v29 }
 0x211   : > { %v2101_v44 = vpop.f32.mrf.mxu0 }
 0x212   : > { %v2142_v45 = vpop.f32.mrf.mxu1  ;;  %v2147_v46 = vadd.f32 %v2139_v41, %v721_v38  ;;  %v2141_v47 = vadd.f32 %v2140_v40, %v2100_v42  ;;  %2156 = sbr.rel (%p2565_p13) target bundleno = 551 (0x227), region = 67 }
 0x213   : > { %v2102_v48 = vpop.f32.mrf.mxu0 }
 0x214   : > { %v2143_v49 = vpop.f32.mrf.mxu1  ;;  %2151 = vst [vmem:[#allocation2 + $0x18] sm:$0xff] %v2147_v46  ;;  %v2148_v50 = vadd.f32 %v2141_v47, %v722_v43 }
 0x216   : > { %2152 = vst [vmem:[#allocation2 + $0x8] sm:$0xff] %v2148_v50 }
 0x217   : > { %v2163_v51 = vlaneseq  ;;  %v2161_v54 = vld [vmem:[%s694_s15] sm:$0xf]  ;;  %v2157_v60 = vld [vmem:[#allocation2 + $0x10] sm:$0xff] }
 0x218   : > { %v2187_v55 = vld [vmem:[%s699_s8] sm:$0xf] }
 0x219   : > { %v2164_v53 = vshrl.u32 %v2163_v51, 7  ;;  %v2158_v61 = vld [vmem:[#allocation2] sm:$0xff] }
 0x21b   : > { %v2165_v56 = vsub.s32 0, %v2164_v53  ;;  %v2169_v57 = vsub.s32 1, %v2164_v53  ;;  %v2173_v58 = vsub.s32 2, %v2164_v53  ;;  %v2177_v59 = vsub.s32 3, %v2164_v53  ;;  %v2159_v2 = vld [vmem:[#allocation2 + $0x18] sm:$0xff] }
 0x21d   : > { %v2166_v62 = vrot.slane %v2161_v54, %v2165_v56  ;;  %v2192_v63 = vrot.slane %v2187_v55, %v2165_v56  ;;  %v2170_v0 = vrot.slane %v2161_v54, %v2169_v57  ;;  %v2196_v1 = vrot.slane %v2187_v55, %v2169_v57  ;;  %v2160_v3 = vld [vmem:[#allocation2 + $0x8] sm:$0xff] }
 0x21e   : > { %v2174_v4 = vrot.slane %v2161_v54, %v2173_v58  ;;  %v2200_v5 = vrot.slane %v2187_v55, %v2173_v58  ;;  %v2178_v6 = vrot.slane %v2161_v54, %v2177_v59  ;;  %v2204_v9 = vrot.slane %v2187_v55, %v2177_v59 }
 0x21f   : > { %v2183_v10 = vmul.f32 %v2166_v62, %v2157_v60  ;;  %v2184_v11 = vmul.f32 %v2170_v0, %v2158_v61 }
 0x220   : > { %v2185_v12 = vmul.f32 %v2174_v4, %v2159_v2  ;;  %v2186_v13 = vmul.f32 %v2178_v6, %v2160_v3 }
 0x221   : > { %v2209_v15 = vadd.f32 %v2192_v63, %v2183_v10  ;;  %v2210_v16 = vadd.f32 %v2196_v1, %v2184_v11 }
 0x222   : > { %v2211_v17 = vadd.f32 %v2200_v5, %v2185_v12  ;;  %v2212_v18 = vadd.f32 %v2204_v9, %v2186_v13 }
 0x223   : > { %v2213_v19 = vmax.f32 %v2209_v15, 0.0  ;;  %v2214_v20 = vmax.f32 %v2210_v16, 0.0 }
 0x224   : > { %v2215_v21 = vmax.f32 %v2211_v17, 0.0  ;;  %v2216_v22 = vmax.f32 %v2212_v18, 0.0 }
 0x225   : > { %2217 = vst [vmem:[%s3476_s12] sm:$0xff] %v2213_v19  ;;  %2218 = vst [vmem:[%s3476_s12 + $0x8] sm:$0xff] %v2214_v20 }
 0x226   : > { %2219 = vst [vmem:[%s3476_s12 + $0x10] sm:$0xff] %v2215_v21  ;;  %2220 = vst [vmem:[%s3476_s12 + $0x18] sm:$0xff] %v2216_v22 }
 0x227 PF: > { %s14_s21 = sadd.s32 1, %s2976_s21   ;;  %s3747_s15 = smov %s2956_s16 }
 0x228   : > { %p11_p0 = scmp.ge.s32.totalorder %s14_s21, 26   ;;  %s3748_s16 = smov %s3055_s28 }
 0x229   : > { %s3749_s17 = smov %s2968_s19  ;;  %s3750_s18 = smov %s2972_s20 }
 0x22a   : > { %s3751_s19 = smov %s3754_s22  ;;  %s3752_s20 = smov %s3758_s23 }
 0x22b   :  { %13 = sbr.rel (!%p11_p0) target bundleno = 4 (0x4), region = 111 }

// kernel: forward.13
= control target key start
LH: loop header
LB: loop body
LE: loop exit
PB: predicated region body
PF: predicated region fallthrough
CT: control target
= control target key end

     0   :  { %s3772_s15 = smov 0   ;;  %s3774_s16 = smov 0   ;;  %s4717_s0 = inlined_call_operand.vmem [shape: bf16[8,4096], index: 0, kind: input, shape index: {}]   ;;  %s4718_s1 = inlined_call_operand.vmem [shape: bf16[4096,4096], index: 1, kind: input, shape index: {}]   ;;  %s4719_s2 = inlined_call_operand.vmem [shape: f32[1,4096], index: 2, kind: input, shape index: {}]   ;;  %s4720_s3 = inlined_call_operand.vmem [shape: f32[1,4096], index: 3, kind: input, shape index: {}]   ;;  %s4721_s4 = inlined_call_operand.vmem [shape: f32[8,4096], index: 4, kind: output, shape index: {}]  }
   0x1   :  { %s3776_s17 = smov 0   ;;  %s3778_s18 = smov 0  }
   0x2   :  { %s3780_s19 = smov 0   ;;  %s3782_s20 = smov 0  }
   0x3   :  { %s3784_s21 = smov 0  }
   0x4 LB: > { %s26_s22 = sadd.s32 1, %s3736_s19  ;;  %s29_s23 = sadd.s32 1, %s3740_s20  ;;  %s3744_s21 = sphi %s3784_s21, %s14_s21   ;;  %s3740_s20 = sphi %s3782_s20, %s4727_s20   ;;  %s3736_s19 = sphi %s3780_s19, %s4726_s19   ;;  %s3732_s18 = sphi %s3778_s18, %s4725_s18   ;;  %s3728_s17 = sphi %s3776_s17, %s4724_s17   ;;  %s3724_s16 = sphi %s3774_s16, %s4723_s16   ;;  %s3720_s15 = sphi %s3772_s15, %s4722_s15  }
   0x5   : > { %p27_p0 = scmp.ge.s32.totalorder %s26_s22, 4  ;;  %p77_p1 = scmp.ne.s32.totalorder %s3724_s16, %s3720_s15 }
   0x6   : > { %p78_p2 = scmp.eq.s32.totalorder %s3744_s21, 0  ;;  %s70_s27 = sadd.s32 1, %s3724_s16 }
   0x7   : > { %s4729_s22 = smov (%p27_p0, %s26_s22), 0  ;;  %s4731_s23 = smov (!%p27_p0, %s29_s23), %s3740_s20 }
   0x8   : > { %p79_p3 = por %p78_p2, %p77_p1  ;;  %p31_p4 = scmp.ge.s32.totalorder %s4731_s23, 8 }
   0x9   : > { %s65_s24 = ssub.s32 %s3736_s19, %s4729_s22  ;;  %p2958_p6 = scmp.ge.s32.totalorder %s3744_s21, 32 }
   0xa   : > { %s4733_s23 = smov (%p31_p4, %s4731_s23), 0 }
   0xb   : > { %s66_s25 = ssub.s32 %s3740_s20, %s4733_s23  ;;  %183 = sbr.rel (%p2958_p6) target bundleno = 151 (0x97), region = 16 }
   0xc   : > { %s67_s26 = sor.u32 %s66_s25, %s65_s24 }
   0xd   : > { %p68_p5 = scmp.eq.s32.totalorder %s67_s26, 0 }
   0xf   : > { %s3823_s28 = scalar_select %p68_p5, %s3724_s16, %s70_s27  }
  0x10   : > { %199 = sbr.rel (!%p79_p3) target bundleno = 151 (0x97), region = 24  ;;  %s201_s29 = sand.u32 (%p79_p3), 1, %s3724_s16  }
  0x11   : > { %s2961_s30 = sshll.u32 (%p79_p3), %s3740_s20, 2  ;;  %s2959_s5 = sshll.u32 (%p79_p3), %s201_s29, 11 }
  0x12   : > { %s3240_s6 = sshll.u32 (%p79_p3), %s3736_s19, 12  ;;  %s3837_s12 = scalar_lea.vmem (%p79_p3), [#allocation3], %s2959_s5 }
  0x13   : > { %s207_s7 = sadd.s32 (%p79_p3), %s3240_s6, %s2961_s30 }
  0x14   : > { %s2963_s8 = sshll.u32 (%p79_p3), %s207_s7, 2 }
  0x15   : > { %s3832_s11 = scalar_lea.vmem %s4718_s1, %s2963_s8 }
  0x16   : > { %v222_v0 = vld [vmem:[%s3832_s11] sm:$0xff]  ;;  %v224_v1 = vld [vmem:[%s3832_s11 + $0x8] sm:$0xff] }
  0x17   : > { %v226_v2 = vld [vmem:[%s3832_s11 + $0x80] sm:$0xff]  ;;  %223 = vst [vmem:[%s3837_s12] sm:$0xff] %v222_v0  ;;  %225 = vst [vmem:[%s3837_s12 + $0x8] sm:$0xff] %v224_v1  ;;  %v228_v3 = vld [vmem:[%s3832_s11 + $0x88] sm:$0xff] }
  0x18   : > { %227 = vst [vmem:[%s3837_s12 + $0x10] sm:$0xff] %v226_v2  ;;  %v230_v4 = vld [vmem:[%s3832_s11 + $0x100] sm:$0xff]  ;;  %v232_v5 = vld [vmem:[%s3832_s11 + $0x108] sm:$0xff]  ;;  %229 = vst [vmem:[%s3837_s12 + $0x18] sm:$0xff] %v228_v3 }
  0x19   : > { %231 = vst [vmem:[%s3837_s12 + $0x20] sm:$0xff] %v230_v4  ;;  %233 = vst [vmem:[%s3837_s12 + $0x28] sm:$0xff] %v232_v5  ;;  %v234_v6 = vld [vmem:[%s3832_s11 + $0x180] sm:$0xff]  ;;  %v236_v7 = vld [vmem:[%s3832_s11 + $0x188] sm:$0xff] }
  0x1a   : > { %v238_v8 = vld [vmem:[%s3832_s11 + $0x200] sm:$0xff]  ;;  %235 = vst [vmem:[%s3837_s12 + $0x30] sm:$0xff] %v234_v6  ;;  %237 = vst [vmem:[%s3837_s12 + $0x38] sm:$0xff] %v236_v7  ;;  %v240_v9 = vld [vmem:[%s3832_s11 + $0x208] sm:$0xff] }
  0x1b   : > { %239 = vst [vmem:[%s3837_s12 + $0x40] sm:$0xff] %v238_v8  ;;  %v242_v10 = vld [vmem:[%s3832_s11 + $0x280] sm:$0xff]  ;;  %v244_v11 = vld [vmem:[%s3832_s11 + $0x288] sm:$0xff]  ;;  %241 = vst [vmem:[%s3837_s12 + $0x48] sm:$0xff] %v240_v9 }
  0x1c   : > { %243 = vst [vmem:[%s3837_s12 + $0x50] sm:$0xff] %v242_v10  ;;  %245 = vst [vmem:[%s3837_s12 + $0x58] sm:$0xff] %v244_v11  ;;  %v246_v12 = vld [vmem:[%s3832_s11 + $0x300] sm:$0xff]  ;;  %v248_v13 = vld [vmem:[%s3832_s11 + $0x308] sm:$0xff] }
  0x1d   : > { %v250_v14 = vld [vmem:[%s3832_s11 + $0x380] sm:$0xff]  ;;  %247 = vst [vmem:[%s3837_s12 + $0x60] sm:$0xff] %v246_v12  ;;  %249 = vst [vmem:[%s3837_s12 + $0x68] sm:$0xff] %v248_v13  ;;  %v252_v15 = vld [vmem:[%s3832_s11 + $0x388] sm:$0xff] }
  0x1e   : > { %251 = vst [vmem:[%s3837_s12 + $0x70] sm:$0xff] %v250_v14  ;;  %v254_v16 = vld [vmem:[%s3832_s11 + $0x400] sm:$0xff]  ;;  %v256_v17 = vld [vmem:[%s3832_s11 + $0x408] sm:$0xff]  ;;  %253 = vst [vmem:[%s3837_s12 + $0x78] sm:$0xff] %v252_v15 }
  0x1f   : > { %255 = vst [vmem:[%s3837_s12 + $0x80] sm:$0xff] %v254_v16  ;;  %257 = vst [vmem:[%s3837_s12 + $0x88] sm:$0xff] %v256_v17  ;;  %v258_v18 = vld [vmem:[%s3832_s11 + $0x480] sm:$0xff]  ;;  %v260_v19 = vld [vmem:[%s3832_s11 + $0x488] sm:$0xff] }
  0x20   : > { %v262_v20 = vld [vmem:[%s3832_s11 + $0x500] sm:$0xff]  ;;  %259 = vst [vmem:[%s3837_s12 + $0x90] sm:$0xff] %v258_v18  ;;  %261 = vst [vmem:[%s3837_s12 + $0x98] sm:$0xff] %v260_v19  ;;  %v264_v21 = vld [vmem:[%s3832_s11 + $0x508] sm:$0xff] }
  0x21   : > { %263 = vst [vmem:[%s3837_s12 + $0xa0] sm:$0xff] %v262_v20  ;;  %v266_v22 = vld [vmem:[%s3832_s11 + $0x580] sm:$0xff]  ;;  %v268_v23 = vld [vmem:[%s3832_s11 + $0x588] sm:$0xff]  ;;  %265 = vst [vmem:[%s3837_s12 + $0xa8] sm:$0xff] %v264_v21 }
  0x22   : > { %267 = vst [vmem:[%s3837_s12 + $0xb0] sm:$0xff] %v266_v22  ;;  %269 = vst [vmem:[%s3837_s12 + $0xb8] sm:$0xff] %v268_v23  ;;  %v270_v24 = vld [vmem:[%s3832_s11 + $0x600] sm:$0xff]  ;;  %v272_v25 = vld [vmem:[%s3832_s11 + $0x608] sm:$0xff] }
  0x23   : > { %v274_v26 = vld [vmem:[%s3832_s11 + $0x680] sm:$0xff]  ;;  %271 = vst [vmem:[%s3837_s12 + $0xc0] sm:$0xff] %v270_v24  ;;  %273 = vst [vmem:[%s3837_s12 + $0xc8] sm:$0xff] %v272_v25  ;;  %v276_v27 = vld [vmem:[%s3832_s11 + $0x688] sm:$0xff] }
  0x24   : > { %275 = vst [vmem:[%s3837_s12 + $0xd0] sm:$0xff] %v274_v26  ;;  %v278_v28 = vld [vmem:[%s3832_s11 + $0x700] sm:$0xff]  ;;  %v280_v29 = vld [vmem:[%s3832_s11 + $0x708] sm:$0xff]  ;;  %277 = vst [vmem:[%s3837_s12 + $0xd8] sm:$0xff] %v276_v27 }
  0x25   : > { %279 = vst [vmem:[%s3837_s12 + $0xe0] sm:$0xff] %v278_v28  ;;  %281 = vst [vmem:[%s3837_s12 + $0xe8] sm:$0xff] %v280_v29  ;;  %v282_v30 = vld [vmem:[%s3832_s11 + $0x780] sm:$0xff]  ;;  %v284_v31 = vld [vmem:[%s3832_s11 + $0x788] sm:$0xff] }
  0x26   : > { %v286_v32 = vld [vmem:[%s3832_s11 + $0x800] sm:$0xff]  ;;  %283 = vst [vmem:[%s3837_s12 + $0xf0] sm:$0xff] %v282_v30  ;;  %285 = vst [vmem:[%s3837_s12 + $0xf8] sm:$0xff] %v284_v31  ;;  %v288_v33 = vld [vmem:[%s3832_s11 + $0x808] sm:$0xff] }
  0x27   : > { %287 = vst [vmem:[%s3837_s12 + $0x100] sm:$0xff] %v286_v32  ;;  %v290_v34 = vld [vmem:[%s3832_s11 + $0x880] sm:$0xff]  ;;  %v292_v35 = vld [vmem:[%s3832_s11 + $0x888] sm:$0xff]  ;;  %289 = vst [vmem:[%s3837_s12 + $0x108] sm:$0xff] %v288_v33 }
  0x28   : > { %291 = vst [vmem:[%s3837_s12 + $0x110] sm:$0xff] %v290_v34  ;;  %293 = vst [vmem:[%s3837_s12 + $0x118] sm:$0xff] %v292_v35  ;;  %v294_v36 = vld [vmem:[%s3832_s11 + $0x900] sm:$0xff]  ;;  %v296_v37 = vld [vmem:[%s3832_s11 + $0x908] sm:$0xff] }
  0x29   : > { %v298_v38 = vld [vmem:[%s3832_s11 + $0x980] sm:$0xff]  ;;  %295 = vst [vmem:[%s3837_s12 + $0x120] sm:$0xff] %v294_v36  ;;  %297 = vst [vmem:[%s3837_s12 + $0x128] sm:$0xff] %v296_v37  ;;  %v300_v39 = vld [vmem:[%s3832_s11 + $0x988] sm:$0xff] }
  0x2a   : > { %299 = vst [vmem:[%s3837_s12 + $0x130] sm:$0xff] %v298_v38  ;;  %v302_v40 = vld [vmem:[%s3832_s11 + $0xa00] sm:$0xff]  ;;  %v304_v41 = vld [vmem:[%s3832_s11 + $0xa08] sm:$0xff]  ;;  %301 = vst [vmem:[%s3837_s12 + $0x138] sm:$0xff] %v300_v39 }
  0x2b   : > { %303 = vst [vmem:[%s3837_s12 + $0x140] sm:$0xff] %v302_v40  ;;  %305 = vst [vmem:[%s3837_s12 + $0x148] sm:$0xff] %v304_v41  ;;  %v306_v42 = vld [vmem:[%s3832_s11 + $0xa80] sm:$0xff]  ;;  %v308_v43 = vld [vmem:[%s3832_s11 + $0xa88] sm:$0xff] }
  0x2c   : > { %v310_v44 = vld [vmem:[%s3832_s11 + $0xb00] sm:$0xff]  ;;  %307 = vst [vmem:[%s3837_s12 + $0x150] sm:$0xff] %v306_v42  ;;  %309 = vst [vmem:[%s3837_s12 + $0x158] sm:$0xff] %v308_v43  ;;  %v312_v45 = vld [vmem:[%s3832_s11 + $0xb08] sm:$0xff] }
  0x2d   : > { %311 = vst [vmem:[%s3837_s12 + $0x160] sm:$0xff] %v310_v44  ;;  %v314_v46 = vld [vmem:[%s3832_s11 + $0xb80] sm:$0xff]  ;;  %v316_v47 = vld [vmem:[%s3832_s11 + $0xb88] sm:$0xff]  ;;  %313 = vst [vmem:[%s3837_s12 + $0x168] sm:$0xff] %v312_v45 }
  0x2e   : > { %315 = vst [vmem:[%s3837_s12 + $0x170] sm:$0xff] %v314_v46  ;;  %317 = vst [vmem:[%s3837_s12 + $0x178] sm:$0xff] %v316_v47  ;;  %v318_v48 = vld [vmem:[%s3832_s11 + $0xc00] sm:$0xff]  ;;  %v320_v49 = vld [vmem:[%s3832_s11 + $0xc08] sm:$0xff] }
  0x2f   : > { %v322_v50 = vld [vmem:[%s3832_s11 + $0xc80] sm:$0xff]  ;;  %319 = vst [vmem:[%s3837_s12 + $0x180] sm:$0xff] %v318_v48  ;;  %321 = vst [vmem:[%s3837_s12 + $0x188] sm:$0xff] %v320_v49  ;;  %v324_v51 = vld [vmem:[%s3832_s11 + $0xc88] sm:$0xff] }
  0x30   : > { %323 = vst [vmem:[%s3837_s12 + $0x190] sm:$0xff] %v322_v50  ;;  %v326_v52 = vld [vmem:[%s3832_s11 + $0xd00] sm:$0xff]  ;;  %v328_v53 = vld [vmem:[%s3832_s11 + $0xd08] sm:$0xff]  ;;  %325 = vst [vmem:[%s3837_s12 + $0x198] sm:$0xff] %v324_v51 }
  0x31   : > { %327 = vst [vmem:[%s3837_s12 + $0x1a0] sm:$0xff] %v326_v52  ;;  %329 = vst [vmem:[%s3837_s12 + $0x1a8] sm:$0xff] %v328_v53  ;;  %v330_v54 = vld [vmem:[%s3832_s11 + $0xd80] sm:$0xff]  ;;  %v332_v55 = vld [vmem:[%s3832_s11 + $0xd88] sm:$0xff] }
  0x32   : > { %v334_v56 = vld [vmem:[%s3832_s11 + $0xe00] sm:$0xff]  ;;  %331 = vst [vmem:[%s3837_s12 + $0x1b0] sm:$0xff] %v330_v54  ;;  %333 = vst [vmem:[%s3837_s12 + $0x1b8] sm:$0xff] %v332_v55  ;;  %v336_v57 = vld [vmem:[%s3832_s11 + $0xe08] sm:$0xff] }
  0x33   : > { %335 = vst [vmem:[%s3837_s12 + $0x1c0] sm:$0xff] %v334_v56  ;;  %v338_v58 = vld [vmem:[%s3832_s11 + $0xe80] sm:$0xff]  ;;  %v340_v59 = vld [vmem:[%s3832_s11 + $0xe88] sm:$0xff]  ;;  %337 = vst [vmem:[%s3837_s12 + $0x1c8] sm:$0xff] %v336_v57 }
  0x34   : > { %339 = vst [vmem:[%s3837_s12 + $0x1d0] sm:$0xff] %v338_v58  ;;  %341 = vst [vmem:[%s3837_s12 + $0x1d8] sm:$0xff] %v340_v59  ;;  %v342_v60 = vld [vmem:[%s3832_s11 + $0xf00] sm:$0xff]  ;;  %v344_v61 = vld [vmem:[%s3832_s11 + $0xf08] sm:$0xff] }
  0x35   : > { %v346_v62 = vld [vmem:[%s3832_s11 + $0xf80] sm:$0xff]  ;;  %343 = vst [vmem:[%s3837_s12 + $0x1e0] sm:$0xff] %v342_v60  ;;  %345 = vst [vmem:[%s3837_s12 + $0x1e8] sm:$0xff] %v344_v61  ;;  %v348_v63 = vld [vmem:[%s3832_s11 + $0xf88] sm:$0xff] }
  0x36   : > { %347 = vst [vmem:[%s3837_s12 + $0x1f0] sm:$0xff] %v346_v62  ;;  %v350_v0 = vld [vmem:[%s3832_s11 + $0x1000] sm:$0xff]  ;;  %v352_v1 = vld [vmem:[%s3832_s11 + $0x1008] sm:$0xff]  ;;  %349 = vst [vmem:[%s3837_s12 + $0x1f8] sm:$0xff] %v348_v63 }
  0x37   : > { %351 = vst [vmem:[%s3837_s12 + $0x200] sm:$0xff] %v350_v0  ;;  %353 = vst [vmem:[%s3837_s12 + $0x208] sm:$0xff] %v352_v1  ;;  %v354_v2 = vld [vmem:[%s3832_s11 + $0x1080] sm:$0xff]  ;;  %v356_v3 = vld [vmem:[%s3832_s11 + $0x1088] sm:$0xff] }
  0x38   : > { %v358_v4 = vld [vmem:[%s3832_s11 + $0x1100] sm:$0xff]  ;;  %355 = vst [vmem:[%s3837_s12 + $0x210] sm:$0xff] %v354_v2  ;;  %357 = vst [vmem:[%s3837_s12 + $0x218] sm:$0xff] %v356_v3  ;;  %v360_v5 = vld [vmem:[%s3832_s11 + $0x1108] sm:$0xff] }
  0x39   : > { %359 = vst [vmem:[%s3837_s12 + $0x220] sm:$0xff] %v358_v4  ;;  %v362_v6 = vld [vmem:[%s3832_s11 + $0x1180] sm:$0xff]  ;;  %v364_v7 = vld [vmem:[%s3832_s11 + $0x1188] sm:$0xff]  ;;  %361 = vst [vmem:[%s3837_s12 + $0x228] sm:$0xff] %v360_v5 }
  0x3a   : > { %363 = vst [vmem:[%s3837_s12 + $0x230] sm:$0xff] %v362_v6  ;;  %365 = vst [vmem:[%s3837_s12 + $0x238] sm:$0xff] %v364_v7  ;;  %v366_v8 = vld [vmem:[%s3832_s11 + $0x1200] sm:$0xff]  ;;  %v368_v9 = vld [vmem:[%s3832_s11 + $0x1208] sm:$0xff] }
  0x3b   : > { %v370_v10 = vld [vmem:[%s3832_s11 + $0x1280] sm:$0xff]  ;;  %367 = vst [vmem:[%s3837_s12 + $0x240] sm:$0xff] %v366_v8  ;;  %369 = vst [vmem:[%s3837_s12 + $0x248] sm:$0xff] %v368_v9  ;;  %v372_v11 = vld [vmem:[%s3832_s11 + $0x1288] sm:$0xff] }
  0x3c   : > { %371 = vst [vmem:[%s3837_s12 + $0x250] sm:$0xff] %v370_v10  ;;  %v374_v12 = vld [vmem:[%s3832_s11 + $0x1300] sm:$0xff]  ;;  %v376_v13 = vld [vmem:[%s3832_s11 + $0x1308] sm:$0xff]  ;;  %373 = vst [vmem:[%s3837_s12 + $0x258] sm:$0xff] %v372_v11 }
  0x3d   : > { %375 = vst [vmem:[%s3837_s12 + $0x260] sm:$0xff] %v374_v12  ;;  %377 = vst [vmem:[%s3837_s12 + $0x268] sm:$0xff] %v376_v13  ;;  %v378_v14 = vld [vmem:[%s3832_s11 + $0x1380] sm:$0xff]  ;;  %v380_v15 = vld [vmem:[%s3832_s11 + $0x1388] sm:$0xff] }
  0x3e   : > { %v382_v16 = vld [vmem:[%s3832_s11 + $0x1400] sm:$0xff]  ;;  %379 = vst [vmem:[%s3837_s12 + $0x270] sm:$0xff] %v378_v14  ;;  %381 = vst [vmem:[%s3837_s12 + $0x278] sm:$0xff] %v380_v15  ;;  %v384_v17 = vld [vmem:[%s3832_s11 + $0x1408] sm:$0xff] }
  0x3f   : > { %383 = vst [vmem:[%s3837_s12 + $0x280] sm:$0xff] %v382_v16  ;;  %v386_v18 = vld [vmem:[%s3832_s11 + $0x1480] sm:$0xff]  ;;  %v388_v19 = vld [vmem:[%s3832_s11 + $0x1488] sm:$0xff]  ;;  %385 = vst [vmem:[%s3837_s12 + $0x288] sm:$0xff] %v384_v17 }
  0x40   : > { %387 = vst [vmem:[%s3837_s12 + $0x290] sm:$0xff] %v386_v18  ;;  %389 = vst [vmem:[%s3837_s12 + $0x298] sm:$0xff] %v388_v19  ;;  %v390_v20 = vld [vmem:[%s3832_s11 + $0x1500] sm:$0xff]  ;;  %v392_v21 = vld [vmem:[%s3832_s11 + $0x1508] sm:$0xff] }
  0x41   : > { %v394_v22 = vld [vmem:[%s3832_s11 + $0x1580] sm:$0xff]  ;;  %391 = vst [vmem:[%s3837_s12 + $0x2a0] sm:$0xff] %v390_v20  ;;  %393 = vst [vmem:[%s3837_s12 + $0x2a8] sm:$0xff] %v392_v21  ;;  %v396_v23 = vld [vmem:[%s3832_s11 + $0x1588] sm:$0xff] }
  0x42   : > { %395 = vst [vmem:[%s3837_s12 + $0x2b0] sm:$0xff] %v394_v22  ;;  %v398_v24 = vld [vmem:[%s3832_s11 + $0x1600] sm:$0xff]  ;;  %v400_v25 = vld [vmem:[%s3832_s11 + $0x1608] sm:$0xff]  ;;  %397 = vst [vmem:[%s3837_s12 + $0x2b8] sm:$0xff] %v396_v23 }
  0x43   : > { %399 = vst [vmem:[%s3837_s12 + $0x2c0] sm:$0xff] %v398_v24  ;;  %401 = vst [vmem:[%s3837_s12 + $0x2c8] sm:$0xff] %v400_v25  ;;  %v402_v26 = vld [vmem:[%s3832_s11 + $0x1680] sm:$0xff]  ;;  %v404_v27 = vld [vmem:[%s3832_s11 + $0x1688] sm:$0xff] }
  0x44   : > { %v406_v28 = vld [vmem:[%s3832_s11 + $0x1700] sm:$0xff]  ;;  %403 = vst [vmem:[%s3837_s12 + $0x2d0] sm:$0xff] %v402_v26  ;;  %405 = vst [vmem:[%s3837_s12 + $0x2d8] sm:$0xff] %v404_v27  ;;  %v408_v29 = vld [vmem:[%s3832_s11 + $0x1708] sm:$0xff] }
  0x45   : > { %407 = vst [vmem:[%s3837_s12 + $0x2e0] sm:$0xff] %v406_v28  ;;  %v410_v30 = vld [vmem:[%s3832_s11 + $0x1780] sm:$0xff]  ;;  %v412_v31 = vld [vmem:[%s3832_s11 + $0x1788] sm:$0xff]  ;;  %409 = vst [vmem:[%s3837_s12 + $0x2e8] sm:$0xff] %v408_v29 }
  0x46   : > { %411 = vst [vmem:[%s3837_s12 + $0x2f0] sm:$0xff] %v410_v30  ;;  %413 = vst [vmem:[%s3837_s12 + $0x2f8] sm:$0xff] %v412_v31  ;;  %v414_v32 = vld [vmem:[%s3832_s11 + $0x1800] sm:$0xff]  ;;  %v416_v33 = vld [vmem:[%s3832_s11 + $0x1808] sm:$0xff] }
  0x47   : > { %v418_v34 = vld [vmem:[%s3832_s11 + $0x1880] sm:$0xff]  ;;  %415 = vst [vmem:[%s3837_s12 + $0x300] sm:$0xff] %v414_v32  ;;  %417 = vst [vmem:[%s3837_s12 + $0x308] sm:$0xff] %v416_v33  ;;  %v420_v35 = vld [vmem:[%s3832_s11 + $0x1888] sm:$0xff] }
  0x48   : > { %419 = vst [vmem:[%s3837_s12 + $0x310] sm:$0xff] %v418_v34  ;;  %v422_v36 = vld [vmem:[%s3832_s11 + $0x1900] sm:$0xff]  ;;  %v424_v37 = vld [vmem:[%s3832_s11 + $0x1908] sm:$0xff]  ;;  %421 = vst [vmem:[%s3837_s12 + $0x318] sm:$0xff] %v420_v35 }
  0x49   : > { %423 = vst [vmem:[%s3837_s12 + $0x320] sm:$0xff] %v422_v36  ;;  %425 = vst [vmem:[%s3837_s12 + $0x328] sm:$0xff] %v424_v37  ;;  %v426_v38 = vld [vmem:[%s3832_s11 + $0x1980] sm:$0xff]  ;;  %v428_v39 = vld [vmem:[%s3832_s11 + $0x1988] sm:$0xff] }
  0x4a   : > { %v430_v40 = vld [vmem:[%s3832_s11 + $0x1a00] sm:$0xff]  ;;  %427 = vst [vmem:[%s3837_s12 + $0x330] sm:$0xff] %v426_v38  ;;  %429 = vst [vmem:[%s3837_s12 + $0x338] sm:$0xff] %v428_v39  ;;  %v432_v41 = vld [vmem:[%s3832_s11 + $0x1a08] sm:$0xff] }
  0x4b   : > { %431 = vst [vmem:[%s3837_s12 + $0x340] sm:$0xff] %v430_v40  ;;  %v434_v42 = vld [vmem:[%s3832_s11 + $0x1a80] sm:$0xff]  ;;  %v436_v43 = vld [vmem:[%s3832_s11 + $0x1a88] sm:$0xff]  ;;  %433 = vst [vmem:[%s3837_s12 + $0x348] sm:$0xff] %v432_v41 }
  0x4c   : > { %435 = vst [vmem:[%s3837_s12 + $0x350] sm:$0xff] %v434_v42  ;;  %437 = vst [vmem:[%s3837_s12 + $0x358] sm:$0xff] %v436_v43  ;;  %v438_v44 = vld [vmem:[%s3832_s11 + $0x1b00] sm:$0xff]  ;;  %v440_v45 = vld [vmem:[%s3832_s11 + $0x1b08] sm:$0xff] }
  0x4d   : > { %v442_v46 = vld [vmem:[%s3832_s11 + $0x1b80] sm:$0xff]  ;;  %439 = vst [vmem:[%s3837_s12 + $0x360] sm:$0xff] %v438_v44  ;;  %441 = vst [vmem:[%s3837_s12 + $0x368] sm:$0xff] %v440_v45  ;;  %v444_v47 = vld [vmem:[%s3832_s11 + $0x1b88] sm:$0xff] }
  0x4e   : > { %443 = vst [vmem:[%s3837_s12 + $0x370] sm:$0xff] %v442_v46  ;;  %v446_v48 = vld [vmem:[%s3832_s11 + $0x1c00] sm:$0xff]  ;;  %v448_v49 = vld [vmem:[%s3832_s11 + $0x1c08] sm:$0xff]  ;;  %445 = vst [vmem:[%s3837_s12 + $0x378] sm:$0xff] %v444_v47 }
  0x4f   : > { %447 = vst [vmem:[%s3837_s12 + $0x380] sm:$0xff] %v446_v48  ;;  %449 = vst [vmem:[%s3837_s12 + $0x388] sm:$0xff] %v448_v49  ;;  %v450_v50 = vld [vmem:[%s3832_s11 + $0x1c80] sm:$0xff]  ;;  %v452_v51 = vld [vmem:[%s3832_s11 + $0x1c88] sm:$0xff] }
  0x50   : > { %v454_v52 = vld [vmem:[%s3832_s11 + $0x1d00] sm:$0xff]  ;;  %451 = vst [vmem:[%s3837_s12 + $0x390] sm:$0xff] %v450_v50  ;;  %453 = vst [vmem:[%s3837_s12 + $0x398] sm:$0xff] %v452_v51  ;;  %v456_v53 = vld [vmem:[%s3832_s11 + $0x1d08] sm:$0xff] }
  0x51   : > { %455 = vst [vmem:[%s3837_s12 + $0x3a0] sm:$0xff] %v454_v52  ;;  %v458_v54 = vld [vmem:[%s3832_s11 + $0x1d80] sm:$0xff]  ;;  %v460_v55 = vld [vmem:[%s3832_s11 + $0x1d88] sm:$0xff]  ;;  %457 = vst [vmem:[%s3837_s12 + $0x3a8] sm:$0xff] %v456_v53 }
  0x52   : > { %459 = vst [vmem:[%s3837_s12 + $0x3b0] sm:$0xff] %v458_v54  ;;  %461 = vst [vmem:[%s3837_s12 + $0x3b8] sm:$0xff] %v460_v55  ;;  %v462_v56 = vld [vmem:[%s3832_s11 + $0x1e00] sm:$0xff]  ;;  %v464_v57 = vld [vmem:[%s3832_s11 + $0x1e08] sm:$0xff] }
  0x53   : > { %v466_v58 = vld [vmem:[%s3832_s11 + $0x1e80] sm:$0xff]  ;;  %463 = vst [vmem:[%s3837_s12 + $0x3c0] sm:$0xff] %v462_v56  ;;  %465 = vst [vmem:[%s3837_s12 + $0x3c8] sm:$0xff] %v464_v57  ;;  %v468_v59 = vld [vmem:[%s3832_s11 + $0x1e88] sm:$0xff] }
  0x54   : > { %467 = vst [vmem:[%s3837_s12 + $0x3d0] sm:$0xff] %v466_v58  ;;  %v470_v60 = vld [vmem:[%s3832_s11 + $0x1f00] sm:$0xff]  ;;  %v472_v61 = vld [vmem:[%s3832_s11 + $0x1f08] sm:$0xff]  ;;  %469 = vst [vmem:[%s3837_s12 + $0x3d8] sm:$0xff] %v468_v59 }
  0x55   : > { %471 = vst [vmem:[%s3837_s12 + $0x3e0] sm:$0xff] %v470_v60  ;;  %473 = vst [vmem:[%s3837_s12 + $0x3e8] sm:$0xff] %v472_v61  ;;  %v474_v62 = vld [vmem:[%s3832_s11 + $0x1f80] sm:$0xff]  ;;  %v476_v63 = vld [vmem:[%s3832_s11 + $0x1f88] sm:$0xff] }
  0x56   : > { %v478_v0 = vld [vmem:[%s3832_s11 + $0x2000] sm:$0xff]  ;;  %475 = vst [vmem:[%s3837_s12 + $0x3f0] sm:$0xff] %v474_v62  ;;  %477 = vst [vmem:[%s3837_s12 + $0x3f8] sm:$0xff] %v476_v63  ;;  %v480_v1 = vld [vmem:[%s3832_s11 + $0x2008] sm:$0xff] }
  0x57   : > { %479 = vst [vmem:[%s3837_s12 + $0x400] sm:$0xff] %v478_v0  ;;  %v482_v2 = vld [vmem:[%s3832_s11 + $0x2080] sm:$0xff]  ;;  %v484_v3 = vld [vmem:[%s3832_s11 + $0x2088] sm:$0xff]  ;;  %481 = vst [vmem:[%s3837_s12 + $0x408] sm:$0xff] %v480_v1 }
  0x58   : > { %483 = vst [vmem:[%s3837_s12 + $0x410] sm:$0xff] %v482_v2  ;;  %485 = vst [vmem:[%s3837_s12 + $0x418] sm:$0xff] %v484_v3  ;;  %v486_v4 = vld [vmem:[%s3832_s11 + $0x2100] sm:$0xff]  ;;  %v488_v5 = vld [vmem:[%s3832_s11 + $0x2108] sm:$0xff] }
  0x59   : > { %v490_v6 = vld [vmem:[%s3832_s11 + $0x2180] sm:$0xff]  ;;  %487 = vst [vmem:[%s3837_s12 + $0x420] sm:$0xff] %v486_v4  ;;  %489 = vst [vmem:[%s3837_s12 + $0x428] sm:$0xff] %v488_v5  ;;  %v492_v7 = vld [vmem:[%s3832_s11 + $0x2188] sm:$0xff] }
  0x5a   : > { %491 = vst [vmem:[%s3837_s12 + $0x430] sm:$0xff] %v490_v6  ;;  %v494_v8 = vld [vmem:[%s3832_s11 + $0x2200] sm:$0xff]  ;;  %v496_v9 = vld [vmem:[%s3832_s11 + $0x2208] sm:$0xff]  ;;  %493 = vst [vmem:[%s3837_s12 + $0x438] sm:$0xff] %v492_v7 }
  0x5b   : > { %495 = vst [vmem:[%s3837_s12 + $0x440] sm:$0xff] %v494_v8  ;;  %497 = vst [vmem:[%s3837_s12 + $0x448] sm:$0xff] %v496_v9  ;;  %v498_v10 = vld [vmem:[%s3832_s11 + $0x2280] sm:$0xff]  ;;  %v500_v11 = vld [vmem:[%s3832_s11 + $0x2288] sm:$0xff] }
  0x5c   : > { %v502_v12 = vld [vmem:[%s3832_s11 + $0x2300] sm:$0xff]  ;;  %499 = vst [vmem:[%s3837_s12 + $0x450] sm:$0xff] %v498_v10  ;;  %501 = vst [vmem:[%s3837_s12 + $0x458] sm:$0xff] %v500_v11  ;;  %v504_v13 = vld [vmem:[%s3832_s11 + $0x2308] sm:$0xff] }
  0x5d   : > { %503 = vst [vmem:[%s3837_s12 + $0x460] sm:$0xff] %v502_v12  ;;  %v506_v14 = vld [vmem:[%s3832_s11 + $0x2380] sm:$0xff]  ;;  %v508_v15 = vld [vmem:[%s3832_s11 + $0x2388] sm:$0xff]  ;;  %505 = vst [vmem:[%s3837_s12 + $0x468] sm:$0xff] %v504_v13 }
  0x5e   : > { %507 = vst [vmem:[%s3837_s12 + $0x470] sm:$0xff] %v506_v14  ;;  %509 = vst [vmem:[%s3837_s12 + $0x478] sm:$0xff] %v508_v15  ;;  %v510_v16 = vld [vmem:[%s3832_s11 + $0x2400] sm:$0xff]  ;;  %v512_v17 = vld [vmem:[%s3832_s11 + $0x2408] sm:$0xff] }
  0x5f   : > { %v514_v18 = vld [vmem:[%s3832_s11 + $0x2480] sm:$0xff]  ;;  %511 = vst [vmem:[%s3837_s12 + $0x480] sm:$0xff] %v510_v16  ;;  %513 = vst [vmem:[%s3837_s12 + $0x488] sm:$0xff] %v512_v17  ;;  %v516_v19 = vld [vmem:[%s3832_s11 + $0x2488] sm:$0xff] }
  0x60   : > { %515 = vst [vmem:[%s3837_s12 + $0x490] sm:$0xff] %v514_v18  ;;  %v518_v20 = vld [vmem:[%s3832_s11 + $0x2500] sm:$0xff]  ;;  %v520_v21 = vld [vmem:[%s3832_s11 + $0x2508] sm:$0xff]  ;;  %517 = vst [vmem:[%s3837_s12 + $0x498] sm:$0xff] %v516_v19 }
  0x61   : > { %519 = vst [vmem:[%s3837_s12 + $0x4a0] sm:$0xff] %v518_v20  ;;  %521 = vst [vmem:[%s3837_s12 + $0x4a8] sm:$0xff] %v520_v21  ;;  %v522_v22 = vld [vmem:[%s3832_s11 + $0x2580] sm:$0xff]  ;;  %v524_v23 = vld [vmem:[%s3832_s11 + $0x2588] sm:$0xff] }
  0x62   : > { %v526_v24 = vld [vmem:[%s3832_s11 + $0x2600] sm:$0xff]  ;;  %523 = vst [vmem:[%s3837_s12 + $0x4b0] sm:$0xff] %v522_v22  ;;  %525 = vst [vmem:[%s3837_s12 + $0x4b8] sm:$0xff] %v524_v23  ;;  %v528_v25 = vld [vmem:[%s3832_s11 + $0x2608] sm:$0xff] }
  0x63   : > { %527 = vst [vmem:[%s3837_s12 + $0x4c0] sm:$0xff] %v526_v24  ;;  %v530_v26 = vld [vmem:[%s3832_s11 + $0x2680] sm:$0xff]  ;;  %v532_v27 = vld [vmem:[%s3832_s11 + $0x2688] sm:$0xff]  ;;  %529 = vst [vmem:[%s3837_s12 + $0x4c8] sm:$0xff] %v528_v25 }
  0x64   : > { %531 = vst [vmem:[%s3837_s12 + $0x4d0] sm:$0xff] %v530_v26  ;;  %533 = vst [vmem:[%s3837_s12 + $0x4d8] sm:$0xff] %v532_v27  ;;  %v534_v28 = vld [vmem:[%s3832_s11 + $0x2700] sm:$0xff]  ;;  %v536_v29 = vld [vmem:[%s3832_s11 + $0x2708] sm:$0xff] }
  0x65   : > { %v538_v30 = vld [vmem:[%s3832_s11 + $0x2780] sm:$0xff]  ;;  %535 = vst [vmem:[%s3837_s12 + $0x4e0] sm:$0xff] %v534_v28  ;;  %537 = vst [vmem:[%s3837_s12 + $0x4e8] sm:$0xff] %v536_v29  ;;  %v540_v31 = vld [vmem:[%s3832_s11 + $0x2788] sm:$0xff] }
  0x66   : > { %539 = vst [vmem:[%s3837_s12 + $0x4f0] sm:$0xff] %v538_v30  ;;  %v542_v32 = vld [vmem:[%s3832_s11 + $0x2800] sm:$0xff]  ;;  %v544_v33 = vld [vmem:[%s3832_s11 + $0x2808] sm:$0xff]  ;;  %541 = vst [vmem:[%s3837_s12 + $0x4f8] sm:$0xff] %v540_v31 }
  0x67   : > { %543 = vst [vmem:[%s3837_s12 + $0x500] sm:$0xff] %v542_v32  ;;  %545 = vst [vmem:[%s3837_s12 + $0x508] sm:$0xff] %v544_v33  ;;  %v546_v34 = vld [vmem:[%s3832_s11 + $0x2880] sm:$0xff]  ;;  %v548_v35 = vld [vmem:[%s3832_s11 + $0x2888] sm:$0xff] }
  0x68   : > { %v550_v36 = vld [vmem:[%s3832_s11 + $0x2900] sm:$0xff]  ;;  %547 = vst [vmem:[%s3837_s12 + $0x510] sm:$0xff] %v546_v34  ;;  %549 = vst [vmem:[%s3837_s12 + $0x518] sm:$0xff] %v548_v35  ;;  %v552_v37 = vld [vmem:[%s3832_s11 + $0x2908] sm:$0xff] }
  0x69   : > { %551 = vst [vmem:[%s3837_s12 + $0x520] sm:$0xff] %v550_v36  ;;  %v554_v38 = vld [vmem:[%s3832_s11 + $0x2980] sm:$0xff]  ;;  %v556_v39 = vld [vmem:[%s3832_s11 + $0x2988] sm:$0xff]  ;;  %553 = vst [vmem:[%s3837_s12 + $0x528] sm:$0xff] %v552_v37 }
  0x6a   : > { %555 = vst [vmem:[%s3837_s12 + $0x530] sm:$0xff] %v554_v38  ;;  %557 = vst [vmem:[%s3837_s12 + $0x538] sm:$0xff] %v556_v39  ;;  %v558_v40 = vld [vmem:[%s3832_s11 + $0x2a00] sm:$0xff]  ;;  %v560_v41 = vld [vmem:[%s3832_s11 + $0x2a08] sm:$0xff] }
  0x6b   : > { %v562_v42 = vld [vmem:[%s3832_s11 + $0x2a80] sm:$0xff]  ;;  %559 = vst [vmem:[%s3837_s12 + $0x540] sm:$0xff] %v558_v40  ;;  %561 = vst [vmem:[%s3837_s12 + $0x548] sm:$0xff] %v560_v41  ;;  %v564_v43 = vld [vmem:[%s3832_s11 + $0x2a88] sm:$0xff] }
  0x6c   : > { %563 = vst [vmem:[%s3837_s12 + $0x550] sm:$0xff] %v562_v42  ;;  %v566_v44 = vld [vmem:[%s3832_s11 + $0x2b00] sm:$0xff]  ;;  %v568_v45 = vld [vmem:[%s3832_s11 + $0x2b08] sm:$0xff]  ;;  %565 = vst [vmem:[%s3837_s12 + $0x558] sm:$0xff] %v564_v43 }
  0x6d   : > { %567 = vst [vmem:[%s3837_s12 + $0x560] sm:$0xff] %v566_v44  ;;  %569 = vst [vmem:[%s3837_s12 + $0x568] sm:$0xff] %v568_v45  ;;  %v570_v46 = vld [vmem:[%s3832_s11 + $0x2b80] sm:$0xff]  ;;  %v572_v47 = vld [vmem:[%s3832_s11 + $0x2b88] sm:$0xff] }
  0x6e   : > { %v574_v48 = vld [vmem:[%s3832_s11 + $0x2c00] sm:$0xff]  ;;  %571 = vst [vmem:[%s3837_s12 + $0x570] sm:$0xff] %v570_v46  ;;  %573 = vst [vmem:[%s3837_s12 + $0x578] sm:$0xff] %v572_v47  ;;  %v576_v49 = vld [vmem:[%s3832_s11 + $0x2c08] sm:$0xff] }
  0x6f   : > { %575 = vst [vmem:[%s3837_s12 + $0x580] sm:$0xff] %v574_v48  ;;  %v578_v50 = vld [vmem:[%s3832_s11 + $0x2c80] sm:$0xff]  ;;  %v580_v51 = vld [vmem:[%s3832_s11 + $0x2c88] sm:$0xff]  ;;  %577 = vst [vmem:[%s3837_s12 + $0x588] sm:$0xff] %v576_v49 }
  0x70   : > { %579 = vst [vmem:[%s3837_s12 + $0x590] sm:$0xff] %v578_v50  ;;  %581 = vst [vmem:[%s3837_s12 + $0x598] sm:$0xff] %v580_v51  ;;  %v582_v52 = vld [vmem:[%s3832_s11 + $0x2d00] sm:$0xff]  ;;  %v584_v53 = vld [vmem:[%s3832_s11 + $0x2d08] sm:$0xff] }
  0x71   : > { %v586_v54 = vld [vmem:[%s3832_s11 + $0x2d80] sm:$0xff]  ;;  %583 = vst [vmem:[%s3837_s12 + $0x5a0] sm:$0xff] %v582_v52  ;;  %585 = vst [vmem:[%s3837_s12 + $0x5a8] sm:$0xff] %v584_v53  ;;  %v588_v55 = vld [vmem:[%s3832_s11 + $0x2d88] sm:$0xff] }
  0x72   : > { %587 = vst [vmem:[%s3837_s12 + $0x5b0] sm:$0xff] %v586_v54  ;;  %v590_v56 = vld [vmem:[%s3832_s11 + $0x2e00] sm:$0xff]  ;;  %v592_v57 = vld [vmem:[%s3832_s11 + $0x2e08] sm:$0xff]  ;;  %589 = vst [vmem:[%s3837_s12 + $0x5b8] sm:$0xff] %v588_v55 }
  0x73   : > { %591 = vst [vmem:[%s3837_s12 + $0x5c0] sm:$0xff] %v590_v56  ;;  %593 = vst [vmem:[%s3837_s12 + $0x5c8] sm:$0xff] %v592_v57  ;;  %v594_v58 = vld [vmem:[%s3832_s11 + $0x2e80] sm:$0xff]  ;;  %v596_v59 = vld [vmem:[%s3832_s11 + $0x2e88] sm:$0xff] }
  0x74   : > { %v598_v60 = vld [vmem:[%s3832_s11 + $0x2f00] sm:$0xff]  ;;  %595 = vst [vmem:[%s3837_s12 + $0x5d0] sm:$0xff] %v594_v58  ;;  %597 = vst [vmem:[%s3837_s12 + $0x5d8] sm:$0xff] %v596_v59  ;;  %v600_v61 = vld [vmem:[%s3832_s11 + $0x2f08] sm:$0xff] }
  0x75   : > { %599 = vst [vmem:[%s3837_s12 + $0x5e0] sm:$0xff] %v598_v60  ;;  %v602_v62 = vld [vmem:[%s3832_s11 + $0x2f80] sm:$0xff]  ;;  %v604_v63 = vld [vmem:[%s3832_s11 + $0x2f88] sm:$0xff]  ;;  %601 = vst [vmem:[%s3837_s12 + $0x5e8] sm:$0xff] %v600_v61 }
  0x76   : > { %603 = vst [vmem:[%s3837_s12 + $0x5f0] sm:$0xff] %v602_v62  ;;  %605 = vst [vmem:[%s3837_s12 + $0x5f8] sm:$0xff] %v604_v63  ;;  %v606_v0 = vld [vmem:[%s3832_s11 + $0x3000] sm:$0xff]  ;;  %v608_v1 = vld [vmem:[%s3832_s11 + $0x3008] sm:$0xff] }
  0x77   : > { %v610_v2 = vld [vmem:[%s3832_s11 + $0x3080] sm:$0xff]  ;;  %607 = vst [vmem:[%s3837_s12 + $0x600] sm:$0xff] %v606_v0  ;;  %609 = vst [vmem:[%s3837_s12 + $0x608] sm:$0xff] %v608_v1  ;;  %v612_v3 = vld [vmem:[%s3832_s11 + $0x3088] sm:$0xff] }
  0x78   : > { %611 = vst [vmem:[%s3837_s12 + $0x610] sm:$0xff] %v610_v2  ;;  %v614_v4 = vld [vmem:[%s3832_s11 + $0x3100] sm:$0xff]  ;;  %v616_v5 = vld [vmem:[%s3832_s11 + $0x3108] sm:$0xff]  ;;  %613 = vst [vmem:[%s3837_s12 + $0x618] sm:$0xff] %v612_v3 }
  0x79   : > { %615 = vst [vmem:[%s3837_s12 + $0x620] sm:$0xff] %v614_v4  ;;  %617 = vst [vmem:[%s3837_s12 + $0x628] sm:$0xff] %v616_v5  ;;  %v618_v6 = vld [vmem:[%s3832_s11 + $0x3180] sm:$0xff]  ;;  %v620_v7 = vld [vmem:[%s3832_s11 + $0x3188] sm:$0xff] }
  0x7a   : > { %v622_v8 = vld [vmem:[%s3832_s11 + $0x3200] sm:$0xff]  ;;  %619 = vst [vmem:[%s3837_s12 + $0x630] sm:$0xff] %v618_v6  ;;  %621 = vst [vmem:[%s3837_s12 + $0x638] sm:$0xff] %v620_v7  ;;  %v624_v9 = vld [vmem:[%s3832_s11 + $0x3208] sm:$0xff] }
  0x7b   : > { %623 = vst [vmem:[%s3837_s12 + $0x640] sm:$0xff] %v622_v8  ;;  %v626_v10 = vld [vmem:[%s3832_s11 + $0x3280] sm:$0xff]  ;;  %v628_v11 = vld [vmem:[%s3832_s11 + $0x3288] sm:$0xff]  ;;  %625 = vst [vmem:[%s3837_s12 + $0x648] sm:$0xff] %v624_v9 }
  0x7c   : > { %627 = vst [vmem:[%s3837_s12 + $0x650] sm:$0xff] %v626_v10  ;;  %629 = vst [vmem:[%s3837_s12 + $0x658] sm:$0xff] %v628_v11  ;;  %v630_v12 = vld [vmem:[%s3832_s11 + $0x3300] sm:$0xff]  ;;  %v632_v13 = vld [vmem:[%s3832_s11 + $0x3308] sm:$0xff] }
  0x7d   : > { %v634_v14 = vld [vmem:[%s3832_s11 + $0x3380] sm:$0xff]  ;;  %631 = vst [vmem:[%s3837_s12 + $0x660] sm:$0xff] %v630_v12  ;;  %633 = vst [vmem:[%s3837_s12 + $0x668] sm:$0xff] %v632_v13  ;;  %v636_v15 = vld [vmem:[%s3832_s11 + $0x3388] sm:$0xff] }
  0x7e   : > { %635 = vst [vmem:[%s3837_s12 + $0x670] sm:$0xff] %v634_v14  ;;  %v638_v16 = vld [vmem:[%s3832_s11 + $0x3400] sm:$0xff]  ;;  %v640_v17 = vld [vmem:[%s3832_s11 + $0x3408] sm:$0xff]  ;;  %637 = vst [vmem:[%s3837_s12 + $0x678] sm:$0xff] %v636_v15 }
  0x7f   : > { %639 = vst [vmem:[%s3837_s12 + $0x680] sm:$0xff] %v638_v16  ;;  %641 = vst [vmem:[%s3837_s12 + $0x688] sm:$0xff] %v640_v17  ;;  %v642_v18 = vld [vmem:[%s3832_s11 + $0x3480] sm:$0xff]  ;;  %v644_v19 = vld [vmem:[%s3832_s11 + $0x3488] sm:$0xff] }
  0x80   : > { %v646_v20 = vld [vmem:[%s3832_s11 + $0x3500] sm:$0xff]  ;;  %643 = vst [vmem:[%s3837_s12 + $0x690] sm:$0xff] %v642_v18  ;;  %645 = vst [vmem:[%s3837_s12 + $0x698] sm:$0xff] %v644_v19  ;;  %v648_v21 = vld [vmem:[%s3832_s11 + $0x3508] sm:$0xff] }
  0x81   : > { %647 = vst [vmem:[%s3837_s12 + $0x6a0] sm:$0xff] %v646_v20  ;;  %v650_v22 = vld [vmem:[%s3832_s11 + $0x3580] sm:$0xff]  ;;  %v652_v23 = vld [vmem:[%s3832_s11 + $0x3588] sm:$0xff]  ;;  %649 = vst [vmem:[%s3837_s12 + $0x6a8] sm:$0xff] %v648_v21 }
  0x82   : > { %651 = vst [vmem:[%s3837_s12 + $0x6b0] sm:$0xff] %v650_v22  ;;  %653 = vst [vmem:[%s3837_s12 + $0x6b8] sm:$0xff] %v652_v23  ;;  %v654_v24 = vld [vmem:[%s3832_s11 + $0x3600] sm:$0xff]  ;;  %v656_v25 = vld [vmem:[%s3832_s11 + $0x3608] sm:$0xff] }
  0x83   : > { %v658_v26 = vld [vmem:[%s3832_s11 + $0x3680] sm:$0xff]  ;;  %655 = vst [vmem:[%s3837_s12 + $0x6c0] sm:$0xff] %v654_v24  ;;  %657 = vst [vmem:[%s3837_s12 + $0x6c8] sm:$0xff] %v656_v25  ;;  %v660_v27 = vld [vmem:[%s3832_s11 + $0x3688] sm:$0xff] }
  0x84   : > { %659 = vst [vmem:[%s3837_s12 + $0x6d0] sm:$0xff] %v658_v26  ;;  %v662_v28 = vld [vmem:[%s3832_s11 + $0x3700] sm:$0xff]  ;;  %v664_v29 = vld [vmem:[%s3832_s11 + $0x3708] sm:$0xff]  ;;  %661 = vst [vmem:[%s3837_s12 + $0x6d8] sm:$0xff] %v660_v27 }
  0x85   : > { %663 = vst [vmem:[%s3837_s12 + $0x6e0] sm:$0xff] %v662_v28  ;;  %665 = vst [vmem:[%s3837_s12 + $0x6e8] sm:$0xff] %v664_v29  ;;  %v666_v30 = vld [vmem:[%s3832_s11 + $0x3780] sm:$0xff]  ;;  %v668_v31 = vld [vmem:[%s3832_s11 + $0x3788] sm:$0xff] }
  0x86   : > { %v670_v32 = vld [vmem:[%s3832_s11 + $0x3800] sm:$0xff]  ;;  %667 = vst [vmem:[%s3837_s12 + $0x6f0] sm:$0xff] %v666_v30  ;;  %669 = vst [vmem:[%s3837_s12 + $0x6f8] sm:$0xff] %v668_v31  ;;  %v672_v33 = vld [vmem:[%s3832_s11 + $0x3808] sm:$0xff] }
  0x87   : > { %671 = vst [vmem:[%s3837_s12 + $0x700] sm:$0xff] %v670_v32  ;;  %v674_v34 = vld [vmem:[%s3832_s11 + $0x3880] sm:$0xff]  ;;  %v676_v35 = vld [vmem:[%s3832_s11 + $0x3888] sm:$0xff]  ;;  %673 = vst [vmem:[%s3837_s12 + $0x708] sm:$0xff] %v672_v33 }
  0x88   : > { %675 = vst [vmem:[%s3837_s12 + $0x710] sm:$0xff] %v674_v34  ;;  %677 = vst [vmem:[%s3837_s12 + $0x718] sm:$0xff] %v676_v35  ;;  %v678_v36 = vld [vmem:[%s3832_s11 + $0x3900] sm:$0xff]  ;;  %v680_v37 = vld [vmem:[%s3832_s11 + $0x3908] sm:$0xff] }
  0x89   : > { %v682_v38 = vld [vmem:[%s3832_s11 + $0x3980] sm:$0xff]  ;;  %679 = vst [vmem:[%s3837_s12 + $0x720] sm:$0xff] %v678_v36  ;;  %681 = vst [vmem:[%s3837_s12 + $0x728] sm:$0xff] %v680_v37  ;;  %v684_v39 = vld [vmem:[%s3832_s11 + $0x3988] sm:$0xff] }
  0x8a   : > { %683 = vst [vmem:[%s3837_s12 + $0x730] sm:$0xff] %v682_v38  ;;  %v686_v40 = vld [vmem:[%s3832_s11 + $0x3a00] sm:$0xff]  ;;  %v688_v41 = vld [vmem:[%s3832_s11 + $0x3a08] sm:$0xff]  ;;  %685 = vst [vmem:[%s3837_s12 + $0x738] sm:$0xff] %v684_v39 }
  0x8b   : > { %687 = vst [vmem:[%s3837_s12 + $0x740] sm:$0xff] %v686_v40  ;;  %689 = vst [vmem:[%s3837_s12 + $0x748] sm:$0xff] %v688_v41  ;;  %v690_v42 = vld [vmem:[%s3832_s11 + $0x3a80] sm:$0xff]  ;;  %v692_v43 = vld [vmem:[%s3832_s11 + $0x3a88] sm:$0xff] }
  0x8c   : > { %v694_v44 = vld [vmem:[%s3832_s11 + $0x3b00] sm:$0xff]  ;;  %691 = vst [vmem:[%s3837_s12 + $0x750] sm:$0xff] %v690_v42  ;;  %693 = vst [vmem:[%s3837_s12 + $0x758] sm:$0xff] %v692_v43  ;;  %v696_v45 = vld [vmem:[%s3832_s11 + $0x3b08] sm:$0xff] }
  0x8d   : > { %695 = vst [vmem:[%s3837_s12 + $0x760] sm:$0xff] %v694_v44  ;;  %v698_v46 = vld [vmem:[%s3832_s11 + $0x3b80] sm:$0xff]  ;;  %v700_v47 = vld [vmem:[%s3832_s11 + $0x3b88] sm:$0xff]  ;;  %697 = vst [vmem:[%s3837_s12 + $0x768] sm:$0xff] %v696_v45 }
  0x8e   : > { %699 = vst [vmem:[%s3837_s12 + $0x770] sm:$0xff] %v698_v46  ;;  %701 = vst [vmem:[%s3837_s12 + $0x778] sm:$0xff] %v700_v47  ;;  %v702_v48 = vld [vmem:[%s3832_s11 + $0x3c00] sm:$0xff]  ;;  %v704_v49 = vld [vmem:[%s3832_s11 + $0x3c08] sm:$0xff] }
  0x8f   : > { %v706_v50 = vld [vmem:[%s3832_s11 + $0x3c80] sm:$0xff]  ;;  %703 = vst [vmem:[%s3837_s12 + $0x780] sm:$0xff] %v702_v48  ;;  %705 = vst [vmem:[%s3837_s12 + $0x788] sm:$0xff] %v704_v49  ;;  %v708_v51 = vld [vmem:[%s3832_s11 + $0x3c88] sm:$0xff] }
  0x90   : > { %707 = vst [vmem:[%s3837_s12 + $0x790] sm:$0xff] %v706_v50  ;;  %v710_v52 = vld [vmem:[%s3832_s11 + $0x3d00] sm:$0xff]  ;;  %v712_v53 = vld [vmem:[%s3832_s11 + $0x3d08] sm:$0xff]  ;;  %709 = vst [vmem:[%s3837_s12 + $0x798] sm:$0xff] %v708_v51 }
  0x91   : > { %711 = vst [vmem:[%s3837_s12 + $0x7a0] sm:$0xff] %v710_v52  ;;  %713 = vst [vmem:[%s3837_s12 + $0x7a8] sm:$0xff] %v712_v53  ;;  %v714_v54 = vld [vmem:[%s3832_s11 + $0x3d80] sm:$0xff]  ;;  %v716_v55 = vld [vmem:[%s3832_s11 + $0x3d88] sm:$0xff] }
  0x92   : > { %v718_v56 = vld [vmem:[%s3832_s11 + $0x3e00] sm:$0xff]  ;;  %715 = vst [vmem:[%s3837_s12 + $0x7b0] sm:$0xff] %v714_v54  ;;  %717 = vst [vmem:[%s3837_s12 + $0x7b8] sm:$0xff] %v716_v55  ;;  %v720_v57 = vld [vmem:[%s3832_s11 + $0x3e08] sm:$0xff] }
  0x93   : > { %719 = vst [vmem:[%s3837_s12 + $0x7c0] sm:$0xff] %v718_v56  ;;  %v722_v58 = vld [vmem:[%s3832_s11 + $0x3e80] sm:$0xff]  ;;  %v724_v59 = vld [vmem:[%s3832_s11 + $0x3e88] sm:$0xff]  ;;  %721 = vst [vmem:[%s3837_s12 + $0x7c8] sm:$0xff] %v720_v57 }
  0x94   : > { %723 = vst [vmem:[%s3837_s12 + $0x7d0] sm:$0xff] %v722_v58  ;;  %725 = vst [vmem:[%s3837_s12 + $0x7d8] sm:$0xff] %v724_v59  ;;  %v726_v60 = vld [vmem:[%s3832_s11 + $0x3f00] sm:$0xff]  ;;  %v728_v61 = vld [vmem:[%s3832_s11 + $0x3f08] sm:$0xff] }
  0x95   : > { %v730_v62 = vld [vmem:[%s3832_s11 + $0x3f80] sm:$0xff]  ;;  %727 = vst [vmem:[%s3837_s12 + $0x7e0] sm:$0xff] %v726_v60  ;;  %729 = vst [vmem:[%s3837_s12 + $0x7e8] sm:$0xff] %v728_v61  ;;  %v732_v63 = vld [vmem:[%s3832_s11 + $0x3f88] sm:$0xff] }
  0x96   : > { %731 = vst [vmem:[%s3837_s12 + $0x7f0] sm:$0xff] %v730_v62  ;;  %733 = vst [vmem:[%s3837_s12 + $0x7f8] sm:$0xff] %v732_v63 }
  0x97 PF: > { %p2964_p7 = scmp.ge.s32.totalorder %s3744_s21, 1  ;;  %p754_p8 = scmp.lt.s32.totalorder %s3744_s21, 33 }
  0x99   : > { %p755_p9 = pnand %p2964_p7, %p754_p8 }
  0x9a   : > { %s761_s13 = sand.u32 (!%p755_p9), 1, %s3720_s15   ;;  %s2966_s14 = sshll.u32 (!%p755_p9), %s3728_s17, 3 }
  0x9b   : > { %758 = sbr.rel (%p755_p9) target bundleno = 646 (0x286), region = 55  ;;  %s2965_s24 = sshll.u32 (!%p755_p9), %s761_s13, 11 }
  0x9c   : > { %p810_p10 = scmp.lt.s32.totalorder (!%p755_p9), %s2966_s14, 31  ;;  %s2968_s25 = sshll.u32 (!%p755_p9), %s3732_s18, 2 }
  0x9d   : > { %p820_p11 = scmp.lt.s32.totalorder (!%p755_p9), %s2968_s25, 31  ;;  %s4374_s13 = scalar_lea.vmem (!%p755_p9), [#allocation3], %s2965_s24 }
  0x9e   : > { %p2972_p12 = scmp.ne.s32.totalorder (!%p755_p9), %s3728_s17, 0 }
  0xa0   : > { %s4735_s14 = smov (!%p810_p10, %s2966_s14), 31  ;;  %s4737_s25 = smov (!%p820_p11, %s2968_s25), 31 }
  0xa1   : > { %s2967_s26 = sshll.u32 %s4735_s14, 2  ;;  %s822_s15 = scalar_lea.vmem %s4719_s2, %s4737_s25 }
  0xa2   : > { %s4356_s30 = scalar_lea.vmem %s4717_s0, %s2967_s26  ;;  %s827_s18 = scalar_lea.vmem %s4720_s3, %s4737_s25 }
  0xa3   : > { %s2971_s9 = sshll.u32 %s4737_s25, 3  ;;  %842 = sbr.rel (%p2972_p12) target bundleno = 171 (0xab), region = 63 }
  0xa4   : > { %s4372_s12 = scalar_lea.vmem %s4721_s4, %s2971_s9 }
  0xa8   : > { %v3746_v0 = vmov 0.0  }
  0xa9   : > { %843 = vst [vmem:[#allocation2 + $0x10] sm:$0xff] %v3746_v0  ;;  %844 = vst [vmem:[#allocation2] sm:$0xff] %v3746_v0 }
  0xaa   : > { %845 = vst [vmem:[#allocation2 + $0x18] sm:$0xff] %v3746_v0  ;;  %846 = vst [vmem:[#allocation2 + $0x8] sm:$0xff] %v3746_v0 }
  0xab PF: > { %v3298_v1 = vld [vmem:[%s4374_s13 + $0xe4] ss:$16 sps:$4 sm:$0xff]   ;;  %v3302_v3 = vld [vmem:[%s4374_s13 + $0xe0] ss:$16 sps:$4 sm:$0xff]   ;;  %v852_v49 = vld [vmem:[%s4356_s30 + $0x8] sm:$0xff]  ;;  %p3237_p13 = scmp.ne.s32.totalorder %s3728_s17, 3 }
  0xac   : > { %v3300_v2 = vld [vmem:[%s4374_s13 + $0x2e4] ss:$16 sps:$4 sm:$0xff]   ;;  %2419 = vmatprep.subr.bf16.mxu0 %v3298_v1  ;;  %v3303_v4 = vld [vmem:[%s4374_s13 + $0x2e0] ss:$16 sps:$4 sm:$0xff]   ;;  %v4429_v52 = vcombine.high %v852_v49, %v852_v49 }
  0xad   : > { %2460 = vmatprep.subr.bf16.mxu1 %v3300_v2  ;;  %v3304_v5 = vld [vmem:[%s4374_s13 + $0xc4] ss:$16 sps:$4 sm:$0xff]   ;;  %2420 = vmatpush1.bf16.msra.mxu0 %v3302_v3  ;;  %v3308_v7 = vld [vmem:[%s4374_s13 + $0xc0] ss:$16 sps:$4 sm:$0xff]  }
  0xae   : > { %2461 = vmatpush1.bf16.msra.mxu1 %v3303_v4  ;;  %v3306_v6 = vld [vmem:[%s4374_s13 + $0x2c4] ss:$16 sps:$4 sm:$0xff]   ;;  %2421 = vmatprep.subr.bf16.mxu0 %v3304_v5  ;;  %v3309_v8 = vld [vmem:[%s4374_s13 + $0x2c0] ss:$16 sps:$4 sm:$0xff]  }
  0xaf   : > { %2462 = vmatprep.subr.bf16.mxu1 %v3306_v6  ;;  %v3310_v9 = vld [vmem:[%s4374_s13 + $0xa4] ss:$16 sps:$4 sm:$0xff]   ;;  %v3314_v11 = vld [vmem:[%s4374_s13 + $0xa0] ss:$16 sps:$4 sm:$0xff]   ;;  %2492 = vmatprep.mubr.bf16.mxu1 %v4429_v52 }
  0xb0   : > { %v3312_v10 = vld [vmem:[%s4374_s13 + $0x2a4] ss:$16 sps:$4 sm:$0xff]   ;;  %v3315_v12 = vld [vmem:[%s4374_s13 + $0x2a0] ss:$16 sps:$4 sm:$0xff]  }
  0xb1   : > { %2422 = vmatpush1.bf16.msra.mxu0 %v3308_v7  ;;  %v3316_v13 = vld [vmem:[%s4374_s13 + $0x84] ss:$16 sps:$4 sm:$0xff]   ;;  %v3320_v15 = vld [vmem:[%s4374_s13 + $0x80] ss:$16 sps:$4 sm:$0xff]  }
  0xb2   : > { %2463 = vmatpush1.bf16.msra.mxu1 %v3309_v8  ;;  %2423 = vmatprep.subr.bf16.mxu0 %v3310_v9  ;;  %v3318_v14 = vld [vmem:[%s4374_s13 + $0x284] ss:$16 sps:$4 sm:$0xff]   ;;  %v3321_v16 = vld [vmem:[%s4374_s13 + $0x280] ss:$16 sps:$4 sm:$0xff]   ;;  %v4453_v8 = vcombine.low %v852_v49, %v852_v49 }
  0xb3   : > { %2464 = vmatprep.subr.bf16.mxu1 %v3312_v10  ;;  %v3322_v17 = vld [vmem:[%s4374_s13 + $0x64] ss:$16 sps:$4 sm:$0xff]   ;;  %v3326_v19 = vld [vmem:[%s4374_s13 + $0x60] ss:$16 sps:$4 sm:$0xff]  }
  0xb4   : > { %v3324_v18 = vld [vmem:[%s4374_s13 + $0x264] ss:$16 sps:$4 sm:$0xff]   ;;  %v3327_v20 = vld [vmem:[%s4374_s13 + $0x260] ss:$16 sps:$4 sm:$0xff]  }
  0xb5   : > { %2424 = vmatpush1.bf16.msra.mxu0 %v3314_v11  ;;  %v3328_v21 = vld [vmem:[%s4374_s13 + $0x44] ss:$16 sps:$4 sm:$0xff]   ;;  %v3332_v23 = vld [vmem:[%s4374_s13 + $0x40] ss:$16 sps:$4 sm:$0xff]  }
  0xb6   : > { %2465 = vmatpush1.bf16.msra.mxu1 %v3315_v12  ;;  %2425 = vmatprep.subr.bf16.mxu0 %v3316_v13  ;;  %v3330_v22 = vld [vmem:[%s4374_s13 + $0x244] ss:$16 sps:$4 sm:$0xff]   ;;  %v3333_v24 = vld [vmem:[%s4374_s13 + $0x240] ss:$16 sps:$4 sm:$0xff]  }
  0xb7   : > { %2466 = vmatprep.subr.bf16.mxu1 %v3318_v14  ;;  %v3334_v25 = vld [vmem:[%s4374_s13 + $0x24] ss:$16 sps:$4 sm:$0xff]   ;;  %v3338_v27 = vld [vmem:[%s4374_s13 + $0x20] ss:$16 sps:$4 sm:$0xff]  }
  0xb8   : > { %v3336_v26 = vld [vmem:[%s4374_s13 + $0x224] ss:$16 sps:$4 sm:$0xff]   ;;  %v3339_v28 = vld [vmem:[%s4374_s13 + $0x220] ss:$16 sps:$4 sm:$0xff]  }
  0xb9   : > { %2426 = vmatpush1.bf16.msra.mxu0 %v3320_v15  ;;  %v3340_v29 = vld [vmem:[%s4374_s13 + $0x4] ss:$16 sps:$4 sm:$0xff]   ;;  %v3344_v31 = vld [vmem:[%s4374_s13] ss:$16 sps:$4 sm:$0xff]  }
  0xba   : > { %2467 = vmatpush1.bf16.msra.mxu1 %v3321_v16  ;;  %2427 = vmatprep.subr.bf16.mxu0 %v3322_v17  ;;  %v3342_v30 = vld [vmem:[%s4374_s13 + $0x204] ss:$16 sps:$4 sm:$0xff]   ;;  %v3345_v32 = vld [vmem:[%s4374_s13 + $0x200] ss:$16 sps:$4 sm:$0xff]  }
  0xbb   : > { %2468 = vmatprep.subr.bf16.mxu1 %v3324_v18  ;;  %v3346_v33 = vld [vmem:[%s4374_s13 + $0x1e4] ss:$16 sps:$4 sm:$0xff]   ;;  %v3350_v35 = vld [vmem:[%s4374_s13 + $0x1e0] ss:$16 sps:$4 sm:$0xff]  }
  0xbc   : > { %v3348_v34 = vld [vmem:[%s4374_s13 + $0x3e4] ss:$16 sps:$4 sm:$0xff]   ;;  %v3351_v36 = vld [vmem:[%s4374_s13 + $0x3e0] ss:$16 sps:$4 sm:$0xff]  }
  0xbd   : > { %2428 = vmatpush1.bf16.msra.mxu0 %v3326_v19  ;;  %v3352_v37 = vld [vmem:[%s4374_s13 + $0x1c4] ss:$16 sps:$4 sm:$0xff]   ;;  %v3356_v39 = vld [vmem:[%s4374_s13 + $0x1c0] ss:$16 sps:$4 sm:$0xff]  }
  0xbe   : > { %2469 = vmatpush1.bf16.msra.mxu1 %v3327_v20  ;;  %2429 = vmatprep.subr.bf16.mxu0 %v3328_v21  ;;  %v3354_v38 = vld [vmem:[%s4374_s13 + $0x3c4] ss:$16 sps:$4 sm:$0xff]   ;;  %v3357_v40 = vld [vmem:[%s4374_s13 + $0x3c0] ss:$16 sps:$4 sm:$0xff]  }
  0xbf   : > { %2470 = vmatprep.subr.bf16.mxu1 %v3330_v22  ;;  %v3358_v41 = vld [vmem:[%s4374_s13 + $0x1a4] ss:$16 sps:$4 sm:$0xff]   ;;  %v3362_v43 = vld [vmem:[%s4374_s13 + $0x1a0] ss:$16 sps:$4 sm:$0xff]  }
  0xc0   : > { %v3360_v42 = vld [vmem:[%s4374_s13 + $0x3a4] ss:$16 sps:$4 sm:$0xff]   ;;  %v3363_v44 = vld [vmem:[%s4374_s13 + $0x3a0] ss:$16 sps:$4 sm:$0xff]  }
  0xc1   : > { %2430 = vmatpush1.bf16.msra.mxu0 %v3332_v23  ;;  %v3364_v45 = vld [vmem:[%s4374_s13 + $0x184] ss:$16 sps:$4 sm:$0xff]   ;;  %v3368_v50 = vld [vmem:[%s4374_s13 + $0x180] ss:$16 sps:$4 sm:$0xff]  }
  0xc2   : > { %2471 = vmatpush1.bf16.msra.mxu1 %v3333_v24  ;;  %2431 = vmatprep.subr.bf16.mxu0 %v3334_v25  ;;  %v3366_v46 = vld [vmem:[%s4374_s13 + $0x384] ss:$16 sps:$4 sm:$0xff]   ;;  %v3369_v51 = vld [vmem:[%s4374_s13 + $0x380] ss:$16 sps:$4 sm:$0xff]  }
  0xc3   : > { %2472 = vmatprep.subr.bf16.mxu1 %v3336_v26  ;;  %v851_v47 = vld [vmem:[%s4356_s30] sm:$0xff] }
  0xc4   : > { %v4424_v48 = vcombine.high %v851_v47, %v851_v47  ;;  %v3370_v53 = vld [vmem:[%s4374_s13 + $0x164] ss:$16 sps:$4 sm:$0xff]   ;;  %v3374_v55 = vld [vmem:[%s4374_s13 + $0x160] ss:$16 sps:$4 sm:$0xff]   ;;  %v4451_v7 = vcombine.low %v851_v47, %v851_v47 }
  0xc5   : > { %2432 = vmatpush1.bf16.msra.mxu0 %v3338_v27  ;;  %v3372_v54 = vld [vmem:[%s4374_s13 + $0x364] ss:$16 sps:$4 sm:$0xff]   ;;  %v3375_v56 = vld [vmem:[%s4374_s13 + $0x360] ss:$16 sps:$4 sm:$0xff]  }
  0xc6   : > { %2473 = vmatpush1.bf16.msra.mxu1 %v3339_v28  ;;  %2433 = vmatprep.subr.bf16.mxu0 %v3340_v29  ;;  %v3376_v57 = vld [vmem:[%s4374_s13 + $0x144] ss:$16 sps:$4 sm:$0xff]   ;;  %v3380_v59 = vld [vmem:[%s4374_s13 + $0x140] ss:$16 sps:$4 sm:$0xff]  }
  0xc7   : > { %2474 = vmatprep.subr.bf16.mxu1 %v3342_v30  ;;  %2451 = vmatprep.mubr.bf16.mxu0 %v4424_v48  ;;  %v3378_v58 = vld [vmem:[%s4374_s13 + $0x344] ss:$16 sps:$4 sm:$0xff]   ;;  %v3381_v60 = vld [vmem:[%s4374_s13 + $0x340] ss:$16 sps:$4 sm:$0xff]  }
  0xc8   : > { %v3382_v61 = vld [vmem:[%s4374_s13 + $0x124] ss:$16 sps:$4 sm:$0xff]   ;;  %v3386_v63 = vld [vmem:[%s4374_s13 + $0x120] ss:$16 sps:$4 sm:$0xff]  }
  0xc9   : > { %2434 = vmatpush1.bf16.msra.mxu0 %v3344_v31  ;;  %v3384_v62 = vld [vmem:[%s4374_s13 + $0x324] ss:$16 sps:$4 sm:$0xff]   ;;  %v3387_v0 = vld [vmem:[%s4374_s13 + $0x320] ss:$16 sps:$4 sm:$0xff]  }
  0xca   : > { %2475 = vmatpush1.bf16.msra.mxu1 %v3345_v32  ;;  %2435 = vmatprep.subr.bf16.mxu0 %v3346_v33  ;;  %v3388_v1 = vld [vmem:[%s4374_s13 + $0x104] ss:$16 sps:$4 sm:$0xff]   ;;  %v3392_v3 = vld [vmem:[%s4374_s13 + $0x100] ss:$16 sps:$4 sm:$0xff]  }
  0xcb   : > { %2476 = vmatprep.subr.bf16.mxu1 %v3348_v34  ;;  %v3390_v2 = vld [vmem:[%s4374_s13 + $0x304] ss:$16 sps:$4 sm:$0xff]   ;;  %v3393_v4 = vld [vmem:[%s4374_s13 + $0x300] ss:$16 sps:$4 sm:$0xff]   ;;  %v4485_v34 = vld [vmem:[%s4356_s30 + $0x18] sm:$0xff] }
  0xcc   : > { %v3400_v5 = vld [vmem:[%s4374_s13 + $0x4e4] ss:$16 sps:$4 sm:$0xff]   ;;  %v3398_v9 = vld [vmem:[%s4374_s13 + $0x4e0] ss:$16 sps:$4 sm:$0xff]  }
  0xcd   : > { %2436 = vmatpush2.bf16.msra.mxu0 %v3350_v35  ;;  %v3403_v6 = vld [vmem:[%s4374_s13 + $0x6e4] ss:$16 sps:$4 sm:$0xff]   ;;  %v3401_v10 = vld [vmem:[%s4374_s13 + $0x6e0] ss:$16 sps:$4 sm:$0xff]  }
  0xce   : > { %2477 = vmatpush2.bf16.msra.mxu1 %v3351_v36  ;;  %2437 = vmatprep.subr.bf16.mxu0 %v3352_v37  ;;  %v3406_v11 = vld [vmem:[%s4374_s13 + $0x4c4] ss:$16 sps:$4 sm:$0xff]   ;;  %v3404_v13 = vld [vmem:[%s4374_s13 + $0x4c0] ss:$16 sps:$4 sm:$0xff]  }
  0xcf   : > { %2478 = vmatprep.subr.bf16.mxu1 %v3354_v38  ;;  %v3409_v12 = vld [vmem:[%s4374_s13 + $0x6c4] ss:$16 sps:$4 sm:$0xff]   ;;  %v3407_v14 = vld [vmem:[%s4374_s13 + $0x6c0] ss:$16 sps:$4 sm:$0xff]   ;;  %v4495_v38 = vcombine.high %v4485_v34, %v4485_v34 }
  0xd0   : > { %v3412_v15 = vld [vmem:[%s4374_s13 + $0x4a4] ss:$16 sps:$4 sm:$0xff]   ;;  %v3410_v17 = vld [vmem:[%s4374_s13 + $0x4a0] ss:$16 sps:$4 sm:$0xff]  }
  0xd1   : > { %2438 = vmatpush2.bf16.msra.mxu0 %v3356_v39  ;;  %v3415_v16 = vld [vmem:[%s4374_s13 + $0x6a4] ss:$16 sps:$4 sm:$0xff]   ;;  %v3413_v18 = vld [vmem:[%s4374_s13 + $0x6a0] ss:$16 sps:$4 sm:$0xff]  }
  0xd2   : > { %2479 = vmatpush2.bf16.msra.mxu1 %v3357_v40  ;;  %2439 = vmatprep.subr.bf16.mxu0 %v3358_v41  ;;  %v3418_v19 = vld [vmem:[%s4374_s13 + $0x484] ss:$16 sps:$4 sm:$0xff]   ;;  %v3416_v21 = vld [vmem:[%s4374_s13 + $0x480] ss:$16 sps:$4 sm:$0xff]  }
  0xd3   : > { %2480 = vmatprep.subr.bf16.mxu1 %v3360_v42  ;;  %v3421_v20 = vld [vmem:[%s4374_s13 + $0x684] ss:$16 sps:$4 sm:$0xff]   ;;  %v3419_v22 = vld [vmem:[%s4374_s13 + $0x680] ss:$16 sps:$4 sm:$0xff]  }
  0xd4   : > { %v3424_v23 = vld [vmem:[%s4374_s13 + $0x464] ss:$16 sps:$4 sm:$0xff]   ;;  %v3422_v25 = vld [vmem:[%s4374_s13 + $0x460] ss:$16 sps:$4 sm:$0xff]  }
  0xd5   : > { %2440 = vmatpush2.bf16.msra.mxu0 %v3362_v43  ;;  %v3427_v24 = vld [vmem:[%s4374_s13 + $0x664] ss:$16 sps:$4 sm:$0xff]   ;;  %v3425_v26 = vld [vmem:[%s4374_s13 + $0x660] ss:$16 sps:$4 sm:$0xff]  }
  0xd6   : > { %2481 = vmatpush2.bf16.msra.mxu1 %v3363_v44  ;;  %2441 = vmatprep.subr.bf16.mxu0 %v3364_v45  ;;  %v3430_v27 = vld [vmem:[%s4374_s13 + $0x444] ss:$16 sps:$4 sm:$0xff]   ;;  %v3428_v29 = vld [vmem:[%s4374_s13 + $0x440] ss:$16 sps:$4 sm:$0xff]  }
  0xd7   : > { %2482 = vmatprep.subr.bf16.mxu1 %v3366_v46  ;;  %v3433_v28 = vld [vmem:[%s4374_s13 + $0x644] ss:$16 sps:$4 sm:$0xff]   ;;  %v3431_v30 = vld [vmem:[%s4374_s13 + $0x640] ss:$16 sps:$4 sm:$0xff]  }
  0xd8   : > { %v3436_v31 = vld [vmem:[%s4374_s13 + $0x424] ss:$16 sps:$4 sm:$0xff]   ;;  %v3434_v35 = vld [vmem:[%s4374_s13 + $0x420] ss:$16 sps:$4 sm:$0xff]  }
  0xd9   : > { %2442 = vmatpush2.bf16.msra.mxu0 %v3368_v50  ;;  %v3439_v32 = vld [vmem:[%s4374_s13 + $0x624] ss:$16 sps:$4 sm:$0xff]   ;;  %v3437_v36 = vld [vmem:[%s4374_s13 + $0x620] ss:$16 sps:$4 sm:$0xff]  }
  0xda   : > { %2483 = vmatpush2.bf16.msra.mxu1 %v3369_v51  ;;  %2443 = vmatprep.subr.bf16.mxu0 %v3370_v53  ;;  %v4482_v33 = vld [vmem:[%s4356_s30 + $0x10] sm:$0xff] }
  0xdb   : > { %2484 = vmatprep.subr.bf16.mxu1 %v3372_v54  ;;  %v4491_v37 = vcombine.high %v4482_v33, %v4482_v33  ;;  %v3442_v39 = vld [vmem:[%s4374_s13 + $0x404] ss:$16 sps:$4 sm:$0xff]   ;;  %v3440_v41 = vld [vmem:[%s4374_s13 + $0x400] ss:$16 sps:$4 sm:$0xff]  }
  0xdc   : > { %v3445_v40 = vld [vmem:[%s4374_s13 + $0x604] ss:$16 sps:$4 sm:$0xff]   ;;  %v3443_v42 = vld [vmem:[%s4374_s13 + $0x600] ss:$16 sps:$4 sm:$0xff]  }
  0xdd   : > { %2444 = vmatpush2.bf16.msra.mxu0 %v3374_v55  ;;  %v3448_v43 = vld [vmem:[%s4374_s13 + $0x5e4] ss:$16 sps:$4 sm:$0xff]   ;;  %v3446_v45 = vld [vmem:[%s4374_s13 + $0x5e0] ss:$16 sps:$4 sm:$0xff]  }
  0xde   : > { %2485 = vmatpush2.bf16.msra.mxu1 %v3375_v56  ;;  %2445 = vmatprep.subr.bf16.mxu0 %v3376_v57  ;;  %v3451_v44 = vld [vmem:[%s4374_s13 + $0x7e4] ss:$16 sps:$4 sm:$0xff]   ;;  %v3449_v46 = vld [vmem:[%s4374_s13 + $0x7e0] ss:$16 sps:$4 sm:$0xff]  }
  0xdf   : > { %2486 = vmatprep.subr.bf16.mxu1 %v3378_v58  ;;  %v3454_v47 = vld [vmem:[%s4374_s13 + $0x5c4] ss:$16 sps:$4 sm:$0xff]   ;;  %v3452_v50 = vld [vmem:[%s4374_s13 + $0x5c0] ss:$16 sps:$4 sm:$0xff]  }
  0xe0   : > { %v3457_v49 = vld [vmem:[%s4374_s13 + $0x7c4] ss:$16 sps:$4 sm:$0xff]   ;;  %v3455_v51 = vld [vmem:[%s4374_s13 + $0x7c0] ss:$16 sps:$4 sm:$0xff]  }
  0xe1   : > { %2446 = vmatpush2.bf16.msra.mxu0 %v3380_v59  ;;  %v3460_v53 = vld [vmem:[%s4374_s13 + $0x5a4] ss:$16 sps:$4 sm:$0xff]   ;;  %v3458_v55 = vld [vmem:[%s4374_s13 + $0x5a0] ss:$16 sps:$4 sm:$0xff]  }
  0xe2   : > { %2487 = vmatpush2.bf16.msra.mxu1 %v3381_v60  ;;  %2447 = vmatprep.subr.bf16.mxu0 %v3382_v61  ;;  %v3463_v54 = vld [vmem:[%s4374_s13 + $0x7a4] ss:$16 sps:$4 sm:$0xff]   ;;  %v3461_v56 = vld [vmem:[%s4374_s13 + $0x7a0] ss:$16 sps:$4 sm:$0xff]  }
  0xe3   : > { %2488 = vmatprep.subr.bf16.mxu1 %v3384_v62  ;;  %v3466_v57 = vld [vmem:[%s4374_s13 + $0x584] ss:$16 sps:$4 sm:$0xff]   ;;  %v3464_v59 = vld [vmem:[%s4374_s13 + $0x580] ss:$16 sps:$4 sm:$0xff]  }
  0xe4   : > { %v3469_v58 = vld [vmem:[%s4374_s13 + $0x784] ss:$16 sps:$4 sm:$0xff]   ;;  %v3467_v60 = vld [vmem:[%s4374_s13 + $0x780] ss:$16 sps:$4 sm:$0xff]  }
  0xe5   : > { %2448 = vmatpush2.bf16.msra.mxu0 %v3386_v63  ;;  %v3472_v61 = vld [vmem:[%s4374_s13 + $0x564] ss:$16 sps:$4 sm:$0xff]   ;;  %v3470_v63 = vld [vmem:[%s4374_s13 + $0x560] ss:$16 sps:$4 sm:$0xff]  }
  0xe6   : > { %2489 = vmatpush2.bf16.msra.mxu1 %v3387_v0  ;;  %2449 = vmatprep.subr.bf16.mxu0 %v3388_v1  ;;  %v3475_v62 = vld [vmem:[%s4374_s13 + $0x764] ss:$16 sps:$4 sm:$0xff]   ;;  %v3473_v0 = vld [vmem:[%s4374_s13 + $0x760] ss:$16 sps:$4 sm:$0xff]  }
  0xe7   : > { %2490 = vmatprep.subr.bf16.mxu1 %v3390_v2  ;;  %v3478_v1 = vld [vmem:[%s4374_s13 + $0x544] ss:$16 sps:$4 sm:$0xff]  }
  0xe8   : > { %v3481_v2 = vld [vmem:[%s4374_s13 + $0x744] ss:$16 sps:$4 sm:$0xff]  }
  0xe9   : > { %2450 = vmatpush2.bf16.msra.mxu0 %v3392_v3  ;;  %v3476_v3 = vld [vmem:[%s4374_s13 + $0x540] ss:$16 sps:$4 sm:$0xff]  }
  0xea   : > { %2491 = vmatpush2.bf16.msra.mxu1 %v3393_v4  ;;  %2501 = vmatprep.subr.bf16.mxu0 %v3400_v5  ;;  %v3479_v4 = vld [vmem:[%s4374_s13 + $0x740] ss:$16 sps:$4 sm:$0xff]   ;;  %v3484_v5 = vld [vmem:[%s4374_s13 + $0x524] ss:$16 sps:$4 sm:$0xff]  }
  0xeb   : > { %2542 = vmatprep.subr.bf16.mxu1 %v3403_v6  ;;  %v3487_v6 = vld [vmem:[%s4374_s13 + $0x724] ss:$16 sps:$4 sm:$0xff]  }
  0xec   : > { %2452 = vmatmul.mubr.bf16.vlgmr.msra.gmra.mxu0 %v4451_v7 }
  0xed   : > { %2493 = vmatmul.mubr.bf16.vlgmr.msra.gmra.mxu1 %v4453_v8  ;;  %2502 = vmatpush1.bf16.msra.mxu0 %v3398_v9  ;;  %v3482_v9 = vld [vmem:[%s4374_s13 + $0x520] ss:$16 sps:$4 sm:$0xff]  }
  0xee   : > { %2543 = vmatpush1.bf16.msra.mxu1 %v3401_v10  ;;  %2503 = vmatprep.subr.bf16.mxu0 %v3406_v11  ;;  %v3485_v10 = vld [vmem:[%s4374_s13 + $0x720] ss:$16 sps:$4 sm:$0xff]   ;;  %v3490_v11 = vld [vmem:[%s4374_s13 + $0x504] ss:$16 sps:$4 sm:$0xff]  }
  0xef   : > { %2544 = vmatprep.subr.bf16.mxu1 %v3409_v12  ;;  %2533 = vmatprep.mubr.bf16.mxu0 %v4491_v37  ;;  %v3493_v12 = vld [vmem:[%s4374_s13 + $0x704] ss:$16 sps:$4 sm:$0xff]  }
  0xf0   : > { %2574 = vmatprep.mubr.bf16.mxu1 %v4495_v38 }
  0xf1   : > { %2504 = vmatpush1.bf16.msra.mxu0 %v3404_v13  ;;  %v3488_v13 = vld [vmem:[%s4374_s13 + $0x500] ss:$16 sps:$4 sm:$0xff]  }
  0xf2   : > { %2545 = vmatpush1.bf16.msra.mxu1 %v3407_v14  ;;  %2505 = vmatprep.subr.bf16.mxu0 %v3412_v15  ;;  %v3491_v14 = vld [vmem:[%s4374_s13 + $0x700] ss:$16 sps:$4 sm:$0xff]   ;;  %v3500_v15 = vld [vmem:[%s4374_s13 + $0xec] ss:$16 sps:$4 sm:$0xff]  }
  0xf3   : > { %2546 = vmatprep.subr.bf16.mxu1 %v3415_v16  ;;  %v3503_v16 = vld [vmem:[%s4374_s13 + $0x2ec] ss:$16 sps:$4 sm:$0xff]  }
  0xf5   : > { %2506 = vmatpush1.bf16.msra.mxu0 %v3410_v17  ;;  %v4539_v17 = vcombine.low %v4482_v33, %v4482_v33  ;;  %v3522_v33 = vld [vmem:[%s4374_s13 + $0x68] ss:$16 sps:$4 sm:$0xff]  }
  0xf6   : > { %2547 = vmatpush1.bf16.msra.mxu1 %v3413_v18  ;;  %2507 = vmatprep.subr.bf16.mxu0 %v3418_v19  ;;  %v4543_v18 = vcombine.low %v4485_v34, %v4485_v34  ;;  %v3498_v19 = vld [vmem:[%s4374_s13 + $0xe8] ss:$16 sps:$4 sm:$0xff]  }
  0xf7   : > { %2548 = vmatprep.subr.bf16.mxu1 %v3421_v20  ;;  %v3501_v20 = vld [vmem:[%s4374_s13 + $0x2e8] ss:$16 sps:$4 sm:$0xff]  }
  0xf8   : > { %v3525_v34 = vld [vmem:[%s4374_s13 + $0x268] ss:$16 sps:$4 sm:$0xff]  }
  0xf9   : > { %2508 = vmatpush1.bf16.msra.mxu0 %v3416_v21  ;;  %v3506_v21 = vld [vmem:[%s4374_s13 + $0xcc] ss:$16 sps:$4 sm:$0xff]  }
  0xfa   : > { %2549 = vmatpush1.bf16.msra.mxu1 %v3419_v22  ;;  %2509 = vmatprep.subr.bf16.mxu0 %v3424_v23  ;;  %v3509_v22 = vld [vmem:[%s4374_s13 + $0x2cc] ss:$16 sps:$4 sm:$0xff]   ;;  %v3504_v23 = vld [vmem:[%s4374_s13 + $0xc8] ss:$16 sps:$4 sm:$0xff]  }
  0xfb   : > { %2550 = vmatprep.subr.bf16.mxu1 %v3427_v24  ;;  %v3507_v24 = vld [vmem:[%s4374_s13 + $0x2c8] ss:$16 sps:$4 sm:$0xff]  }
  0xfd   : > { %2510 = vmatpush1.bf16.msra.mxu0 %v3422_v25  ;;  %v3512_v25 = vld [vmem:[%s4374_s13 + $0xac] ss:$16 sps:$4 sm:$0xff]  }
  0xfe   : > { %2551 = vmatpush1.bf16.msra.mxu1 %v3425_v26  ;;  %2511 = vmatprep.subr.bf16.mxu0 %v3430_v27  ;;  %v3515_v26 = vld [vmem:[%s4374_s13 + $0x2ac] ss:$16 sps:$4 sm:$0xff]   ;;  %v3510_v27 = vld [vmem:[%s4374_s13 + $0xa8] ss:$16 sps:$4 sm:$0xff]  }
  0xff   : > { %2552 = vmatprep.subr.bf16.mxu1 %v3433_v28  ;;  %v3513_v28 = vld [vmem:[%s4374_s13 + $0x2a8] ss:$16 sps:$4 sm:$0xff]  }
 0x101   : > { %2512 = vmatpush1.bf16.msra.mxu0 %v3428_v29  ;;  %v3518_v29 = vld [vmem:[%s4374_s13 + $0x8c] ss:$16 sps:$4 sm:$0xff]  }
 0x102   : > { %2553 = vmatpush1.bf16.msra.mxu1 %v3431_v30  ;;  %2513 = vmatprep.subr.bf16.mxu0 %v3436_v31  ;;  %v3521_v30 = vld [vmem:[%s4374_s13 + $0x28c] ss:$16 sps:$4 sm:$0xff]   ;;  %v3516_v31 = vld [vmem:[%s4374_s13 + $0x88] ss:$16 sps:$4 sm:$0xff]  }
 0x103   : > { %2554 = vmatprep.subr.bf16.mxu1 %v3439_v32  ;;  %v3519_v32 = vld [vmem:[%s4374_s13 + $0x288] ss:$16 sps:$4 sm:$0xff]  }
 0x105   : > { %2514 = vmatpush1.bf16.msra.mxu0 %v3434_v35  ;;  %v3530_v35 = vld [vmem:[%s4374_s13 + $0x4c] ss:$16 sps:$4 sm:$0xff]  }
 0x106   : > { %2555 = vmatpush1.bf16.msra.mxu1 %v3437_v36  ;;  %2515 = vmatprep.subr.bf16.mxu0 %v3442_v39  ;;  %v3533_v36 = vld [vmem:[%s4374_s13 + $0x24c] ss:$16 sps:$4 sm:$0xff]   ;;  %v3528_v39 = vld [vmem:[%s4374_s13 + $0x48] ss:$16 sps:$4 sm:$0xff]  }
 0x107   : > { %2556 = vmatprep.subr.bf16.mxu1 %v3445_v40  ;;  %v3531_v40 = vld [vmem:[%s4374_s13 + $0x248] ss:$16 sps:$4 sm:$0xff]  }
 0x109   : > { %2516 = vmatpush1.bf16.msra.mxu0 %v3440_v41  ;;  %v3536_v41 = vld [vmem:[%s4374_s13 + $0x2c] ss:$16 sps:$4 sm:$0xff]  }
 0x10a   : > { %2557 = vmatpush1.bf16.msra.mxu1 %v3443_v42  ;;  %2517 = vmatprep.subr.bf16.mxu0 %v3448_v43  ;;  %v3539_v42 = vld [vmem:[%s4374_s13 + $0x22c] ss:$16 sps:$4 sm:$0xff]   ;;  %v3534_v43 = vld [vmem:[%s4374_s13 + $0x28] ss:$16 sps:$4 sm:$0xff]  }
 0x10b   : > { %2558 = vmatprep.subr.bf16.mxu1 %v3451_v44  ;;  %v3537_v44 = vld [vmem:[%s4374_s13 + $0x228] ss:$16 sps:$4 sm:$0xff]  }
 0x10d   : > { %2518 = vmatpush2.bf16.msra.mxu0 %v3446_v45  ;;  %v3542_v45 = vld [vmem:[%s4374_s13 + $0xc] ss:$16 sps:$4 sm:$0xff]  }
 0x10e   : > { %2559 = vmatpush2.bf16.msra.mxu1 %v3449_v46  ;;  %2519 = vmatprep.subr.bf16.mxu0 %v3454_v47  ;;  %v3545_v46 = vld [vmem:[%s4374_s13 + $0x20c] ss:$16 sps:$4 sm:$0xff]   ;;  %v3540_v47 = vld [vmem:[%s4374_s13 + $0x8] ss:$16 sps:$4 sm:$0xff]  }
 0x10f   : > { %2560 = vmatprep.subr.bf16.mxu1 %v3457_v49  ;;  %v3543_v49 = vld [vmem:[%s4374_s13 + $0x208] ss:$16 sps:$4 sm:$0xff]  }
 0x111   : > { %2520 = vmatpush2.bf16.msra.mxu0 %v3452_v50  ;;  %v3548_v50 = vld [vmem:[%s4374_s13 + $0x1ec] ss:$16 sps:$4 sm:$0xff]  }
 0x112   : > { %2561 = vmatpush2.bf16.msra.mxu1 %v3455_v51  ;;  %2521 = vmatprep.subr.bf16.mxu0 %v3460_v53  ;;  %v3551_v51 = vld [vmem:[%s4374_s13 + $0x3ec] ss:$16 sps:$4 sm:$0xff]   ;;  %v3546_v53 = vld [vmem:[%s4374_s13 + $0x1e8] ss:$16 sps:$4 sm:$0xff]  }
 0x113   : > { %2562 = vmatprep.subr.bf16.mxu1 %v3463_v54  ;;  %v3549_v54 = vld [vmem:[%s4374_s13 + $0x3e8] ss:$16 sps:$4 sm:$0xff]  }
 0x115   : > { %2522 = vmatpush2.bf16.msra.mxu0 %v3458_v55  ;;  %v3554_v55 = vld [vmem:[%s4374_s13 + $0x1cc] ss:$16 sps:$4 sm:$0xff]  }
 0x116   : > { %2563 = vmatpush2.bf16.msra.mxu1 %v3461_v56  ;;  %2523 = vmatprep.subr.bf16.mxu0 %v3466_v57  ;;  %v3557_v56 = vld [vmem:[%s4374_s13 + $0x3cc] ss:$16 sps:$4 sm:$0xff]   ;;  %v3552_v57 = vld [vmem:[%s4374_s13 + $0x1c8] ss:$16 sps:$4 sm:$0xff]  }
 0x117   : > { %2564 = vmatprep.subr.bf16.mxu1 %v3469_v58  ;;  %v3555_v58 = vld [vmem:[%s4374_s13 + $0x3c8] ss:$16 sps:$4 sm:$0xff]  }
 0x119   : > { %2524 = vmatpush2.bf16.msra.mxu0 %v3464_v59  ;;  %v3560_v59 = vld [vmem:[%s4374_s13 + $0x1ac] ss:$16 sps:$4 sm:$0xff]  }
 0x11a   : > { %2565 = vmatpush2.bf16.msra.mxu1 %v3467_v60  ;;  %2525 = vmatprep.subr.bf16.mxu0 %v3472_v61  ;;  %v3563_v60 = vld [vmem:[%s4374_s13 + $0x3ac] ss:$16 sps:$4 sm:$0xff]   ;;  %v3558_v61 = vld [vmem:[%s4374_s13 + $0x1a8] ss:$16 sps:$4 sm:$0xff]  }
 0x11b   : > { %2566 = vmatprep.subr.bf16.mxu1 %v3475_v62  ;;  %v3561_v62 = vld [vmem:[%s4374_s13 + $0x3a8] ss:$16 sps:$4 sm:$0xff]  }
 0x11d   : > { %2526 = vmatpush2.bf16.msra.mxu0 %v3470_v63  ;;  %v3566_v63 = vld [vmem:[%s4374_s13 + $0x18c] ss:$16 sps:$4 sm:$0xff]  }
 0x11e   : > { %2567 = vmatpush2.bf16.msra.mxu1 %v3473_v0  ;;  %2527 = vmatprep.subr.bf16.mxu0 %v3478_v1  ;;  %v3569_v0 = vld [vmem:[%s4374_s13 + $0x38c] ss:$16 sps:$4 sm:$0xff]   ;;  %v3564_v1 = vld [vmem:[%s4374_s13 + $0x188] ss:$16 sps:$4 sm:$0xff]  }
 0x11f   : > { %2568 = vmatprep.subr.bf16.mxu1 %v3481_v2  ;;  %v3567_v2 = vld [vmem:[%s4374_s13 + $0x388] ss:$16 sps:$4 sm:$0xff]  }
 0x121   : > { %2528 = vmatpush2.bf16.msra.mxu0 %v3476_v3  ;;  %v3572_v3 = vld [vmem:[%s4374_s13 + $0x16c] ss:$16 sps:$4 sm:$0xff]  }
 0x122   : > { %2569 = vmatpush2.bf16.msra.mxu1 %v3479_v4  ;;  %2529 = vmatprep.subr.bf16.mxu0 %v3484_v5  ;;  %v3575_v4 = vld [vmem:[%s4374_s13 + $0x36c] ss:$16 sps:$4 sm:$0xff]   ;;  %v3570_v5 = vld [vmem:[%s4374_s13 + $0x168] ss:$16 sps:$4 sm:$0xff]  }
 0x123   : > { %2570 = vmatprep.subr.bf16.mxu1 %v3487_v6  ;;  %v3573_v6 = vld [vmem:[%s4374_s13 + $0x368] ss:$16 sps:$4 sm:$0xff]  }
 0x125   : > { %2530 = vmatpush2.bf16.msra.mxu0 %v3482_v9  ;;  %v3578_v9 = vld [vmem:[%s4374_s13 + $0x14c] ss:$16 sps:$4 sm:$0xff]  }
 0x126   : > { %2571 = vmatpush2.bf16.msra.mxu1 %v3485_v10  ;;  %2531 = vmatprep.subr.bf16.mxu0 %v3490_v11  ;;  %v3581_v10 = vld [vmem:[%s4374_s13 + $0x34c] ss:$16 sps:$4 sm:$0xff]   ;;  %v3576_v11 = vld [vmem:[%s4374_s13 + $0x148] ss:$16 sps:$4 sm:$0xff]  }
 0x127   : > { %2572 = vmatprep.subr.bf16.mxu1 %v3493_v12  ;;  %v3579_v12 = vld [vmem:[%s4374_s13 + $0x348] ss:$16 sps:$4 sm:$0xff]  }
 0x129   : > { %2532 = vmatpush2.bf16.msra.mxu0 %v3488_v13  ;;  %v3584_v13 = vld [vmem:[%s4374_s13 + $0x12c] ss:$16 sps:$4 sm:$0xff]  }
 0x12a   : > { %2573 = vmatpush2.bf16.msra.mxu1 %v3491_v14  ;;  %2583 = vmatprep.subr.bf16.mxu0 %v3500_v15  ;;  %v3587_v14 = vld [vmem:[%s4374_s13 + $0x32c] ss:$16 sps:$4 sm:$0xff]   ;;  %v3582_v15 = vld [vmem:[%s4374_s13 + $0x128] ss:$16 sps:$4 sm:$0xff]  }
 0x12b   : > { %2624 = vmatprep.subr.bf16.mxu1 %v3503_v16  ;;  %v3585_v16 = vld [vmem:[%s4374_s13 + $0x328] ss:$16 sps:$4 sm:$0xff]  }
 0x12c   : > { %2534 = vmatmul.mubr.bf16.vlgmr.msra.gmra.mxu0 %v4539_v17 }
 0x12d   : > { %2575 = vmatmul.mubr.bf16.vlgmr.msra.gmra.mxu1 %v4543_v18  ;;  %2584 = vmatpush1.bf16.msra.mxu0 %v3498_v19  ;;  %v3590_v19 = vld [vmem:[%s4374_s13 + $0x10c] ss:$16 sps:$4 sm:$0xff]  }
 0x12e   : > { %2625 = vmatpush1.bf16.msra.mxu1 %v3501_v20  ;;  %2585 = vmatprep.subr.bf16.mxu0 %v3506_v21  ;;  %v3593_v20 = vld [vmem:[%s4374_s13 + $0x30c] ss:$16 sps:$4 sm:$0xff]   ;;  %v3588_v21 = vld [vmem:[%s4374_s13 + $0x108] ss:$16 sps:$4 sm:$0xff]  }
 0x12f   : > { %2626 = vmatprep.subr.bf16.mxu1 %v3509_v22  ;;  %2615 = vmatprep.mubr.bf16.mxu0 %v4424_v48  ;;  %v3524_v48 = vld [vmem:[%s4374_s13 + $0x6c] ss:$16 sps:$4 sm:$0xff]   ;;  %v3591_v22 = vld [vmem:[%s4374_s13 + $0x308] ss:$16 sps:$4 sm:$0xff]  }
 0x130   : > { %2656 = vmatprep.mubr.bf16.mxu1 %v4429_v52  ;;  %v3527_v52 = vld [vmem:[%s4374_s13 + $0x26c] ss:$16 sps:$4 sm:$0xff]  }
 0x131   : > { %2586 = vmatpush1.bf16.msra.mxu0 %v3504_v23  ;;  %v3596_v23 = vld [vmem:[%s4374_s13 + $0x4ec] ss:$16 sps:$4 sm:$0xff]  }
 0x132   : > { %2627 = vmatpush1.bf16.msra.mxu1 %v3507_v24  ;;  %2587 = vmatprep.subr.bf16.mxu0 %v3512_v25  ;;  %v3599_v24 = vld [vmem:[%s4374_s13 + $0x6ec] ss:$16 sps:$4 sm:$0xff]   ;;  %v3594_v25 = vld [vmem:[%s4374_s13 + $0x4e8] ss:$16 sps:$4 sm:$0xff]  }
 0x133   : > { %2628 = vmatprep.subr.bf16.mxu1 %v3515_v26  ;;  %v3597_v26 = vld [vmem:[%s4374_s13 + $0x6e8] ss:$16 sps:$4 sm:$0xff]  }
 0x135   : > { %2588 = vmatpush1.bf16.msra.mxu0 %v3510_v27  ;;  %v3602_v27 = vld [vmem:[%s4374_s13 + $0x4cc] ss:$16 sps:$4 sm:$0xff]  }
 0x136   : > { %2629 = vmatpush1.bf16.msra.mxu1 %v3513_v28  ;;  %2589 = vmatprep.subr.bf16.mxu0 %v3518_v29  ;;  %v3605_v28 = vld [vmem:[%s4374_s13 + $0x6cc] ss:$16 sps:$4 sm:$0xff]   ;;  %v3600_v29 = vld [vmem:[%s4374_s13 + $0x4c8] ss:$16 sps:$4 sm:$0xff]  }
 0x137   : > { %2630 = vmatprep.subr.bf16.mxu1 %v3521_v30  ;;  %v3603_v30 = vld [vmem:[%s4374_s13 + $0x6c8] ss:$16 sps:$4 sm:$0xff]  }
 0x139   : > { %2590 = vmatpush1.bf16.msra.mxu0 %v3516_v31  ;;  %v3608_v31 = vld [vmem:[%s4374_s13 + $0x4ac] ss:$16 sps:$4 sm:$0xff]  }
 0x13a   : > { %2631 = vmatpush1.bf16.msra.mxu1 %v3519_v32  ;;  %2591 = vmatprep.subr.bf16.mxu0 %v3524_v48  ;;  %v3611_v32 = vld [vmem:[%s4374_s13 + $0x6ac] ss:$16 sps:$4 sm:$0xff]  }
 0x13b   : > { %2632 = vmatprep.subr.bf16.mxu1 %v3527_v52  ;;  %v3614_v48 = vld [vmem:[%s4374_s13 + $0x48c] ss:$16 sps:$4 sm:$0xff]  }
 0x13c   : > { %v3617_v52 = vld [vmem:[%s4374_s13 + $0x68c] ss:$16 sps:$4 sm:$0xff]  }
 0x13d   : > { %2592 = vmatpush1.bf16.msra.mxu0 %v3522_v33  ;;  %v3612_v33 = vld [vmem:[%s4374_s13 + $0x488] ss:$16 sps:$4 sm:$0xff]  }
 0x13e   : > { %2633 = vmatpush1.bf16.msra.mxu1 %v3525_v34  ;;  %2593 = vmatprep.subr.bf16.mxu0 %v3530_v35  ;;  %v3623_v34 = vld [vmem:[%s4374_s13 + $0x66c] ss:$16 sps:$4 sm:$0xff]   ;;  %v3618_v35 = vld [vmem:[%s4374_s13 + $0x468] ss:$16 sps:$4 sm:$0xff]  }
 0x13f   : > { %2634 = vmatprep.subr.bf16.mxu1 %v3533_v36  ;;  %v3621_v36 = vld [vmem:[%s4374_s13 + $0x668] ss:$16 sps:$4 sm:$0xff]  }
 0x141   : > { %2594 = vmatpush1.bf16.msra.mxu0 %v3528_v39  ;;  %v3626_v39 = vld [vmem:[%s4374_s13 + $0x44c] ss:$16 sps:$4 sm:$0xff]  }
 0x142   : > { %2635 = vmatpush1.bf16.msra.mxu1 %v3531_v40  ;;  %2595 = vmatprep.subr.bf16.mxu0 %v3536_v41  ;;  %v3629_v40 = vld [vmem:[%s4374_s13 + $0x64c] ss:$16 sps:$4 sm:$0xff]   ;;  %v3624_v41 = vld [vmem:[%s4374_s13 + $0x448] ss:$16 sps:$4 sm:$0xff]  }
 0x143   : > { %2636 = vmatprep.subr.bf16.mxu1 %v3539_v42  ;;  %v3627_v42 = vld [vmem:[%s4374_s13 + $0x648] ss:$16 sps:$4 sm:$0xff]  }
 0x145   : > { %2596 = vmatpush1.bf16.msra.mxu0 %v3534_v43  ;;  %v3632_v43 = vld [vmem:[%s4374_s13 + $0x42c] ss:$16 sps:$4 sm:$0xff]  }
 0x146   : > { %2637 = vmatpush1.bf16.msra.mxu1 %v3537_v44  ;;  %2597 = vmatprep.subr.bf16.mxu0 %v3542_v45  ;;  %v3635_v44 = vld [vmem:[%s4374_s13 + $0x62c] ss:$16 sps:$4 sm:$0xff]   ;;  %v3630_v45 = vld [vmem:[%s4374_s13 + $0x428] ss:$16 sps:$4 sm:$0xff]  }
 0x147   : > { %2638 = vmatprep.subr.bf16.mxu1 %v3545_v46  ;;  %v3633_v46 = vld [vmem:[%s4374_s13 + $0x628] ss:$16 sps:$4 sm:$0xff]  }
 0x149   : > { %2598 = vmatpush1.bf16.msra.mxu0 %v3540_v47  ;;  %v3638_v47 = vld [vmem:[%s4374_s13 + $0x40c] ss:$16 sps:$4 sm:$0xff]  }
 0x14a   : > { %2639 = vmatpush1.bf16.msra.mxu1 %v3543_v49  ;;  %2599 = vmatprep.subr.bf16.mxu0 %v3548_v50  ;;  %v3641_v49 = vld [vmem:[%s4374_s13 + $0x60c] ss:$16 sps:$4 sm:$0xff]   ;;  %v3636_v50 = vld [vmem:[%s4374_s13 + $0x408] ss:$16 sps:$4 sm:$0xff]  }
 0x14b   : > { %2640 = vmatprep.subr.bf16.mxu1 %v3551_v51  ;;  %v3639_v51 = vld [vmem:[%s4374_s13 + $0x608] ss:$16 sps:$4 sm:$0xff]  }
 0x14d   : > { %2600 = vmatpush2.bf16.msra.mxu0 %v3546_v53  ;;  %v3644_v53 = vld [vmem:[%s4374_s13 + $0x5ec] ss:$16 sps:$4 sm:$0xff]  }
 0x14e   : > { %2641 = vmatpush2.bf16.msra.mxu1 %v3549_v54  ;;  %2601 = vmatprep.subr.bf16.mxu0 %v3554_v55  ;;  %v3647_v54 = vld [vmem:[%s4374_s13 + $0x7ec] ss:$16 sps:$4 sm:$0xff]   ;;  %v3642_v55 = vld [vmem:[%s4374_s13 + $0x5e8] ss:$16 sps:$4 sm:$0xff]  }
 0x14f   : > { %2642 = vmatprep.subr.bf16.mxu1 %v3557_v56  ;;  %v3645_v56 = vld [vmem:[%s4374_s13 + $0x7e8] ss:$16 sps:$4 sm:$0xff]  }
 0x151   : > { %2602 = vmatpush2.bf16.msra.mxu0 %v3552_v57  ;;  %v3650_v57 = vld [vmem:[%s4374_s13 + $0x5cc] ss:$16 sps:$4 sm:$0xff]  }
 0x152   : > { %2643 = vmatpush2.bf16.msra.mxu1 %v3555_v58  ;;  %2603 = vmatprep.subr.bf16.mxu0 %v3560_v59  ;;  %v3653_v58 = vld [vmem:[%s4374_s13 + $0x7cc] ss:$16 sps:$4 sm:$0xff]   ;;  %v3648_v59 = vld [vmem:[%s4374_s13 + $0x5c8] ss:$16 sps:$4 sm:$0xff]  }
 0x153   : > { %2644 = vmatprep.subr.bf16.mxu1 %v3563_v60  ;;  %v3651_v60 = vld [vmem:[%s4374_s13 + $0x7c8] ss:$16 sps:$4 sm:$0xff]  }
 0x155   : > { %2604 = vmatpush2.bf16.msra.mxu0 %v3558_v61  ;;  %v3656_v61 = vld [vmem:[%s4374_s13 + $0x5ac] ss:$16 sps:$4 sm:$0xff]  }
 0x156   : > { %2645 = vmatpush2.bf16.msra.mxu1 %v3561_v62  ;;  %2605 = vmatprep.subr.bf16.mxu0 %v3566_v63  ;;  %v3659_v62 = vld [vmem:[%s4374_s13 + $0x7ac] ss:$16 sps:$4 sm:$0xff]   ;;  %v3654_v63 = vld [vmem:[%s4374_s13 + $0x5a8] ss:$16 sps:$4 sm:$0xff]  }
 0x157   : > { %2646 = vmatprep.subr.bf16.mxu1 %v3569_v0  ;;  %v3657_v0 = vld [vmem:[%s4374_s13 + $0x7a8] ss:$16 sps:$4 sm:$0xff]  }
 0x159   : > { %2606 = vmatpush2.bf16.msra.mxu0 %v3564_v1  ;;  %v3662_v1 = vld [vmem:[%s4374_s13 + $0x58c] ss:$16 sps:$4 sm:$0xff]  }
 0x15a   : > { %2647 = vmatpush2.bf16.msra.mxu1 %v3567_v2  ;;  %2607 = vmatprep.subr.bf16.mxu0 %v3572_v3  ;;  %v3665_v2 = vld [vmem:[%s4374_s13 + $0x78c] ss:$16 sps:$4 sm:$0xff]   ;;  %v3660_v3 = vld [vmem:[%s4374_s13 + $0x588] ss:$16 sps:$4 sm:$0xff]  }
 0x15b   : > { %2648 = vmatprep.subr.bf16.mxu1 %v3575_v4  ;;  %v3663_v4 = vld [vmem:[%s4374_s13 + $0x788] ss:$16 sps:$4 sm:$0xff]  }
 0x15d   : > { %2608 = vmatpush2.bf16.msra.mxu0 %v3570_v5  ;;  %v3668_v5 = vld [vmem:[%s4374_s13 + $0x56c] ss:$16 sps:$4 sm:$0xff]  }
 0x15e   : > { %2649 = vmatpush2.bf16.msra.mxu1 %v3573_v6  ;;  %2609 = vmatprep.subr.bf16.mxu0 %v3578_v9  ;;  %v3671_v6 = vld [vmem:[%s4374_s13 + $0x76c] ss:$16 sps:$4 sm:$0xff]   ;;  %v3666_v9 = vld [vmem:[%s4374_s13 + $0x568] ss:$16 sps:$4 sm:$0xff]  }
 0x15f   : > { %2650 = vmatprep.subr.bf16.mxu1 %v3581_v10  ;;  %v3669_v10 = vld [vmem:[%s4374_s13 + $0x768] ss:$16 sps:$4 sm:$0xff]  }
 0x161   : > { %2610 = vmatpush2.bf16.msra.mxu0 %v3576_v11  ;;  %v3674_v11 = vld [vmem:[%s4374_s13 + $0x54c] ss:$16 sps:$4 sm:$0xff]  }
 0x162   : > { %2651 = vmatpush2.bf16.msra.mxu1 %v3579_v12  ;;  %2611 = vmatprep.subr.bf16.mxu0 %v3584_v13  ;;  %v3677_v12 = vld [vmem:[%s4374_s13 + $0x74c] ss:$16 sps:$4 sm:$0xff]   ;;  %v3672_v13 = vld [vmem:[%s4374_s13 + $0x548] ss:$16 sps:$4 sm:$0xff]  }
 0x163   : > { %2652 = vmatprep.subr.bf16.mxu1 %v3587_v14  ;;  %v3675_v14 = vld [vmem:[%s4374_s13 + $0x748] ss:$16 sps:$4 sm:$0xff]  }
 0x165   : > { %2612 = vmatpush2.bf16.msra.mxu0 %v3582_v15  ;;  %v3680_v15 = vld [vmem:[%s4374_s13 + $0x52c] ss:$16 sps:$4 sm:$0xff]  }
 0x166   : > { %2653 = vmatpush2.bf16.msra.mxu1 %v3585_v16  ;;  %2613 = vmatprep.subr.bf16.mxu0 %v3590_v19  ;;  %v3683_v16 = vld [vmem:[%s4374_s13 + $0x72c] ss:$16 sps:$4 sm:$0xff]   ;;  %v3678_v19 = vld [vmem:[%s4374_s13 + $0x528] ss:$16 sps:$4 sm:$0xff]  }
 0x167   : > { %2654 = vmatprep.subr.bf16.mxu1 %v3593_v20  ;;  %v3681_v20 = vld [vmem:[%s4374_s13 + $0x728] ss:$16 sps:$4 sm:$0xff]  }
 0x169   : > { %2614 = vmatpush2.bf16.msra.mxu0 %v3588_v21  ;;  %v3686_v21 = vld [vmem:[%s4374_s13 + $0x50c] ss:$16 sps:$4 sm:$0xff]  }
 0x16a   : > { %2655 = vmatpush2.bf16.msra.mxu1 %v3591_v22  ;;  %2665 = vmatprep.subr.bf16.mxu0 %v3596_v23  ;;  %v3689_v22 = vld [vmem:[%s4374_s13 + $0x70c] ss:$16 sps:$4 sm:$0xff]   ;;  %v3684_v23 = vld [vmem:[%s4374_s13 + $0x508] ss:$16 sps:$4 sm:$0xff]  }
 0x16b   : > { %2706 = vmatprep.subr.bf16.mxu1 %v3599_v24  ;;  %v3687_v24 = vld [vmem:[%s4374_s13 + $0x708] ss:$16 sps:$4 sm:$0xff]  }
 0x16c   : > { %2616 = vmatmul.mubr.bf16.vlgmr.msra.gmra.mxu0 %v4451_v7  ;;  %v3606_v7 = vld [vmem:[%s4374_s13 + $0x4a8] ss:$16 sps:$4 sm:$0xff]  }
 0x16d   : > { %2657 = vmatmul.mubr.bf16.vlgmr.msra.gmra.mxu1 %v4453_v8  ;;  %2666 = vmatpush1.bf16.msra.mxu0 %v3594_v25  ;;  %v3609_v8 = vld [vmem:[%s4374_s13 + $0x6a8] ss:$16 sps:$4 sm:$0xff]  }
 0x16e   : > { %2707 = vmatpush1.bf16.msra.mxu1 %v3597_v26  ;;  %2667 = vmatprep.subr.bf16.mxu0 %v3602_v27 }
 0x16f   : > { %2708 = vmatprep.subr.bf16.mxu1 %v3605_v28  ;;  %2697 = vmatprep.mubr.bf16.mxu0 %v4491_v37  ;;  %v3615_v37 = vld [vmem:[%s4374_s13 + $0x688] ss:$16 sps:$4 sm:$0xff]  }
 0x170   : > { %2738 = vmatprep.mubr.bf16.mxu1 %v4495_v38  ;;  %v3620_v38 = vld [vmem:[%s4374_s13 + $0x46c] ss:$16 sps:$4 sm:$0xff]  }
 0x171   : > { %2668 = vmatpush1.bf16.msra.mxu0 %v3600_v29 }
 0x172   : > { %2709 = vmatpush1.bf16.msra.mxu1 %v3603_v30  ;;  %2669 = vmatprep.subr.bf16.mxu0 %v3608_v31 }
 0x173   : > { %2710 = vmatprep.subr.bf16.mxu1 %v3611_v32 }
 0x175   : > { %2670 = vmatpush1.bf16.msra.mxu0 %v3606_v7 }
 0x176   : > { %2711 = vmatpush1.bf16.msra.mxu1 %v3609_v8  ;;  %2671 = vmatprep.subr.bf16.mxu0 %v3614_v48 }
 0x177   : > { %2712 = vmatprep.subr.bf16.mxu1 %v3617_v52 }
 0x179   : > { %2672 = vmatpush1.bf16.msra.mxu0 %v3612_v33 }
 0x17a   : > { %2713 = vmatpush1.bf16.msra.mxu1 %v3615_v37  ;;  %2673 = vmatprep.subr.bf16.mxu0 %v3620_v38  ;;  %v847_v37 = vld [vmem:[#allocation2 + $0x10] sm:$0xff] }
 0x17b   : > { %2714 = vmatprep.subr.bf16.mxu1 %v3623_v34 }
 0x17d   : > { %2674 = vmatpush1.bf16.msra.mxu0 %v3618_v35 }
 0x17e   : > { %2715 = vmatpush1.bf16.msra.mxu1 %v3621_v36  ;;  %2675 = vmatprep.subr.bf16.mxu0 %v3626_v39  ;;  %v848_v39 = vld [vmem:[#allocation2] sm:$0xff] }
 0x17f   : > { %2716 = vmatprep.subr.bf16.mxu1 %v3629_v40 }
 0x181   : > { %2676 = vmatpush1.bf16.msra.mxu0 %v3624_v41 }
 0x182   : > { %2717 = vmatpush1.bf16.msra.mxu1 %v3627_v42  ;;  %2677 = vmatprep.subr.bf16.mxu0 %v3632_v43 }
 0x183   : > { %2718 = vmatprep.subr.bf16.mxu1 %v3635_v44 }
 0x185   : > { %2678 = vmatpush1.bf16.msra.mxu0 %v3630_v45 }
 0x186   : > { %2719 = vmatpush1.bf16.msra.mxu1 %v3633_v46  ;;  %2679 = vmatprep.subr.bf16.mxu0 %v3638_v47 }
 0x187   : > { %2720 = vmatprep.subr.bf16.mxu1 %v3641_v49 }
 0x189   : > { %2680 = vmatpush1.bf16.msra.mxu0 %v3636_v50 }
 0x18a   : > { %2721 = vmatpush1.bf16.msra.mxu1 %v3639_v51  ;;  %2681 = vmatprep.subr.bf16.mxu0 %v3644_v53 }
 0x18b   : > { %2722 = vmatprep.subr.bf16.mxu1 %v3647_v54 }
 0x18d   : > { %2682 = vmatpush2.bf16.msra.mxu0 %v3642_v55 }
 0x18e   : > { %2723 = vmatpush2.bf16.msra.mxu1 %v3645_v56  ;;  %2683 = vmatprep.subr.bf16.mxu0 %v3650_v57 }
 0x18f   : > { %2724 = vmatprep.subr.bf16.mxu1 %v3653_v58 }
 0x191   : > { %2684 = vmatpush2.bf16.msra.mxu0 %v3648_v59 }
 0x192   : > { %2725 = vmatpush2.bf16.msra.mxu1 %v3651_v60  ;;  %2685 = vmatprep.subr.bf16.mxu0 %v3656_v61  ;;  %v849_v60 = vld [vmem:[#allocation2 + $0x18] sm:$0xff] }
 0x193   : > { %2726 = vmatprep.subr.bf16.mxu1 %v3659_v62 }
 0x195   : > { %2686 = vmatpush2.bf16.msra.mxu0 %v3654_v63 }
 0x196   : > { %2727 = vmatpush2.bf16.msra.mxu1 %v3657_v0  ;;  %2687 = vmatprep.subr.bf16.mxu0 %v3662_v1  ;;  %v850_v1 = vld [vmem:[#allocation2 + $0x8] sm:$0xff] }
 0x197   : > { %2728 = vmatprep.subr.bf16.mxu1 %v3665_v2 }
 0x199   : > { %2688 = vmatpush2.bf16.msra.mxu0 %v3660_v3 }
 0x19a   : > { %2729 = vmatpush2.bf16.msra.mxu1 %v3663_v4  ;;  %2689 = vmatprep.subr.bf16.mxu0 %v3668_v5 }
 0x19b   : > { %2730 = vmatprep.subr.bf16.mxu1 %v3671_v6 }
 0x19d   : > { %2690 = vmatpush2.bf16.msra.mxu0 %v3666_v9 }
 0x19e   : > { %2731 = vmatpush2.bf16.msra.mxu1 %v3669_v10  ;;  %2691 = vmatprep.subr.bf16.mxu0 %v3674_v11 }
 0x19f   : > { %2732 = vmatprep.subr.bf16.mxu1 %v3677_v12 }
 0x1a1   : > { %2692 = vmatpush2.bf16.msra.mxu0 %v3672_v13 }
 0x1a2   : > { %2733 = vmatpush2.bf16.msra.mxu1 %v3675_v14  ;;  %2693 = vmatprep.subr.bf16.mxu0 %v3680_v15 }
 0x1a3   : > { %2734 = vmatprep.subr.bf16.mxu1 %v3683_v16 }
 0x1a5   : > { %2694 = vmatpush2.bf16.msra.mxu0 %v3678_v19 }
 0x1a6   : > { %2735 = vmatpush2.bf16.msra.mxu1 %v3681_v20  ;;  %2695 = vmatprep.subr.bf16.mxu0 %v3686_v21 }
 0x1a7   : > { %2736 = vmatprep.subr.bf16.mxu1 %v3689_v22 }
 0x1a9   : > { %2696 = vmatpush2.bf16.msra.mxu0 %v3684_v23 }
 0x1aa   : > { %2737 = vmatpush2.bf16.msra.mxu1 %v3687_v24 }
 0x1ac   : > { %v2453_v25 = vpop.f32.mrf.mxu0  ;;  %2698 = vmatmul.mubr.bf16.vlgmr.msra.gmra.mxu0 %v4539_v17 }
 0x1ad   : > { %v2494_v26 = vpop.f32.mrf.mxu1  ;;  %2739 = vmatmul.mubr.bf16.vlgmr.msra.gmra.mxu1 %v4543_v18 }
 0x1ae   : > { %v2455_v27 = vpop.f32.mrf.mxu0  ;;  %v2495_v7 = vadd.f32 %v2494_v26, %v2453_v25 }
 0x1af   : > { %v2496_v28 = vpop.f32.mrf.mxu1 }
 0x1b0   : > { %v2457_v29 = vpop.f32.mrf.mxu0  ;;  %v2497_v52 = vadd.f32 %v2496_v28, %v2455_v27 }
 0x1b1   : > { %v2498_v30 = vpop.f32.mrf.mxu1 }
 0x1b2   : > { %v2458_v31 = vpop.f32.mrf.mxu0 }
 0x1b3   : > { %v2499_v32 = vpop.f32.mrf.mxu1 }
 0x1ec   : > { %v2535_v8 = vpop.f32.mrf.mxu0 }
 0x1ed   : > { %v2576_v48 = vpop.f32.mrf.mxu1  ;;  %v2536_v33 = vadd.f32 %v2535_v8, %v2495_v7 }
 0x1ee   : > { %v2537_v38 = vpop.f32.mrf.mxu0 }
 0x1ef   : > { %v2578_v34 = vpop.f32.mrf.mxu1  ;;  %v2577_v35 = vadd.f32 %v2576_v48, %v2536_v33  ;;  %v2538_v36 = vadd.f32 %v2537_v38, %v2497_v52 }
 0x1f0   : > { %v2539_v17 = vpop.f32.mrf.mxu0 }
 0x1f1   : > { %v2580_v40 = vpop.f32.mrf.mxu1  ;;  %v2747_v18 = vadd.f32 %v2577_v35, %v847_v37  ;;  %v2579_v41 = vadd.f32 %v2578_v34, %v2538_v36 }
 0x1f2   : > { %v2540_v42 = vpop.f32.mrf.mxu0 }
 0x1f3   : > { %v2581_v43 = vpop.f32.mrf.mxu1  ;;  %2751 = vst [vmem:[#allocation2 + $0x10] sm:$0xff] %v2747_v18  ;;  %v2748_v44 = vadd.f32 %v2579_v41, %v848_v39 }
 0x1f5   : > { %2752 = vst [vmem:[#allocation2] sm:$0xff] %v2748_v44 }
 0x22c   : > { %v2617_v45 = vpop.f32.mrf.mxu0 }
 0x22d   : > { %v2658_v46 = vpop.f32.mrf.mxu1 }
 0x22e   : > { %v2619_v47 = vpop.f32.mrf.mxu0  ;;  %v2659_v55 = vadd.f32 %v2658_v46, %v2617_v45 }
 0x22f   : > { %v2660_v49 = vpop.f32.mrf.mxu1 }
 0x230   : > { %v2621_v50 = vpop.f32.mrf.mxu0  ;;  %v2661_v58 = vadd.f32 %v2660_v49, %v2619_v47 }
 0x231   : > { %v2662_v51 = vpop.f32.mrf.mxu1 }
 0x232   : > { %v2622_v53 = vpop.f32.mrf.mxu0 }
 0x233   : > { %v2663_v54 = vpop.f32.mrf.mxu1 }
 0x26c   : > { %v2699_v56 = vpop.f32.mrf.mxu0 }
 0x26d   : > { %v2740_v57 = vpop.f32.mrf.mxu1  ;;  %v2700_v59 = vadd.f32 %v2699_v56, %v2659_v55 }
 0x26e   : > { %v2701_v61 = vpop.f32.mrf.mxu0 }
 0x26f   : > { %v2742_v62 = vpop.f32.mrf.mxu1  ;;  %v2741_v63 = vadd.f32 %v2740_v57, %v2700_v59  ;;  %v2702_v0 = vadd.f32 %v2701_v61, %v2661_v58 }
 0x270   : > { %v2703_v2 = vpop.f32.mrf.mxu0 }
 0x271   : > { %v2744_v3 = vpop.f32.mrf.mxu1  ;;  %v2749_v4 = vadd.f32 %v2741_v63, %v849_v60  ;;  %v2743_v5 = vadd.f32 %v2742_v62, %v2702_v0  ;;  %2758 = sbr.rel (%p3237_p13) target bundleno = 646 (0x286), region = 67 }
 0x272   : > { %v2704_v6 = vpop.f32.mrf.mxu0 }
 0x273   : > { %v2745_v9 = vpop.f32.mrf.mxu1  ;;  %2753 = vst [vmem:[#allocation2 + $0x18] sm:$0xff] %v2749_v4  ;;  %v2750_v10 = vadd.f32 %v2743_v5, %v850_v1 }
 0x275   : > { %2754 = vst [vmem:[#allocation2 + $0x8] sm:$0xff] %v2750_v10 }
 0x276   : > { %v2765_v11 = vlaneseq  ;;  %v2763_v13 = vld [vmem:[%s822_s15] sm:$0xf]  ;;  %v2759_v21 = vld [vmem:[#allocation2 + $0x10] sm:$0xff] }
 0x277   : > { %v2789_v14 = vld [vmem:[%s827_s18] sm:$0xf] }
 0x278   : > { %v2766_v12 = vshrl.u32 %v2765_v11, 7  ;;  %v2760_v22 = vld [vmem:[#allocation2] sm:$0xff] }
 0x27a   : > { %v2767_v15 = vsub.s32 0, %v2766_v12  ;;  %v2771_v16 = vsub.s32 1, %v2766_v12  ;;  %v2775_v19 = vsub.s32 2, %v2766_v12  ;;  %v2779_v20 = vsub.s32 3, %v2766_v12  ;;  %v2761_v27 = vld [vmem:[#allocation2 + $0x18] sm:$0xff] }
 0x27c   : > { %v2768_v23 = vrot.slane %v2763_v13, %v2767_v15  ;;  %v2794_v24 = vrot.slane %v2789_v14, %v2767_v15  ;;  %v2772_v25 = vrot.slane %v2763_v13, %v2771_v16  ;;  %v2798_v26 = vrot.slane %v2789_v14, %v2771_v16  ;;  %v2762_v28 = vld [vmem:[#allocation2 + $0x8] sm:$0xff] }
 0x27d   : > { %v2776_v29 = vrot.slane %v2763_v13, %v2775_v19  ;;  %v2802_v30 = vrot.slane %v2789_v14, %v2775_v19  ;;  %v2780_v31 = vrot.slane %v2763_v13, %v2779_v20  ;;  %v2806_v32 = vrot.slane %v2789_v14, %v2779_v20 }
 0x27e   : > { %v2785_v7 = vmul.f32 %v2768_v23, %v2759_v21  ;;  %v2786_v8 = vmul.f32 %v2772_v25, %v2760_v22 }
 0x27f   : > { %v2787_v48 = vmul.f32 %v2776_v29, %v2761_v27  ;;  %v2788_v52 = vmul.f32 %v2780_v31, %v2762_v28 }
 0x280   : > { %v2811_v33 = vadd.f32 %v2794_v24, %v2785_v7  ;;  %v2812_v37 = vadd.f32 %v2798_v26, %v2786_v8 }
 0x281   : > { %v2813_v38 = vadd.f32 %v2802_v30, %v2787_v48  ;;  %v2814_v34 = vadd.f32 %v2806_v32, %v2788_v52 }
 0x282   : > { %v2815_v35 = vmax.f32 %v2811_v33, 0.0  ;;  %v2816_v36 = vmax.f32 %v2812_v37, 0.0 }
 0x283   : > { %v2817_v39 = vmax.f32 %v2813_v38, 0.0  ;;  %v2818_v17 = vmax.f32 %v2814_v34, 0.0 }
 0x284   : > { %2819 = vst [vmem:[%s4372_s12] sm:$0xff] %v2815_v35  ;;  %2820 = vst [vmem:[%s4372_s12 + $0x8] sm:$0xff] %v2816_v36 }
 0x285   : > { %2821 = vst [vmem:[%s4372_s12 + $0x10] sm:$0xff] %v2817_v39  ;;  %2822 = vst [vmem:[%s4372_s12 + $0x18] sm:$0xff] %v2818_v17 }
 0x286 PF: > { %s14_s21 = sadd.s32 1, %s3744_s21   ;;  %s4722_s15 = smov %s3724_s16 }
 0x287   : > { %p11_p0 = scmp.ge.s32.totalorder %s14_s21, 34   ;;  %s4723_s16 = smov %s3823_s28 }
 0x288   : > { %s4724_s17 = smov %s3736_s19  ;;  %s4725_s18 = smov %s3740_s20 }
 0x289   : > { %s4726_s19 = smov %s4729_s22  ;;  %s4727_s20 = smov %s4733_s23 }
 0x28a   :  { %13 = sbr.rel (!%p11_p0) target bundleno = 4 (0x4), region = 111 }

</bundles_post_ra>
